<compile_context>
chip_gen: v7x
topology: tpu7x:2x2x1
jax: 0.10.0
libtpu: 0.0.40
codegen_flags: <defaults>
</compile_context>

<pallas_src>
import functools

import jax
import jax.numpy as jnp
from jax import lax
from jax.experimental import pallas as pl
from jax.experimental.pallas import tpu as pltpu


def _round_up(n, m):
    return ((n + m - 1) // m) * m


def _gelu(x):
    # tanh-approximate GELU (routes the transcendental to the EUP slot).  Deviates ~1e-3 from
    # PyTorch's exact erf GELU.
    # TODO(synk): switch to approximate=False if bit-parity with torch.nn.GELU() is required.
    return jax.nn.gelu(x, approximate=True)


# ------------------------------------ fused kernel ------------------------------------

def encoder_kernel(x_hbm, w1_ref, b1_ref, w2_ref, b2_ref, wr_ref, br_ref, wd_ref, bd_ref,
                   o_ref, xbuf, act_ref, copy_sem, *, depth, l_real, tile_l, halo):
    b = pl.program_id(0)
    lt = pl.program_id(1)
    rows = xbuf.shape[0]                           # tile_l + 2*halo

    # ---- fetch this (batch, L-tile)'s halo'd activation window from HBM -----------------
    row0 = pl.multiple_of(lt * tile_l, 16)         # start row in the halo-padded HBM array
    cp = pltpu.make_async_copy(x_hbm.at[b, pl.ds(row0, rows), :], xbuf, copy_sem)
    cp.start()
    cp.wait()

    x = xbuf[...].astype(jnp.float32)              # (rows, C_pad), lane-dense

    # Rows whose original sequence index lies outside [0, l_real) must stay zero so every conv5
    # sees correct "same" zero padding (one select per conv input instead of 5 per-tap masks;
    # roll wrap-around only contaminates rows the halo budget discards anyway).
    ridx = lax.broadcasted_iota(jnp.int32, (rows, 1), 0)
    orig = lt * tile_l + ridx - halo
    valid = jnp.logical_and(orig >= 0, orig < l_real)

    def conv5(h, w_ref, base, bias):
        # 5 accumulating per-tap MXU dots; shifts are XLU sublane rolls on the f32 activation.
        acc = None
        for k in range(5):
            off = k - 2
            hk = h if off == 0 else pltpu.roll(h, (-off) % rows, axis=0)
            c = jnp.dot(hk.astype(jnp.bfloat16), w_ref[base + k],
                        preferred_element_type=jnp.float32)
            acc = c if acc is None else acc + c
        return acc + bias

    def block_step(d, h):
        base = d * 5
        h1 = _gelu(conv5(h, w1_ref, base, b1_ref[d]))
        h1 = jnp.where(valid, h1, 0.0)             # keep the zero-invariant for the next conv5
        h2 = _gelu(conv5(h1, w2_ref, base, b2_ref[d]))
        res = jnp.dot(h.astype(jnp.bfloat16), wr_ref[d],
                      preferred_element_type=jnp.float32) + br_ref[d]
        out = _gelu(h2 + res)
        return jnp.where(valid, out, 0.0)

    if depth <= 3:                                 # static unroll for small depth
        for d in range(depth):
            x = block_step(d, x)
    else:                                          # bound vreg live ranges for larger depth
        x = lax.fori_loop(0, depth, block_step, x)

    # ---- fused Conv1d(k=2, stride=2): y[l] = x[2l] @ W0 + x[2l+1] @ W1 + b ---------------
    act_ref[...] = x[halo:halo + tile_l, :]        # central (non-halo) rows only
    x_even = act_ref[pl.ds(0, tile_l // 2, stride=2), :]
    x_odd = act_ref[pl.ds(1, tile_l // 2, stride=2), :]
    y = (jnp.dot(x_even.astype(jnp.bfloat16), wd_ref[0], preferred_element_type=jnp.float32)
         + jnp.dot(x_odd.astype(jnp.bfloat16), wd_ref[1], preferred_element_type=jnp.float32)
         + bd_ref[...])
    o_ref[0] = y.astype(o_ref.dtype)


# ------------------------------------- wrapper ----------------------------------------

def encoder_forward_pallas(x_ncl, block_params, down_params, *, l_tile=512):
    """ResUnetBasicEncoder.forward. x_ncl: (B, dim, L) -> (B, 2*dim, L//2)."""
    B, C, L = x_ncl.shape
    depth = len(block_params)
    dw, db = down_params
    Cout = dw.shape[0]

    C_pad = _round_up(C, 128)                      # lane dimension
    Cout_pad = _round_up(Cout, 128)
    halo = _round_up(4 * depth, 16)                # conv receptive-field halo per side
    TL = min(_round_up(l_tile, 16), _round_up(L, 16))      # even, sublane-aligned tile rows
    L_pad = _round_up(L, TL)
    n_lt = L_pad // TL
    Lo = L // 2
    rows = TL + 2 * halo

    # Channels-last + zero pad once (halo / tail rows are zero, so the first conv's "same"
    # padding is correct).  bf16 activations in HBM halve the input DMA.
    x = jnp.transpose(x_ncl, (0, 2, 1))
    x = jnp.pad(x, ((0, 0), (halo, halo + L_pad - L), (0, C_pad - C))).astype(jnp.bfloat16)

    def pack_conv5(w, b):
        # torch (Cout, Cin, 5) -> per-tap (C_pad, C_pad) matrices, bf16; bias (1, C_pad) f32.
        wt = jnp.transpose(w, (2, 1, 0))
        wt = jnp.pad(wt, ((0, 0), (0, C_pad - w.shape[1]), (0, C_pad - w.shape[0])))
        return wt.astype(jnp.bfloat16), jnp.pad(b, (0, C_pad - b.shape[0]))[None, :]

    def pack_1x1(w, b):
        wt = jnp.pad(jnp.transpose(w[:, :, 0]),
                     ((0, C_pad - w.shape[1]), (0, C_pad - w.shape[0])))
        return wt.astype(jnp.bfloat16), jnp.pad(b, (0, C_pad - b.shape[0]))[None, :]

    w1s, b1s, w2s, b2s, wrs, brs = [], [], [], [], [], []
    for (w1, b1, w2, b2, wr, br) in block_params:
        a, v = pack_conv5(w1, b1); w1s.append(a); b1s.append(v)
        a, v = pack_conv5(w2, b2); w2s.append(a); b2s.append(v)
        a, v = pack_1x1(wr, br); wrs.append(a); brs.append(v)
    w1s = jnp.concatenate(w1s, axis=0)             # (depth*5, C_pad, C_pad) bf16
    w2s = jnp.concatenate(w2s, axis=0)
    wrs = jnp.stack(wrs)                           # (depth, C_pad, C_pad) bf16
    b1s = jnp.stack(b1s)                           # (depth, 1, C_pad) f32
    b2s = jnp.stack(b2s)
    brs = jnp.stack(brs)

    # downsample: torch (2*dim, dim, 2) -> two (C_pad, Cout_pad) bf16 matrices (stacked).
    wd = jnp.stack([jnp.pad(jnp.transpose(dw[:, :, j]),
                            ((0, C_pad - C), (0, Cout_pad - Cout))) for j in (0, 1)]
                   ).astype(jnp.bfloat16)
    bd = jnp.pad(db, (0, Cout_pad - Cout))[None, :]

    # Explicit scoped-VMEM budget from the real footprint (default 16/32 MiB is too small for
    # realistic C/L); capped below the physical VMEM of whatever chip we are on.
    weight_bytes = 2 * (w1s.size + w2s.size + wrs.size + wd.size) \
        + 4 * (b1s.size + b2s.size + brs.size + bd.size)
    act_bytes = rows * C_pad * 6 + TL * C_pad * 4 + 2 * (TL // 2) * Cout_pad * 4
    tmp_bytes = 8 * rows * C_pad * 4
    try:
        vmem_cap = pltpu.get_tpu_info().vmem_capacity_bytes
    except Exception:
        vmem_cap = 64 * 2 ** 20
    vmem_limit = int(min(0.85 * vmem_cap,
                         max(32 * 2 ** 20, 1.25 * (2 * weight_bytes + act_bytes + tmp_bytes))))

    kernel = functools.partial(encoder_kernel, depth=depth, l_real=L, tile_l=TL, halo=halo)
    args = (x, w1s, b1s, w2s, b2s, wrs, brs, wd, bd)

    def build(single_buffer_weights):
        def const_spec(a):
            zeros = (0,) * a.ndim
            kw = {"pipeline_mode": pl.Buffered(1)} if single_buffer_weights else {}
            return pl.BlockSpec(a.shape, lambda bi, li: zeros, **kw)

        return pl.pallas_call(
            kernel,
            out_shape=jax.ShapeDtypeStruct((B, L_pad // 2, Cout_pad), x_ncl.dtype),
            grid=(B, n_lt),
            in_specs=[pl.BlockSpec(memory_space=pl.ANY)]        # x stays in HBM, manual halo DMA
                     + [const_spec(a) for a in args[1:]],       # weights: whole-array, constant
            out_specs=pl.BlockSpec((1, TL // 2, Cout_pad), lambda bi, li: (bi, li, 0)),
            scratch_shapes=[pltpu.VMEM((rows, C_pad), jnp.bfloat16),   # halo'd x tile
                            pltpu.VMEM((TL, C_pad), jnp.float32),      # downsample staging
                            pltpu.SemaphoreType.DMA(())],
            compiler_params=pltpu.CompilerParams(
                dimension_semantics=("parallel", "parallel"),
                vmem_limit_bytes=vmem_limit),
        )

    try:
        out = build(True)(*args)        # weights single-buffered (constant index_map over grid)
    except Exception:
        out = build(False)(*args)       # fallback: default double-buffering

    # strip channel/length padding, return PyTorch NCL layout
    return jnp.transpose(out[:, :Lo, :Cout], (0, 2, 1))


# ------------------------- pure-JAX reference (for verification) -------------------------

def _torch_conv1d_ref(x_ncl, w, b, stride=1, padding=0):
    out = lax.conv_general_dilated(
        x_ncl, w, window_strides=(stride,), padding=[(padding, padding)],
        dimension_numbers=("NCH", "OIH", "NCH"))
    return out + b[None, :, None]


def encoder_forward_ref(x_ncl, block_params, down_params):
    gelu = lambda t: jax.nn.gelu(t, approximate=False)     # PyTorch exact erf GELU, f32
    x = x_ncl
    for (w1, b1, w2, b2, wr, br) in block_params:
        out = gelu(_torch_conv1d_ref(x, w1, b1, padding=2))
        out = gelu(_torch_conv1d_ref(out, w2, b2, padding=2))
        residual = _torch_conv1d_ref(x, wr, br)
        x = gelu(out + residual)
    dw, db = down_params
    return _torch_conv1d_ref(x, dw, db, stride=2, padding=0)


# ------------------------------------- main ------------------------------------------

if __name__ == "__main__":

    def init_conv(key, cout, cin, k):
        kw, kb = jax.random.split(key)
        scale = 1.0 / jnp.sqrt(cin * k)
        w = jax.random.uniform(kw, (cout, cin, k), jnp.float32, -scale, scale)
        b = jax.random.uniform(kb, (cout,), jnp.float32, -scale, scale)
        return w, b

    def make_inputs(key, B, dim, L, depth):
        keys = jax.random.split(key, 3 * depth + 2)
        blocks = []
        for i in range(depth):
            w1, b1 = init_conv(keys[3 * i + 0], dim, dim, 5)
            w2, b2 = init_conv(keys[3 * i + 1], dim, dim, 5)
            wr, br = init_conv(keys[3 * i + 2], dim, dim, 1)
            blocks.append((w1, b1, w2, b2, wr, br))
        dw, db = init_conv(keys[3 * depth], 2 * dim, dim, 2)
        x = jax.random.normal(keys[-1], (B, dim, L), jnp.float32)
        return x, blocks, (dw, db)

    # Config 1: single L-tile, statically unrolled depth loop.
    # Config 2: multi L-tile halo path + lax.fori_loop depth loop (depth > 3).
    for (B, dim, L, depth, l_tile) in [(2, 4, 16, 2, 512), (1, 8, 48, 4, 16)]:
        x, blocks, down = make_inputs(jax.random.PRNGKey(0), B, dim, L, depth)
        out = jax.block_until_ready(encoder_forward_pallas(x, blocks, down, l_tile=l_tile))
        ref = encoder_forward_ref(x, blocks, down)
        assert out.shape == (B, 2 * dim, L // 2), out.shape
        err = float(jnp.max(jnp.abs(out - ref)))
        # bf16 MXU operands + tanh GELU => ~1e-2-level deviation vs. the exact-f32 reference.
        assert jnp.allclose(out, ref, atol=5e-2, rtol=5e-2), (B, dim, L, depth, err)

    print("KERNEL_OK")
</pallas_src>

<mosaic_0001>
module attributes {stable_mosaic.version = 11 : i64} {
  func.func @encoder_kernel(%arg0: i32, %arg1: i32, %arg2: memref<2x48x128xbf16, #tpu.memory_space<any>>, %arg3: memref<10x128x128xbf16, #tpu.memory_space<vmem>>, %arg4: memref<2x1x128xf32, #tpu.memory_space<vmem>>, %arg5: memref<10x128x128xbf16, #tpu.memory_space<vmem>>, %arg6: memref<2x1x128xf32, #tpu.memory_space<vmem>>, %arg7: memref<2x128x128xbf16, #tpu.memory_space<vmem>>, %arg8: memref<2x1x128xf32, #tpu.memory_space<vmem>>, %arg9: memref<2x128x128xbf16, #tpu.memory_space<vmem>>, %arg10: memref<1x128xf32, #tpu.memory_space<vmem>>, %arg11: memref<1x8x128xf32, #tpu.memory_space<vmem>>, %arg12: memref<48x128xbf16, #tpu.memory_space<vmem>>, %arg13: memref<16x128xf32, #tpu.memory_space<vmem>>, %arg14: memref<!tpu.dma_semaphore, #tpu.memory_space<semaphore_mem>>) attributes {dimension_semantics = [#tpu.dimension_semantics<parallel>, #tpu.dimension_semantics<parallel>], iteration_bounds = array<i64: 2, 1>, scalar_prefetch = 0 : i64, scratch_operands = 3 : i64, tpu.core_type = #tpu.core_type<tc>, window_params = [{}, {pipeline_mode = #tpu.pipeline_mode<synchronous>, transform_indices = @transform_1, window_bounds = array<i64: 10, 128, 128>}, {pipeline_mode = #tpu.pipeline_mode<synchronous>, transform_indices = @transform_2, window_bounds = array<i64: 2, 1, 128>}, {pipeline_mode = #tpu.pipeline_mode<synchronous>, transform_indices = @transform_3, window_bounds = array<i64: 10, 128, 128>}, {pipeline_mode = #tpu.pipeline_mode<synchronous>, transform_indices = @transform_4, window_bounds = array<i64: 2, 1, 128>}, {pipeline_mode = #tpu.pipeline_mode<synchronous>, transform_indices = @transform_5, window_bounds = array<i64: 2, 128, 128>}, {pipeline_mode = #tpu.pipeline_mode<synchronous>, transform_indices = @transform_6, window_bounds = array<i64: 2, 1, 128>}, {pipeline_mode = #tpu.pipeline_mode<synchronous>, transform_indices = @transform_7, window_bounds = array<i64: 2, 128, 128>}, {pipeline_mode = #tpu.pipeline_mode<synchronous>, transform_indices = @transform_8, window_bounds = array<i64: 1, 128>}, {transform_indices = @transform_9, window_bounds = array<i64: 1, 8, 128>}]} {
    %c16_i32 = arith.constant 16 : i32
    %0 = arith.muli %arg1, %c16_i32 : i32
    %1 = tpu.assume_multiple %0, 16 : i32
    %c0_i32 = arith.constant 0 : i32
    %2 = tpu.memref_slice %arg2[%arg0, %1, %c0_i32] : memref<2x48x128xbf16, #tpu.memory_space<any>> -> memref<1x48x128xbf16, #tpu.memory_space<any>>
    %3 = tpu.memref_squeeze %2 : memref<1x48x128xbf16, #tpu.memory_space<any>> -> memref<48x128xbf16, #tpu.memory_space<any>>
    tpu.enqueue_dma source(%3 : memref<48x128xbf16, #tpu.memory_space<any>>) target(%arg12 : memref<48x128xbf16, #tpu.memory_space<vmem>>) target_semaphore(%arg14 : memref<!tpu.dma_semaphore, #tpu.memory_space<semaphore_mem>>)
    %c0_i32_0 = arith.constant 0 : i32
    %4 = tpu.memref_slice %arg2[%arg0, %1, %c0_i32_0] : memref<2x48x128xbf16, #tpu.memory_space<any>> -> memref<1x48x128xbf16, #tpu.memory_space<any>>
    %5 = tpu.memref_squeeze %4 : memref<1x48x128xbf16, #tpu.memory_space<any>> -> memref<48x128xbf16, #tpu.memory_space<any>>
    tpu.wait_dma2 semaphore(%arg14 : memref<!tpu.dma_semaphore, #tpu.memory_space<semaphore_mem>>) src(%5 : memref<48x128xbf16, #tpu.memory_space<any>>) dst(%arg12 : memref<48x128xbf16, #tpu.memory_space<vmem>>)
    %c0 = arith.constant 0 : index
    %c0_1 = arith.constant 0 : index
    %6 = vector.load %arg12[%c0, %c0_1] : memref<48x128xbf16, #tpu.memory_space<vmem>>, vector<48x128xbf16>
    %7 = arith.extf %6 : vector<48x128xbf16> to vector<48x128xf32>
    %8 = tpu.iota {dimensions = array<i32: 0>} : vector<48x1xi32>
    %c16_i32_2 = arith.constant 16 : i32
    %9 = arith.muli %arg1, %c16_i32_2 : i32
    %10 = vector.broadcast %9 : i32 to vector<48x1xi32>
    %11 = arith.addi %10, %8 : vector<48x1xi32>
    %c16_i32_3 = arith.constant 16 : i32
    %12 = vector.broadcast %c16_i32_3 : i32 to vector<48x1xi32>
    %13 = arith.subi %11, %12 : vector<48x1xi32>
    %c0_i32_4 = arith.constant 0 : i32
    %14 = vector.broadcast %c0_i32_4 : i32 to vector<48x1xi32>
    %15 = arith.cmpi sge, %13, %14 : vector<48x1xi32>
    %c16_i32_5 = arith.constant 16 : i32
    %16 = vector.broadcast %c16_i32_5 : i32 to vector<48x1xi32>
    %17 = arith.cmpi slt, %13, %16 : vector<48x1xi32>
    %18 = arith.andi %15, %17 : vector<48x1xi1>
    %c0_6 = arith.constant 0 : index
    %c0_7 = arith.constant 0 : index
    %c0_8 = arith.constant 0 : index
    %19 = vector.load %arg4[%c0_6, %c0_7, %c0_8] : memref<2x1x128xf32, #tpu.memory_space<vmem>>, vector<1x1x128xf32>
    %20 = vector.shape_cast %19 : vector<1x1x128xf32> to vector<1x128xf32>
    %c2_i32 = arith.constant 2 : i32
    %21 = tpu.dynamic_rotate %7 by %c2_i32 dim 0 : vector<48x128xf32>, i32 -> vector<48x128xf32>
    %22 = arith.truncf %21 : vector<48x128xf32> to vector<48x128xbf16>
    %c0_9 = arith.constant 0 : index
    %c0_10 = arith.constant 0 : index
    %c0_11 = arith.constant 0 : index
    %23 = vector.load %arg3[%c0_9, %c0_10, %c0_11] : memref<10x128x128xbf16, #tpu.memory_space<vmem>>, vector<1x128x128xbf16>
    %24 = vector.shape_cast %23 : vector<1x128x128xbf16> to vector<128x128xbf16>
    %cst = arith.constant dense<0.000000e+00> : vector<48x128xf32>
    %25 = tpu.matmul %22, %24, %cst {dimension_numbers = #tpu.dot_dimension_numbers<[1], [0], [0], [1], [0, 0, 1, 1], [], []>} : vector<48x128xbf16>, vector<128x128xbf16>, vector<48x128xf32> -> vector<48x128xf32>
    %c1_i32 = arith.constant 1 : i32
    %26 = tpu.dynamic_rotate %7 by %c1_i32 dim 0 : vector<48x128xf32>, i32 -> vector<48x128xf32>
    %27 = arith.truncf %26 : vector<48x128xf32> to vector<48x128xbf16>
    %c1 = arith.constant 1 : index
    %c0_12 = arith.constant 0 : index
    %c0_13 = arith.constant 0 : index
    %28 = vector.load %arg3[%c1, %c0_12, %c0_13] : memref<10x128x128xbf16, #tpu.memory_space<vmem>>, vector<1x128x128xbf16>
    %29 = vector.shape_cast %28 : vector<1x128x128xbf16> to vector<128x128xbf16>
    %cst_14 = arith.constant dense<0.000000e+00> : vector<48x128xf32>
    %30 = tpu.matmul %27, %29, %cst_14 {dimension_numbers = #tpu.dot_dimension_numbers<[1], [0], [0], [1], [0, 0, 1, 1], [], []>} : vector<48x128xbf16>, vector<128x128xbf16>, vector<48x128xf32> -> vector<48x128xf32>
    %31 = arith.addf %25, %30 : vector<48x128xf32>
    %32 = arith.truncf %7 : vector<48x128xf32> to vector<48x128xbf16>
    %c2 = arith.constant 2 : index
    %c0_15 = arith.constant 0 : index
    %c0_16 = arith.constant 0 : index
    %33 = vector.load %arg3[%c2, %c0_15, %c0_16] : memref<10x128x128xbf16, #tpu.memory_space<vmem>>, vector<1x128x128xbf16>
    %34 = vector.shape_cast %33 : vector<1x128x128xbf16> to vector<128x128xbf16>
    %cst_17 = arith.constant dense<0.000000e+00> : vector<48x128xf32>
    %35 = tpu.matmul %32, %34, %cst_17 {dimension_numbers = #tpu.dot_dimension_numbers<[1], [0], [0], [1], [0, 0, 1, 1], [], []>} : vector<48x128xbf16>, vector<128x128xbf16>, vector<48x128xf32> -> vector<48x128xf32>
    %36 = arith.addf %31, %35 : vector<48x128xf32>
    %c47_i32 = arith.constant 47 : i32
    %37 = tpu.dynamic_rotate %7 by %c47_i32 dim 0 : vector<48x128xf32>, i32 -> vector<48x128xf32>
    %38 = arith.truncf %37 : vector<48x128xf32> to vector<48x128xbf16>
    %c3 = arith.constant 3 : index
    %c0_18 = arith.constant 0 : index
    %c0_19 = arith.constant 0 : index
    %39 = vector.load %arg3[%c3, %c0_18, %c0_19] : memref<10x128x128xbf16, #tpu.memory_space<vmem>>, vector<1x128x128xbf16>
    %40 = vector.shape_cast %39 : vector<1x128x128xbf16> to vector<128x128xbf16>
    %cst_20 = arith.constant dense<0.000000e+00> : vector<48x128xf32>
    %41 = tpu.matmul %38, %40, %cst_20 {dimension_numbers = #tpu.dot_dimension_numbers<[1], [0], [0], [1], [0, 0, 1, 1], [], []>} : vector<48x128xbf16>, vector<128x128xbf16>, vector<48x128xf32> -> vector<48x128xf32>
    %42 = arith.addf %36, %41 : vector<48x128xf32>
    %c46_i32 = arith.constant 46 : i32
    %43 = tpu.dynamic_rotate %7 by %c46_i32 dim 0 : vector<48x128xf32>, i32 -> vector<48x128xf32>
    %44 = arith.truncf %43 : vector<48x128xf32> to vector<48x128xbf16>
    %c4 = arith.constant 4 : index
    %c0_21 = arith.constant 0 : index
    %c0_22 = arith.constant 0 : index
    %45 = vector.load %arg3[%c4, %c0_21, %c0_22] : memref<10x128x128xbf16, #tpu.memory_space<vmem>>, vector<1x128x128xbf16>
    %46 = vector.shape_cast %45 : vector<1x128x128xbf16> to vector<128x128xbf16>
    %cst_23 = arith.constant dense<0.000000e+00> : vector<48x128xf32>
    %47 = tpu.matmul %44, %46, %cst_23 {dimension_numbers = #tpu.dot_dimension_numbers<[1], [0], [0], [1], [0, 0, 1, 1], [], []>} : vector<48x128xbf16>, vector<128x128xbf16>, vector<48x128xf32> -> vector<48x128xf32>
    %48 = arith.addf %42, %47 : vector<48x128xf32>
    %49 = vector.broadcast %20 : vector<1x128xf32> to vector<48x128xf32>
    %50 = arith.addf %48, %49 : vector<48x128xf32>
    %51 = arith.mulf %50, %50 : vector<48x128xf32>
    %52 = arith.mulf %50, %51 : vector<48x128xf32>
    %cst_24 = arith.constant 4.471500e-02 : f32
    %53 = vector.broadcast %cst_24 : f32 to vector<48x128xf32>
    %54 = arith.mulf %53, %52 : vector<48x128xf32>
    %55 = arith.addf %50, %54 : vector<48x128xf32>
    %cst_25 = arith.constant 0.797884583 : f32
    %56 = vector.broadcast %cst_25 : f32 to vector<48x128xf32>
    %57 = arith.mulf %56, %55 : vector<48x128xf32>
    %58 = math.tanh %57 : vector<48x128xf32>
    %cst_26 = arith.constant 1.000000e+00 : f32
    %59 = vector.broadcast %cst_26 : f32 to vector<48x128xf32>
    %60 = arith.addf %59, %58 : vector<48x128xf32>
    %cst_27 = arith.constant 5.000000e-01 : f32
    %61 = vector.broadcast %cst_27 : f32 to vector<48x128xf32>
    %62 = arith.mulf %61, %60 : vector<48x128xf32>
    %63 = arith.mulf %50, %62 : vector<48x128xf32>
    %cst_28 = arith.constant 0.000000e+00 : f32
    %64 = vector.shape_cast %18 : vector<48x1xi1> to vector<48x1xi1>
    %65 = vector.broadcast %64 : vector<48x1xi1> to vector<48x128xi1>
    %66 = vector.broadcast %cst_28 : f32 to vector<48x128xf32>
    %67 = arith.select %65, %63, %66 : vector<48x128xi1>, vector<48x128xf32>
    %c0_29 = arith.constant 0 : index
    %c0_30 = arith.constant 0 : index
    %c0_31 = arith.constant 0 : index
    %68 = vector.load %arg6[%c0_29, %c0_30, %c0_31] : memref<2x1x128xf32, #tpu.memory_space<vmem>>, vector<1x1x128xf32>
    %69 = vector.shape_cast %68 : vector<1x1x128xf32> to vector<1x128xf32>
    %c2_i32_32 = arith.constant 2 : i32
    %70 = tpu.dynamic_rotate %67 by %c2_i32_32 dim 0 : vector<48x128xf32>, i32 -> vector<48x128xf32>
    %71 = arith.truncf %70 : vector<48x128xf32> to vector<48x128xbf16>
    %c0_33 = arith.constant 0 : index
    %c0_34 = arith.constant 0 : index
    %c0_35 = arith.constant 0 : index
    %72 = vector.load %arg5[%c0_33, %c0_34, %c0_35] : memref<10x128x128xbf16, #tpu.memory_space<vmem>>, vector<1x128x128xbf16>
    %73 = vector.shape_cast %72 : vector<1x128x128xbf16> to vector<128x128xbf16>
    %cst_36 = arith.constant dense<0.000000e+00> : vector<48x128xf32>
    %74 = tpu.matmul %71, %73, %cst_36 {dimension_numbers = #tpu.dot_dimension_numbers<[1], [0], [0], [1], [0, 0, 1, 1], [], []>} : vector<48x128xbf16>, vector<128x128xbf16>, vector<48x128xf32> -> vector<48x128xf32>
    %c1_i32_37 = arith.constant 1 : i32
    %75 = tpu.dynamic_rotate %67 by %c1_i32_37 dim 0 : vector<48x128xf32>, i32 -> vector<48x128xf32>
    %76 = arith.truncf %75 : vector<48x128xf32> to vector<48x128xbf16>
    %c1_38 = arith.constant 1 : index
    %c0_39 = arith.constant 0 : index
    %c0_40 = arith.constant 0 : index
    %77 = vector.load %arg5[%c1_38, %c0_39, %c0_40] : memref<10x128x128xbf16, #tpu.memory_space<vmem>>, vector<1x128x128xbf16>
    %78 = vector.shape_cast %77 : vector<1x128x128xbf16> to vector<128x128xbf16>
    %cst_41 = arith.constant dense<0.000000e+00> : vector<48x128xf32>
    %79 = tpu.matmul %76, %78, %cst_41 {dimension_numbers = #tpu.dot_dimension_numbers<[1], [0], [0], [1], [0, 0, 1, 1], [], []>} : vector<48x128xbf16>, vector<128x128xbf16>, vector<48x128xf32> -> vector<48x128xf32>
    %80 = arith.addf %74, %79 : vector<48x128xf32>
    %81 = arith.truncf %67 : vector<48x128xf32> to vector<48x128xbf16>
    %c2_42 = arith.constant 2 : index
    %c0_43 = arith.constant 0 : index
    %c0_44 = arith.constant 0 : index
    %82 = vector.load %arg5[%c2_42, %c0_43, %c0_44] : memref<10x128x128xbf16, #tpu.memory_space<vmem>>, vector<1x128x128xbf16>
    %83 = vector.shape_cast %82 : vector<1x128x128xbf16> to vector<128x128xbf16>
    %cst_45 = arith.constant dense<0.000000e+00> : vector<48x128xf32>
    %84 = tpu.matmul %81, %83, %cst_45 {dimension_numbers = #tpu.dot_dimension_numbers<[1], [0], [0], [1], [0, 0, 1, 1], [], []>} : vector<48x128xbf16>, vector<128x128xbf16>, vector<48x128xf32> -> vector<48x128xf32>
    %85 = arith.addf %80, %84 : vector<48x128xf32>
    %c47_i32_46 = arith.constant 47 : i32
    %86 = tpu.dynamic_rotate %67 by %c47_i32_46 dim 0 : vector<48x128xf32>, i32 -> vector<48x128xf32>
    %87 = arith.truncf %86 : vector<48x128xf32> to vector<48x128xbf16>
    %c3_47 = arith.constant 3 : index
    %c0_48 = arith.constant 0 : index
    %c0_49 = arith.constant 0 : index
    %88 = vector.load %arg5[%c3_47, %c0_48, %c0_49] : memref<10x128x128xbf16, #tpu.memory_space<vmem>>, vector<1x128x128xbf16>
    %89 = vector.shape_cast %88 : vector<1x128x128xbf16> to vector<128x128xbf16>
    %cst_50 = arith.constant dense<0.000000e+00> : vector<48x128xf32>
    %90 = tpu.matmul %87, %89, %cst_50 {dimension_numbers = #tpu.dot_dimension_numbers<[1], [0], [0], [1], [0, 0, 1, 1], [], []>} : vector<48x128xbf16>, vector<128x128xbf16>, vector<48x128xf32> -> vector<48x128xf32>
    %91 = arith.addf %85, %90 : vector<48x128xf32>
    %c46_i32_51 = arith.constant 46 : i32
    %92 = tpu.dynamic_rotate %67 by %c46_i32_51 dim 0 : vector<48x128xf32>, i32 -> vector<48x128xf32>
    %93 = arith.truncf %92 : vector<48x128xf32> to vector<48x128xbf16>
    %c4_52 = arith.constant 4 : index
    %c0_53 = arith.constant 0 : index
    %c0_54 = arith.constant 0 : index
    %94 = vector.load %arg5[%c4_52, %c0_53, %c0_54] : memref<10x128x128xbf16, #tpu.memory_space<vmem>>, vector<1x128x128xbf16>
    %95 = vector.shape_cast %94 : vector<1x128x128xbf16> to vector<128x128xbf16>
    %cst_55 = arith.constant dense<0.000000e+00> : vector<48x128xf32>
    %96 = tpu.matmul %93, %95, %cst_55 {dimension_numbers = #tpu.dot_dimension_numbers<[1], [0], [0], [1], [0, 0, 1, 1], [], []>} : vector<48x128xbf16>, vector<128x128xbf16>, vector<48x128xf32> -> vector<48x128xf32>
    %97 = arith.addf %91, %96 : vector<48x128xf32>
    %98 = vector.broadcast %69 : vector<1x128xf32> to vector<48x128xf32>
    %99 = arith.addf %97, %98 : vector<48x128xf32>
    %100 = arith.mulf %99, %99 : vector<48x128xf32>
    %101 = arith.mulf %99, %100 : vector<48x128xf32>
    %cst_56 = arith.constant 4.471500e-02 : f32
    %102 = vector.broadcast %cst_56 : f32 to vector<48x128xf32>
    %103 = arith.mulf %102, %101 : vector<48x128xf32>
    %104 = arith.addf %99, %103 : vector<48x128xf32>
    %cst_57 = arith.constant 0.797884583 : f32
    %105 = vector.broadcast %cst_57 : f32 to vector<48x128xf32>
    %106 = arith.mulf %105, %104 : vector<48x128xf32>
    %107 = math.tanh %106 : vector<48x128xf32>
    %cst_58 = arith.constant 1.000000e+00 : f32
    %108 = vector.broadcast %cst_58 : f32 to vector<48x128xf32>
    %109 = arith.addf %108, %107 : vector<48x128xf32>
    %cst_59 = arith.constant 5.000000e-01 : f32
    %110 = vector.broadcast %cst_59 : f32 to vector<48x128xf32>
    %111 = arith.mulf %110, %109 : vector<48x128xf32>
    %112 = arith.mulf %99, %111 : vector<48x128xf32>
    %113 = arith.truncf %7 : vector<48x128xf32> to vector<48x128xbf16>
    %c0_60 = arith.constant 0 : index
    %c0_61 = arith.constant 0 : index
    %c0_62 = arith.constant 0 : index
    %114 = vector.load %arg7[%c0_60, %c0_61, %c0_62] : memref<2x128x128xbf16, #tpu.memory_space<vmem>>, vector<1x128x128xbf16>
    %115 = vector.shape_cast %114 : vector<1x128x128xbf16> to vector<128x128xbf16>
    %cst_63 = arith.constant dense<0.000000e+00> : vector<48x128xf32>
    %116 = tpu.matmul %113, %115, %cst_63 {dimension_numbers = #tpu.dot_dimension_numbers<[1], [0], [0], [1], [0, 0, 1, 1], [], []>} : vector<48x128xbf16>, vector<128x128xbf16>, vector<48x128xf32> -> vector<48x128xf32>
    %c0_64 = arith.constant 0 : index
    %c0_65 = arith.constant 0 : index
    %c0_66 = arith.constant 0 : index
    %117 = vector.load %arg8[%c0_64, %c0_65, %c0_66] : memref<2x1x128xf32, #tpu.memory_space<vmem>>, vector<1x1x128xf32>
    %118 = vector.shape_cast %117 : vector<1x1x128xf32> to vector<1x128xf32>
    %119 = vector.broadcast %118 : vector<1x128xf32> to vector<48x128xf32>
    %120 = arith.addf %116, %119 : vector<48x128xf32>
    %121 = arith.addf %112, %120 : vector<48x128xf32>
    %122 = arith.mulf %121, %121 : vector<48x128xf32>
    %123 = arith.mulf %121, %122 : vector<48x128xf32>
    %cst_67 = arith.constant 4.471500e-02 : f32
    %124 = vector.broadcast %cst_67 : f32 to vector<48x128xf32>
    %125 = arith.mulf %124, %123 : vector<48x128xf32>
    %126 = arith.addf %121, %125 : vector<48x128xf32>
    %cst_68 = arith.constant 0.797884583 : f32
    %127 = vector.broadcast %cst_68 : f32 to vector<48x128xf32>
    %128 = arith.mulf %127, %126 : vector<48x128xf32>
    %129 = math.tanh %128 : vector<48x128xf32>
    %cst_69 = arith.constant 1.000000e+00 : f32
    %130 = vector.broadcast %cst_69 : f32 to vector<48x128xf32>
    %131 = arith.addf %130, %129 : vector<48x128xf32>
    %cst_70 = arith.constant 5.000000e-01 : f32
    %132 = vector.broadcast %cst_70 : f32 to vector<48x128xf32>
    %133 = arith.mulf %132, %131 : vector<48x128xf32>
    %134 = arith.mulf %121, %133 : vector<48x128xf32>
    %cst_71 = arith.constant 0.000000e+00 : f32
    %135 = vector.shape_cast %18 : vector<48x1xi1> to vector<48x1xi1>
    %136 = vector.broadcast %135 : vector<48x1xi1> to vector<48x128xi1>
    %137 = vector.broadcast %cst_71 : f32 to vector<48x128xf32>
    %138 = arith.select %136, %134, %137 : vector<48x128xi1>, vector<48x128xf32>
    %c1_72 = arith.constant 1 : index
    %c0_73 = arith.constant 0 : index
    %c0_74 = arith.constant 0 : index
    %139 = vector.load %arg4[%c1_72, %c0_73, %c0_74] : memref<2x1x128xf32, #tpu.memory_space<vmem>>, vector<1x1x128xf32>
    %140 = vector.shape_cast %139 : vector<1x1x128xf32> to vector<1x128xf32>
    %c2_i32_75 = arith.constant 2 : i32
    %141 = tpu.dynamic_rotate %138 by %c2_i32_75 dim 0 : vector<48x128xf32>, i32 -> vector<48x128xf32>
    %142 = arith.truncf %141 : vector<48x128xf32> to vector<48x128xbf16>
    %c5 = arith.constant 5 : index
    %c0_76 = arith.constant 0 : index
    %c0_77 = arith.constant 0 : index
    %143 = vector.load %arg3[%c5, %c0_76, %c0_77] : memref<10x128x128xbf16, #tpu.memory_space<vmem>>, vector<1x128x128xbf16>
    %144 = vector.shape_cast %143 : vector<1x128x128xbf16> to vector<128x128xbf16>
    %cst_78 = arith.constant dense<0.000000e+00> : vector<48x128xf32>
    %145 = tpu.matmul %142, %144, %cst_78 {dimension_numbers = #tpu.dot_dimension_numbers<[1], [0], [0], [1], [0, 0, 1, 1], [], []>} : vector<48x128xbf16>, vector<128x128xbf16>, vector<48x128xf32> -> vector<48x128xf32>
    %c1_i32_79 = arith.constant 1 : i32
    %146 = tpu.dynamic_rotate %138 by %c1_i32_79 dim 0 : vector<48x128xf32>, i32 -> vector<48x128xf32>
    %147 = arith.truncf %146 : vector<48x128xf32> to vector<48x128xbf16>
    %c6 = arith.constant 6 : index
    %c0_80 = arith.constant 0 : index
    %c0_81 = arith.constant 0 : index
    %148 = vector.load %arg3[%c6, %c0_80, %c0_81] : memref<10x128x128xbf16, #tpu.memory_space<vmem>>, vector<1x128x128xbf16>
    %149 = vector.shape_cast %148 : vector<1x128x128xbf16> to vector<128x128xbf16>
    %cst_82 = arith.constant dense<0.000000e+00> : vector<48x128xf32>
    %150 = tpu.matmul %147, %149, %cst_82 {dimension_numbers = #tpu.dot_dimension_numbers<[1], [0], [0], [1], [0, 0, 1, 1], [], []>} : vector<48x128xbf16>, vector<128x128xbf16>, vector<48x128xf32> -> vector<48x128xf32>
    %151 = arith.addf %145, %150 : vector<48x128xf32>
    %152 = arith.truncf %138 : vector<48x128xf32> to vector<48x128xbf16>
    %c7 = arith.constant 7 : index
    %c0_83 = arith.constant 0 : index
    %c0_84 = arith.constant 0 : index
    %153 = vector.load %arg3[%c7, %c0_83, %c0_84] : memref<10x128x128xbf16, #tpu.memory_space<vmem>>, vector<1x128x128xbf16>
    %154 = vector.shape_cast %153 : vector<1x128x128xbf16> to vector<128x128xbf16>
    %cst_85 = arith.constant dense<0.000000e+00> : vector<48x128xf32>
    %155 = tpu.matmul %152, %154, %cst_85 {dimension_numbers = #tpu.dot_dimension_numbers<[1], [0], [0], [1], [0, 0, 1, 1], [], []>} : vector<48x128xbf16>, vector<128x128xbf16>, vector<48x128xf32> -> vector<48x128xf32>
    %156 = arith.addf %151, %155 : vector<48x128xf32>
    %c47_i32_86 = arith.constant 47 : i32
    %157 = tpu.dynamic_rotate %138 by %c47_i32_86 dim 0 : vector<48x128xf32>, i32 -> vector<48x128xf32>
    %158 = arith.truncf %157 : vector<48x128xf32> to vector<48x128xbf16>
    %c8 = arith.constant 8 : index
    %c0_87 = arith.constant 0 : index
    %c0_88 = arith.constant 0 : index
    %159 = vector.load %arg3[%c8, %c0_87, %c0_88] : memref<10x128x128xbf16, #tpu.memory_space<vmem>>, vector<1x128x128xbf16>
    %160 = vector.shape_cast %159 : vector<1x128x128xbf16> to vector<128x128xbf16>
    %cst_89 = arith.constant dense<0.000000e+00> : vector<48x128xf32>
    %161 = tpu.matmul %158, %160, %cst_89 {dimension_numbers = #tpu.dot_dimension_numbers<[1], [0], [0], [1], [0, 0, 1, 1], [], []>} : vector<48x128xbf16>, vector<128x128xbf16>, vector<48x128xf32> -> vector<48x128xf32>
    %162 = arith.addf %156, %161 : vector<48x128xf32>
    %c46_i32_90 = arith.constant 46 : i32
    %163 = tpu.dynamic_rotate %138 by %c46_i32_90 dim 0 : vector<48x128xf32>, i32 -> vector<48x128xf32>
    %164 = arith.truncf %163 : vector<48x128xf32> to vector<48x128xbf16>
    %c9 = arith.constant 9 : index
    %c0_91 = arith.constant 0 : index
    %c0_92 = arith.constant 0 : index
    %165 = vector.load %arg3[%c9, %c0_91, %c0_92] : memref<10x128x128xbf16, #tpu.memory_space<vmem>>, vector<1x128x128xbf16>
    %166 = vector.shape_cast %165 : vector<1x128x128xbf16> to vector<128x128xbf16>
    %cst_93 = arith.constant dense<0.000000e+00> : vector<48x128xf32>
    %167 = tpu.matmul %164, %166, %cst_93 {dimension_numbers = #tpu.dot_dimension_numbers<[1], [0], [0], [1], [0, 0, 1, 1], [], []>} : vector<48x128xbf16>, vector<128x128xbf16>, vector<48x128xf32> -> vector<48x128xf32>
    %168 = arith.addf %162, %167 : vector<48x128xf32>
    %169 = vector.broadcast %140 : vector<1x128xf32> to vector<48x128xf32>
    %170 = arith.addf %168, %169 : vector<48x128xf32>
    %171 = arith.mulf %170, %170 : vector<48x128xf32>
    %172 = arith.mulf %170, %171 : vector<48x128xf32>
    %cst_94 = arith.constant 4.471500e-02 : f32
    %173 = vector.broadcast %cst_94 : f32 to vector<48x128xf32>
    %174 = arith.mulf %173, %172 : vector<48x128xf32>
    %175 = arith.addf %170, %174 : vector<48x128xf32>
    %cst_95 = arith.constant 0.797884583 : f32
    %176 = vector.broadcast %cst_95 : f32 to vector<48x128xf32>
    %177 = arith.mulf %176, %175 : vector<48x128xf32>
    %178 = math.tanh %177 : vector<48x128xf32>
    %cst_96 = arith.constant 1.000000e+00 : f32
    %179 = vector.broadcast %cst_96 : f32 to vector<48x128xf32>
    %180 = arith.addf %179, %178 : vector<48x128xf32>
    %cst_97 = arith.constant 5.000000e-01 : f32
    %181 = vector.broadcast %cst_97 : f32 to vector<48x128xf32>
    %182 = arith.mulf %181, %180 : vector<48x128xf32>
    %183 = arith.mulf %170, %182 : vector<48x128xf32>
    %cst_98 = arith.constant 0.000000e+00 : f32
    %184 = vector.shape_cast %18 : vector<48x1xi1> to vector<48x1xi1>
    %185 = vector.broadcast %184 : vector<48x1xi1> to vector<48x128xi1>
    %186 = vector.broadcast %cst_98 : f32 to vector<48x128xf32>
    %187 = arith.select %185, %183, %186 : vector<48x128xi1>, vector<48x128xf32>
    %c1_99 = arith.constant 1 : index
    %c0_100 = arith.constant 0 : index
    %c0_101 = arith.constant 0 : index
    %188 = vector.load %arg6[%c1_99, %c0_100, %c0_101] : memref<2x1x128xf32, #tpu.memory_space<vmem>>, vector<1x1x128xf32>
    %189 = vector.shape_cast %188 : vector<1x1x128xf32> to vector<1x128xf32>
    %c2_i32_102 = arith.constant 2 : i32
    %190 = tpu.dynamic_rotate %187 by %c2_i32_102 dim 0 : vector<48x128xf32>, i32 -> vector<48x128xf32>
    %191 = arith.truncf %190 : vector<48x128xf32> to vector<48x128xbf16>
    %c5_103 = arith.constant 5 : index
    %c0_104 = arith.constant 0 : index
    %c0_105 = arith.constant 0 : index
    %192 = vector.load %arg5[%c5_103, %c0_104, %c0_105] : memref<10x128x128xbf16, #tpu.memory_space<vmem>>, vector<1x128x128xbf16>
    %193 = vector.shape_cast %192 : vector<1x128x128xbf16> to vector<128x128xbf16>
    %cst_106 = arith.constant dense<0.000000e+00> : vector<48x128xf32>
    %194 = tpu.matmul %191, %193, %cst_106 {dimension_numbers = #tpu.dot_dimension_numbers<[1], [0], [0], [1], [0, 0, 1, 1], [], []>} : vector<48x128xbf16>, vector<128x128xbf16>, vector<48x128xf32> -> vector<48x128xf32>
    %c1_i32_107 = arith.constant 1 : i32
    %195 = tpu.dynamic_rotate %187 by %c1_i32_107 dim 0 : vector<48x128xf32>, i32 -> vector<48x128xf32>
    %196 = arith.truncf %195 : vector<48x128xf32> to vector<48x128xbf16>
    %c6_108 = arith.constant 6 : index
    %c0_109 = arith.constant 0 : index
    %c0_110 = arith.constant 0 : index
    %197 = vector.load %arg5[%c6_108, %c0_109, %c0_110] : memref<10x128x128xbf16, #tpu.memory_space<vmem>>, vector<1x128x128xbf16>
    %198 = vector.shape_cast %197 : vector<1x128x128xbf16> to vector<128x128xbf16>
    %cst_111 = arith.constant dense<0.000000e+00> : vector<48x128xf32>
    %199 = tpu.matmul %196, %198, %cst_111 {dimension_numbers = #tpu.dot_dimension_numbers<[1], [0], [0], [1], [0, 0, 1, 1], [], []>} : vector<48x128xbf16>, vector<128x128xbf16>, vector<48x128xf32> -> vector<48x128xf32>
    %200 = arith.addf %194, %199 : vector<48x128xf32>
    %201 = arith.truncf %187 : vector<48x128xf32> to vector<48x128xbf16>
    %c7_112 = arith.constant 7 : index
    %c0_113 = arith.constant 0 : index
    %c0_114 = arith.constant 0 : index
    %202 = vector.load %arg5[%c7_112, %c0_113, %c0_114] : memref<10x128x128xbf16, #tpu.memory_space<vmem>>, vector<1x128x128xbf16>
    %203 = vector.shape_cast %202 : vector<1x128x128xbf16> to vector<128x128xbf16>
    %cst_115 = arith.constant dense<0.000000e+00> : vector<48x128xf32>
    %204 = tpu.matmul %201, %203, %cst_115 {dimension_numbers = #tpu.dot_dimension_numbers<[1], [0], [0], [1], [0, 0, 1, 1], [], []>} : vector<48x128xbf16>, vector<128x128xbf16>, vector<48x128xf32> -> vector<48x128xf32>
    %205 = arith.addf %200, %204 : vector<48x128xf32>
    %c47_i32_116 = arith.constant 47 : i32
    %206 = tpu.dynamic_rotate %187 by %c47_i32_116 dim 0 : vector<48x128xf32>, i32 -> vector<48x128xf32>
    %207 = arith.truncf %206 : vector<48x128xf32> to vector<48x128xbf16>
    %c8_117 = arith.constant 8 : index
    %c0_118 = arith.constant 0 : index
    %c0_119 = arith.constant 0 : index
    %208 = vector.load %arg5[%c8_117, %c0_118, %c0_119] : memref<10x128x128xbf16, #tpu.memory_space<vmem>>, vector<1x128x128xbf16>
    %209 = vector.shape_cast %208 : vector<1x128x128xbf16> to vector<128x128xbf16>
    %cst_120 = arith.constant dense<0.000000e+00> : vector<48x128xf32>
    %210 = tpu.matmul %207, %209, %cst_120 {dimension_numbers = #tpu.dot_dimension_numbers<[1], [0], [0], [1], [0, 0, 1, 1], [], []>} : vector<48x128xbf16>, vector<128x128xbf16>, vector<48x128xf32> -> vector<48x128xf32>
    %211 = arith.addf %205, %210 : vector<48x128xf32>
    %c46_i32_121 = arith.constant 46 : i32
    %212 = tpu.dynamic_rotate %187 by %c46_i32_121 dim 0 : vector<48x128xf32>, i32 -> vector<48x128xf32>
    %213 = arith.truncf %212 : vector<48x128xf32> to vector<48x128xbf16>
    %c9_122 = arith.constant 9 : index
    %c0_123 = arith.constant 0 : index
    %c0_124 = arith.constant 0 : index
    %214 = vector.load %arg5[%c9_122, %c0_123, %c0_124] : memref<10x128x128xbf16, #tpu.memory_space<vmem>>, vector<1x128x128xbf16>
    %215 = vector.shape_cast %214 : vector<1x128x128xbf16> to vector<128x128xbf16>
    %cst_125 = arith.constant dense<0.000000e+00> : vector<48x128xf32>
    %216 = tpu.matmul %213, %215, %cst_125 {dimension_numbers = #tpu.dot_dimension_numbers<[1], [0], [0], [1], [0, 0, 1, 1], [], []>} : vector<48x128xbf16>, vector<128x128xbf16>, vector<48x128xf32> -> vector<48x128xf32>
    %217 = arith.addf %211, %216 : vector<48x128xf32>
    %218 = vector.broadcast %189 : vector<1x128xf32> to vector<48x128xf32>
    %219 = arith.addf %217, %218 : vector<48x128xf32>
    %220 = arith.mulf %219, %219 : vector<48x128xf32>
    %221 = arith.mulf %219, %220 : vector<48x128xf32>
    %cst_126 = arith.constant 4.471500e-02 : f32
    %222 = vector.broadcast %cst_126 : f32 to vector<48x128xf32>
    %223 = arith.mulf %222, %221 : vector<48x128xf32>
    %224 = arith.addf %219, %223 : vector<48x128xf32>
    %cst_127 = arith.constant 0.797884583 : f32
    %225 = vector.broadcast %cst_127 : f32 to vector<48x128xf32>
    %226 = arith.mulf %225, %224 : vector<48x128xf32>
    %227 = math.tanh %226 : vector<48x128xf32>
    %cst_128 = arith.constant 1.000000e+00 : f32
    %228 = vector.broadcast %cst_128 : f32 to vector<48x128xf32>
    %229 = arith.addf %228, %227 : vector<48x128xf32>
    %cst_129 = arith.constant 5.000000e-01 : f32
    %230 = vector.broadcast %cst_129 : f32 to vector<48x128xf32>
    %231 = arith.mulf %230, %229 : vector<48x128xf32>
    %232 = arith.mulf %219, %231 : vector<48x128xf32>
    %233 = arith.truncf %138 : vector<48x128xf32> to vector<48x128xbf16>
    %c1_130 = arith.constant 1 : index
    %c0_131 = arith.constant 0 : index
    %c0_132 = arith.constant 0 : index
    %234 = vector.load %arg7[%c1_130, %c0_131, %c0_132] : memref<2x128x128xbf16, #tpu.memory_space<vmem>>, vector<1x128x128xbf16>
    %235 = vector.shape_cast %234 : vector<1x128x128xbf16> to vector<128x128xbf16>
    %cst_133 = arith.constant dense<0.000000e+00> : vector<48x128xf32>
    %236 = tpu.matmul %233, %235, %cst_133 {dimension_numbers = #tpu.dot_dimension_numbers<[1], [0], [0], [1], [0, 0, 1, 1], [], []>} : vector<48x128xbf16>, vector<128x128xbf16>, vector<48x128xf32> -> vector<48x128xf32>
    %c1_134 = arith.constant 1 : index
    %c0_135 = arith.constant 0 : index
    %c0_136 = arith.constant 0 : index
    %237 = vector.load %arg8[%c1_134, %c0_135, %c0_136] : memref<2x1x128xf32, #tpu.memory_space<vmem>>, vector<1x1x128xf32>
    %238 = vector.shape_cast %237 : vector<1x1x128xf32> to vector<1x128xf32>
    %239 = vector.broadcast %238 : vector<1x128xf32> to vector<48x128xf32>
    %240 = arith.addf %236, %239 : vector<48x128xf32>
    %241 = arith.addf %232, %240 : vector<48x128xf32>
    %242 = arith.mulf %241, %241 : vector<48x128xf32>
    %243 = arith.mulf %241, %242 : vector<48x128xf32>
    %cst_137 = arith.constant 4.471500e-02 : f32
    %244 = vector.broadcast %cst_137 : f32 to vector<48x128xf32>
    %245 = arith.mulf %244, %243 : vector<48x128xf32>
    %246 = arith.addf %241, %245 : vector<48x128xf32>
    %cst_138 = arith.constant 0.797884583 : f32
    %247 = vector.broadcast %cst_138 : f32 to vector<48x128xf32>
    %248 = arith.mulf %247, %246 : vector<48x128xf32>
    %249 = math.tanh %248 : vector<48x128xf32>
    %cst_139 = arith.constant 1.000000e+00 : f32
    %250 = vector.broadcast %cst_139 : f32 to vector<48x128xf32>
    %251 = arith.addf %250, %249 : vector<48x128xf32>
    %cst_140 = arith.constant 5.000000e-01 : f32
    %252 = vector.broadcast %cst_140 : f32 to vector<48x128xf32>
    %253 = arith.mulf %252, %251 : vector<48x128xf32>
    %254 = arith.mulf %241, %253 : vector<48x128xf32>
    %cst_141 = arith.constant 0.000000e+00 : f32
    %255 = vector.shape_cast %18 : vector<48x1xi1> to vector<48x1xi1>
    %256 = vector.broadcast %255 : vector<48x1xi1> to vector<48x128xi1>
    %257 = vector.broadcast %cst_141 : f32 to vector<48x128xf32>
    %258 = arith.select %256, %254, %257 : vector<48x128xi1>, vector<48x128xf32>
    %259 = vector.extract_strided_slice %258 {offsets = [16, 0], sizes = [16, 128], strides = [1, 1]} : vector<48x128xf32> to vector<16x128xf32>
    %c0_142 = arith.constant 0 : index
    %c0_143 = arith.constant 0 : index
    %260 = vector.load %arg13[%c0_142, %c0_143] : memref<16x128xf32, #tpu.memory_space<vmem>>, vector<16x128xf32>
    tpu.vector_store %arg13[%c0_142, %c0_143], %259 {strides = array<i32>} : memref<16x128xf32, #tpu.memory_space<vmem>>, vector<16x128xf32>,
    %c0_144 = arith.constant 0 : index
    %c0_145 = arith.constant 0 : index
    %261 = tpu.strided_load %arg13[%c0_144, %c0_145] {strides = array<i32: 2, 1>} : memref<16x128xf32, #tpu.memory_space<vmem>>, vector<8x128xf32>
    %c1_146 = arith.constant 1 : index
    %c0_147 = arith.constant 0 : index
    %262 = tpu.strided_load %arg13[%c1_146, %c0_147] {strides = array<i32: 2, 1>} : memref<16x128xf32, #tpu.memory_space<vmem>>, vector<8x128xf32>
    %263 = arith.truncf %261 : vector<8x128xf32> to vector<8x128xbf16>
    %c0_148 = arith.constant 0 : index
    %c0_149 = arith.constant 0 : index
    %c0_150 = arith.constant 0 : index
    %264 = vector.load %arg9[%c0_148, %c0_149, %c0_150] : memref<2x128x128xbf16, #tpu.memory_space<vmem>>, vector<1x128x128xbf16>
    %265 = vector.shape_cast %264 : vector<1x128x128xbf16> to vector<128x128xbf16>
    %cst_151 = arith.constant dense<0.000000e+00> : vector<8x128xf32>
    %266 = tpu.matmul %263, %265, %cst_151 {dimension_numbers = #tpu.dot_dimension_numbers<[1], [0], [0], [1], [0, 0, 1, 1], [], []>} : vector<8x128xbf16>, vector<128x128xbf16>, vector<8x128xf32> -> vector<8x128xf32>
    %267 = arith.truncf %262 : vector<8x128xf32> to vector<8x128xbf16>
    %c1_152 = arith.constant 1 : index
    %c0_153 = arith.constant 0 : index
    %c0_154 = arith.constant 0 : index
    %268 = vector.load %arg9[%c1_152, %c0_153, %c0_154] : memref<2x128x128xbf16, #tpu.memory_space<vmem>>, vector<1x128x128xbf16>
    %269 = vector.shape_cast %268 : vector<1x128x128xbf16> to vector<128x128xbf16>
    %cst_155 = arith.constant dense<0.000000e+00> : vector<8x128xf32>
    %270 = tpu.matmul %267, %269, %cst_155 {dimension_numbers = #tpu.dot_dimension_numbers<[1], [0], [0], [1], [0, 0, 1, 1], [], []>} : vector<8x128xbf16>, vector<128x128xbf16>, vector<8x128xf32> -> vector<8x128xf32>
    %271 = arith.addf %266, %270 : vector<8x128xf32>
    %c0_156 = arith.constant 0 : index
    %c0_157 = arith.constant 0 : index
    %272 = vector.load %arg10[%c0_156, %c0_157] : memref<1x128xf32, #tpu.memory_space<vmem>>, vector<1x128xf32>
    %273 = vector.broadcast %272 : vector<1x128xf32> to vector<8x128xf32>
    %274 = arith.addf %271, %273 : vector<8x128xf32>
    %c0_158 = arith.constant 0 : index
    %c0_159 = arith.constant 0 : index
    %c0_160 = arith.constant 0 : index
    %275 = vector.load %arg11[%c0_158, %c0_159, %c0_160] : memref<1x8x128xf32, #tpu.memory_space<vmem>>, vector<1x8x128xf32>
    %276 = vector.shape_cast %275 : vector<1x8x128xf32> to vector<8x128xf32>
    %277 = vector.shape_cast %274 : vector<8x128xf32> to vector<1x8x128xf32>
    tpu.vector_store %arg11[%c0_158, %c0_159, %c0_160], %277 {strides = array<i32>} : memref<1x8x128xf32, #tpu.memory_space<vmem>>, vector<1x8x128xf32>,
    return
  }
  func.func @transform_1(%arg0: i32, %arg1: i32) -> (i32, i32, i32) {
    %c0_i32 = arith.constant 0 : i32
    %c0_i32_0 = arith.constant 0 : i32
    %c0_i32_1 = arith.constant 0 : i32
    %c0_i32_2 = arith.constant 0 : i32
    return %c0_i32, %c0_i32_0, %c0_i32_1 : i32, i32, i32
  }
  func.func @transform_2(%arg0: i32, %arg1: i32) -> (i32, i32, i32) {
    %c0_i32 = arith.constant 0 : i32
    %c0_i32_0 = arith.constant 0 : i32
    %c0_i32_1 = arith.constant 0 : i32
    %c0_i32_2 = arith.constant 0 : i32
    return %c0_i32, %c0_i32_0, %c0_i32_1 : i32, i32, i32
  }
  func.func @transform_3(%arg0: i32, %arg1: i32) -> (i32, i32, i32) {
    %c0_i32 = arith.constant 0 : i32
    %c0_i32_0 = arith.constant 0 : i32
    %c0_i32_1 = arith.constant 0 : i32
    %c0_i32_2 = arith.constant 0 : i32
    return %c0_i32, %c0_i32_0, %c0_i32_1 : i32, i32, i32
  }
  func.func @transform_4(%arg0: i32, %arg1: i32) -> (i32, i32, i32) {
    %c0_i32 = arith.constant 0 : i32
    %c0_i32_0 = arith.constant 0 : i32
    %c0_i32_1 = arith.constant 0 : i32
    %c0_i32_2 = arith.constant 0 : i32
    return %c0_i32, %c0_i32_0, %c0_i32_1 : i32, i32, i32
  }
  func.func @transform_5(%arg0: i32, %arg1: i32) -> (i32, i32, i32) {
    %c0_i32 = arith.constant 0 : i32
    %c0_i32_0 = arith.constant 0 : i32
    %c0_i32_1 = arith.constant 0 : i32
    %c0_i32_2 = arith.constant 0 : i32
    return %c0_i32, %c0_i32_0, %c0_i32_1 : i32, i32, i32
  }
  func.func @transform_6(%arg0: i32, %arg1: i32) -> (i32, i32, i32) {
    %c0_i32 = arith.constant 0 : i32
    %c0_i32_0 = arith.constant 0 : i32
    %c0_i32_1 = arith.constant 0 : i32
    %c0_i32_2 = arith.constant 0 : i32
    return %c0_i32, %c0_i32_0, %c0_i32_1 : i32, i32, i32
  }
  func.func @transform_7(%arg0: i32, %arg1: i32) -> (i32, i32, i32) {
    %c0_i32 = arith.constant 0 : i32
    %c0_i32_0 = arith.constant 0 : i32
    %c0_i32_1 = arith.constant 0 : i32
    %c0_i32_2 = arith.constant 0 : i32
    return %c0_i32, %c0_i32_0, %c0_i32_1 : i32, i32, i32
  }
  func.func @transform_8(%arg0: i32, %arg1: i32) -> (i32, i32) {
    %c0_i32 = arith.constant 0 : i32
    %c0_i32_0 = arith.constant 0 : i32
    %c0_i32_1 = arith.constant 0 : i32
    return %c0_i32, %c0_i32_0 : i32, i32
  }
  func.func @transform_9(%arg0: i32, %arg1: i32) -> (i32, i32, i32) {
    %c0_i32 = arith.constant 0 : i32
    %c0_i32_0 = arith.constant 0 : i32
    return %arg0, %arg1, %c0_i32 : i32, i32, i32
  }
}

module attributes {stable_mosaic.version = 11 : i64} {
  func.func @encoder_kernel(%arg0: i32, %arg1: i32, %arg2: memref<2x48x128xbf16, #tpu.memory_space<any>>, %arg3: memref<10x128x128xbf16, #tpu.memory_space<vmem>>, %arg4: memref<2x1x128xf32, #tpu.memory_space<vmem>>, %arg5: memref<10x128x128xbf16, #tpu.memory_space<vmem>>, %arg6: memref<2x1x128xf32, #tpu.memory_space<vmem>>, %arg7: memref<2x128x128xbf16, #tpu.memory_space<vmem>>, %arg8: memref<2x1x128xf32, #tpu.memory_space<vmem>>, %arg9: memref<2x128x128xbf16, #tpu.memory_space<vmem>>, %arg10: memref<1x128xf32, #tpu.memory_space<vmem>>, %arg11: memref<1x8x128xf32, #tpu.memory_space<vmem>>, %arg12: memref<48x128xbf16, #tpu.memory_space<vmem>>, %arg13: memref<16x128xf32, #tpu.memory_space<vmem>>, %arg14: memref<!tpu.dma_semaphore, #tpu.memory_space<semaphore_mem>>) attributes {dimension_semantics = [#tpu.dimension_semantics<parallel>, #tpu.dimension_semantics<parallel>], iteration_bounds = array<i64: 2, 1>, scalar_prefetch = 0 : i64, scratch_operands = 3 : i64, tpu.core_type = #tpu.core_type<tc>, window_params = [{}, {pipeline_mode = #tpu.pipeline_mode<synchronous>, transform_indices = @transform_1, window_bounds = array<i64: 10, 128, 128>}, {pipeline_mode = #tpu.pipeline_mode<synchronous>, transform_indices = @transform_2, window_bounds = array<i64: 2, 1, 128>}, {pipeline_mode = #tpu.pipeline_mode<synchronous>, transform_indices = @transform_3, window_bounds = array<i64: 10, 128, 128>}, {pipeline_mode = #tpu.pipeline_mode<synchronous>, transform_indices = @transform_4, window_bounds = array<i64: 2, 1, 128>}, {pipeline_mode = #tpu.pipeline_mode<synchronous>, transform_indices = @transform_5, window_bounds = array<i64: 2, 128, 128>}, {pipeline_mode = #tpu.pipeline_mode<synchronous>, transform_indices = @transform_6, window_bounds = array<i64: 2, 1, 128>}, {pipeline_mode = #tpu.pipeline_mode<synchronous>, transform_indices = @transform_7, window_bounds = array<i64: 2, 128, 128>}, {pipeline_mode = #tpu.pipeline_mode<synchronous>, transform_indices = @transform_8, window_bounds = array<i64: 1, 128>}, {transform_indices = @transform_9, window_bounds = array<i64: 1, 8, 128>}]} {
    %c16_i32 = arith.constant 16 : i32
    %0 = arith.muli %arg1, %c16_i32 : i32
    %1 = tpu.assume_multiple %0, 16 : i32
    %c0_i32 = arith.constant 0 : i32
    %2 = tpu.memref_slice %arg2[%arg0, %1, %c0_i32] : memref<2x48x128xbf16, #tpu.memory_space<any>> -> memref<1x48x128xbf16, #tpu.memory_space<any>>
    %3 = tpu.memref_squeeze %2 : memref<1x48x128xbf16, #tpu.memory_space<any>> -> memref<48x128xbf16, #tpu.memory_space<any>>
    tpu.enqueue_dma source(%3 : memref<48x128xbf16, #tpu.memory_space<any>>) target(%arg12 : memref<48x128xbf16, #tpu.memory_space<vmem>>) target_semaphore(%arg14 : memref<!tpu.dma_semaphore, #tpu.memory_space<semaphore_mem>>)
    %c0_i32_0 = arith.constant 0 : i32
    %4 = tpu.memref_slice %arg2[%arg0, %1, %c0_i32_0] : memref<2x48x128xbf16, #tpu.memory_space<any>> -> memref<1x48x128xbf16, #tpu.memory_space<any>>
    %5 = tpu.memref_squeeze %4 : memref<1x48x128xbf16, #tpu.memory_space<any>> -> memref<48x128xbf16, #tpu.memory_space<any>>
    tpu.wait_dma2 semaphore(%arg14 : memref<!tpu.dma_semaphore, #tpu.memory_space<semaphore_mem>>) src(%5 : memref<48x128xbf16, #tpu.memory_space<any>>) dst(%arg12 : memref<48x128xbf16, #tpu.memory_space<vmem>>)
    %c0 = arith.constant 0 : index
    %c0_1 = arith.constant 0 : index
    %6 = vector.load %arg12[%c0, %c0_1] : memref<48x128xbf16, #tpu.memory_space<vmem>>, vector<48x128xbf16>
    %7 = arith.extf %6 : vector<48x128xbf16> to vector<48x128xf32>
    %8 = tpu.iota {dimensions = array<i32: 0>} : vector<48x1xi32>
    %c16_i32_2 = arith.constant 16 : i32
    %9 = arith.muli %arg1, %c16_i32_2 : i32
    %10 = vector.broadcast %9 : i32 to vector<48x1xi32>
    %11 = arith.addi %10, %8 : vector<48x1xi32>
    %c16_i32_3 = arith.constant 16 : i32
    %12 = vector.broadcast %c16_i32_3 : i32 to vector<48x1xi32>
    %13 = arith.subi %11, %12 : vector<48x1xi32>
    %c0_i32_4 = arith.constant 0 : i32
    %14 = vector.broadcast %c0_i32_4 : i32 to vector<48x1xi32>
    %15 = arith.cmpi sge, %13, %14 : vector<48x1xi32>
    %c16_i32_5 = arith.constant 16 : i32
    %16 = vector.broadcast %c16_i32_5 : i32 to vector<48x1xi32>
    %17 = arith.cmpi slt, %13, %16 : vector<48x1xi32>
    %18 = arith.andi %15, %17 : vector<48x1xi1>
    %c0_6 = arith.constant 0 : index
    %c0_7 = arith.constant 0 : index
    %c0_8 = arith.constant 0 : index
    %19 = vector.load %arg4[%c0_6, %c0_7, %c0_8] : memref<2x1x128xf32, #tpu.memory_space<vmem>>, vector<1x1x128xf32>
    %20 = vector.shape_cast %19 : vector<1x1x128xf32> to vector<1x128xf32>
    %c2_i32 = arith.constant 2 : i32
    %21 = tpu.dynamic_rotate %7 by %c2_i32 dim 0 : vector<48x128xf32>, i32 -> vector<48x128xf32>
    %22 = arith.truncf %21 : vector<48x128xf32> to vector<48x128xbf16>
    %c0_9 = arith.constant 0 : index
    %c0_10 = arith.constant 0 : index
    %c0_11 = arith.constant 0 : index
    %23 = vector.load %arg3[%c0_9, %c0_10, %c0_11] : memref<10x128x128xbf16, #tpu.memory_space<vmem>>, vector<1x128x128xbf16>
    %24 = vector.shape_cast %23 : vector<1x128x128xbf16> to vector<128x128xbf16>
    %cst = arith.constant dense<0.000000e+00> : vector<48x128xf32>
    %25 = tpu.matmul %22, %24, %cst {dimension_numbers = #tpu.dot_dimension_numbers<[1], [0], [0], [1], [0, 0, 1, 1], [], []>} : vector<48x128xbf16>, vector<128x128xbf16>, vector<48x128xf32> -> vector<48x128xf32>
    %c1_i32 = arith.constant 1 : i32
    %26 = tpu.dynamic_rotate %7 by %c1_i32 dim 0 : vector<48x128xf32>, i32 -> vector<48x128xf32>
    %27 = arith.truncf %26 : vector<48x128xf32> to vector<48x128xbf16>
    %c1 = arith.constant 1 : index
    %c0_12 = arith.constant 0 : index
    %c0_13 = arith.constant 0 : index
    %28 = vector.load %arg3[%c1, %c0_12, %c0_13] : memref<10x128x128xbf16, #tpu.memory_space<vmem>>, vector<1x128x128xbf16>
    %29 = vector.shape_cast %28 : vector<1x128x128xbf16> to vector<128x128xbf16>
    %cst_14 = arith.constant dense<0.000000e+00> : vector<48x128xf32>
    %30 = tpu.matmul %27, %29, %cst_14 {dimension_numbers = #tpu.dot_dimension_numbers<[1], [0], [0], [1], [0, 0, 1, 1], [], []>} : vector<48x128xbf16>, vector<128x128xbf16>, vector<48x128xf32> -> vector<48x128xf32>
    %31 = arith.addf %25, %30 : vector<48x128xf32>
    %32 = arith.truncf %7 : vector<48x128xf32> to vector<48x128xbf16>
    %c2 = arith.constant 2 : index
    %c0_15 = arith.constant 0 : index
    %c0_16 = arith.constant 0 : index
    %33 = vector.load %arg3[%c2, %c0_15, %c0_16] : memref<10x128x128xbf16, #tpu.memory_space<vmem>>, vector<1x128x128xbf16>
    %34 = vector.shape_cast %33 : vector<1x128x128xbf16> to vector<128x128xbf16>
    %cst_17 = arith.constant dense<0.000000e+00> : vector<48x128xf32>
    %35 = tpu.matmul %32, %34, %cst_17 {dimension_numbers = #tpu.dot_dimension_numbers<[1], [0], [0], [1], [0, 0, 1, 1], [], []>} : vector<48x128xbf16>, vector<128x128xbf16>, vector<48x128xf32> -> vector<48x128xf32>
    %36 = arith.addf %31, %35 : vector<48x128xf32>
    %c47_i32 = arith.constant 47 : i32
    %37 = tpu.dynamic_rotate %7 by %c47_i32 dim 0 : vector<48x128xf32>, i32 -> vector<48x128xf32>
    %38 = arith.truncf %37 : vector<48x128xf32> to vector<48x128xbf16>
    %c3 = arith.constant 3 : index
    %c0_18 = arith.constant 0 : index
    %c0_19 = arith.constant 0 : index
    %39 = vector.load %arg3[%c3, %c0_18, %c0_19] : memref<10x128x128xbf16, #tpu.memory_space<vmem>>, vector<1x128x128xbf16>
    %40 = vector.shape_cast %39 : vector<1x128x128xbf16> to vector<128x128xbf16>
    %cst_20 = arith.constant dense<0.000000e+00> : vector<48x128xf32>
    %41 = tpu.matmul %38, %40, %cst_20 {dimension_numbers = #tpu.dot_dimension_numbers<[1], [0], [0], [1], [0, 0, 1, 1], [], []>} : vector<48x128xbf16>, vector<128x128xbf16>, vector<48x128xf32> -> vector<48x128xf32>
    %42 = arith.addf %36, %41 : vector<48x128xf32>
    %c46_i32 = arith.constant 46 : i32
    %43 = tpu.dynamic_rotate %7 by %c46_i32 dim 0 : vector<48x128xf32>, i32 -> vector<48x128xf32>
    %44 = arith.truncf %43 : vector<48x128xf32> to vector<48x128xbf16>
    %c4 = arith.constant 4 : index
    %c0_21 = arith.constant 0 : index
    %c0_22 = arith.constant 0 : index
    %45 = vector.load %arg3[%c4, %c0_21, %c0_22] : memref<10x128x128xbf16, #tpu.memory_space<vmem>>, vector<1x128x128xbf16>
    %46 = vector.shape_cast %45 : vector<1x128x128xbf16> to vector<128x128xbf16>
    %cst_23 = arith.constant dense<0.000000e+00> : vector<48x128xf32>
    %47 = tpu.matmul %44, %46, %cst_23 {dimension_numbers = #tpu.dot_dimension_numbers<[1], [0], [0], [1], [0, 0, 1, 1], [], []>} : vector<48x128xbf16>, vector<128x128xbf16>, vector<48x128xf32> -> vector<48x128xf32>
    %48 = arith.addf %42, %47 : vector<48x128xf32>
    %49 = vector.broadcast %20 : vector<1x128xf32> to vector<48x128xf32>
    %50 = arith.addf %48, %49 : vector<48x128xf32>
    %51 = arith.mulf %50, %50 : vector<48x128xf32>
    %52 = arith.mulf %50, %51 : vector<48x128xf32>
    %cst_24 = arith.constant 4.471500e-02 : f32
    %53 = vector.broadcast %cst_24 : f32 to vector<48x128xf32>
    %54 = arith.mulf %53, %52 : vector<48x128xf32>
    %55 = arith.addf %50, %54 : vector<48x128xf32>
    %cst_25 = arith.constant 0.797884583 : f32
    %56 = vector.broadcast %cst_25 : f32 to vector<48x128xf32>
    %57 = arith.mulf %56, %55 : vector<48x128xf32>
    %58 = math.tanh %57 : vector<48x128xf32>
    %cst_26 = arith.constant 1.000000e+00 : f32
    %59 = vector.broadcast %cst_26 : f32 to vector<48x128xf32>
    %60 = arith.addf %59, %58 : vector<48x128xf32>
    %cst_27 = arith.constant 5.000000e-01 : f32
    %61 = vector.broadcast %cst_27 : f32 to vector<48x128xf32>
    %62 = arith.mulf %61, %60 : vector<48x128xf32>
    %63 = arith.mulf %50, %62 : vector<48x128xf32>
    %cst_28 = arith.constant 0.000000e+00 : f32
    %64 = vector.shape_cast %18 : vector<48x1xi1> to vector<48x1xi1>
    %65 = vector.broadcast %64 : vector<48x1xi1> to vector<48x128xi1>
    %66 = vector.broadcast %cst_28 : f32 to vector<48x128xf32>
    %67 = arith.select %65, %63, %66 : vector<48x128xi1>, vector<48x128xf32>
    %c0_29 = arith.constant 0 : index
    %c0_30 = arith.constant 0 : index
    %c0_31 = arith.constant 0 : index
    %68 = vector.load %arg6[%c0_29, %c0_30, %c0_31] : memref<2x1x128xf32, #tpu.memory_space<vmem>>, vector<1x1x128xf32>
    %69 = vector.shape_cast %68 : vector<1x1x128xf32> to vector<1x128xf32>
    %c2_i32_32 = arith.constant 2 : i32
    %70 = tpu.dynamic_rotate %67 by %c2_i32_32 dim 0 : vector<48x128xf32>, i32 -> vector<48x128xf32>
    %71 = arith.truncf %70 : vector<48x128xf32> to vector<48x128xbf16>
    %c0_33 = arith.constant 0 : index
    %c0_34 = arith.constant 0 : index
    %c0_35 = arith.constant 0 : index
    %72 = vector.load %arg5[%c0_33, %c0_34, %c0_35] : memref<10x128x128xbf16, #tpu.memory_space<vmem>>, vector<1x128x128xbf16>
    %73 = vector.shape_cast %72 : vector<1x128x128xbf16> to vector<128x128xbf16>
    %cst_36 = arith.constant dense<0.000000e+00> : vector<48x128xf32>
    %74 = tpu.matmul %71, %73, %cst_36 {dimension_numbers = #tpu.dot_dimension_numbers<[1], [0], [0], [1], [0, 0, 1, 1], [], []>} : vector<48x128xbf16>, vector<128x128xbf16>, vector<48x128xf32> -> vector<48x128xf32>
    %c1_i32_37 = arith.constant 1 : i32
    %75 = tpu.dynamic_rotate %67 by %c1_i32_37 dim 0 : vector<48x128xf32>, i32 -> vector<48x128xf32>
    %76 = arith.truncf %75 : vector<48x128xf32> to vector<48x128xbf16>
    %c1_38 = arith.constant 1 : index
    %c0_39 = arith.constant 0 : index
    %c0_40 = arith.constant 0 : index
    %77 = vector.load %arg5[%c1_38, %c0_39, %c0_40] : memref<10x128x128xbf16, #tpu.memory_space<vmem>>, vector<1x128x128xbf16>
    %78 = vector.shape_cast %77 : vector<1x128x128xbf16> to vector<128x128xbf16>
    %cst_41 = arith.constant dense<0.000000e+00> : vector<48x128xf32>
    %79 = tpu.matmul %76, %78, %cst_41 {dimension_numbers = #tpu.dot_dimension_numbers<[1], [0], [0], [1], [0, 0, 1, 1], [], []>} : vector<48x128xbf16>, vector<128x128xbf16>, vector<48x128xf32> -> vector<48x128xf32>
    %80 = arith.addf %74, %79 : vector<48x128xf32>
    %81 = arith.truncf %67 : vector<48x128xf32> to vector<48x128xbf16>
    %c2_42 = arith.constant 2 : index
    %c0_43 = arith.constant 0 : index
    %c0_44 = arith.constant 0 : index
    %82 = vector.load %arg5[%c2_42, %c0_43, %c0_44] : memref<10x128x128xbf16, #tpu.memory_space<vmem>>, vector<1x128x128xbf16>
    %83 = vector.shape_cast %82 : vector<1x128x128xbf16> to vector<128x128xbf16>
    %cst_45 = arith.constant dense<0.000000e+00> : vector<48x128xf32>
    %84 = tpu.matmul %81, %83, %cst_45 {dimension_numbers = #tpu.dot_dimension_numbers<[1], [0], [0], [1], [0, 0, 1, 1], [], []>} : vector<48x128xbf16>, vector<128x128xbf16>, vector<48x128xf32> -> vector<48x128xf32>
    %85 = arith.addf %80, %84 : vector<48x128xf32>
    %c47_i32_46 = arith.constant 47 : i32
    %86 = tpu.dynamic_rotate %67 by %c47_i32_46 dim 0 : vector<48x128xf32>, i32 -> vector<48x128xf32>
    %87 = arith.truncf %86 : vector<48x128xf32> to vector<48x128xbf16>
    %c3_47 = arith.constant 3 : index
    %c0_48 = arith.constant 0 : index
    %c0_49 = arith.constant 0 : index
    %88 = vector.load %arg5[%c3_47, %c0_48, %c0_49] : memref<10x128x128xbf16, #tpu.memory_space<vmem>>, vector<1x128x128xbf16>
    %89 = vector.shape_cast %88 : vector<1x128x128xbf16> to vector<128x128xbf16>
    %cst_50 = arith.constant dense<0.000000e+00> : vector<48x128xf32>
    %90 = tpu.matmul %87, %89, %cst_50 {dimension_numbers = #tpu.dot_dimension_numbers<[1], [0], [0], [1], [0, 0, 1, 1], [], []>} : vector<48x128xbf16>, vector<128x128xbf16>, vector<48x128xf32> -> vector<48x128xf32>
    %91 = arith.addf %85, %90 : vector<48x128xf32>
    %c46_i32_51 = arith.constant 46 : i32
    %92 = tpu.dynamic_rotate %67 by %c46_i32_51 dim 0 : vector<48x128xf32>, i32 -> vector<48x128xf32>
    %93 = arith.truncf %92 : vector<48x128xf32> to vector<48x128xbf16>
    %c4_52 = arith.constant 4 : index
    %c0_53 = arith.constant 0 : index
    %c0_54 = arith.constant 0 : index
    %94 = vector.load %arg5[%c4_52, %c0_53, %c0_54] : memref<10x128x128xbf16, #tpu.memory_space<vmem>>, vector<1x128x128xbf16>
    %95 = vector.shape_cast %94 : vector<1x128x128xbf16> to vector<128x128xbf16>
    %cst_55 = arith.constant dense<0.000000e+00> : vector<48x128xf32>
    %96 = tpu.matmul %93, %95, %cst_55 {dimension_numbers = #tpu.dot_dimension_numbers<[1], [0], [0], [1], [0, 0, 1, 1], [], []>} : vector<48x128xbf16>, vector<128x128xbf16>, vector<48x128xf32> -> vector<48x128xf32>
    %97 = arith.addf %91, %96 : vector<48x128xf32>
    %98 = vector.broadcast %69 : vector<1x128xf32> to vector<48x128xf32>
    %99 = arith.addf %97, %98 : vector<48x128xf32>
    %100 = arith.mulf %99, %99 : vector<48x128xf32>
    %101 = arith.mulf %99, %100 : vector<48x128xf32>
    %cst_56 = arith.constant 4.471500e-02 : f32
    %102 = vector.broadcast %cst_56 : f32 to vector<48x128xf32>
    %103 = arith.mulf %102, %101 : vector<48x128xf32>
    %104 = arith.addf %99, %103 : vector<48x128xf32>
    %cst_57 = arith.constant 0.797884583 : f32
    %105 = vector.broadcast %cst_57 : f32 to vector<48x128xf32>
    %106 = arith.mulf %105, %104 : vector<48x128xf32>
    %107 = math.tanh %106 : vector<48x128xf32>
    %cst_58 = arith.constant 1.000000e+00 : f32
    %108 = vector.broadcast %cst_58 : f32 to vector<48x128xf32>
    %109 = arith.addf %108, %107 : vector<48x128xf32>
    %cst_59 = arith.constant 5.000000e-01 : f32
    %110 = vector.broadcast %cst_59 : f32 to vector<48x128xf32>
    %111 = arith.mulf %110, %109 : vector<48x128xf32>
    %112 = arith.mulf %99, %111 : vector<48x128xf32>
    %113 = arith.truncf %7 : vector<48x128xf32> to vector<48x128xbf16>
    %c0_60 = arith.constant 0 : index
    %c0_61 = arith.constant 0 : index
    %c0_62 = arith.constant 0 : index
    %114 = vector.load %arg7[%c0_60, %c0_61, %c0_62] : memref<2x128x128xbf16, #tpu.memory_space<vmem>>, vector<1x128x128xbf16>
    %115 = vector.shape_cast %114 : vector<1x128x128xbf16> to vector<128x128xbf16>
    %cst_63 = arith.constant dense<0.000000e+00> : vector<48x128xf32>
    %116 = tpu.matmul %113, %115, %cst_63 {dimension_numbers = #tpu.dot_dimension_numbers<[1], [0], [0], [1], [0, 0, 1, 1], [], []>} : vector<48x128xbf16>, vector<128x128xbf16>, vector<48x128xf32> -> vector<48x128xf32>
    %c0_64 = arith.constant 0 : index
    %c0_65 = arith.constant 0 : index
    %c0_66 = arith.constant 0 : index
    %117 = vector.load %arg8[%c0_64, %c0_65, %c0_66] : memref<2x1x128xf32, #tpu.memory_space<vmem>>, vector<1x1x128xf32>
    %118 = vector.shape_cast %117 : vector<1x1x128xf32> to vector<1x128xf32>
    %119 = vector.broadcast %118 : vector<1x128xf32> to vector<48x128xf32>
    %120 = arith.addf %116, %119 : vector<48x128xf32>
    %121 = arith.addf %112, %120 : vector<48x128xf32>
    %122 = arith.mulf %121, %121 : vector<48x128xf32>
    %123 = arith.mulf %121, %122 : vector<48x128xf32>
    %cst_67 = arith.constant 4.471500e-02 : f32
    %124 = vector.broadcast %cst_67 : f32 to vector<48x128xf32>
    %125 = arith.mulf %124, %123 : vector<48x128xf32>
    %126 = arith.addf %121, %125 : vector<48x128xf32>
    %cst_68 = arith.constant 0.797884583 : f32
    %127 = vector.broadcast %cst_68 : f32 to vector<48x128xf32>
    %128 = arith.mulf %127, %126 : vector<48x128xf32>
    %129 = math.tanh %128 : vector<48x128xf32>
    %cst_69 = arith.constant 1.000000e+00 : f32
    %130 = vector.broadcast %cst_69 : f32 to vector<48x128xf32>
    %131 = arith.addf %130, %129 : vector<48x128xf32>
    %cst_70 = arith.constant 5.000000e-01 : f32
    %132 = vector.broadcast %cst_70 : f32 to vector<48x128xf32>
    %133 = arith.mulf %132, %131 : vector<48x128xf32>
    %134 = arith.mulf %121, %133 : vector<48x128xf32>
    %cst_71 = arith.constant 0.000000e+00 : f32
    %135 = vector.shape_cast %18 : vector<48x1xi1> to vector<48x1xi1>
    %136 = vector.broadcast %135 : vector<48x1xi1> to vector<48x128xi1>
    %137 = vector.broadcast %cst_71 : f32 to vector<48x128xf32>
    %138 = arith.select %136, %134, %137 : vector<48x128xi1>, vector<48x128xf32>
    %c1_72 = arith.constant 1 : index
    %c0_73 = arith.constant 0 : index
    %c0_74 = arith.constant 0 : index
    %139 = vector.load %arg4[%c1_72, %c0_73, %c0_74] : memref<2x1x128xf32, #tpu.memory_space<vmem>>, vector<1x1x128xf32>
    %140 = vector.shape_cast %139 : vector<1x1x128xf32> to vector<1x128xf32>
    %c2_i32_75 = arith.constant 2 : i32
    %141 = tpu.dynamic_rotate %138 by %c2_i32_75 dim 0 : vector<48x128xf32>, i32 -> vector<48x128xf32>
    %142 = arith.truncf %141 : vector<48x128xf32> to vector<48x128xbf16>
    %c5 = arith.constant 5 : index
    %c0_76 = arith.constant 0 : index
    %c0_77 = arith.constant 0 : index
    %143 = vector.load %arg3[%c5, %c0_76, %c0_77] : memref<10x128x128xbf16, #tpu.memory_space<vmem>>, vector<1x128x128xbf16>
    %144 = vector.shape_cast %143 : vector<1x128x128xbf16> to vector<128x128xbf16>
    %cst_78 = arith.constant dense<0.000000e+00> : vector<48x128xf32>
    %145 = tpu.matmul %142, %144, %cst_78 {dimension_numbers = #tpu.dot_dimension_numbers<[1], [0], [0], [1], [0, 0, 1, 1], [], []>} : vector<48x128xbf16>, vector<128x128xbf16>, vector<48x128xf32> -> vector<48x128xf32>
    %c1_i32_79 = arith.constant 1 : i32
    %146 = tpu.dynamic_rotate %138 by %c1_i32_79 dim 0 : vector<48x128xf32>, i32 -> vector<48x128xf32>
    %147 = arith.truncf %146 : vector<48x128xf32> to vector<48x128xbf16>
    %c6 = arith.constant 6 : index
    %c0_80 = arith.constant 0 : index
    %c0_81 = arith.constant 0 : index
    %148 = vector.load %arg3[%c6, %c0_80, %c0_81] : memref<10x128x128xbf16, #tpu.memory_space<vmem>>, vector<1x128x128xbf16>
    %149 = vector.shape_cast %148 : vector<1x128x128xbf16> to vector<128x128xbf16>
    %cst_82 = arith.constant dense<0.000000e+00> : vector<48x128xf32>
    %150 = tpu.matmul %147, %149, %cst_82 {dimension_numbers = #tpu.dot_dimension_numbers<[1], [0], [0], [1], [0, 0, 1, 1], [], []>} : vector<48x128xbf16>, vector<128x128xbf16>, vector<48x128xf32> -> vector<48x128xf32>
    %151 = arith.addf %145, %150 : vector<48x128xf32>
    %152 = arith.truncf %138 : vector<48x128xf32> to vector<48x128xbf16>
    %c7 = arith.constant 7 : index
    %c0_83 = arith.constant 0 : index
    %c0_84 = arith.constant 0 : index
    %153 = vector.load %arg3[%c7, %c0_83, %c0_84] : memref<10x128x128xbf16, #tpu.memory_space<vmem>>, vector<1x128x128xbf16>
    %154 = vector.shape_cast %153 : vector<1x128x128xbf16> to vector<128x128xbf16>
    %cst_85 = arith.constant dense<0.000000e+00> : vector<48x128xf32>
    %155 = tpu.matmul %152, %154, %cst_85 {dimension_numbers = #tpu.dot_dimension_numbers<[1], [0], [0], [1], [0, 0, 1, 1], [], []>} : vector<48x128xbf16>, vector<128x128xbf16>, vector<48x128xf32> -> vector<48x128xf32>
    %156 = arith.addf %151, %155 : vector<48x128xf32>
    %c47_i32_86 = arith.constant 47 : i32
    %157 = tpu.dynamic_rotate %138 by %c47_i32_86 dim 0 : vector<48x128xf32>, i32 -> vector<48x128xf32>
    %158 = arith.truncf %157 : vector<48x128xf32> to vector<48x128xbf16>
    %c8 = arith.constant 8 : index
    %c0_87 = arith.constant 0 : index
    %c0_88 = arith.constant 0 : index
    %159 = vector.load %arg3[%c8, %c0_87, %c0_88] : memref<10x128x128xbf16, #tpu.memory_space<vmem>>, vector<1x128x128xbf16>
    %160 = vector.shape_cast %159 : vector<1x128x128xbf16> to vector<128x128xbf16>
    %cst_89 = arith.constant dense<0.000000e+00> : vector<48x128xf32>
    %161 = tpu.matmul %158, %160, %cst_89 {dimension_numbers = #tpu.dot_dimension_numbers<[1], [0], [0], [1], [0, 0, 1, 1], [], []>} : vector<48x128xbf16>, vector<128x128xbf16>, vector<48x128xf32> -> vector<48x128xf32>
    %162 = arith.addf %156, %161 : vector<48x128xf32>
    %c46_i32_90 = arith.constant 46 : i32
    %163 = tpu.dynamic_rotate %138 by %c46_i32_90 dim 0 : vector<48x128xf32>, i32 -> vector<48x128xf32>
    %164 = arith.truncf %163 : vector<48x128xf32> to vector<48x128xbf16>
    %c9 = arith.constant 9 : index
    %c0_91 = arith.constant 0 : index
    %c0_92 = arith.constant 0 : index
    %165 = vector.load %arg3[%c9, %c0_91, %c0_92] : memref<10x128x128xbf16, #tpu.memory_space<vmem>>, vector<1x128x128xbf16>
    %166 = vector.shape_cast %165 : vector<1x128x128xbf16> to vector<128x128xbf16>
    %cst_93 = arith.constant dense<0.000000e+00> : vector<48x128xf32>
    %167 = tpu.matmul %164, %166, %cst_93 {dimension_numbers = #tpu.dot_dimension_numbers<[1], [0], [0], [1], [0, 0, 1, 1], [], []>} : vector<48x128xbf16>, vector<128x128xbf16>, vector<48x128xf32> -> vector<48x128xf32>
    %168 = arith.addf %162, %167 : vector<48x128xf32>
    %169 = vector.broadcast %140 : vector<1x128xf32> to vector<48x128xf32>
    %170 = arith.addf %168, %169 : vector<48x128xf32>
    %171 = arith.mulf %170, %170 : vector<48x128xf32>
    %172 = arith.mulf %170, %171 : vector<48x128xf32>
    %cst_94 = arith.constant 4.471500e-02 : f32
    %173 = vector.broadcast %cst_94 : f32 to vector<48x128xf32>
    %174 = arith.mulf %173, %172 : vector<48x128xf32>
    %175 = arith.addf %170, %174 : vector<48x128xf32>
    %cst_95 = arith.constant 0.797884583 : f32
    %176 = vector.broadcast %cst_95 : f32 to vector<48x128xf32>
    %177 = arith.mulf %176, %175 : vector<48x128xf32>
    %178 = math.tanh %177 : vector<48x128xf32>
    %cst_96 = arith.constant 1.000000e+00 : f32
    %179 = vector.broadcast %cst_96 : f32 to vector<48x128xf32>
    %180 = arith.addf %179, %178 : vector<48x128xf32>
    %cst_97 = arith.constant 5.000000e-01 : f32
    %181 = vector.broadcast %cst_97 : f32 to vector<48x128xf32>
    %182 = arith.mulf %181, %180 : vector<48x128xf32>
    %183 = arith.mulf %170, %182 : vector<48x128xf32>
    %cst_98 = arith.constant 0.000000e+00 : f32
    %184 = vector.shape_cast %18 : vector<48x1xi1> to vector<48x1xi1>
    %185 = vector.broadcast %184 : vector<48x1xi1> to vector<48x128xi1>
    %186 = vector.broadcast %cst_98 : f32 to vector<48x128xf32>
    %187 = arith.select %185, %183, %186 : vector<48x128xi1>, vector<48x128xf32>
    %c1_99 = arith.constant 1 : index
    %c0_100 = arith.constant 0 : index
    %c0_101 = arith.constant 0 : index
    %188 = vector.load %arg6[%c1_99, %c0_100, %c0_101] : memref<2x1x128xf32, #tpu.memory_space<vmem>>, vector<1x1x128xf32>
    %189 = vector.shape_cast %188 : vector<1x1x128xf32> to vector<1x128xf32>
    %c2_i32_102 = arith.constant 2 : i32
    %190 = tpu.dynamic_rotate %187 by %c2_i32_102 dim 0 : vector<48x128xf32>, i32 -> vector<48x128xf32>
    %191 = arith.truncf %190 : vector<48x128xf32> to vector<48x128xbf16>
    %c5_103 = arith.constant 5 : index
    %c0_104 = arith.constant 0 : index
    %c0_105 = arith.constant 0 : index
    %192 = vector.load %arg5[%c5_103, %c0_104, %c0_105] : memref<10x128x128xbf16, #tpu.memory_space<vmem>>, vector<1x128x128xbf16>
    %193 = vector.shape_cast %192 : vector<1x128x128xbf16> to vector<128x128xbf16>
    %cst_106 = arith.constant dense<0.000000e+00> : vector<48x128xf32>
    %194 = tpu.matmul %191, %193, %cst_106 {dimension_numbers = #tpu.dot_dimension_numbers<[1], [0], [0], [1], [0, 0, 1, 1], [], []>} : vector<48x128xbf16>, vector<128x128xbf16>, vector<48x128xf32> -> vector<48x128xf32>
    %c1_i32_107 = arith.constant 1 : i32
    %195 = tpu.dynamic_rotate %187 by %c1_i32_107 dim 0 : vector<48x128xf32>, i32 -> vector<48x128xf32>
    %196 = arith.truncf %195 : vector<48x128xf32> to vector<48x128xbf16>
    %c6_108 = arith.constant 6 : index
    %c0_109 = arith.constant 0 : index
    %c0_110 = arith.constant 0 : index
    %197 = vector.load %arg5[%c6_108, %c0_109, %c0_110] : memref<10x128x128xbf16, #tpu.memory_space<vmem>>, vector<1x128x128xbf16>
    %198 = vector.shape_cast %197 : vector<1x128x128xbf16> to vector<128x128xbf16>
    %cst_111 = arith.constant dense<0.000000e+00> : vector<48x128xf32>
    %199 = tpu.matmul %196, %198, %cst_111 {dimension_numbers = #tpu.dot_dimension_numbers<[1], [0], [0], [1], [0, 0, 1, 1], [], []>} : vector<48x128xbf16>, vector<128x128xbf16>, vector<48x128xf32> -> vector<48x128xf32>
    %200 = arith.addf %194, %199 : vector<48x128xf32>
    %201 = arith.truncf %187 : vector<48x128xf32> to vector<48x128xbf16>
    %c7_112 = arith.constant 7 : index
    %c0_113 = arith.constant 0 : index
    %c0_114 = arith.constant 0 : index
    %202 = vector.load %arg5[%c7_112, %c0_113, %c0_114] : memref<10x128x128xbf16, #tpu.memory_space<vmem>>, vector<1x128x128xbf16>
    %203 = vector.shape_cast %202 : vector<1x128x128xbf16> to vector<128x128xbf16>
    %cst_115 = arith.constant dense<0.000000e+00> : vector<48x128xf32>
    %204 = tpu.matmul %201, %203, %cst_115 {dimension_numbers = #tpu.dot_dimension_numbers<[1], [0], [0], [1], [0, 0, 1, 1], [], []>} : vector<48x128xbf16>, vector<128x128xbf16>, vector<48x128xf32> -> vector<48x128xf32>
    %205 = arith.addf %200, %204 : vector<48x128xf32>
    %c47_i32_116 = arith.constant 47 : i32
    %206 = tpu.dynamic_rotate %187 by %c47_i32_116 dim 0 : vector<48x128xf32>, i32 -> vector<48x128xf32>
    %207 = arith.truncf %206 : vector<48x128xf32> to vector<48x128xbf16>
    %c8_117 = arith.constant 8 : index
    %c0_118 = arith.constant 0 : index
    %c0_119 = arith.constant 0 : index
    %208 = vector.load %arg5[%c8_117, %c0_118, %c0_119] : memref<10x128x128xbf16, #tpu.memory_space<vmem>>, vector<1x128x128xbf16>
    %209 = vector.shape_cast %208 : vector<1x128x128xbf16> to vector<128x128xbf16>
    %cst_120 = arith.constant dense<0.000000e+00> : vector<48x128xf32>
    %210 = tpu.matmul %207, %209, %cst_120 {dimension_numbers = #tpu.dot_dimension_numbers<[1], [0], [0], [1], [0, 0, 1, 1], [], []>} : vector<48x128xbf16>, vector<128x128xbf16>, vector<48x128xf32> -> vector<48x128xf32>
    %211 = arith.addf %205, %210 : vector<48x128xf32>
    %c46_i32_121 = arith.constant 46 : i32
    %212 = tpu.dynamic_rotate %187 by %c46_i32_121 dim 0 : vector<48x128xf32>, i32 -> vector<48x128xf32>
    %213 = arith.truncf %212 : vector<48x128xf32> to vector<48x128xbf16>
    %c9_122 = arith.constant 9 : index
    %c0_123 = arith.constant 0 : index
    %c0_124 = arith.constant 0 : index
    %214 = vector.load %arg5[%c9_122, %c0_123, %c0_124] : memref<10x128x128xbf16, #tpu.memory_space<vmem>>, vector<1x128x128xbf16>
    %215 = vector.shape_cast %214 : vector<1x128x128xbf16> to vector<128x128xbf16>
    %cst_125 = arith.constant dense<0.000000e+00> : vector<48x128xf32>
    %216 = tpu.matmul %213, %215, %cst_125 {dimension_numbers = #tpu.dot_dimension_numbers<[1], [0], [0], [1], [0, 0, 1, 1], [], []>} : vector<48x128xbf16>, vector<128x128xbf16>, vector<48x128xf32> -> vector<48x128xf32>
    %217 = arith.addf %211, %216 : vector<48x128xf32>
    %218 = vector.broadcast %189 : vector<1x128xf32> to vector<48x128xf32>
    %219 = arith.addf %217, %218 : vector<48x128xf32>
    %220 = arith.mulf %219, %219 : vector<48x128xf32>
    %221 = arith.mulf %219, %220 : vector<48x128xf32>
    %cst_126 = arith.constant 4.471500e-02 : f32
    %222 = vector.broadcast %cst_126 : f32 to vector<48x128xf32>
    %223 = arith.mulf %222, %221 : vector<48x128xf32>
    %224 = arith.addf %219, %223 : vector<48x128xf32>
    %cst_127 = arith.constant 0.797884583 : f32
    %225 = vector.broadcast %cst_127 : f32 to vector<48x128xf32>
    %226 = arith.mulf %225, %224 : vector<48x128xf32>
    %227 = math.tanh %226 : vector<48x128xf32>
    %cst_128 = arith.constant 1.000000e+00 : f32
    %228 = vector.broadcast %cst_128 : f32 to vector<48x128xf32>
    %229 = arith.addf %228, %227 : vector<48x128xf32>
    %cst_129 = arith.constant 5.000000e-01 : f32
    %230 = vector.broadcast %cst_129 : f32 to vector<48x128xf32>
    %231 = arith.mulf %230, %229 : vector<48x128xf32>
    %232 = arith.mulf %219, %231 : vector<48x128xf32>
    %233 = arith.truncf %138 : vector<48x128xf32> to vector<48x128xbf16>
    %c1_130 = arith.constant 1 : index
    %c0_131 = arith.constant 0 : index
    %c0_132 = arith.constant 0 : index
    %234 = vector.load %arg7[%c1_130, %c0_131, %c0_132] : memref<2x128x128xbf16, #tpu.memory_space<vmem>>, vector<1x128x128xbf16>
    %235 = vector.shape_cast %234 : vector<1x128x128xbf16> to vector<128x128xbf16>
    %cst_133 = arith.constant dense<0.000000e+00> : vector<48x128xf32>
    %236 = tpu.matmul %233, %235, %cst_133 {dimension_numbers = #tpu.dot_dimension_numbers<[1], [0], [0], [1], [0, 0, 1, 1], [], []>} : vector<48x128xbf16>, vector<128x128xbf16>, vector<48x128xf32> -> vector<48x128xf32>
    %c1_134 = arith.constant 1 : index
    %c0_135 = arith.constant 0 : index
    %c0_136 = arith.constant 0 : index
    %237 = vector.load %arg8[%c1_134, %c0_135, %c0_136] : memref<2x1x128xf32, #tpu.memory_space<vmem>>, vector<1x1x128xf32>
    %238 = vector.shape_cast %237 : vector<1x1x128xf32> to vector<1x128xf32>
    %239 = vector.broadcast %238 : vector<1x128xf32> to vector<48x128xf32>
    %240 = arith.addf %236, %239 : vector<48x128xf32>
    %241 = arith.addf %232, %240 : vector<48x128xf32>
    %242 = arith.mulf %241, %241 : vector<48x128xf32>
    %243 = arith.mulf %241, %242 : vector<48x128xf32>
    %cst_137 = arith.constant 4.471500e-02 : f32
    %244 = vector.broadcast %cst_137 : f32 to vector<48x128xf32>
    %245 = arith.mulf %244, %243 : vector<48x128xf32>
    %246 = arith.addf %241, %245 : vector<48x128xf32>
    %cst_138 = arith.constant 0.797884583 : f32
    %247 = vector.broadcast %cst_138 : f32 to vector<48x128xf32>
    %248 = arith.mulf %247, %246 : vector<48x128xf32>
    %249 = math.tanh %248 : vector<48x128xf32>
    %cst_139 = arith.constant 1.000000e+00 : f32
    %250 = vector.broadcast %cst_139 : f32 to vector<48x128xf32>
    %251 = arith.addf %250, %249 : vector<48x128xf32>
    %cst_140 = arith.constant 5.000000e-01 : f32
    %252 = vector.broadcast %cst_140 : f32 to vector<48x128xf32>
    %253 = arith.mulf %252, %251 : vector<48x128xf32>
    %254 = arith.mulf %241, %253 : vector<48x128xf32>
    %cst_141 = arith.constant 0.000000e+00 : f32
    %255 = vector.shape_cast %18 : vector<48x1xi1> to vector<48x1xi1>
    %256 = vector.broadcast %255 : vector<48x1xi1> to vector<48x128xi1>
    %257 = vector.broadcast %cst_141 : f32 to vector<48x128xf32>
    %258 = arith.select %256, %254, %257 : vector<48x128xi1>, vector<48x128xf32>
    %259 = vector.extract_strided_slice %258 {offsets = [16, 0], sizes = [16, 128], strides = [1, 1]} : vector<48x128xf32> to vector<16x128xf32>
    %c0_142 = arith.constant 0 : index
    %c0_143 = arith.constant 0 : index
    %260 = vector.load %arg13[%c0_142, %c0_143] : memref<16x128xf32, #tpu.memory_space<vmem>>, vector<16x128xf32>
    tpu.vector_store %arg13[%c0_142, %c0_143], %259 {strides = array<i32>} : memref<16x128xf32, #tpu.memory_space<vmem>>, vector<16x128xf32>,
    %c0_144 = arith.constant 0 : index
    %c0_145 = arith.constant 0 : index
    %261 = tpu.strided_load %arg13[%c0_144, %c0_145] {strides = array<i32: 2, 1>} : memref<16x128xf32, #tpu.memory_space<vmem>>, vector<8x128xf32>
    %c1_146 = arith.constant 1 : index
    %c0_147 = arith.constant 0 : index
    %262 = tpu.strided_load %arg13[%c1_146, %c0_147] {strides = array<i32: 2, 1>} : memref<16x128xf32, #tpu.memory_space<vmem>>, vector<8x128xf32>
    %263 = arith.truncf %261 : vector<8x128xf32> to vector<8x128xbf16>
    %c0_148 = arith.constant 0 : index
    %c0_149 = arith.constant 0 : index
    %c0_150 = arith.constant 0 : index
    %264 = vector.load %arg9[%c0_148, %c0_149, %c0_150] : memref<2x128x128xbf16, #tpu.memory_space<vmem>>, vector<1x128x128xbf16>
    %265 = vector.shape_cast %264 : vector<1x128x128xbf16> to vector<128x128xbf16>
    %cst_151 = arith.constant dense<0.000000e+00> : vector<8x128xf32>
    %266 = tpu.matmul %263, %265, %cst_151 {dimension_numbers = #tpu.dot_dimension_numbers<[1], [0], [0], [1], [0, 0, 1, 1], [], []>} : vector<8x128xbf16>, vector<128x128xbf16>, vector<8x128xf32> -> vector<8x128xf32>
    %267 = arith.truncf %262 : vector<8x128xf32> to vector<8x128xbf16>
    %c1_152 = arith.constant 1 : index
    %c0_153 = arith.constant 0 : index
    %c0_154 = arith.constant 0 : index
    %268 = vector.load %arg9[%c1_152, %c0_153, %c0_154] : memref<2x128x128xbf16, #tpu.memory_space<vmem>>, vector<1x128x128xbf16>
    %269 = vector.shape_cast %268 : vector<1x128x128xbf16> to vector<128x128xbf16>
    %cst_155 = arith.constant dense<0.000000e+00> : vector<8x128xf32>
    %270 = tpu.matmul %267, %269, %cst_155 {dimension_numbers = #tpu.dot_dimension_numbers<[1], [0], [0], [1], [0, 0, 1, 1], [], []>} : vector<8x128xbf16>, vector<128x128xbf16>, vector<8x128xf32> -> vector<8x128xf32>
    %271 = arith.addf %266, %270 : vector<8x128xf32>
    %c0_156 = arith.constant 0 : index
    %c0_157 = arith.constant 0 : index
    %272 = vector.load %arg10[%c0_156, %c0_157] : memref<1x128xf32, #tpu.memory_space<vmem>>, vector<1x128xf32>
    %273 = vector.broadcast %272 : vector<1x128xf32> to vector<8x128xf32>
    %274 = arith.addf %271, %273 : vector<8x128xf32>
    %c0_158 = arith.constant 0 : index
    %c0_159 = arith.constant 0 : index
    %c0_160 = arith.constant 0 : index
    %275 = vector.load %arg11[%c0_158, %c0_159, %c0_160] : memref<1x8x128xf32, #tpu.memory_space<vmem>>, vector<1x8x128xf32>
    %276 = vector.shape_cast %275 : vector<1x8x128xf32> to vector<8x128xf32>
    %277 = vector.shape_cast %274 : vector<8x128xf32> to vector<1x8x128xf32>
    tpu.vector_store %arg11[%c0_158, %c0_159, %c0_160], %277 {strides = array<i32>} : memref<1x8x128xf32, #tpu.memory_space<vmem>>, vector<1x8x128xf32>,
    return
  }
  func.func @transform_1(%arg0: i32, %arg1: i32) -> (i32, i32, i32) {
    %c0_i32 = arith.constant 0 : i32
    %c0_i32_0 = arith.constant 0 : i32
    %c0_i32_1 = arith.constant 0 : i32
    %c0_i32_2 = arith.constant 0 : i32
    return %c0_i32, %c0_i32_0, %c0_i32_1 : i32, i32, i32
  }
  func.func @transform_2(%arg0: i32, %arg1: i32) -> (i32, i32, i32) {
    %c0_i32 = arith.constant 0 : i32
    %c0_i32_0 = arith.constant 0 : i32
    %c0_i32_1 = arith.constant 0 : i32
    %c0_i32_2 = arith.constant 0 : i32
    return %c0_i32, %c0_i32_0, %c0_i32_1 : i32, i32, i32
  }
  func.func @transform_3(%arg0: i32, %arg1: i32) -> (i32, i32, i32) {
    %c0_i32 = arith.constant 0 : i32
    %c0_i32_0 = arith.constant 0 : i32
    %c0_i32_1 = arith.constant 0 : i32
    %c0_i32_2 = arith.constant 0 : i32
    return %c0_i32, %c0_i32_0, %c0_i32_1 : i32, i32, i32
  }
  func.func @transform_4(%arg0: i32, %arg1: i32) -> (i32, i32, i32) {
    %c0_i32 = arith.constant 0 : i32
    %c0_i32_0 = arith.constant 0 : i32
    %c0_i32_1 = arith.constant 0 : i32
    %c0_i32_2 = arith.constant 0 : i32
    return %c0_i32, %c0_i32_0, %c0_i32_1 : i32, i32, i32
  }
  func.func @transform_5(%arg0: i32, %arg1: i32) -> (i32, i32, i32) {
    %c0_i32 = arith.constant 0 : i32
    %c0_i32_0 = arith.constant 0 : i32
    %c0_i32_1 = arith.constant 0 : i32
    %c0_i32_2 = arith.constant 0 : i32
    return %c0_i32, %c0_i32_0, %c0_i32_1 : i32, i32, i32
  }
  func.func @transform_6(%arg0: i32, %arg1: i32) -> (i32, i32, i32) {
    %c0_i32 = arith.constant 0 : i32
    %c0_i32_0 = arith.constant 0 : i32
    %c0_i32_1 = arith.constant 0 : i32
    %c0_i32_2 = arith.constant 0 : i32
    return %c0_i32, %c0_i32_0, %c0_i32_1 : i32, i32, i32
  }
  func.func @transform_7(%arg0: i32, %arg1: i32) -> (i32, i32, i32) {
    %c0_i32 = arith.constant 0 : i32
    %c0_i32_0 = arith.constant 0 : i32
    %c0_i32_1 = arith.constant 0 : i32
    %c0_i32_2 = arith.constant 0 : i32
    return %c0_i32, %c0_i32_0, %c0_i32_1 : i32, i32, i32
  }
  func.func @transform_8(%arg0: i32, %arg1: i32) -> (i32, i32) {
    %c0_i32 = arith.constant 0 : i32
    %c0_i32_0 = arith.constant 0 : i32
    %c0_i32_1 = arith.constant 0 : i32
    return %c0_i32, %c0_i32_0 : i32, i32
  }
  func.func @transform_9(%arg0: i32, %arg1: i32) -> (i32, i32, i32) {
    %c0_i32 = arith.constant 0 : i32
    %c0_i32_0 = arith.constant 0 : i32
    return %arg0, %arg1, %c0_i32 : i32, i32, i32
  }
}

</mosaic_0001>

<bundles_post_ra>
// kernel: tpu_custom_call.1
= control target key start
LH: loop header
LB: loop body
LE: loop exit
PB: predicated region body
PF: predicated region fallthrough
CT: control target
= control target key end

     0   :  { %s6811_s0 = inlined_call_operand.hbm [shape: bf16[2,48,128], index: 0, kind: input, shape index: {}]   ;;  %s6812_s1 = inlined_call_operand.hbm [shape: bf16[10,128,128], index: 1, kind: input, shape index: {}]   ;;  %s6813_s2 = inlined_call_operand.vmem [shape: f32[2,1,128], index: 2, kind: input, shape index: {}]   ;;  %s6814_s3 = inlined_call_operand.hbm [shape: bf16[10,128,128], index: 3, kind: input, shape index: {}]   ;;  %s6815_s4 = inlined_call_operand.vmem [shape: f32[2,1,128], index: 4, kind: input, shape index: {}]   ;;  %s6816_s5 = inlined_call_operand.hbm [shape: bf16[2,128,128], index: 5, kind: input, shape index: {}]   ;;  %s6817_s6 = inlined_call_operand.vmem [shape: f32[2,1,128], index: 6, kind: input, shape index: {}]   ;;  %s6818_s7 = inlined_call_operand.hbm [shape: bf16[2,128,128], index: 7, kind: input, shape index: {}]   ;;  %s6819_s8 = inlined_call_operand.vmem [shape: f32[1,128], index: 8, kind: input, shape index: {}]   ;;  %s6820_s9 = inlined_call_operand.hbm [shape: f32[2,8,128], index: 9, kind: output, shape index: {}]  }
   0x1   :  { %6832 = sst [smem:[#allocation30_spill]] %s6814_s3 }
   0x2   :  { %14 = vsyncpa [#allocation6], 0 }
   0x3   :  { %15 = vsyncpa [#allocation9], 0 }
   0x4   :  { %16 = vsyncpa [#allocation12], 0 }
   0x5   :  { %17 = vsyncpa [#allocation7], 0 }
   0x6   :  { %19 = vsyncpa [#allocation7 + $0x1], 0  ;;  %s5858_s30 = smov 0   ;;  %s5860_s10 = smov 0  }
   0x7   :  { %s5862_s11 = smov 0   ;;  %s5864_s12 = smov 0  }
   0x8   :  { %s5866_s13 = smov 0   ;;  %s5868_s14 = smov 0  }
   0x9 LB: > { %6833 = sst [smem:[#allocation23_spill]] %s5775_s30  ;;  %s4102_s15 = sadd.s32 4294967295, %s5795_s14   ;;  %s5795_s14 = sphi %s5868_s14, %s25_s14   ;;  %s5791_s13 = sphi %s5866_s13, %s6857_s13   ;;  %s5787_s12 = sphi %s5864_s12, %s6856_s12   ;;  %s5783_s11 = sphi %s5862_s11, %s6855_s11   ;;  %s5779_s10 = sphi %s5860_s10, %s6859_s10   ;;  %s5775_s30 = sphi %s5858_s30, %s6858_s30  }
   0xa   : > { %6834 = sst [smem:[#allocation24_spill]] %s5783_s11  ;;  %s4103_s16 = sadd.s32 4294967294, %s5795_s14  }
   0xb   : > { %6835 = sst [smem:[#allocation25_spill]] %s5791_s13  ;;  %s37_s17 = sadd.s32 1, %s5791_s13 }
   0xc   : > { %6836 = sst [smem:[#allocation26_spill]] %s5795_s14  ;;  %s214_s18 = sadd.s32 1, %s5783_s11 }
   0xd   : > { %p39_p0 = scmp.ge.s32.totalorder %s37_s17, 2  ;;  %p224_p1 = scmp.ne.s32.totalorder %s5783_s11, %s5779_s10 }
   0xe   : > { %p225_p2 = scmp.eq.s32.totalorder %s4102_s15, 1  ;;  %p230_p3 = scmp.ne.s32.totalorder %s5779_s10, %s5775_s30 }
   0xf   : > { %s6861_s17 = smov (%p39_p0, %s37_s17), 0  ;;  %p231_p5 = scmp.eq.s32.totalorder %s4103_s16, 1 }
  0x10   : > { %6837 = sst [smem:[#allocation27_spill]] %s6861_s17  ;;  %p5898_p4 = por %p225_p2, %p224_p1 }
  0x11   : > { %s209_s20 = ssub.s32 %s5791_s13, %s6861_s17  ;;  %p4104_p6 = scmp.ge.s32.totalorder %s5795_s14, 1 }
  0x12   : > { %s6838_s19 = scalar_select %p5898_p4, 1, 0 }
  0x13   : > { %p212_p7 = scmp.eq.s32.totalorder %s209_s20, 0  ;;  %p5905_p8 = por %p231_p5, %p230_p3 }
  0x14   : > { %p238_p9 = scmp.lt.s32.totalorder %s5795_s14, 3  ;;  %p5917_p11 = scmp.eq.s32.totalorder %s4102_s15, 0 }
  0x15   : > { %s6839_s21 = scalar_select %p5905_p8, 1, 0 }
  0x16   : > { %s5911_s22 = scalar_select %p212_p7, %s5783_s11, %s214_s18  }
  0x17   : > { %6840 = sst [smem:[#allocation28_spill]] %s6839_s21  ;;  %p5913_p10 = pnand %p4104_p6, %p238_p9 }
  0x18   : > { %6841 = sst [smem:[#allocation29_spill]] %s5911_s22  ;;  %s5797_s25 = smov [#allocation8]  }
  0x19   : > { %s6842_s23 = scalar_select %p5913_p10, 1, 0 }
  0x1a   : > { %s6843_s24 = scalar_select %p5917_p11, 1, 0 }
  0x1b   : > { %p5264_p12 = pneg %p5913_p10  ;;  %s266_s26 = sshll.u32 %s5797_s25, 4  ;;  %s267_s26 = int_to_ptr.vmem [resolvable:$true] %s266_s26 }
  0x1c   : > { %s5798_s28 = smov [#allocation5]   ;;  %s6845_s3 = sld [smem:[#allocation30_spill]] }
  0x1d   : > { %p5925_p13 = pnand %p5917_p11, %p5264_p12  ;;  %s250_s29 = sshll.u32 %s5798_s28, 4  ;;  %s251_s29 = int_to_ptr.vmem [resolvable:$true] %s250_s29 }
  0x1f   : > { %p5937_p1 = pneg %p5925_p13 }
  0x22   : > { %s5567_s15 = scalar_lea.hbm %s6845_s3, 10240 }
  0x23   : > { %p5568_p0 = scmp.ne.s32.totalorder %s6845_s3, %s5567_s15  ;;  %p5574_p5 = scmp.lt.u32.totalorder %s5567_s15, %s6845_s3 }
  0x25   : > { %p5570_p2 = pnand %p5937_p1, %p5568_p0 }
  0x27   : > { %p5571_p3 = pneg %p5570_p2 }
  0x29   : > { %p5576_p6 = pnand %p5574_p5, %p5571_p3 }
  0x2b   : > { %5579 = shalt.err (!%p5576_p6)
}
  0x2c   : > { %s5580_s28 = scalar_lea.vmem %s267_s26, 10240  ;;  %p5588_p8 = scmp.lt.s32.totalorder %s267_s26, %s267_s26 }
  0x2d   : > { %p5581_p7 = scmp.ne.s32.totalorder %s267_s26, %s5580_s28  ;;  %p5589_p4 = scmp.lt.s32.totalorder %s5580_s28, %s5580_s28 }
  0x2f   : > { %p5583_p9 = pnand %p5581_p7, %p5937_p1  ;;  %p5590_p11 = por %p5589_p4, %p5588_p8 }
  0x31   : > { %p5584_p12 = pneg %p5583_p9 }
  0x33   : > { %p5591_p10 = pnand %p5590_p11, %p5584_p12 }
  0x35   : > { %5594 = shalt.err (!%p5591_p10)
}
  0x36   : > { %s5799_s17 = smov 64   ;;  %s5800_s16 = smov 4  }
  0x37   : > { %5270 = dma.hbm_to_vmem [thread:$0]  (!%p5925_p13), %s6845_s3, 10240, %s267_s26, [#allocation9], %s5799_s17, %s5799_s17, %s5800_s16  }
  0x38   : > { %s5595_s20 = scalar_lea.hbm %s6812_s1, 10240 }
  0x39   : > { %p5596_p4 = scmp.ne.s32.totalorder %s6812_s1, %s5595_s20  ;;  %p5602_p11 = scmp.lt.u32.totalorder %s5595_s20, %s6812_s1 }
  0x3b   : > { %p5598_p8 = pnand %p5596_p4, %p5937_p1 }
  0x3d   : > { %p5599_p10 = pneg %p5598_p8 }
  0x3f   : > { %p5604_p0 = pnand %p5602_p11, %p5599_p10 }
  0x41   : > { %5607 = shalt.err (!%p5604_p0)
}
  0x42   : > { %s5608_s13 = scalar_lea.vmem %s251_s29, 10240  ;;  %p5616_p6 = scmp.lt.s32.totalorder %s251_s29, %s251_s29 }
  0x43   : > { %p5609_p2 = scmp.ne.s32.totalorder %s251_s29, %s5608_s13  ;;  %p5617_p7 = scmp.lt.s32.totalorder %s5608_s13, %s5608_s13 }
  0x45   : > { %p5611_p3 = pnand %p5609_p2, %p5937_p1  ;;  %p5618_p9 = por %p5617_p7, %p5616_p6 }
  0x47   : > { %p5612_p5 = pneg %p5611_p3 }
  0x49   : > { %p5619_p12 = pnand %p5618_p9, %p5612_p5 }
  0x4b   : > { %5622 = shalt.err (!%p5619_p12)
}
  0x4c   : > { %5267 = dma.hbm_to_vmem [thread:$0]  (!%p5925_p13), %s6812_s1, 10240, %s251_s29, [#allocation6], %s5799_s17, %s5799_s17, %s5800_s16  }
  0x4d   : > { %s5801_s21 = smov [#allocation10]   ;;  %s5802_s22 = smov [#allocation11]  }
  0x4e   : > { %s282_s26 = sshll.u32 %s5801_s21, 4  ;;  %s298_s18 = sshll.u32 %s5802_s22, 4  ;;  %s283_s26 = int_to_ptr.vmem [resolvable:$true] %s282_s26  ;;  %s299_s18 = int_to_ptr.vmem [resolvable:$true] %s298_s18 }
  0x4f   : > { %s5623_s28 = scalar_lea.hbm %s6816_s5, 2048 }
  0x50   : > { %p5624_p4 = scmp.ne.s32.totalorder %s6816_s5, %s5623_s28  ;;  %p5630_p11 = scmp.lt.u32.totalorder %s5623_s28, %s6816_s5 }
  0x52   : > { %p5626_p8 = pnand %p5624_p4, %p5937_p1 }
  0x54   : > { %p5627_p10 = pneg %p5626_p8 }
  0x56   : > { %p5632_p0 = pnand %p5630_p11, %p5627_p10 }
  0x58   : > { %5635 = shalt.err (!%p5632_p0)
}
  0x59   : > { %s5636_s29 = scalar_lea.vmem %s283_s26, 2048  ;;  %p5644_p6 = scmp.lt.s32.totalorder %s283_s26, %s283_s26 }
  0x5a   : > { %p5637_p2 = scmp.ne.s32.totalorder %s283_s26, %s5636_s29  ;;  %p5645_p7 = scmp.lt.s32.totalorder %s5636_s29, %s5636_s29 }
  0x5c   : > { %p5639_p3 = pnand %p5637_p2, %p5937_p1  ;;  %p5646_p9 = por %p5645_p7, %p5644_p6 }
  0x5e   : > { %p5640_p5 = pneg %p5639_p3 }
  0x60   : > { %p5647_p12 = pnand %p5646_p9, %p5640_p5 }
  0x62   : > { %5650 = shalt.err (!%p5647_p12)
}
  0x63   : > { %5273 = dma.hbm_to_vmem [thread:$0]  (!%p5925_p13), %s6816_s5, 2048, %s283_s26, [#allocation9], %s5799_s17, %s5799_s17, %s5800_s16  }
  0x64   : > { %s5651_s22 = scalar_lea.hbm %s6818_s7, 2048 }
  0x65   : > { %p5652_p4 = scmp.ne.s32.totalorder %s6818_s7, %s5651_s22  ;;  %p5658_p11 = scmp.lt.u32.totalorder %s5651_s22, %s6818_s7 }
  0x67   : > { %p5654_p8 = pnand %p5652_p4, %p5937_p1 }
  0x69   : > { %p5655_p10 = pneg %p5654_p8 }
  0x6b   : > { %p5660_p0 = pnand %p5658_p11, %p5655_p10 }
  0x6d   : > { %5663 = shalt.err (!%p5660_p0)
}
  0x6e   : > { %s5664_s30 = scalar_lea.vmem %s299_s18, 2048  ;;  %p5672_p6 = scmp.lt.s32.totalorder %s299_s18, %s299_s18 }
  0x6f   : > { %p5665_p2 = scmp.ne.s32.totalorder %s299_s18, %s5664_s30  ;;  %p5673_p7 = scmp.lt.s32.totalorder %s5664_s30, %s5664_s30 }
  0x71   : > { %p5667_p3 = pnand %p5665_p2, %p5937_p1  ;;  %p5674_p9 = por %p5673_p7, %p5672_p6 }
  0x73   : > { %p5668_p5 = pneg %p5667_p3 }
  0x75   : > { %p5675_p12 = pnand %p5674_p9, %p5668_p5 }
  0x77   : > { %5678 = shalt.err (!%p5675_p12)
}
  0x78   : > { %5276 = dma.hbm_to_vmem [thread:$0]  (!%p5925_p13), %s6818_s7, 2048, %s299_s18, [#allocation12], %s5799_s17, %s5799_s17, %s5800_s16  }
  0x79   : > { %p6847_p4 = scmp.ne.s32.totalorder %s6842_s23, 0 }
  0x7a   : > { %p6848_p1 = scmp.ne.s32.totalorder (!%p6847_p4), %s6843_s24, 0 }
  0x7b   : > { %317 = sbr.rel (%p6847_p4) target bundleno = 1727 (0x6bf), region = 52 }
  0x82   : > { %5756 = dma.done.wait (%p6848_p1), [#allocation6], 10240  }
  0x83   : > { %5758 = vsyncadd (%p6848_p1), [#allocation6], 4294957056 }
  0x84   : > { %5760 = dma.done.wait (%p6848_p1), [#allocation9], 12288  }
  0x85   : > { %5762 = vsyncadd (%p6848_p1), [#allocation9], 4294955008 }
  0x86   : > { %5764 = dma.done.wait (%p6848_p1), [#allocation12], 2048  }
  0x87   : > { %5766 = vsyncadd (%p6848_p1), [#allocation12], 4294965248  ;;  %s355_s23 = sand.u32 1, %s5779_s10   ;;  %s4329_s27 = smul.u32 384, %s5787_s12 }
  0x88   : > { %s6037_s25 = sshll.u32 %s355_s23, 3  ;;  %s5803_s3 = smov [#allocation2]  }
  0x89   : > { %s365_s18 = scalar_lea.hbm %s6811_s0, %s4329_s27  ;;  %s373_s14 = sshll.u32 %s5803_s3, 4  ;;  %s374_s14 = int_to_ptr.vmem [resolvable:$true] %s373_s14 }
  0x8a   : > { %s5679_s11 = scalar_lea.hbm %s365_s18, 384  ;;  %s5681_s22 = scalar_lea.hbm %s6811_s0, 768 }
  0x8b   : > { %p5680_p13 = scmp.ne.s32.totalorder %s365_s18, %s5679_s11  ;;  %p5682_p8 = scmp.lt.u32.totalorder %s365_s18, %s6811_s0 }
  0x8c   : > { %p5683_p10 = scmp.lt.u32.totalorder %s5681_s22, %s5679_s11  ;;  %p5685_p0 = scmp.lt.u32.totalorder %s5679_s11, %s365_s18 }
  0x8e   : > { %p5684_p11 = por %p5683_p10, %p5682_p8 }
  0x90   : > { %p5686_p2 = por %p5685_p0, %p5684_p11 }
  0x92   : > { %p5687_p3 = pnand %p5686_p2, %p5680_p13 }
  0x94   : > { %5690 = shalt.err (!%p5687_p3)  }
  0x95   : > { %s5691_s28 = scalar_lea.vmem %s374_s14, 384  ;;  %p5696_p6 = scmp.lt.s32.totalorder %s374_s14, %s374_s14 }
  0x96   : > { %p5692_p5 = scmp.ne.s32.totalorder %s374_s14, %s5691_s28  ;;  %p5697_p7 = scmp.lt.s32.totalorder %s5691_s28, %s5691_s28 }
  0x98   : > { %p5698_p9 = por %p5697_p7, %p5696_p6 }
  0x9a   : > { %p5699_p12 = pnand %p5698_p9, %p5692_p5 }
  0x9c   : > { %5702 = shalt.err (!%p5699_p12)  }
  0x9d   : > { %376 = dma.hbm_to_vmem [thread:$0]  %s365_s18, 384, %s374_s14, [#allocation4] }
  0x9e   : > { %s357_s13 = scalar_lea.vmem [#allocation13], %s6037_s25 }
  0x9f   : > { %5767 = dma.done.wait [#allocation4], 384 }
  0xa0   : > { %5768 = vsyncadd [#allocation4], 4294966912  ;;  %v5804_v0 = vmov 0.0   ;;  %vm5805_vm0 = vmmov 0   ;;  %v5348_v1 = vld [vmem:[#allocation5 + $0x40] sm:$0xff]   ;;  %v5350_v3 = vld [vmem:[#allocation5 + $0x48] sm:$0xff]   ;;  %v390_v9 = vlaneseq }
  0xa1   : > { %4590 = vmatprep.subr.bf16.mxu0 %v5804_v0  ;;  %4618 = vmatprep.subr.bf16.mxu1 %v5804_v0  ;;  %v5349_v2 = vld [vmem:[#allocation5] sm:$0xff]   ;;  %v5351_v4 = vld [vmem:[#allocation5 + $0x8] sm:$0xff]   ;;  %v5352_v5 = vld [vmem:[#allocation5 + $0x50] sm:$0xff]   ;;  %s4325_s20 = sshll.u32 %s5787_s12, 7  ;;  %s3995_s28 = sshll.u32 %s357_s13, 4  ;;  %s6762_s28 = int_to_ptr.vmem [resolvable:$true] %s3995_s28 }
  0xa2   : > { %4606 = vmatprep.mubr.msk.bf16.mxu0 %vm5805_vm0, %v5804_v0  ;;  %4634 = vmatprep.mubr.msk.bf16.mxu1 %vm5805_vm0, %v5804_v0  ;;  %v5353_v6 = vld [vmem:[#allocation5 + $0x10] sm:$0xff]   ;;  %v5354_v7 = vld [vmem:[#allocation5 + $0x58] sm:$0xff]   ;;  %v5356_v10 = vld [vmem:[#allocation5 + $0x60] sm:$0xff]   ;;  %v6067_v14 = vshrl.u32 %v390_v9, 7  ;;  %s6760_s29 = scalar_lea.hbm %s6820_s9, %s4325_s20  ;;  %s3981_s12 = scalar_lea.sflag [#allocation7], %s355_s23 }
  0xa3   : > { %4591 = vmatpush3.bf16.msra.mxu0 %v5348_v1  ;;  %4619 = vmatpush3.bf16.msra.mxu1 %v5349_v2  ;;  %v5355_v8 = vld [vmem:[#allocation5 + $0x18] sm:$0xff]   ;;  %v5357_v11 = vld [vmem:[#allocation5 + $0x20] sm:$0xff]   ;;  %v6065_v13 = vld [vmem:[#allocation2 + $0x10] sm:$0xff]  ;;  %s5703_s27 = scalar_lea.vmem %s6762_s28, 128  ;;  %p6849_p1 = scmp.ne.s32.totalorder %s6838_s19, 0 }
  0xa4   : > { %4592 = vmatprep.subr.bf16.mxu0 %v5804_v0  ;;  %4620 = vmatprep.subr.bf16.mxu1 %v5804_v0  ;;  %v6063_v12 = vld [vmem:[#allocation2] sm:$0xff]  ;;  %v5358_v17 = vld [vmem:[#allocation5 + $0x68] sm:$0xff]   ;;  %v6076_v18 = vunpack.c.h.bf16 %v6065_v13  ;;  %v5360_v20 = vld [vmem:[#allocation5 + $0x70] sm:$0xff]   ;;  %vm467_vm1 = vcmp.lt.s32.totalorder %v6067_v14, 1  ;;  %vm435_vm2 = vcmp.lt.s32.totalorder %v6067_v14, 2  ;;  %v6119_v45 = vunpack.c.l.bf16 %v6065_v13  ;;  %p5704_p4 = scmp.ne.s32.totalorder %s6762_s28, %s5703_s27  ;;  %s5807_s17 = smov [#allocation13]  }
  0xa5   : > { %v6070_v15 = vunpack.c.l.bf16 %v6063_v12  ;;  %v6073_v16 = vunpack.c.h.bf16 %v6063_v12  ;;  %v5359_v19 = vld [vmem:[#allocation5 + $0x28] sm:$0xff]   ;;  %v5361_v23 = vld [vmem:[#allocation5 + $0x30] sm:$0xff]   ;;  %v6090_v28 = vld [vmem:[#allocation2 + $0x8] sm:$0xff]  ;;  %vm838_vm3 = vcmp.lt.s32.totalorder %v6067_v14, 7  ;;  %vm982_vm4 = vcmp.lt.s32.totalorder %v6067_v14, 6  ;;  %s5707_s16 = sshll.u32 %s5807_s17, 4  ;;  %s5708_s16 = int_to_ptr.vmem [resolvable:$false] %s5707_s16 }
  0xa6   : > { %v466_v24 = vrot.slane %v6076_v18, 7  ;;  %v434_v27 = vrot.slane %v6076_v18, 6  ;;  %v5362_v29 = vld [vmem:[#allocation5 + $0x78] sm:$0xff]   ;;  %v6099_v32 = vunpack.c.l.bf16 %v6090_v28  ;;  %v6102_v33 = vunpack.c.h.bf16 %v6090_v28  ;;  %v5364_v37 = vld [vmem:[#allocation5 + $0x80] sm:$0xff]   ;;  %v5366_v46 = vld [vmem:[#allocation5 + $0x88] sm:$0xff]   ;;  %p5705_p13 = pnand %p5704_p4, %p6849_p1  ;;  %s5709_s18 = scalar_lea.vmem %s5708_s16, 256 }
  0xa7   : > { %4593 = vmatpush3.bf16.msra.mxu0 %v5350_v3  ;;  %4621 = vmatpush3.bf16.msra.mxu1 %v5351_v4  ;;  %v461_v21 = vrot.slane %v6070_v15, 7  ;;  %v462_v22 = vrot.slane %v6073_v16, 7  ;;  %v429_v25 = vrot.slane %v6070_v15, 6  ;;  %v430_v26 = vrot.slane %v6073_v16, 6  ;;  %v5363_v34 = vld [vmem:[#allocation5 + $0x38] sm:$0xff]   ;;  %v5365_v39 = vld [vmem:[#allocation5 + $0xc0] sm:$0xff]   ;;  %p5710_p10 = scmp.lt.s32.totalorder %s6762_s28, %s5708_s16  ;;  %p5711_p11 = scmp.lt.s32.totalorder %s5709_s18, %s5703_s27 }
  0xa8   : > { %4594 = vmatprep.subr.bf16.mxu0 %v5804_v0  ;;  %4622 = vmatprep.subr.bf16.mxu1 %v5804_v0  ;;  %v463_v41 = vrot.slane %v6099_v32, 7  ;;  %v464_v42 = vrot.slane %v6102_v33, 7  ;;  %v431_v43 = vrot.slane %v6099_v32, 6  ;;  %v432_v44 = vrot.slane %v6102_v33, 6  ;;  %v5367_v49 = vld [vmem:[#allocation5 + $0xc8] sm:$0xff]   ;;  %v5368_v52 = vld [vmem:[#allocation5 + $0x90] sm:$0xff]   ;;  %p5706_p8 = pneg %p5705_p13 }
  0xa9   : > { %v472_v30 = vsel %vm467_vm1, %v461_v21, %v462_v22  ;;  %v473_v31 = vsel %vm467_vm1, %v466_v24, %v461_v21  ;;  %v440_v35 = vsel %vm435_vm2, %v429_v25, %v430_v26  ;;  %v441_v36 = vsel %vm435_vm2, %v434_v27, %v429_v25  ;;  %v5369_v54 = vld [vmem:[#allocation5 + $0xd0] sm:$0xff]   ;;  %v5370_v62 = vld [vmem:[#allocation5 + $0x98] sm:$0xff]   ;;  %v5374_v21 = vld [vmem:[#allocation5 + $0xa8] sm:$0xff]   ;;  %p5712_p0 = por %p5711_p11, %p5710_p10 }
  0xaa   : > { %v474_v38 = vpack.c.bf16 %v472_v30, %v473_v31  ;;  %v442_v40 = vpack.c.bf16 %v440_v35, %v441_v36  ;;  %v470_v47 = vsel %vm467_vm1, %v463_v41, %v464_v42  ;;  %v471_v48 = vsel %vm467_vm1, %v462_v22, %v463_v41  ;;  %v5371_v2 = vld [vmem:[#allocation5 + $0xd8] sm:$0xff]   ;;  %v5375_v22 = vld [vmem:[#allocation5 + $0xe8] sm:$0xff]   ;;  %v5380_v30 = vld [vmem:[#allocation5 + $0x100] sm:$0xff]  }
  0xab   : > { %4595 = vmatpush3.bf16.msra.mxu0 %v5352_v5  ;;  %4623 = vmatpush3.bf16.msra.mxu1 %v5353_v6  ;;  %v438_v50 = vsel %vm435_vm2, %v431_v43, %v432_v44  ;;  %v439_v51 = vsel %vm435_vm2, %v430_v26, %v431_v43  ;;  %v465_v53 = vrot.slane %v6119_v45, 7  ;;  %v475_v55 = vpack.c.bf16 %v470_v47, %v471_v48  ;;  %v5378_v25 = vld [vmem:[#allocation5 + $0xb8] sm:$0xff]   ;;  %v5382_v36 = vld [vmem:[#allocation5 + $0x110] sm:$0xff]   ;;  %v5388_v47 = vld [vmem:[#allocation8 + $0x40] sm:$0xff]   ;;  %p5713_p2 = pnand %p5712_p0, %p5706_p8 }
  0xac   : > { %4596 = vmatprep.subr.bf16.mxu0 %v5804_v0  ;;  %4624 = vmatprep.subr.bf16.mxu1 %v5804_v0  ;;  %v433_v56 = vrot.slane %v6119_v45, 6  ;;  %v443_v57 = vpack.c.bf16 %v438_v50, %v439_v51  ;;  %v832_v58 = vrot.slane %v6070_v15, 1  ;;  %v833_v59 = vrot.slane %v6073_v16, 1  ;;  %v5379_v26 = vld [vmem:[#allocation5 + $0xf8] sm:$0xff]   ;;  %v5389_v48 = vld [vmem:[#allocation8] sm:$0xff]   ;;  %v5393_v50 = vld [vmem:[#allocation8 + $0x10] sm:$0xff]  }
  0xad   : > { %v836_v60 = vrot.slane %v6119_v45, 1  ;;  %v976_v61 = vrot.slane %v6070_v15, 2  ;;  %v834_v63 = vrot.slane %v6099_v32, 1  ;;  %v835_v1 = vrot.slane %v6102_v33, 1  ;;  %v5387_v41 = vld [vmem:[#allocation5 + $0x138] sm:$0xff]  }
  0xae   : > { %v977_v3 = vrot.slane %v6073_v16, 2  ;;  %v978_v4 = vrot.slane %v6099_v32, 2  ;;  %v468_v5 = vsel %vm467_vm1, %v465_v53, %v466_v24  ;;  %v469_v6 = vsel %vm467_vm1, %v464_v42, %v465_v53  ;;  %v5377_v24 = vld [vmem:[#allocation5 + $0xf0] sm:$0xff]   ;;  %v5391_v32 = vld [vmem:[#allocation8 + $0x8] sm:$0xff]   ;;  %v5394_v51 = vld [vmem:[#allocation8 + $0x58] sm:$0xff]  }
  0xaf   : > { %4597 = vmatpush3.bf16.msra.mxu0 %v5354_v7  ;;  %4625 = vmatpush3.bf16.msra.mxu1 %v5355_v8  ;;  %v979_v7 = vrot.slane %v6102_v33, 2  ;;  %v980_v8 = vrot.slane %v6119_v45, 2  ;;  %v436_v9 = vsel %vm435_vm2, %v433_v56, %v434_v27  ;;  %v842_v27 = vsel %vm838_vm3, %v833_v59, %v834_v63  ;;  %v5392_v33 = vld [vmem:[#allocation8 + $0x50] sm:$0xff]   ;;  %v5396_v53 = vld [vmem:[#allocation8 + $0x60] sm:$0xff]   ;;  %v5403_v45 = vld [vmem:[#allocation8 + $0x38] sm:$0xff]  }
  0xb0   : > { %4598 = vmatprep.subr.bf16.mxu0 %v5804_v0  ;;  %4626 = vmatprep.subr.bf16.mxu1 %v5804_v0  ;;  %v840_v35 = vsel %vm838_vm3, %v835_v1, %v836_v60  ;;  %v986_v42 = vsel %vm982_vm4, %v977_v3, %v978_v4 }
  0xb1   : > { %v984_v16 = vsel %vm982_vm4, %v979_v7, %v980_v8 }
  0xb3   : > { %4599 = vmatpush3.bf16.msra.mxu0 %v5356_v10  ;;  %4627 = vmatpush3.bf16.msra.mxu1 %v5357_v11  ;;  %v437_v10 = vsel %vm435_vm2, %v432_v44, %v433_v56  ;;  %v5372_v11 = vld [vmem:[#allocation5 + $0xa0] sm:$0xff]   ;;  %v985_v44 = vsel %vm982_vm4, %v978_v4, %v979_v7  ;;  %v837_v56 = vrot.slane %v6076_v18, 1  ;;  %v5401_v4 = vld [vmem:[#allocation8 + $0x30] sm:$0xff]  }
  0xb4   : > { %4600 = vmatprep.subr.bf16.mxu0 %v5804_v0  ;;  %4628 = vmatprep.subr.bf16.mxu1 %v5804_v0 }
  0xb7   : > { %4601 = vmatpush3.bf16.msra.mxu0 %v5358_v17  ;;  %4629 = vmatpush3.bf16.msra.mxu1 %v5359_v19  ;;  %v5373_v17 = vld [vmem:[#allocation5 + $0xe0] sm:$0xff]   ;;  %v476_v19 = vpack.c.bf16 %v468_v5, %v469_v6  ;;  %v6286_v5 = vrot.slane %v5804_v0, 7 }
  0xb8   : > { %4602 = vmatprep.subr.bf16.mxu0 %v5804_v0  ;;  %4630 = vmatprep.subr.bf16.mxu1 %v5804_v0  ;;  %v5404_v6 = vld [vmem:[#allocation8 + $0x80] sm:$0xff]  }
  0xb9   : > { %v6291_v15 = vpack.c.bf16 %v6286_v5, %v6286_v5 }
  0xbb   : > { %4603 = vmatpush3.bf16.msra.mxu0 %v5360_v20  ;;  %4631 = vmatpush3.bf16.msra.mxu1 %v5361_v23  ;;  %v444_v20 = vpack.c.bf16 %v436_v9, %v437_v10  ;;  %v5376_v23 = vld [vmem:[#allocation5 + $0xb0] sm:$0xff]   ;;  %v5406_v9 = vld [vmem:[#allocation8 + $0x88] sm:$0xff]  }
  0xbc   : > { %4604 = vmatprep.subr.bf16.mxu0 %v5804_v0  ;;  %4632 = vmatprep.subr.bf16.mxu1 %v5804_v0  ;;  %v5407_v10 = vld [vmem:[#allocation8 + $0xc8] sm:$0xff]  }
  0xbf   : > { %4605 = vmatpush3.bf16.msra.mxu0 %v5362_v29  ;;  %4633 = vmatpush3.bf16.msra.mxu1 %v5363_v34  ;;  %v843_v29 = vsel %vm838_vm3, %v832_v58, %v833_v59  ;;  %v5381_v34 = vld [vmem:[#allocation5 + $0x108] sm:$0xff]   ;;  %v844_v59 = vsel %vm838_vm3, %v837_v56, %v832_v58 }
  0xc0   : > { %4646 = vmatprep.subr.bf16.mxu0 %v5804_v0  ;;  %4674 = vmatprep.subr.bf16.mxu1 %v5804_v0  ;;  %v845_v31 = vpack.c.bf16 %v842_v27, %v843_v29  ;;  %v5418_v27 = vld [vmem:[#allocation8 + $0xb8] sm:$0xff]  }
  0xc1   : > { %v5419_v29 = vld [vmem:[#allocation8 + $0xf8] sm:$0xff]  }
  0xc2   : > { %4607 = vmatmul.mubr.bf16.vlgmr.msra.gmra.mrb[0].mxu0 %v474_v38  ;;  %4635 = vmatmul.mubr.bf16.vlgmr.msra.gmra.mrb[0].mxu1 %v442_v40  ;;  %v5383_v38 = vld [vmem:[#allocation5 + $0x118] sm:$0xff]   ;;  %v5385_v40 = vld [vmem:[#allocation5 + $0x128] sm:$0xff]  }
  0xc3   : > { %4647 = vmatpush3.bf16.msra.mxu0 %v5364_v37  ;;  %4675 = vmatpush3.bf16.msra.mxu1 %v5365_v39  ;;  %v5384_v39 = vld [vmem:[#allocation5 + $0x120] sm:$0xff]  }
  0xc4   : > { %4648 = vmatprep.subr.bf16.mxu0 %v5804_v0  ;;  %4676 = vmatprep.subr.bf16.mxu1 %v5804_v0 }
  0xc5   : > { %4610 = vmatprep.mubr.msk.bf16.mxu0 %vm5805_vm0, %v5804_v0  ;;  %4638 = vmatprep.mubr.msk.bf16.mxu1 %vm5805_vm0, %v5804_v0 }
  0xc7   : > { %4649 = vmatpush3.bf16.msra.mxu0 %v5366_v46  ;;  %4677 = vmatpush3.bf16.msra.mxu1 %v5367_v49  ;;  %v990_v46 = vpack.c.bf16 %v984_v16, %v985_v44  ;;  %v5390_v49 = vld [vmem:[#allocation8 + $0x48] sm:$0xff]  }
  0xc8   : > { %4650 = vmatprep.subr.bf16.mxu0 %v5804_v0  ;;  %4678 = vmatprep.subr.bf16.mxu1 %v5804_v0 }
  0xca   : > { %4611 = vmatmul.mubr.bf16.gmra.mrb[4].mxu0 %v475_v55  ;;  %4639 = vmatmul.mubr.bf16.gmra.mrb[4].mxu1 %v443_v57  ;;  %v5398_v55 = vld [vmem:[#allocation8 + $0x68] sm:$0xff]   ;;  %v839_v57 = vsel %vm838_vm3, %v836_v60, %v837_v56 }
  0xcb   : > { %4651 = vmatpush3.bf16.msra.mxu0 %v5368_v52  ;;  %4679 = vmatpush3.bf16.msra.mxu1 %v5369_v54  ;;  %v5395_v52 = vld [vmem:[#allocation8 + $0x18] sm:$0xff]   ;;  %v5397_v54 = vld [vmem:[#allocation8 + $0x20] sm:$0xff]  }
  0xcc   : > { %4652 = vmatprep.subr.bf16.mxu0 %v5804_v0  ;;  %4680 = vmatprep.subr.bf16.mxu1 %v5804_v0 }
  0xcd   : > { %4614 = vmatprep.mubr.msk.bf16.mxu0 %vm5805_vm0, %v5804_v0  ;;  %4642 = vmatprep.mubr.msk.bf16.mxu1 %vm5805_vm0, %v5804_v0 }
  0xcf   : > { %4653 = vmatpush3.bf16.msra.mxu0 %v5370_v62  ;;  %4681 = vmatpush3.bf16.msra.mxu1 %v5371_v2  ;;  %v847_v62 = vpack.c.bf16 %v844_v59, %v839_v57  ;;  %v981_v2 = vrot.slane %v6076_v18, 2  ;;  %v5402_v18 = vld [vmem:[#allocation8 + $0x78] sm:$0xff]  }
  0xd0   : > { %4654 = vmatprep.subr.bf16.mxu0 %v5804_v0  ;;  %4682 = vmatprep.subr.bf16.mxu1 %v5804_v0 }
  0xd1   : > { %v983_v60 = vsel %vm982_vm4, %v980_v8, %v981_v2  ;;  %v988_v58 = vsel %vm982_vm4, %v981_v2, %v976_v61  ;;  %v5405_v8 = vld [vmem:[#allocation8 + $0xc0] sm:$0xff]  }
  0xd2   : > { %4615 = vmatmul.mubr.bf16.gmra.mrb[8].mxu0 %v476_v19  ;;  %4643 = vmatmul.mubr.bf16.gmra.mrb[8].mxu1 %v444_v20  ;;  %v5410_v19 = vld [vmem:[#allocation8 + $0x98] sm:$0xff]  }
  0xd3   : > { %4655 = vmatpush3.bf16.msra.mxu0 %v5372_v11  ;;  %4683 = vmatpush3.bf16.msra.mxu1 %v5373_v17  ;;  %v5408_v11 = vld [vmem:[#allocation8 + $0x90] sm:$0xff]   ;;  %v5411_v20 = vld [vmem:[#allocation8 + $0xd8] sm:$0xff]  }
  0xd4   : > { %4656 = vmatprep.subr.bf16.mxu0 %v5804_v0  ;;  %4684 = vmatprep.subr.bf16.mxu1 %v5804_v0  ;;  %v5409_v17 = vld [vmem:[#allocation8 + $0xd0] sm:$0xff]  }
  0xd5   : > { %4662 = vmatprep.mubr.msk.bf16.mxu0 %vm5805_vm0, %v5804_v0  ;;  %4690 = vmatprep.mubr.msk.bf16.mxu1 %vm5805_vm0, %v5804_v0 }
  0xd7   : > { %4657 = vmatpush3.bf16.msra.mxu0 %v5374_v21  ;;  %4685 = vmatpush3.bf16.msra.mxu1 %v5375_v22  ;;  %v5412_v21 = vld [vmem:[#allocation8 + $0xa0] sm:$0xff]  }
  0xd8   : > { %4658 = vmatprep.subr.bf16.mxu0 %v5804_v0  ;;  %4686 = vmatprep.subr.bf16.mxu1 %v5804_v0  ;;  %v5413_v22 = vld [vmem:[#allocation8 + $0xe0] sm:$0xff]  }
  0xdb   : > { %4659 = vmatpush3.bf16.msra.mxu0 %v5376_v23  ;;  %4687 = vmatpush3.bf16.msra.mxu1 %v5377_v24  ;;  %v5414_v23 = vld [vmem:[#allocation8 + $0xa8] sm:$0xff]  }
  0xdc   : > { %4660 = vmatprep.subr.bf16.mxu0 %v5804_v0  ;;  %4688 = vmatprep.subr.bf16.mxu1 %v5804_v0  ;;  %v5415_v24 = vld [vmem:[#allocation8 + $0xe8] sm:$0xff]  }
  0xdf   : > { %4661 = vmatpush3.bf16.msra.mxu0 %v5378_v25  ;;  %4689 = vmatpush3.bf16.msra.mxu1 %v5379_v26  ;;  %v5416_v25 = vld [vmem:[#allocation8 + $0xb0] sm:$0xff]  }
  0xe0   : > { %4702 = vmatprep.subr.bf16.mxu0 %v5804_v0  ;;  %4730 = vmatprep.subr.bf16.mxu1 %v5804_v0  ;;  %v5417_v26 = vld [vmem:[#allocation8 + $0xf0] sm:$0xff]  }
  0xe2   : > { %4663 = vmatmul.mubr.bf16.vlgmr.msra.gmra.mrb[12].mxu0 %v6063_v12  ;;  %4691 = vmatmul.mubr.bf16.vlgmr.msra.gmra.mrb[12].mxu1 %v845_v31  ;;  %v841_v12 = vsel %vm838_vm3, %v834_v63, %v835_v1  ;;  %v5399_v63 = vld [vmem:[#allocation8 + $0x28] sm:$0xff]   ;;  %v5400_v1 = vld [vmem:[#allocation8 + $0x70] sm:$0xff]  }
  0xe3   : > { %4703 = vmatpush3.bf16.msra.mxu0 %v5380_v30  ;;  %4666 = vmatprep.mubr.msk.bf16.mxu0 %vm5805_vm0, %v5804_v0  ;;  %v846_v37 = vpack.c.bf16 %v840_v35, %v841_v12 }
  0xe4   : > { %4704 = vmatprep.subr.bf16.mxu0 %v5804_v0  ;;  %4694 = vmatprep.mubr.msk.bf16.mxu1 %vm5805_vm0, %v5804_v0 }
  0xe5   : > { %4731 = vmatpush3.bf16.msra.mxu1 %v5388_v47 }
  0xe6   : > { %4732 = vmatprep.subr.bf16.mxu1 %v5804_v0 }
  0xe7   : > { %4705 = vmatpush3.bf16.msra.mxu0 %v5381_v34 }
  0xe8   : > { %4706 = vmatprep.subr.bf16.mxu0 %v5804_v0 }
  0xe9   : > { %4733 = vmatpush3.bf16.msra.mxu1 %v5390_v49 }
  0xea   : > { %4667 = vmatmul.mubr.bf16.gmra.mrb[16].mxu0 %v6090_v28  ;;  %4695 = vmatmul.mubr.bf16.gmra.mrb[16].mxu1 %v846_v37  ;;  %v5386_v28 = vld [vmem:[#allocation5 + $0x130] sm:$0xff]  }
  0xeb   : > { %4707 = vmatpush3.bf16.msra.mxu0 %v5382_v36  ;;  %4670 = vmatprep.mubr.msk.bf16.mxu0 %vm5805_vm0, %v5804_v0 }
  0xec   : > { %4708 = vmatprep.subr.bf16.mxu0 %v5804_v0  ;;  %4698 = vmatprep.mubr.msk.bf16.mxu1 %vm5805_vm0, %v5804_v0 }
  0xed   : > { %4734 = vmatprep.subr.bf16.mxu1 %v5804_v0 }
  0xee   : > { %4735 = vmatpush3.bf16.msra.mxu1 %v5392_v33 }
  0xef   : > { %4709 = vmatpush3.bf16.msra.mxu0 %v5383_v38  ;;  %4736 = vmatprep.subr.bf16.mxu1 %v5804_v0 }
  0xf0   : > { %4710 = vmatprep.subr.bf16.mxu0 %v5804_v0 }
  0xf2   : > { %4671 = vmatmul.mubr.bf16.gmra.mrb[20].mxu0 %v6065_v13  ;;  %v987_v13 = vsel %vm982_vm4, %v976_v61, %v977_v3  ;;  %4737 = vmatpush3.bf16.msra.mxu1 %v5394_v51  ;;  %v991_v3 = vpack.c.bf16 %v988_v58, %v983_v60  ;;  %v6298_v61 = vrot.slane %v5804_v0, 6 }
  0xf3   : > { %4711 = vmatpush3.bf16.msra.mxu0 %v5384_v39  ;;  %4718 = vmatprep.mubr.msk.bf16.mxu0 %vm5805_vm0, %v5804_v0  ;;  %v989_v43 = vpack.c.bf16 %v986_v42, %v987_v13 }
  0xf4   : > { %4712 = vmatprep.subr.bf16.mxu0 %v5804_v0  ;;  %4738 = vmatprep.subr.bf16.mxu1 %v5804_v0  ;;  %v6305_v7 = vpack.c.bf16 %v6298_v61, %v6298_v61 }
  0xf5   : > { %4699 = vmatmul.mubr.bf16.gmra.mrb[20].mxu1 %v847_v62 }
  0xf6   : > { %4739 = vmatpush3.bf16.msra.mxu1 %v5396_v53  ;;  %4746 = vmatprep.mubr.msk.bf16.mxu1 %vm5805_vm0, %v5804_v0 }
  0xf7   : > { %4713 = vmatpush3.bf16.msra.mxu0 %v5385_v40  ;;  %4740 = vmatprep.subr.bf16.mxu1 %v5804_v0 }
  0xf8   : > { %4714 = vmatprep.subr.bf16.mxu0 %v5804_v0 }
  0xfa   : > { %4741 = vmatpush3.bf16.msra.mxu1 %v5398_v55 }
  0xfb   : > { %4715 = vmatpush3.bf16.msra.mxu0 %v5386_v28  ;;  %4742 = vmatprep.subr.bf16.mxu1 %v5804_v0 }
  0xfc   : > { %4716 = vmatprep.subr.bf16.mxu0 %v5804_v0 }
  0xfe   : > { %4743 = vmatpush3.bf16.msra.mxu1 %v5400_v1 }
  0xff   : > { %4717 = vmatpush3.bf16.msra.mxu0 %v5387_v41  ;;  %4744 = vmatprep.subr.bf16.mxu1 %v5804_v0 }
 0x100   : > { %4758 = vmatprep.subr.bf16.mxu0 %v5804_v0 }
 0x102   : > { %4719 = vmatmul.mubr.bf16.vlgmr.msra.gmra.mrb[24].mxu0 %v989_v43  ;;  %4745 = vmatpush3.bf16.msra.mxu1 %v5402_v18 }
 0x103   : > { %4722 = vmatprep.mubr.msk.bf16.mxu0 %vm5805_vm0, %v5804_v0  ;;  %4759 = vmatpush3.bf16.msra.mxu0 %v5389_v48 }
 0x104   : > { %4760 = vmatprep.subr.bf16.mxu0 %v5804_v0  ;;  %4786 = vmatprep.subr.bf16.mxu1 %v5804_v0 }
 0x105   : > { %4747 = vmatmul.mubr.bf16.vlgmr.msra.gmra.mrb[24].mxu1 %v6291_v15 }
 0x106   : > { %4750 = vmatprep.mubr.msk.bf16.mxu1 %vm5805_vm0, %v5804_v0  ;;  %4787 = vmatpush3.bf16.msra.mxu1 %v5404_v6 }
 0x107   : > { %4761 = vmatpush3.bf16.msra.mxu0 %v5391_v32  ;;  %4788 = vmatprep.subr.bf16.mxu1 %v5804_v0 }
 0x108   : > { %4762 = vmatprep.subr.bf16.mxu0 %v5804_v0 }
 0x10a   : > { %4723 = vmatmul.mubr.bf16.gmra.mrb[28].mxu0 %v990_v46  ;;  %4789 = vmatpush3.bf16.msra.mxu1 %v5406_v9 }
 0x10b   : > { %4726 = vmatprep.mubr.msk.bf16.mxu0 %vm5805_vm0, %v5804_v0  ;;  %4763 = vmatpush3.bf16.msra.mxu0 %v5393_v50 }
 0x10c   : > { %4764 = vmatprep.subr.bf16.mxu0 %v5804_v0  ;;  %4790 = vmatprep.subr.bf16.mxu1 %v5804_v0 }
 0x10e   : > { %4791 = vmatpush3.bf16.msra.mxu1 %v5408_v11 }
 0x10f   : > { %4765 = vmatpush3.bf16.msra.mxu0 %v5395_v52  ;;  %4792 = vmatprep.subr.bf16.mxu1 %v5804_v0 }
 0x110   : > { %4766 = vmatprep.subr.bf16.mxu0 %v5804_v0 }
 0x112   : > { %4727 = vmatmul.mubr.bf16.gmra.mrb[32].mxu0 %v991_v3  ;;  %4793 = vmatpush3.bf16.msra.mxu1 %v5410_v19 }
 0x113   : > { %4767 = vmatpush3.bf16.msra.mxu0 %v5397_v54  ;;  %4774 = vmatprep.mubr.msk.bf16.mxu0 %vm5805_vm0, %v5804_v0 }
 0x114   : > { %4768 = vmatprep.subr.bf16.mxu0 %v5804_v0  ;;  %4794 = vmatprep.subr.bf16.mxu1 %v5804_v0 }
 0x116   : > { %4795 = vmatpush3.bf16.msra.mxu1 %v5412_v21 }
 0x117   : > { %4769 = vmatpush3.bf16.msra.mxu0 %v5399_v63  ;;  %4796 = vmatprep.subr.bf16.mxu1 %v5804_v0 }
 0x118   : > { %4770 = vmatprep.subr.bf16.mxu0 %v5804_v0 }
 0x11a   : > { %4797 = vmatpush3.bf16.msra.mxu1 %v5414_v23 }
 0x11b   : > { %4771 = vmatpush3.bf16.msra.mxu0 %v5401_v4  ;;  %4798 = vmatprep.subr.bf16.mxu1 %v5804_v0 }
 0x11c   : > { %4772 = vmatprep.subr.bf16.mxu0 %v5804_v0 }
 0x11e   : > { %4799 = vmatpush3.bf16.msra.mxu1 %v5416_v25  ;;  %v4162_v25 = vld [vmem:[%s6813_s2] ss:$0 sm:$0xff] }
 0x11f   : > { %4773 = vmatpush3.bf16.msra.mxu0 %v5403_v45  ;;  %4800 = vmatprep.subr.bf16.mxu1 %v5804_v0 }
 0x120   : > { %4814 = vmatprep.subr.bf16.mxu0 %v5804_v0 }
 0x122   : > { %4775 = vmatmul.mubr.bf16.vlgmr.msra.gmra.mrb[36].mxu0 %v6305_v7  ;;  %4801 = vmatpush3.bf16.msra.mxu1 %v5418_v27 }
 0x123   : > { %4815 = vmatpush3.bf16.msra.mxu0 %v5405_v8  ;;  %4778 = vmatprep.mubr.msk.bf16.mxu0 %vm5805_vm0, %v5804_v0 }
 0x124   : > { %4816 = vmatprep.subr.bf16.mxu0 %v5804_v0  ;;  %4842 = vmatprep.subr.bf16.mxu1 %v5804_v0 }
 0x127   : > { %4817 = vmatpush3.bf16.msra.mxu0 %v5407_v10 }
 0x128   : > { %4818 = vmatprep.subr.bf16.mxu0 %v5804_v0 }
 0x12b   : > { %4819 = vmatpush3.bf16.msra.mxu0 %v5409_v17 }
 0x12c   : > { %4820 = vmatprep.subr.bf16.mxu0 %v5804_v0 }
 0x12f   : > { %4821 = vmatpush3.bf16.msra.mxu0 %v5411_v20 }
 0x130   : > { %4822 = vmatprep.subr.bf16.mxu0 %v5804_v0 }
 0x133   : > { %4823 = vmatpush3.bf16.msra.mxu0 %v5413_v22 }
 0x134   : > { %4824 = vmatprep.subr.bf16.mxu0 %v5804_v0 }
 0x137   : > { %4825 = vmatpush3.bf16.msra.mxu0 %v5415_v24 }
 0x138   : > { %4826 = vmatprep.subr.bf16.mxu0 %v5804_v0 }
 0x13b   : > { %4827 = vmatpush3.bf16.msra.mxu0 %v5417_v26 }
 0x13c   : > { %4828 = vmatprep.subr.bf16.mxu0 %v5804_v0 }
 0x13f   : > { %4829 = vmatpush3.bf16.msra.mxu0 %v5419_v29 }
 0x140   : > { %4870 = vmatprep.subr.bf16.mxu0 %v5804_v0 }
 0x195   : > { %v576_v30 = vpop.f32.mrb[0].mxu0  ;;  %v681_v34 = vpop.f32.mrb[0].mxu1 }
 0x196   : > { %v4608_v31 = vpop.f32.mrb[1].mxu0  ;;  %v4636_v12 = vpop.f32.mrb[1].mxu1 }
 0x197   : > { %v579_v35 = vpop.f32.mrb[2].mxu0  ;;  %v684_v37 = vpop.f32.mrb[2].mxu1 }
 0x198   : > { %v4609_v36 = vpop.f32.mrb[3].mxu0  ;;  %v4637_v38 = vpop.f32.mrb[3].mxu1 }
 0x19d   : > { %v584_v39 = vpop.f32.mrb[4].mxu0  ;;  %v689_v28 = vpop.f32.mrb[4].mxu1 }
 0x19e   : > { %v4612_v40 = vpop.f32.mrb[5].mxu0  ;;  %v690_v41 = vadd.f32 %v689_v28, %v584_v39  ;;  %v4640_v13 = vpop.f32.mrb[5].mxu1 }
 0x19f   : > { %v587_v42 = vpop.f32.mrb[6].mxu0  ;;  %v692_v16 = vpop.f32.mrb[6].mxu1 }
 0x1a0   : > { %v4613_v43 = vpop.f32.mrb[7].mxu0  ;;  %v693_v44 = vadd.f32 %v692_v16, %v587_v42  ;;  %v4641_v46 = vpop.f32.mrb[7].mxu1 }
 0x1a5   : > { %v592_v47 = vpop.f32.mrb[8].mxu0  ;;  %v697_v49 = vpop.f32.mrb[8].mxu1 }
 0x1a6   : > { %v4616_v48 = vpop.f32.mrb[9].mxu0  ;;  %v4644_v33 = vpop.f32.mrb[9].mxu1 }
 0x1a7   : > { %v595_v32 = vpop.f32.mrb[10].mxu0  ;;  %v700_v51 = vpop.f32.mrb[10].mxu1 }
 0x1a8   : > { %v4617_v50 = vpop.f32.mrb[11].mxu0  ;;  %v4645_v52 = vpop.f32.mrb[11].mxu1 }
 0x1b5   : > { %v803_v53 = vpop.f32.mrb[12].mxu0  ;;  %v947_v55 = vpop.f32.mrb[12].mxu1 }
 0x1b6   : > { %v4664_v54 = vpop.f32.mrb[13].mxu0  ;;  %v4692_v57 = vpop.f32.mrb[13].mxu1 }
 0x1b7   : > { %v806_v56 = vpop.f32.mrb[14].mxu0  ;;  %v950_v62 = vpop.f32.mrb[14].mxu1  ;;  %v6334_v54 = vrot.slane %v5804_v0, 1 }
 0x1b8   : > { %v4665_v59 = vpop.f32.mrb[15].mxu0  ;;  %v4693_v63 = vpop.f32.mrb[15].mxu1 }
 0x1bd   : > { %v811_v1 = vpop.f32.mrb[16].mxu0  ;;  %v955_v58 = vpop.f32.mrb[16].mxu1 }
 0x1be   : > { %v828_v2 = vadd.f32 %v811_v1, %v690_v41  ;;  %v4668_v60 = vpop.f32.mrb[17].mxu0  ;;  %v4696_v4 = vpop.f32.mrb[17].mxu1 }
 0x1bf   : > { %v814_v3 = vpop.f32.mrb[18].mxu0  ;;  %v958_v6 = vpop.f32.mrb[18].mxu1 }
 0x1c0   : > { %v829_v18 = vadd.f32 %v814_v3, %v693_v44  ;;  %v972_v45 = vadd.f32 %v955_v58, %v828_v2  ;;  %v4669_v8 = vpop.f32.mrb[19].mxu0  ;;  %v4697_v9 = vpop.f32.mrb[19].mxu1 }
 0x1c2   : > { %v973_v10 = vadd.f32 %v958_v6, %v829_v18  ;;  %v6354_v18 = vrot.slane %v5804_v0, 2 }
 0x1c5   : > { %v819_v11 = vpop.f32.mrb[20].mxu0 }
 0x1c6   : > { %v4672_v17 = vpop.f32.mrb[21].mxu0 }
 0x1c7   : > { %v822_v19 = vpop.f32.mrb[22].mxu0 }
 0x1c8   : > { %v4673_v20 = vpop.f32.mrb[23].mxu0 }
 0x1d5   : > { %v1091_v21 = vpop.f32.mrb[24].mxu0 }
 0x1d6   : > { %v4720_v22 = vpop.f32.mrb[25].mxu0 }
 0x1d7   : > { %v1094_v23 = vpop.f32.mrb[26].mxu0  ;;  %v5420_v22 = vld [vmem:[#allocation8 + $0x100] sm:$0xff]  }
 0x1d8   : > { %v4721_v24 = vpop.f32.mrb[27].mxu0 }
 0x1d9   : > { %v5427_v24 = vld [vmem:[#allocation10] sm:$0xff]  }
 0x1dd   : > { %v1099_v26 = vpop.f32.mrb[28].mxu0 }
 0x1de   : > { %v1116_v27 = vadd.f32 %v1099_v26, %v972_v45  ;;  %v4724_v29 = vpop.f32.mrb[29].mxu0  ;;  %v5421_v26 = vld [vmem:[#allocation8 + $0x108] sm:$0xff]  }
 0x1df   : > { %v1102_v30 = vpop.f32.mrb[30].mxu0  ;;  %v5422_v29 = vld [vmem:[#allocation8 + $0x110] sm:$0xff]  }
 0x1e0   : > { %v1128_v31 = vadd.f32 %v4162_v25, %v1116_v27  ;;  %v1117_v34 = vadd.f32 %v1102_v30, %v973_v10  ;;  %v4725_v35 = vpop.f32.mrb[31].mxu0  ;;  %v5429_v27 = vld [vmem:[#allocation10 + $0x8] sm:$0xff]   ;;  %v5430_v30 = vld [vmem:[#allocation10 + $0x10] sm:$0xff]  }
 0x1e1   : > { %v5424_v35 = vld [vmem:[#allocation8 + $0x120] sm:$0xff]  }
 0x1e2   : > { %v1134_v12 = vmul.f32 %v1128_v31, %v1128_v31  ;;  %v1129_v36 = vadd.f32 %v4162_v25, %v1117_v34  ;;  %v5806_v25 = vmov 0.0|0.0   ;;  %v5431_v34 = vld [vmem:[#allocation10 + $0x18] sm:$0xff]  }
 0x1e4   : > { %v1140_v37 = vmul.f32 %v1134_v12, %v1128_v31  ;;  %v1135_v38 = vmul.f32 %v1129_v36, %v1129_v36  ;;  %v6408_v12 = vpack.c.bf16 %v6334_v54, %v6334_v54 }
 0x1e6   : > { %v1146_v39 = vmul.f32 0.044715, %v1140_v37  ;;  %v1141_v40 = vmul.f32 %v1135_v38, %v1129_v36  ;;  %v5425_v37 = vld [vmem:[#allocation8 + $0x128] sm:$0xff]  }
 0x1e7   : > { %v5433_v38 = vld [vmem:[#allocation10 + $0x28] sm:$0xff]  }
 0x1e8   : > { %v1152_v28 = vadd.f32 %v1146_v39, %v1128_v31  ;;  %v1147_v41 = vmul.f32 0.044715, %v1141_v40  ;;  %v5426_v39 = vld [vmem:[#allocation8 + $0x130] sm:$0xff]  }
 0x1e9   : > { %v5434_v40 = vld [vmem:[#allocation10 + $0x30] sm:$0xff]  }
 0x1ea   : > { %v1158_v42 = vmul.f32 0.7978846, %v1152_v28  ;;  %v1153_v13 = vadd.f32 %v1147_v41, %v1129_v36  ;;  %v5428_v28 = vld [vmem:[#allocation8 + $0x138] sm:$0xff]  }
 0x1ec   : > { %5540 = vtanh.f32 %v1158_v42  ;;  %v1159_v43 = vmul.f32 0.7978846, %v1153_v13  ;;  %v5435_v42 = vld [vmem:[#allocation10 + $0x38] sm:$0xff]  }
 0x1ee   : > { %5542 = vtanh.f32 %v1159_v43  ;;  %v5564_v43 = vld [vmem:[#allocation2] sm:$0xff] }
 0x1f6   : > { %v5541_v16 = vpop.eup %5540 }
 0x1f7   : > { %v1170_v44 = vadd.f32 1.0, %v5541_v16  ;;  %v963_v16 = vpop.f32.mrb[20].mxu1 }
 0x1f8   : > { %v5543_v46 = vpop.eup %5542 }
 0x1f9   : > { %v1176_v47 = vmul.f32 0.5, %v1170_v44  ;;  %v1171_v48 = vadd.f32 1.0, %v5543_v46  ;;  %v4700_v44 = vpop.f32.mrb[21].mxu1  ;;  %v5565_v46 = vld [vmem:[#allocation2 + $0x8] sm:$0xff] }
 0x1fb   : > { %v6329_v49 = vmul.f32 %v1176_v47, %v1128_v31  ;;  %v1177_v32 = vmul.f32 0.5, %v1171_v48  ;;  %v5423_v31 = vld [vmem:[#allocation8 + $0x118] sm:$0xff]   ;;  %v966_v47 = vpop.f32.mrb[22].mxu1 }
 0x1fc   : > { %v4701_v48 = vpop.f32.mrb[23].mxu1  ;;  %v5464_v47 = vld [vmem:[#allocation5 + $0x1f0] sm:$0xff]  }
 0x1fd   : > { %v1183_v33 = vmul.f32 %v1177_v32, %v1129_v36  ;;  %v1238_v50 = vrot.slane %v6329_v49, 7  ;;  %v1207_v51 = vrot.slane %v6329_v49, 6  ;;  %v1611_v55 = vrot.slane %v6329_v49, 1  ;;  %v5432_v36 = vld [vmem:[#allocation10 + $0x20] sm:$0xff]   ;;  %v5465_v48 = vld [vmem:[#allocation5 + $0x230] sm:$0xff]  }
 0x1fe   : > { %v1754_v45 = vrot.slane %v6329_v49, 2 }
 0x1ff   : > { %v1239_v52 = vrot.slane %v1183_v33, 7  ;;  %v1208_v53 = vrot.slane %v1183_v33, 6  ;;  %v1479_v56 = vpack.c.bf16 %v1183_v33, %v6329_v49  ;;  %v1612_v57 = vrot.slane %v1183_v33, 1  ;;  %v1107_v49 = vpop.f32.mrb[32].mxu0 }
 0x200   : > { %v1245_v62 = vsel %vm467_vm1, %v6286_v5, %v1238_v50  ;;  %v1214_v1 = vsel %vm435_vm2, %v6298_v61, %v1207_v51  ;;  %v1755_v6 = vrot.slane %v1183_v33, 2  ;;  %v1618_v21 = vsel %vm838_vm3, %v6334_v54, %v1611_v55  ;;  %v4728_v32 = vpop.f32.mrb[33].mxu0 }
 0x201   : > { %v1244_v59 = vsel %vm467_vm1, %v1238_v50, %v1239_v52  ;;  %v1213_v63 = vsel %vm435_vm2, %v1207_v51, %v1208_v53  ;;  %v1616_v58 = vsel %vm838_vm3, %v1612_v57, %v6334_v54  ;;  %v1617_v3 = vsel %vm838_vm3, %v1611_v55, %v1612_v57  ;;  %v1110_v33 = vpop.f32.mrb[34].mxu0  ;;  %v1350_v51 = vpop.f32.mrb[24].mxu1  ;;  %v5566_v55 = vld [vmem:[#allocation2 + $0x10] sm:$0xff] }
 0x202   : > { %v1249_v2 = vpack.c.bf16 %v1244_v59, %v1245_v62  ;;  %v1218_v60 = vpack.c.bf16 %v1213_v63, %v1214_v1  ;;  %v1622_v4 = vpack.c.bf16 %v1616_v58, %v1617_v3  ;;  %v6364_v8 = vsel %vm982_vm4, %v1755_v6, %v6354_v18  ;;  %v4729_v50 = vpop.f32.mrb[35].mxu0  ;;  %v5436_v1 = vld [vmem:[#allocation5 + $0x180] sm:$0xff]   ;;  %v5439_v58 = vld [vmem:[#allocation5 + $0x148] sm:$0xff]   ;;  %v5440_v3 = vld [vmem:[#allocation5 + $0x190] sm:$0xff]  }
 0x203   : > { %v6370_v9 = vsel %vm982_vm4, %v1754_v45, %v1755_v6  ;;  %v1243_v10 = vsel %vm467_vm1, %v1239_v52, %v6286_v5  ;;  %v1212_v11 = vsel %vm435_vm2, %v1208_v53, %v6298_v61  ;;  %v1621_v23 = vpack.c.bf16 %v1618_v21, %v6334_v54  ;;  %v4748_v52 = vpop.f32.mrb[25].mxu1  ;;  %v1455_v57 = vpop.f32.mrb[36].mxu0  ;;  %v5443_v6 = vld [vmem:[#allocation5 + $0x158] sm:$0xff]  }
 0x204   : > { %4751 = vmatmul.mubr.bf16.gmra.mrb[28].mxu1 %v1249_v2  ;;  %4779 = vmatmul.mubr.bf16.gmra.mrb[40].mxu0 %v1218_v60  ;;  %v1765_v17 = vpack.c.bf16 %v6364_v8, %v6370_v9  ;;  %v1250_v19 = vpack.c.bf16 %v6286_v5, %v1243_v10  ;;  %v1219_v20 = vpack.c.bf16 %v6298_v61, %v1212_v11  ;;  %v1353_v53 = vpop.f32.mrb[26].mxu1  ;;  %v4776_v59 = vpop.f32.mrb[37].mxu0  ;;  %v5437_v2 = vld [vmem:[#allocation5 + $0x140] sm:$0xff]   ;;  %v5438_v60 = vld [vmem:[#allocation5 + $0x188] sm:$0xff]   ;;  %v5450_v21 = vld [vmem:[#allocation5 + $0x1b8] sm:$0xff]  }
 0x205   : > { %4754 = vmatprep.mubr.msk.bf16.mxu1 %vm5805_vm0, %v5804_v0  ;;  %4782 = vmatprep.mubr.msk.bf16.mxu0 %vm5805_vm0, %v5804_v0  ;;  %v1761_v41 = vsel %vm982_vm4, %v6354_v18, %v1754_v45  ;;  %v1458_v62 = vpop.f32.mrb[38].mxu0  ;;  %v5442_v45 = vld [vmem:[#allocation5 + $0x198] sm:$0xff]   ;;  %v5444_v8 = vld [vmem:[#allocation5 + $0x1a0] sm:$0xff]   ;;  %v5446_v10 = vld [vmem:[#allocation5 + $0x1a8] sm:$0xff]   ;;  %v6456_v11 = vpack.c.bf16 %v6354_v18, %v6354_v18 }
 0x206   : > { %v1764_v13 = vpack.c.bf16 %v1761_v41, %v6354_v18  ;;  %v4777_v63 = vpop.f32.mrb[39].mxu0  ;;  %v5445_v9 = vld [vmem:[#allocation5 + $0x160] sm:$0xff]   ;;  %v5466_v33 = vld [vmem:[#allocation5 + $0x1f8] sm:$0xff]  }
 0x207   : > { %v5467_v52 = vld [vmem:[#allocation5 + $0x238] sm:$0xff]  }
 0x20c   : > { %4755 = vmatmul.mubr.bf16.gmra.mrb[32].mxu1 %v1250_v19  ;;  %4783 = vmatmul.mubr.bf16.gmra.mrb[44].mxu0 %v1219_v20  ;;  %v5448_v19 = vld [vmem:[#allocation5 + $0x1b0] sm:$0xff]  }
 0x20d   : > { %4802 = vmatprep.mubr.msk.bf16.mxu1 %vm5805_vm0, %v5804_v0  ;;  %4830 = vmatprep.mubr.msk.bf16.mxu0 %vm5805_vm0, %v5804_v0  ;;  %v5449_v20 = vld [vmem:[#allocation5 + $0x170] sm:$0xff]  }
 0x214   : > { %4803 = vmatmul.mubr.bf16.vlgmr.msra.gmra.mrb[36].mxu1 %v5806_v25  ;;  %4831 = vmatmul.mubr.bf16.vlgmr.msra.gmra.mrb[48].mxu0 %v1621_v23  ;;  %v5452_v23 = vld [vmem:[#allocation5 + $0x1c0] sm:$0xff]  }
 0x215   : > { %4843 = vmatpush3.bf16.msra.mxu1 %v5420_v22  ;;  %4806 = vmatprep.mubr.msk.bf16.mxu1 %vm5805_vm0, %v5804_v0  ;;  %v5451_v22 = vld [vmem:[#allocation5 + $0x178] sm:$0xff]  }
 0x216   : > { %4844 = vmatprep.subr.bf16.mxu1 %v5804_v0  ;;  %4834 = vmatprep.mubr.msk.bf16.mxu0 %vm5805_vm0, %v5804_v0 }
 0x217   : > { %4871 = vmatpush3.bf16.msra.mxu0 %v5427_v24  ;;  %v5453_v24 = vld [vmem:[#allocation5 + $0x200] sm:$0xff]  }
 0x218   : > { %4872 = vmatprep.subr.bf16.mxu0 %v5804_v0 }
 0x219   : > { %4845 = vmatpush3.bf16.msra.mxu1 %v5421_v26  ;;  %v5454_v26 = vld [vmem:[#allocation5 + $0x1c8] sm:$0xff]  }
 0x21a   : > { %4846 = vmatprep.subr.bf16.mxu1 %v5804_v0 }
 0x21b   : > { %4873 = vmatpush3.bf16.msra.mxu0 %v5429_v27  ;;  %v5455_v27 = vld [vmem:[#allocation5 + $0x208] sm:$0xff]  }
 0x21c   : > { %4807 = vmatmul.mubr.bf16.gmra.mrb[40].mxu1 %v1479_v56  ;;  %4835 = vmatmul.mubr.bf16.gmra.mrb[52].mxu0 %v1622_v4  ;;  %v4749_v56 = vpop.f32.mrb[27].mxu1  ;;  %v5441_v4 = vld [vmem:[#allocation5 + $0x150] sm:$0xff]  }
 0x21d   : > { %4847 = vmatpush3.bf16.msra.mxu1 %v5422_v29  ;;  %4810 = vmatprep.mubr.msk.bf16.mxu1 %vm5805_vm0, %v5804_v0  ;;  %v5456_v29 = vld [vmem:[#allocation5 + $0x1d0] sm:$0xff]  }
 0x21e   : > { %4848 = vmatprep.subr.bf16.mxu1 %v5804_v0  ;;  %4874 = vmatprep.subr.bf16.mxu0 %v5804_v0 }
 0x21f   : > { %4875 = vmatpush3.bf16.msra.mxu0 %v5430_v30  ;;  %4838 = vmatprep.mubr.msk.bf16.mxu0 %vm5805_vm0, %v5804_v0  ;;  %v5457_v30 = vld [vmem:[#allocation5 + $0x210] sm:$0xff]  }
 0x220   : > { %4876 = vmatprep.subr.bf16.mxu0 %v5804_v0 }
 0x221   : > { %4849 = vmatpush3.bf16.msra.mxu1 %v5423_v31  ;;  %v5458_v31 = vld [vmem:[#allocation5 + $0x1d8] sm:$0xff]  }
 0x222   : > { %4850 = vmatprep.subr.bf16.mxu1 %v5804_v0 }
 0x223   : > { %4877 = vmatpush3.bf16.msra.mxu0 %v5431_v34  ;;  %v5459_v34 = vld [vmem:[#allocation5 + $0x218] sm:$0xff]  }
 0x224   : > { %4811 = vmatmul.mubr.bf16.gmra.mrb[44].mxu1 %v5806_v25  ;;  %4878 = vmatprep.subr.bf16.mxu0 %v5804_v0 }
 0x225   : > { %4851 = vmatpush3.bf16.msra.mxu1 %v5424_v35  ;;  %4858 = vmatprep.mubr.msk.bf16.mxu1 %vm5805_vm0, %v5804_v0  ;;  %v5460_v35 = vld [vmem:[#allocation5 + $0x1e0] sm:$0xff]  }
 0x226   : > { %4852 = vmatprep.subr.bf16.mxu1 %v5804_v0  ;;  %4839 = vmatmul.mubr.bf16.gmra.mrb[56].mxu0 %v6408_v12 }
 0x227   : > { %4879 = vmatpush3.bf16.msra.mxu0 %v5432_v36  ;;  %4886 = vmatprep.mubr.msk.bf16.mxu0 %vm5805_vm0, %v5804_v0  ;;  %v5461_v36 = vld [vmem:[#allocation5 + $0x220] sm:$0xff]  }
 0x228   : > { %4880 = vmatprep.subr.bf16.mxu0 %v5804_v0 }
 0x229   : > { %4853 = vmatpush3.bf16.msra.mxu1 %v5425_v37 }
 0x22a   : > { %4854 = vmatprep.subr.bf16.mxu1 %v5804_v0 }
 0x22b   : > { %4881 = vmatpush3.bf16.msra.mxu0 %v5433_v38 }
 0x22c   : > { %4882 = vmatprep.subr.bf16.mxu0 %v5804_v0 }
 0x22d   : > { %4855 = vmatpush3.bf16.msra.mxu1 %v5426_v39  ;;  %v5462_v39 = vld [vmem:[#allocation5 + $0x1e8] sm:$0xff]  }
 0x22e   : > { %4856 = vmatprep.subr.bf16.mxu1 %v5804_v0 }
 0x22f   : > { %4883 = vmatpush3.bf16.msra.mxu0 %v5434_v40 }
 0x230   : > { %4884 = vmatprep.subr.bf16.mxu0 %v5804_v0 }
 0x231   : > { %4857 = vmatpush3.bf16.msra.mxu1 %v5428_v28 }
 0x232   : > { %4898 = vmatprep.subr.bf16.mxu1 %v5804_v0 }
 0x233   : > { %4885 = vmatpush3.bf16.msra.mxu0 %v5435_v42  ;;  %v5463_v42 = vld [vmem:[#allocation5 + $0x228] sm:$0xff]  }
 0x234   : > { %4859 = vmatmul.mubr.bf16.vlgmr.msra.gmra.mrb[48].mxu1 %v1764_v13  ;;  %4926 = vmatprep.subr.bf16.mxu0 %v5804_v0 }
 0x235   : > { %4862 = vmatprep.mubr.msk.bf16.mxu1 %vm5805_vm0, %v5804_v0  ;;  %4899 = vmatpush3.bf16.msra.mxu1 %v5436_v1 }
 0x236   : > { %4887 = vmatmul.mubr.bf16.vlgmr.msra.gmra.mrb[60].mxu0 %v5564_v43  ;;  %4900 = vmatprep.subr.bf16.mxu1 %v5804_v0 }
 0x237   : > { %4890 = vmatprep.mubr.msk.bf16.mxu0 %vm5805_vm0, %v5804_v0  ;;  %4927 = vmatpush3.bf16.msra.mxu0 %v5437_v2 }
 0x238   : > { %4928 = vmatprep.subr.bf16.mxu0 %v5804_v0 }
 0x239   : > { %4901 = vmatpush3.bf16.msra.mxu1 %v5438_v60 }
 0x23a   : > { %4902 = vmatprep.subr.bf16.mxu1 %v5804_v0 }
 0x23b   : > { %4929 = vmatpush3.bf16.msra.mxu0 %v5439_v58 }
 0x23c   : > { %4863 = vmatmul.mubr.bf16.gmra.mrb[52].mxu1 %v1765_v17  ;;  %4930 = vmatprep.subr.bf16.mxu0 %v5804_v0  ;;  %v5447_v17 = vld [vmem:[#allocation5 + $0x168] sm:$0xff]  }
 0x23d   : > { %4866 = vmatprep.mubr.msk.bf16.mxu1 %vm5805_vm0, %v5804_v0  ;;  %4903 = vmatpush3.bf16.msra.mxu1 %v5440_v3 }
 0x23e   : > { %4891 = vmatmul.mubr.bf16.gmra.mrb[64].mxu0 %v5565_v46  ;;  %4904 = vmatprep.subr.bf16.mxu1 %v5804_v0 }
 0x23f   : > { %4894 = vmatprep.mubr.msk.bf16.mxu0 %vm5805_vm0, %v5804_v0  ;;  %4931 = vmatpush3.bf16.msra.mxu0 %v5441_v4 }
 0x240   : > { %4932 = vmatprep.subr.bf16.mxu0 %v5804_v0 }
 0x241   : > { %4905 = vmatpush3.bf16.msra.mxu1 %v5442_v45 }
 0x242   : > { %4906 = vmatprep.subr.bf16.mxu1 %v5804_v0 }
 0x243   : > { %4933 = vmatpush3.bf16.msra.mxu0 %v5443_v6 }
 0x244   : > { %4934 = vmatprep.subr.bf16.mxu0 %v5804_v0  ;;  %4867 = vmatmul.mubr.bf16.gmra.mrb[56].mxu1 %v6456_v11 }
 0x245   : > { %4907 = vmatpush3.bf16.msra.mxu1 %v5444_v8  ;;  %4914 = vmatprep.mubr.msk.bf16.mxu1 %vm5805_vm0, %v5804_v0 }
 0x246   : > { %4895 = vmatmul.mubr.bf16.gmra.mrb[68].mxu0 %v5566_v55  ;;  %4908 = vmatprep.subr.bf16.mxu1 %v5804_v0 }
 0x247   : > { %4942 = vmatprep.mubr.msk.bf16.mxu0 %vm5805_vm0, %v5804_v0  ;;  %4935 = vmatpush3.bf16.msra.mxu0 %v5445_v9 }
 0x248   : > { %4936 = vmatprep.subr.bf16.mxu0 %v5804_v0 }
 0x249   : > { %4909 = vmatpush3.bf16.msra.mxu1 %v5446_v10 }
 0x24a   : > { %4910 = vmatprep.subr.bf16.mxu1 %v5804_v0 }
 0x24b   : > { %4937 = vmatpush3.bf16.msra.mxu0 %v5447_v17 }
 0x24c   : > { %4938 = vmatprep.subr.bf16.mxu0 %v5804_v0 }
 0x24d   : > { %4911 = vmatpush3.bf16.msra.mxu1 %v5448_v19 }
 0x24e   : > { %4912 = vmatprep.subr.bf16.mxu1 %v5804_v0 }
 0x24f   : > { %4939 = vmatpush3.bf16.msra.mxu0 %v5449_v20 }
 0x250   : > { %4940 = vmatprep.subr.bf16.mxu0 %v5804_v0 }
 0x251   : > { %4913 = vmatpush3.bf16.msra.mxu1 %v5450_v21 }
 0x252   : > { %4954 = vmatprep.subr.bf16.mxu1 %v5804_v0 }
 0x253   : > { %4941 = vmatpush3.bf16.msra.mxu0 %v5451_v22 }
 0x254   : > { %4915 = vmatmul.mubr.bf16.vlgmr.msra.gmra.mrb[60].mxu1 %v6291_v15  ;;  %4982 = vmatprep.subr.bf16.mxu0 %v5804_v0 }
 0x255   : > { %4918 = vmatprep.mubr.msk.bf16.mxu1 %vm5805_vm0, %v5804_v0  ;;  %4955 = vmatpush3.bf16.msra.mxu1 %v5452_v23 }
 0x256   : > { %4943 = vmatmul.mubr.bf16.vlgmr.msra.gmra.mrb[72].mxu0 %v6305_v7  ;;  %4956 = vmatprep.subr.bf16.mxu1 %v5804_v0 }
 0x257   : > { %4983 = vmatpush3.bf16.msra.mxu0 %v5453_v24  ;;  %4946 = vmatprep.mubr.msk.bf16.mxu0 %vm5805_vm0, %v5804_v0 }
 0x258   : > { %4984 = vmatprep.subr.bf16.mxu0 %v5804_v0 }
 0x259   : > { %4957 = vmatpush3.bf16.msra.mxu1 %v5454_v26 }
 0x25a   : > { %4958 = vmatprep.subr.bf16.mxu1 %v5804_v0 }
 0x25b   : > { %4985 = vmatpush3.bf16.msra.mxu0 %v5455_v27 }
 0x25c   : > { %4986 = vmatprep.subr.bf16.mxu0 %v5804_v0 }
 0x25d   : > { %4959 = vmatpush3.bf16.msra.mxu1 %v5456_v29 }
 0x25e   : > { %4960 = vmatprep.subr.bf16.mxu1 %v5804_v0 }
 0x25f   : > { %4987 = vmatpush3.bf16.msra.mxu0 %v5457_v30 }
 0x260   : > { %4988 = vmatprep.subr.bf16.mxu0 %v5804_v0 }
 0x261   : > { %4961 = vmatpush3.bf16.msra.mxu1 %v5458_v31 }
 0x262   : > { %4962 = vmatprep.subr.bf16.mxu1 %v5804_v0 }
 0x263   : > { %4989 = vmatpush3.bf16.msra.mxu0 %v5459_v34 }
 0x264   : > { %4990 = vmatprep.subr.bf16.mxu0 %v5804_v0 }
 0x265   : > { %4963 = vmatpush3.bf16.msra.mxu1 %v5460_v35 }
 0x266   : > { %4964 = vmatprep.subr.bf16.mxu1 %v5804_v0 }
 0x267   : > { %4991 = vmatpush3.bf16.msra.mxu0 %v5461_v36 }
 0x268   : > { %4992 = vmatprep.subr.bf16.mxu0 %v5804_v0 }
 0x269   : > { %4965 = vmatpush3.bf16.msra.mxu1 %v5462_v39 }
 0x26a   : > { %4966 = vmatprep.subr.bf16.mxu1 %v5804_v0 }
 0x26b   : > { %4993 = vmatpush3.bf16.msra.mxu0 %v5463_v42 }
 0x26c   : > { %4994 = vmatprep.subr.bf16.mxu0 %v5804_v0 }
 0x26d   : > { %4967 = vmatpush3.bf16.msra.mxu1 %v5464_v47 }
 0x26e   : > { %4968 = vmatprep.subr.bf16.mxu1 %v5804_v0 }
 0x26f   : > { %4995 = vmatpush3.bf16.msra.mxu0 %v5465_v48 }
 0x270   : > { %4996 = vmatprep.subr.bf16.mxu0 %v5804_v0 }
 0x271   : > { %4969 = vmatpush3.bf16.msra.mxu1 %v5466_v33 }
 0x272   : > { %5010 = vmatprep.subr.bf16.mxu1 %v5804_v0 }
 0x273   : > { %4997 = vmatpush3.bf16.msra.mxu0 %v5467_v52 }
 0x274   : > { %5038 = vmatprep.subr.bf16.mxu0 %v5804_v0 }
 0x2d7   : > { %v1358_v37 = vpop.f32.mrb[28].mxu1  ;;  %v1463_v38 = vpop.f32.mrb[40].mxu0 }
 0x2d8   : > { %v1464_v40 = vadd.f32 %v1463_v38, %v1358_v37  ;;  %v4752_v28 = vpop.f32.mrb[29].mxu1  ;;  %v4780_v41 = vpop.f32.mrb[41].mxu0 }
 0x2d9   : > { %v1361_v13 = vpop.f32.mrb[30].mxu1  ;;  %v1466_v43 = vpop.f32.mrb[42].mxu0 }
 0x2da   : > { %v1467_v16 = vadd.f32 %v1466_v43, %v1361_v13  ;;  %v4753_v44 = vpop.f32.mrb[31].mxu1  ;;  %v4781_v46 = vpop.f32.mrb[43].mxu0  ;;  %v4203_v13 = vld [vmem:[%s6815_s4] ss:$0 sm:$0xff] }
 0x2df   : > { %v1366_v49 = vpop.f32.mrb[32].mxu1  ;;  %v1471_v32 = vpop.f32.mrb[44].mxu0 }
 0x2e0   : > { %v4756_v50 = vpop.f32.mrb[33].mxu1  ;;  %v4784_v51 = vpop.f32.mrb[45].mxu0 }
 0x2e1   : > { %v1369_v53 = vpop.f32.mrb[34].mxu1  ;;  %v1474_v55 = vpop.f32.mrb[46].mxu0 }
 0x2e2   : > { %v4757_v56 = vpop.f32.mrb[35].mxu1  ;;  %v4785_v57 = vpop.f32.mrb[47].mxu0 }
 0x2e7   : > { %v1580_v59 = vpop.f32.mrb[36].mxu1  ;;  %v1723_v62 = vpop.f32.mrb[48].mxu0 }
 0x2e8   : > { %v4804_v63 = vpop.f32.mrb[37].mxu1  ;;  %v4832_v1 = vpop.f32.mrb[49].mxu0 }
 0x2e9   : > { %v1583_v2 = vpop.f32.mrb[38].mxu1  ;;  %v1726_v60 = vpop.f32.mrb[50].mxu0 }
 0x2ea   : > { %v4805_v58 = vpop.f32.mrb[39].mxu1  ;;  %v4833_v3 = vpop.f32.mrb[51].mxu0 }
 0x2ef   : > { %v1588_v4 = vpop.f32.mrb[40].mxu1  ;;  %v1731_v45 = vpop.f32.mrb[52].mxu0 }
 0x2f0   : > { %v1605_v6 = vadd.f32 %v1588_v4, %v1464_v40  ;;  %v4808_v8 = vpop.f32.mrb[41].mxu1  ;;  %v4836_v9 = vpop.f32.mrb[53].mxu0 }
 0x2f1   : > { %v1591_v10 = vpop.f32.mrb[42].mxu1  ;;  %v1734_v17 = vpop.f32.mrb[54].mxu0  ;;  %v4204_v8 = vld [vmem:[%s6817_s6] ss:$0 sm:$0xff] }
 0x2f2   : > { %v1748_v19 = vadd.f32 %v1731_v45, %v1605_v6  ;;  %v1606_v20 = vadd.f32 %v1591_v10, %v1467_v16  ;;  %v4809_v21 = vpop.f32.mrb[43].mxu1  ;;  %v4837_v22 = vpop.f32.mrb[55].mxu0 }
 0x2f4   : > { %v1749_v23 = vadd.f32 %v1734_v17, %v1606_v20 }
 0x2f7   : > { %v1596_v24 = vpop.f32.mrb[44].mxu1 }
 0x2f8   : > { %v4812_v26 = vpop.f32.mrb[45].mxu1 }
 0x2f9   : > { %v1599_v27 = vpop.f32.mrb[46].mxu1  ;;  %v1739_v29 = vpop.f32.mrb[56].mxu0 }
 0x2fa   : > { %v4813_v30 = vpop.f32.mrb[47].mxu1  ;;  %v4840_v31 = vpop.f32.mrb[57].mxu0 }
 0x2fb   : > { %v1742_v34 = vpop.f32.mrb[58].mxu0 }
 0x2fc   : > { %v4841_v35 = vpop.f32.mrb[59].mxu0 }
 0x307   : > { %v1866_v36 = vpop.f32.mrb[48].mxu1 }
 0x308   : > { %v4860_v37 = vpop.f32.mrb[49].mxu1 }
 0x309   : > { %v1869_v38 = vpop.f32.mrb[50].mxu1  ;;  %v2066_v39 = vpop.f32.mrb[60].mxu0 }
 0x30a   : > { %v4861_v40 = vpop.f32.mrb[51].mxu1  ;;  %v4888_v28 = vpop.f32.mrb[61].mxu0 }
 0x30b   : > { %v2069_v41 = vpop.f32.mrb[62].mxu0 }
 0x30c   : > { %v4889_v42 = vpop.f32.mrb[63].mxu0 }
 0x30f   : > { %v1874_v43 = vpop.f32.mrb[52].mxu1 }
 0x310   : > { %v1891_v16 = vadd.f32 %v1874_v43, %v1748_v19  ;;  %v4864_v44 = vpop.f32.mrb[53].mxu1 }
 0x311   : > { %v1877_v46 = vpop.f32.mrb[54].mxu1  ;;  %v2074_v47 = vpop.f32.mrb[64].mxu0 }
 0x312   : > { %v1903_v48 = vadd.f32 %v4203_v13, %v1891_v16  ;;  %v1892_v49 = vadd.f32 %v1877_v46, %v1749_v23  ;;  %v4865_v32 = vpop.f32.mrb[55].mxu1  ;;  %v4892_v33 = vpop.f32.mrb[65].mxu0  ;;  %v2075_v19 = vadd.f32 %v4204_v8, %v2074_v47 }
 0x313   : > { %v2077_v50 = vpop.f32.mrb[66].mxu0 }
 0x314   : > { %v1909_v51 = vmul.f32 %v1903_v48, %v1903_v48  ;;  %v1904_v52 = vadd.f32 %v4203_v13, %v1892_v49  ;;  %v4893_v53 = vpop.f32.mrb[67].mxu0  ;;  %v2078_v26 = vadd.f32 %v4204_v8, %v2077_v50 }
 0x316   : > { %v1915_v55 = vmul.f32 %v1909_v51, %v1903_v48  ;;  %v1910_v56 = vmul.f32 %v1904_v52, %v1904_v52 }
 0x318   : > { %v1921_v57 = vmul.f32 0.044715, %v1915_v55  ;;  %v1916_v59 = vmul.f32 %v1910_v56, %v1904_v52 }
 0x319   : > { %v2082_v62 = vpop.f32.mrb[68].mxu0 }
 0x31a   : > { %v1927_v63 = vadd.f32 %v1921_v57, %v1903_v48  ;;  %v1922_v1 = vmul.f32 0.044715, %v1916_v59  ;;  %v4896_v2 = vpop.f32.mrb[69].mxu0 }
 0x31b   : > { %v2085_v60 = vpop.f32.mrb[70].mxu0 }
 0x31c   : > { %v1928_v58 = vadd.f32 %v1922_v1, %v1904_v52  ;;  %v1933_v3 = vmul.f32 0.7978846, %v1927_v63  ;;  %v4897_v4 = vpop.f32.mrb[71].mxu0 }
 0x31e   : > { %5544 = vtanh.f32 %v1933_v3  ;;  %v1934_v45 = vmul.f32 0.7978846, %v1928_v58 }
 0x320   : > { %5546 = vtanh.f32 %v1934_v45 }
 0x328   : > { %v5545_v6 = vpop.eup %5544 }
 0x329   : > { %v1945_v9 = vadd.f32 1.0, %v5545_v6 }
 0x32a   : > { %v5547_v10 = vpop.eup %5546 }
 0x32b   : > { %v1951_v17 = vmul.f32 0.5, %v1945_v9  ;;  %v1946_v20 = vadd.f32 1.0, %v5547_v10 }
 0x32d   : > { %v1957_v21 = vmul.f32 %v1951_v17, %v1903_v48  ;;  %v1952_v22 = vmul.f32 0.5, %v1946_v20  ;;  %v5468_v17 = vld [vmem:[#allocation5 + $0x240] sm:$0xff]   ;;  %v5469_v20 = vld [vmem:[#allocation5 + $0x248] sm:$0xff]  }
 0x32f   : > { %v2091_v23 = vadd.f32 %v2075_v19, %v1957_v21  ;;  %v1958_v24 = vmul.f32 %v1952_v22, %v1904_v52  ;;  %v5470_v21 = vld [vmem:[#allocation5 + $0x250] sm:$0xff]   ;;  %v5471_v22 = vld [vmem:[#allocation5 + $0x258] sm:$0xff]  }
 0x331   : > { %v2097_v27 = vmul.f32 %v2091_v23, %v2091_v23  ;;  %v2092_v29 = vadd.f32 %v2078_v26, %v1958_v24  ;;  %v5473_v24 = vld [vmem:[#allocation5 + $0x268] sm:$0xff]   ;;  %v5474_v26 = vld [vmem:[#allocation5 + $0x270] sm:$0xff]  }
 0x333   : > { %v2103_v30 = vmul.f32 %v2097_v27, %v2091_v23  ;;  %v2098_v31 = vmul.f32 %v2092_v29, %v2092_v29  ;;  %v5475_v27 = vld [vmem:[#allocation5 + $0x278] sm:$0xff]  }
 0x335   : > { %v2109_v34 = vmul.f32 0.044715, %v2103_v30  ;;  %v2104_v35 = vmul.f32 %v2098_v31, %v2092_v29  ;;  %v1882_v31 = vpop.f32.mrb[56].mxu1 }
 0x337   : > { %v2115_v36 = vadd.f32 %v2109_v34, %v2091_v23  ;;  %v2110_v37 = vmul.f32 0.044715, %v2104_v35  ;;  %v4868_v34 = vpop.f32.mrb[57].mxu1 }
 0x338   : > { %v1885_v35 = vpop.f32.mrb[58].mxu1 }
 0x339   : > { %v2121_v38 = vmul.f32 0.7978846, %v2115_v36  ;;  %v2116_v39 = vadd.f32 %v2110_v37, %v2092_v29  ;;  %v4869_v36 = vpop.f32.mrb[59].mxu1 }
 0x33a   : > { %v2303_v37 = vpop.f32.mrb[60].mxu1 }
 0x33b   : > { %5548 = vtanh.f32 %v2121_v38  ;;  %v2122_v40 = vmul.f32 0.7978846, %v2116_v39  ;;  %v4916_v38 = vpop.f32.mrb[61].mxu1 }
 0x33c   : > { %v2306_v39 = vpop.f32.mrb[62].mxu1 }
 0x33d   : > { %5550 = vtanh.f32 %v2122_v40  ;;  %v4917_v40 = vpop.f32.mrb[63].mxu1 }
 0x345   : > { %v5549_v28 = vpop.eup %5548 }
 0x346   : > { %v2133_v41 = vadd.f32 1.0, %v5549_v28  ;;  %v2408_v28 = vpop.f32.mrb[72].mxu0 }
 0x347   : > { %v5551_v42 = vpop.eup %5550 }
 0x348   : > { %v2139_v13 = vmul.f32 0.5, %v2133_v41  ;;  %v2134_v43 = vadd.f32 1.0, %v5551_v42  ;;  %v4944_v41 = vpop.f32.mrb[73].mxu0 }
 0x349   : > { %v2411_v42 = vpop.f32.mrb[74].mxu0 }
 0x34a   : > { %v6495_v16 = vmul.f32 %v2139_v13, %v2091_v23  ;;  %v2140_v44 = vmul.f32 0.5, %v2134_v43  ;;  %v5472_v23 = vld [vmem:[#allocation5 + $0x260] sm:$0xff]   ;;  %v4945_v13 = vpop.f32.mrb[75].mxu0 }
 0x34b   : > { %v5476_v43 = vld [vmem:[#allocation8 + $0x180] sm:$0xff]  }
 0x34c   : > { %v2146_v46 = vmul.f32 %v2140_v44, %v2092_v29  ;;  %v2191_v47 = vrot.slane %v6495_v16, 7  ;;  %v2159_v48 = vrot.slane %v6495_v16, 6  ;;  %v2564_v33 = vrot.slane %v6495_v16, 1  ;;  %v5478_v44 = vld [vmem:[#allocation8 + $0x188] sm:$0xff]  }
 0x34d   : > { %v2707_v2 = vrot.slane %v6495_v16, 2 }
 0x34e   : > { %v2192_v49 = vrot.slane %v2146_v46, 7  ;;  %v2160_v32 = vrot.slane %v2146_v46, 6  ;;  %v6501_v50 = vpack.c.bf16 %v2146_v46, %v6495_v16  ;;  %v2565_v51 = vrot.slane %v2146_v46, 1  ;;  %v5477_v16 = vld [vmem:[#allocation8 + $0x140] sm:$0xff]  }
 0x34f   : > { %v2198_v53 = vsel %vm467_vm1, %v6286_v5, %v2191_v47  ;;  %v2166_v56 = vsel %vm435_vm2, %v6298_v61, %v2159_v48  ;;  %v2708_v60 = vrot.slane %v2146_v46, 2  ;;  %v2571_v10 = vsel %vm838_vm3, %v6334_v54, %v2564_v33  ;;  %v5479_v46 = vld [vmem:[#allocation8 + $0x148] sm:$0xff]  }
 0x350   : > { %v2197_v52 = vsel %vm467_vm1, %v2191_v47, %v2192_v49  ;;  %v2165_v55 = vsel %vm435_vm2, %v2159_v48, %v2160_v32  ;;  %v2569_v62 = vsel %vm838_vm3, %v2565_v51, %v6334_v54  ;;  %v2570_v63 = vsel %vm838_vm3, %v2564_v33, %v2565_v51  ;;  %v5480_v47 = vld [vmem:[#allocation8 + $0x190] sm:$0xff]   ;;  %v5484_v33 = vld [vmem:[#allocation8 + $0x1a0] sm:$0xff]  }
 0x351   : > { %v2202_v57 = vpack.c.bf16 %v2197_v52, %v2198_v53  ;;  %v2170_v59 = vpack.c.bf16 %v2165_v55, %v2166_v56  ;;  %v2575_v1 = vpack.c.bf16 %v2569_v62, %v2570_v63  ;;  %v2712_v58 = vsel %vm982_vm4, %v2708_v60, %v6354_v18  ;;  %v5481_v48 = vld [vmem:[#allocation8 + $0x150] sm:$0xff]   ;;  %v5485_v51 = vld [vmem:[#allocation8 + $0x160] sm:$0xff]   ;;  %v5486_v52 = vld [vmem:[#allocation8 + $0x1a8] sm:$0xff]  }
 0x352   : > { %v2713_v3 = vsel %vm982_vm4, %v2707_v2, %v2708_v60  ;;  %v2196_v4 = vsel %vm467_vm1, %v2192_v49, %v6286_v5  ;;  %v2164_v45 = vsel %vm435_vm2, %v2160_v32, %v6298_v61  ;;  %v2574_v19 = vpack.c.bf16 %v2571_v10, %v6334_v54  ;;  %v5482_v49 = vld [vmem:[#allocation8 + $0x198] sm:$0xff]   ;;  %v5487_v53 = vld [vmem:[#allocation8 + $0x168] sm:$0xff]   ;;  %v5488_v55 = vld [vmem:[#allocation8 + $0x1b0] sm:$0xff]  }
 0x353   : > { %4919 = vmatmul.mubr.bf16.gmra.mrb[64].mxu1 %v2202_v57  ;;  %4947 = vmatmul.mubr.bf16.gmra.mrb[76].mxu0 %v2170_v59  ;;  %v2718_v6 = vpack.c.bf16 %v2712_v58, %v2713_v3  ;;  %v2203_v8 = vpack.c.bf16 %v6286_v5, %v2196_v4  ;;  %v2171_v9 = vpack.c.bf16 %v6298_v61, %v2164_v45  ;;  %v5483_v32 = vld [vmem:[#allocation8 + $0x158] sm:$0xff]   ;;  %v5489_v56 = vld [vmem:[#allocation8 + $0x170] sm:$0xff]   ;;  %v5492_v62 = vld [vmem:[#allocation8 + $0x1c0] sm:$0xff]  }
 0x354   : > { %4922 = vmatprep.mubr.msk.bf16.mxu1 %vm5805_vm0, %v5804_v0  ;;  %4950 = vmatprep.mubr.msk.bf16.mxu0 %vm5805_vm0, %v5804_v0  ;;  %v2714_v29 = vsel %vm982_vm4, %v6354_v18, %v2707_v2  ;;  %v5490_v57 = vld [vmem:[#allocation8 + $0x1b8] sm:$0xff]   ;;  %v5493_v63 = vld [vmem:[#allocation8 + $0x200] sm:$0xff]   ;;  %v5495_v2 = vld [vmem:[#allocation8 + $0x208] sm:$0xff]  }
 0x355   : > { %v2717_v30 = vpack.c.bf16 %v2714_v29, %v6354_v18  ;;  %v5491_v59 = vld [vmem:[#allocation8 + $0x178] sm:$0xff]   ;;  %v5497_v60 = vld [vmem:[#allocation8 + $0x210] sm:$0xff]   ;;  %v5500_v3 = vld [vmem:[#allocation8 + $0x1e0] sm:$0xff]  }
 0x356   : > { %v5499_v58 = vld [vmem:[#allocation8 + $0x218] sm:$0xff]   ;;  %v5501_v4 = vld [vmem:[#allocation8 + $0x220] sm:$0xff]   ;;  %v5502_v45 = vld [vmem:[#allocation8 + $0x1e8] sm:$0xff]  }
 0x357   : > { %v5506_v10 = vld [vmem:[#allocation8 + $0x1f8] sm:$0xff]  }
 0x35b   : > { %4923 = vmatmul.mubr.bf16.gmra.mrb[68].mxu1 %v2203_v8  ;;  %4951 = vmatmul.mubr.bf16.gmra.mrb[80].mxu0 %v2171_v9  ;;  %v5504_v8 = vld [vmem:[#allocation8 + $0x1f0] sm:$0xff]  }
 0x35c   : > { %4970 = vmatprep.mubr.msk.bf16.mxu1 %vm5805_vm0, %v5804_v0  ;;  %4998 = vmatprep.mubr.msk.bf16.mxu0 %vm5805_vm0, %v5804_v0  ;;  %v5505_v9 = vld [vmem:[#allocation8 + $0x230] sm:$0xff]  }
 0x363   : > { %4971 = vmatmul.mubr.bf16.vlgmr.msra.gmra.mrb[72].mxu1 %v5806_v25  ;;  %4999 = vmatmul.mubr.bf16.vlgmr.msra.gmra.mrb[84].mxu0 %v2574_v19 }
 0x364   : > { %5011 = vmatpush3.bf16.msra.mxu1 %v5468_v17  ;;  %4974 = vmatprep.mubr.msk.bf16.mxu1 %vm5805_vm0, %v5804_v0  ;;  %v5507_v17 = vld [vmem:[#allocation8 + $0x238] sm:$0xff]  }
 0x365   : > { %5012 = vmatprep.subr.bf16.mxu1 %v5804_v0  ;;  %5002 = vmatprep.mubr.msk.bf16.mxu0 %vm5805_vm0, %v5804_v0 }
 0x366   : > { %5039 = vmatpush3.bf16.msra.mxu0 %v5476_v43 }
 0x367   : > { %5040 = vmatprep.subr.bf16.mxu0 %v5804_v0 }
 0x368   : > { %5013 = vmatpush3.bf16.msra.mxu1 %v5469_v20 }
 0x369   : > { %5014 = vmatprep.subr.bf16.mxu1 %v5804_v0 }
 0x36a   : > { %5041 = vmatpush3.bf16.msra.mxu0 %v5478_v44 }
 0x36b   : > { %4975 = vmatmul.mubr.bf16.gmra.mrb[76].mxu1 %v6501_v50  ;;  %5003 = vmatmul.mubr.bf16.gmra.mrb[88].mxu0 %v2575_v1  ;;  %v5494_v1 = vld [vmem:[#allocation8 + $0x1c8] sm:$0xff]  }
 0x36c   : > { %5015 = vmatpush3.bf16.msra.mxu1 %v5470_v21  ;;  %4978 = vmatprep.mubr.msk.bf16.mxu1 %vm5805_vm0, %v5804_v0 }
 0x36d   : > { %5016 = vmatprep.subr.bf16.mxu1 %v5804_v0  ;;  %5006 = vmatprep.mubr.msk.bf16.mxu0 %vm5805_vm0, %v5804_v0 }
 0x36e   : > { %5042 = vmatprep.subr.bf16.mxu0 %v5804_v0 }
 0x36f   : > { %5043 = vmatpush3.bf16.msra.mxu0 %v5480_v47 }
 0x370   : > { %5017 = vmatpush3.bf16.msra.mxu1 %v5471_v22  ;;  %5044 = vmatprep.subr.bf16.mxu0 %v5804_v0 }
 0x371   : > { %5018 = vmatprep.subr.bf16.mxu1 %v5804_v0 }
 0x373   : > { %4979 = vmatmul.mubr.bf16.gmra.mrb[80].mxu1 %v5806_v25  ;;  %5007 = vmatmul.mubr.bf16.gmra.mrb[92].mxu0 %v6408_v12 }
 0x374   : > { %5019 = vmatpush3.bf16.msra.mxu1 %v5472_v23  ;;  %5026 = vmatprep.mubr.msk.bf16.mxu1 %vm5805_vm0, %v5804_v0 }
 0x375   : > { %5020 = vmatprep.subr.bf16.mxu1 %v5804_v0  ;;  %5054 = vmatprep.mubr.msk.bf16.mxu0 %vm5805_vm0, %v5804_v0 }
 0x376   : > { %5045 = vmatpush3.bf16.msra.mxu0 %v5482_v49 }
 0x377   : > { %5046 = vmatprep.subr.bf16.mxu0 %v5804_v0 }
 0x378   : > { %5021 = vmatpush3.bf16.msra.mxu1 %v5473_v24 }
 0x379   : > { %5022 = vmatprep.subr.bf16.mxu1 %v5804_v0 }
 0x37a   : > { %5047 = vmatpush3.bf16.msra.mxu0 %v5484_v33 }
 0x37b   : > { %5048 = vmatprep.subr.bf16.mxu0 %v5804_v0 }
 0x37c   : > { %5023 = vmatpush3.bf16.msra.mxu1 %v5474_v26 }
 0x37d   : > { %5024 = vmatprep.subr.bf16.mxu1 %v5804_v0 }
 0x37e   : > { %5049 = vmatpush3.bf16.msra.mxu0 %v5486_v52 }
 0x37f   : > { %5050 = vmatprep.subr.bf16.mxu0 %v5804_v0 }
 0x380   : > { %5025 = vmatpush3.bf16.msra.mxu1 %v5475_v27 }
 0x381   : > { %5066 = vmatprep.subr.bf16.mxu1 %v5804_v0 }
 0x382   : > { %5051 = vmatpush3.bf16.msra.mxu0 %v5488_v55 }
 0x383   : > { %5027 = vmatmul.mubr.bf16.vlgmr.msra.gmra.mrb[84].mxu1 %v2717_v30  ;;  %5052 = vmatprep.subr.bf16.mxu0 %v5804_v0 }
 0x384   : > { %5030 = vmatprep.mubr.msk.bf16.mxu1 %vm5805_vm0, %v5804_v0  ;;  %5067 = vmatpush3.bf16.msra.mxu1 %v5477_v16 }
 0x385   : > { %5068 = vmatprep.subr.bf16.mxu1 %v5804_v0 }
 0x386   : > { %5053 = vmatpush3.bf16.msra.mxu0 %v5490_v57 }
 0x387   : > { %5094 = vmatprep.subr.bf16.mxu0 %v5804_v0 }
 0x388   : > { %5069 = vmatpush3.bf16.msra.mxu1 %v5479_v46 }
 0x389   : > { %5070 = vmatprep.subr.bf16.mxu1 %v5804_v0  ;;  %5055 = vmatmul.mubr.bf16.vlgmr.msra.gmra.mrb[96].mxu0 %v6291_v15  ;;  %v5496_v15 = vld [vmem:[#allocation8 + $0x1d0] sm:$0xff]  }
 0x38a   : > { %5058 = vmatprep.mubr.msk.bf16.mxu0 %vm5805_vm0, %v5804_v0  ;;  %5095 = vmatpush3.bf16.msra.mxu0 %v5492_v62 }
 0x38b   : > { %5031 = vmatmul.mubr.bf16.gmra.mrb[88].mxu1 %v2718_v6  ;;  %5096 = vmatprep.subr.bf16.mxu0 %v5804_v0  ;;  %v5503_v6 = vld [vmem:[#allocation8 + $0x228] sm:$0xff]  }
 0x38c   : > { %5034 = vmatprep.mubr.msk.bf16.mxu1 %vm5805_vm0, %v5804_v0  ;;  %5071 = vmatpush3.bf16.msra.mxu1 %v5481_v48 }
 0x38d   : > { %5072 = vmatprep.subr.bf16.mxu1 %v5804_v0 }
 0x38e   : > { %5097 = vmatpush3.bf16.msra.mxu0 %v5494_v1 }
 0x38f   : > { %5098 = vmatprep.subr.bf16.mxu0 %v5804_v0 }
 0x390   : > { %5073 = vmatpush3.bf16.msra.mxu1 %v5483_v32 }
 0x391   : > { %5074 = vmatprep.subr.bf16.mxu1 %v5804_v0 }
 0x392   : > { %5099 = vmatpush3.bf16.msra.mxu0 %v5496_v15 }
 0x393   : > { %5035 = vmatmul.mubr.bf16.gmra.mrb[92].mxu1 %v6456_v11  ;;  %5100 = vmatprep.subr.bf16.mxu0 %v5804_v0 }
 0x394   : > { %5082 = vmatprep.mubr.msk.bf16.mxu1 %vm5805_vm0, %v5804_v0  ;;  %5075 = vmatpush3.bf16.msra.mxu1 %v5485_v51 }
 0x395   : > { %5076 = vmatprep.subr.bf16.mxu1 %v5804_v0 }
 0x398   : > { %5077 = vmatpush3.bf16.msra.mxu1 %v5487_v53 }
 0x399   : > { %5078 = vmatprep.subr.bf16.mxu1 %v5804_v0 }
 0x39c   : > { %5079 = vmatpush3.bf16.msra.mxu1 %v5489_v56 }
 0x39d   : > { %5080 = vmatprep.subr.bf16.mxu1 %v5804_v0 }
 0x3a0   : > { %5081 = vmatpush3.bf16.msra.mxu1 %v5491_v59 }
 0x3a1   : > { %5122 = vmatprep.subr.bf16.mxu1 %v5804_v0 }
 0x3a3   : > { %5083 = vmatmul.mubr.bf16.vlgmr.msra.gmra.mrb[96].mxu1 %v6305_v7  ;;  %v5498_v7 = vld [vmem:[#allocation8 + $0x1d8] sm:$0xff]  }
 0x3a4   : > { %5123 = vmatpush3.bf16.msra.mxu1 %v5493_v63  ;;  %5086 = vmatprep.mubr.msk.bf16.mxu1 %vm5805_vm0, %v5804_v0 }
 0x3a5   : > { %5124 = vmatprep.subr.bf16.mxu1 %v5804_v0  ;;  %5101 = vmatpush3.bf16.msra.mxu0 %v5498_v7 }
 0x3a6   : > { %5102 = vmatprep.subr.bf16.mxu0 %v5804_v0 }
 0x3a8   : > { %5125 = vmatpush3.bf16.msra.mxu1 %v5495_v2 }
 0x3a9   : > { %5126 = vmatprep.subr.bf16.mxu1 %v5804_v0  ;;  %5103 = vmatpush3.bf16.msra.mxu0 %v5500_v3 }
 0x3aa   : > { %5104 = vmatprep.subr.bf16.mxu0 %v5804_v0 }
 0x3ac   : > { %5127 = vmatpush3.bf16.msra.mxu1 %v5497_v60 }
 0x3ad   : > { %5128 = vmatprep.subr.bf16.mxu1 %v5804_v0  ;;  %5105 = vmatpush3.bf16.msra.mxu0 %v5502_v45 }
 0x3ae   : > { %5106 = vmatprep.subr.bf16.mxu0 %v5804_v0 }
 0x3b0   : > { %5129 = vmatpush3.bf16.msra.mxu1 %v5499_v58 }
 0x3b1   : > { %5130 = vmatprep.subr.bf16.mxu1 %v5804_v0  ;;  %5107 = vmatpush3.bf16.msra.mxu0 %v5504_v8  ;;  %v4254_v8 = vld [vmem:[%s6813_s2 + $0x1] ss:$0 sm:$0xff] }
 0x3b2   : > { %5108 = vmatprep.subr.bf16.mxu0 %v5804_v0 }
 0x3b4   : > { %5131 = vmatpush3.bf16.msra.mxu1 %v5501_v4 }
 0x3b5   : > { %5132 = vmatprep.subr.bf16.mxu1 %v5804_v0  ;;  %5109 = vmatpush3.bf16.msra.mxu0 %v5506_v10 }
 0x3b6   : > { %5150 = vmatprep.subr.bf16.mxu0 %v5804_v0 }
 0x3b8   : > { %5133 = vmatpush3.bf16.msra.mxu1 %v5503_v6 }
 0x3b9   : > { %5134 = vmatprep.subr.bf16.mxu1 %v5804_v0 }
 0x3bc   : > { %5135 = vmatpush3.bf16.msra.mxu1 %v5505_v9 }
 0x3bd   : > { %5136 = vmatprep.subr.bf16.mxu1 %v5804_v0 }
 0x3c0   : > { %5137 = vmatpush3.bf16.msra.mxu1 %v5507_v17 }
 0x3c1   : > { %5178 = vmatprep.subr.bf16.mxu1 %v5804_v0 }
 0x426   : > { %v2311_v19 = vpop.f32.mrb[64].mxu1  ;;  %v2416_v20 = vpop.f32.mrb[76].mxu0 }
 0x427   : > { %v2417_v21 = vadd.f32 %v2416_v20, %v2311_v19  ;;  %v4920_v22 = vpop.f32.mrb[65].mxu1  ;;  %v4948_v23 = vpop.f32.mrb[77].mxu0 }
 0x428   : > { %v2314_v24 = vpop.f32.mrb[66].mxu1  ;;  %v2419_v26 = vpop.f32.mrb[78].mxu0 }
 0x429   : > { %v2420_v27 = vadd.f32 %v2419_v26, %v2314_v24  ;;  %v4921_v29 = vpop.f32.mrb[67].mxu1  ;;  %v4949_v30 = vpop.f32.mrb[79].mxu0 }
 0x42e   : > { %v2319_v31 = vpop.f32.mrb[68].mxu1  ;;  %v2424_v34 = vpop.f32.mrb[80].mxu0 }
 0x42f   : > { %v4924_v35 = vpop.f32.mrb[69].mxu1  ;;  %v4952_v36 = vpop.f32.mrb[81].mxu0 }
 0x430   : > { %v2322_v37 = vpop.f32.mrb[70].mxu1  ;;  %v2427_v38 = vpop.f32.mrb[82].mxu0 }
 0x431   : > { %v4925_v39 = vpop.f32.mrb[71].mxu1  ;;  %v4953_v40 = vpop.f32.mrb[83].mxu0 }
 0x436   : > { %v2533_v28 = vpop.f32.mrb[72].mxu1  ;;  %v2676_v41 = vpop.f32.mrb[84].mxu0 }
 0x437   : > { %v4972_v42 = vpop.f32.mrb[73].mxu1  ;;  %v5000_v13 = vpop.f32.mrb[85].mxu0 }
 0x438   : > { %v2536_v43 = vpop.f32.mrb[74].mxu1  ;;  %v2679_v16 = vpop.f32.mrb[86].mxu0 }
 0x439   : > { %v4973_v44 = vpop.f32.mrb[75].mxu1  ;;  %v5001_v46 = vpop.f32.mrb[87].mxu0 }
 0x43e   : > { %v2541_v47 = vpop.f32.mrb[76].mxu1  ;;  %v2684_v48 = vpop.f32.mrb[88].mxu0 }
 0x43f   : > { %v2558_v49 = vadd.f32 %v2541_v47, %v2417_v21  ;;  %v4976_v32 = vpop.f32.mrb[77].mxu1  ;;  %v5004_v33 = vpop.f32.mrb[89].mxu0 }
 0x440   : > { %v2544_v51 = vpop.f32.mrb[78].mxu1  ;;  %v2687_v52 = vpop.f32.mrb[90].mxu0 }
 0x441   : > { %v2701_v53 = vadd.f32 %v2684_v48, %v2558_v49  ;;  %v2559_v55 = vadd.f32 %v2544_v51, %v2420_v27  ;;  %v4977_v56 = vpop.f32.mrb[79].mxu1  ;;  %v5005_v57 = vpop.f32.mrb[91].mxu0 }
 0x443   : > { %v2702_v59 = vadd.f32 %v2687_v52, %v2559_v55 }
 0x446   : > { %v2549_v62 = vpop.f32.mrb[80].mxu1  ;;  %v2692_v63 = vpop.f32.mrb[92].mxu0 }
 0x447   : > { %v4980_v1 = vpop.f32.mrb[81].mxu1  ;;  %v5008_v2 = vpop.f32.mrb[93].mxu0 }
 0x448   : > { %v2552_v15 = vpop.f32.mrb[82].mxu1  ;;  %v2695_v60 = vpop.f32.mrb[94].mxu0 }
 0x449   : > { %v4981_v7 = vpop.f32.mrb[83].mxu1  ;;  %v5009_v58 = vpop.f32.mrb[95].mxu0 }
 0x456   : > { %v2819_v3 = vpop.f32.mrb[84].mxu1 }
 0x457   : > { %v5028_v4 = vpop.f32.mrb[85].mxu1 }
 0x458   : > { %v2822_v45 = vpop.f32.mrb[86].mxu1 }
 0x459   : > { %v5029_v6 = vpop.f32.mrb[87].mxu1 }
 0x45c   : > { %v3068_v14 = vpop.f32.mrb[96].mxu0 }
 0x45e   : > { %v2827_v9 = vpop.f32.mrb[88].mxu1 }
 0x45f   : > { %v2844_v10 = vadd.f32 %v2827_v9, %v2701_v53  ;;  %v5032_v17 = vpop.f32.mrb[89].mxu1 }
 0x460   : > { %v2830_v19 = vpop.f32.mrb[90].mxu1  ;;  %v5508_v17 = vld [vmem:[#allocation8 + $0x240] sm:$0xff]  }
 0x461   : > { %v2856_v20 = vadd.f32 %v4254_v8, %v2844_v10  ;;  %v2845_v21 = vadd.f32 %v2830_v19, %v2702_v59  ;;  %v5033_v22 = vpop.f32.mrb[91].mxu1  ;;  %v5509_v19 = vld [vmem:[#allocation10 + $0x40] sm:$0xff]  }
 0x462   : > { %v5514_v22 = vld [vmem:[#allocation8 + $0x258] sm:$0xff]  }
 0x463   : > { %v2862_v23 = vmul.f32 %v2856_v20, %v2856_v20  ;;  %v2857_v24 = vadd.f32 %v4254_v8, %v2845_v21  ;;  %v5513_v21 = vld [vmem:[#allocation10 + $0x50] sm:$0xff]  }
 0x465   : > { %v2868_v26 = vmul.f32 %v2862_v23, %v2856_v20  ;;  %v2863_v27 = vmul.f32 %v2857_v24, %v2857_v24  ;;  %v5515_v23 = vld [vmem:[#allocation10 + $0x58] sm:$0xff]  }
 0x466   : > { %v2835_v29 = vpop.f32.mrb[92].mxu1 }
 0x467   : > { %v2874_v30 = vmul.f32 0.044715, %v2868_v26  ;;  %v2869_v31 = vmul.f32 %v2863_v27, %v2857_v24  ;;  %v5036_v34 = vpop.f32.mrb[93].mxu1  ;;  %v5517_v26 = vld [vmem:[#allocation10 + $0x60] sm:$0xff]   ;;  %v5518_v27 = vld [vmem:[#allocation8 + $0x268] sm:$0xff]  }
 0x468   : > { %v2838_v35 = vpop.f32.mrb[94].mxu1  ;;  %v5519_v29 = vld [vmem:[#allocation10 + $0x68] sm:$0xff]   ;;  %v5523_v34 = vld [vmem:[#allocation10 + $0x78] sm:$0xff]  }
 0x469   : > { %v2880_v36 = vadd.f32 %v2874_v30, %v2856_v20  ;;  %v2875_v37 = vmul.f32 0.044715, %v2869_v31  ;;  %v5037_v38 = vpop.f32.mrb[95].mxu1  ;;  %v5520_v30 = vld [vmem:[#allocation8 + $0x270] sm:$0xff]  }
 0x46a   : > { %v5521_v31 = vld [vmem:[#allocation10 + $0x70] sm:$0xff]  }
 0x46b   : > { %v2886_v39 = vmul.f32 0.7978846, %v2880_v36  ;;  %v2881_v40 = vadd.f32 %v2875_v37, %v2857_v24 }
 0x46d   : > { %5552 = vtanh.f32 %v2886_v39  ;;  %v2887_v28 = vmul.f32 0.7978846, %v2881_v40 }
 0x46f   : > { %5554 = vtanh.f32 %v2887_v28 }
 0x477   : > { %v5553_v41 = vpop.eup %5552 }
 0x478   : > { %v2898_v42 = vadd.f32 1.0, %v5553_v41  ;;  %v5524_v41 = vld [vmem:[#allocation11 + $0x40] sm:$0xff]  }
 0x479   : > { %v5555_v13 = vpop.eup %5554 }
 0x47a   : > { %v2904_v43 = vmul.f32 0.5, %v2898_v42  ;;  %v2899_v16 = vadd.f32 1.0, %v5555_v13  ;;  %v5525_v42 = vld [vmem:[#allocation11] sm:$0xff]   ;;  %v5528_v13 = vld [vmem:[#allocation11 + $0x50] sm:$0xff]  }
 0x47c   : > { %v6620_v44 = vmul.f32 %v2904_v43, %v2856_v20  ;;  %v2905_v46 = vmul.f32 0.5, %v2899_v16  ;;  %v5529_v43 = vld [vmem:[#allocation11 + $0x10] sm:$0xff]   ;;  %v5530_v16 = vld [vmem:[#allocation11 + $0x58] sm:$0xff]  }
 0x47e   : > { %v2911_v47 = vmul.f32 %v2905_v46, %v2857_v24  ;;  %v2956_v48 = vrot.slane %v6620_v44, 7  ;;  %v2924_v49 = vrot.slane %v6620_v44, 6  ;;  %v3313_v51 = vrot.slane %v6620_v44, 1  ;;  %v5516_v24 = vld [vmem:[#allocation8 + $0x260] sm:$0xff]  }
 0x47f   : > { %v3448_v60 = vrot.slane %v6620_v44, 2  ;;  %v5532_v46 = vld [vmem:[#allocation11 + $0x60] sm:$0xff]  }
 0x480   : > { %v2957_v32 = vrot.slane %v2911_v47, 7  ;;  %v2925_v33 = vrot.slane %v2911_v47, 6  ;;  %v3189_v52 = vpack.c.bf16 %v2911_v47, %v6620_v44  ;;  %v3314_v53 = vrot.slane %v2911_v47, 1  ;;  %v5531_v44 = vld [vmem:[#allocation11 + $0x18] sm:$0xff]  }
 0x481   : > { %v2963_v56 = vsel %vm467_vm1, %v6286_v5, %v2956_v48  ;;  %v2931_v59 = vsel %vm435_vm2, %v6298_v61, %v2924_v49  ;;  %v3449_v7 = vrot.slane %v2911_v47, 2  ;;  %v3320_v10 = vsel %vm838_vm3, %v6334_v54, %v3313_v51  ;;  %v5533_v47 = vld [vmem:[#allocation11 + $0x20] sm:$0xff]  }
 0x482   : > { %v2962_v55 = vsel %vm467_vm1, %v2956_v48, %v2957_v32  ;;  %v2930_v57 = vsel %vm435_vm2, %v2924_v49, %v2925_v33  ;;  %v3318_v1 = vsel %vm838_vm3, %v3314_v53, %v6334_v54  ;;  %v3319_v2 = vsel %vm838_vm3, %v3313_v51, %v3314_v53  ;;  %v5534_v48 = vld [vmem:[#allocation11 + $0x68] sm:$0xff]   ;;  %v5538_v51 = vld [vmem:[#allocation11 + $0x78] sm:$0xff]  }
 0x483   : > { %v2967_v62 = vpack.c.bf16 %v2962_v55, %v2963_v56  ;;  %v2935_v63 = vpack.c.bf16 %v2930_v57, %v2931_v59  ;;  %v3324_v15 = vpack.c.bf16 %v3318_v1, %v3319_v2  ;;  %v6649_v58 = vsel %vm982_vm4, %v3449_v7, %v6354_v18  ;;  %v5535_v49 = vld [vmem:[#allocation11 + $0x28] sm:$0xff]  }
 0x484   : > { %v6655_v3 = vsel %vm982_vm4, %v3448_v60, %v3449_v7  ;;  %v2961_v4 = vsel %vm467_vm1, %v2957_v32, %v6286_v5  ;;  %v2929_v45 = vsel %vm435_vm2, %v2925_v33, %v6298_v61  ;;  %v3323_v20 = vpack.c.bf16 %v3320_v10, %v6334_v54  ;;  %v5512_v54 = vld [vmem:[#allocation8 + $0x250] sm:$0xff]  }
 0x485   : > { %5059 = vmatmul.mubr.bf16.gmra.mrb[100].mxu0 %v2967_v62  ;;  %5087 = vmatmul.mubr.bf16.gmra.mrb[100].mxu1 %v2935_v63  ;;  %v3459_v6 = vpack.c.bf16 %v6649_v58, %v6655_v3  ;;  %v2968_v8 = vpack.c.bf16 %v6286_v5, %v2961_v4  ;;  %v2936_v9 = vpack.c.bf16 %v6298_v61, %v2929_v45  ;;  %v5510_v5 = vld [vmem:[#allocation8 + $0x248] sm:$0xff]   ;;  %v5536_v32 = vld [vmem:[#allocation11 + $0x70] sm:$0xff]  }
 0x486   : > { %5062 = vmatprep.mubr.msk.bf16.mxu0 %vm5805_vm0, %v5804_v0  ;;  %5090 = vmatprep.mubr.msk.bf16.mxu1 %vm5805_vm0, %v5804_v0  ;;  %v5511_v61 = vld [vmem:[#allocation10 + $0x48] sm:$0xff]   ;;  %v3455_v35 = vsel %vm982_vm4, %v6354_v18, %v3448_v60  ;;  %v5537_v33 = vld [vmem:[#allocation11 + $0x30] sm:$0xff]  }
 0x487   : > { %v3458_v36 = vpack.c.bf16 %v3455_v35, %v6354_v18  ;;  %v5056_v18 = vpop.f32.mrb[97].mxu0 }
 0x488   : > { %v3070_v37 = vpop.f32.mrb[98].mxu0 }
 0x489   : > { %v5057_v38 = vpop.f32.mrb[99].mxu0 }
 0x48d   : > { %5063 = vmatmul.mubr.bf16.gmra.mrb[104].mxu0 %v2968_v8  ;;  %5091 = vmatmul.mubr.bf16.gmra.mrb[104].mxu1 %v2936_v9 }
 0x48e   : > { %5110 = vmatprep.mubr.msk.bf16.mxu0 %vm5805_vm0, %v5804_v0  ;;  %5138 = vmatprep.mubr.msk.bf16.mxu1 %vm5805_vm0, %v5804_v0 }
 0x495   : > { %5111 = vmatmul.mubr.bf16.vlgmr.msra.gmra.mrb[108].mxu0 %v5806_v25  ;;  %5139 = vmatmul.mubr.bf16.vlgmr.msra.gmra.mrb[108].mxu1 %v3323_v20 }
 0x496   : > { %5151 = vmatpush3.bf16.msra.mxu0 %v5508_v17  ;;  %5179 = vmatpush3.bf16.msra.mxu1 %v5509_v19 }
 0x497   : > { %5152 = vmatprep.subr.bf16.mxu0 %v5804_v0  ;;  %5180 = vmatprep.subr.bf16.mxu1 %v5804_v0 }
 0x498   : > { %5114 = vmatprep.mubr.msk.bf16.mxu0 %vm5805_vm0, %v5804_v0  ;;  %5142 = vmatprep.mubr.msk.bf16.mxu1 %vm5805_vm0, %v5804_v0 }
 0x49a   : > { %5153 = vmatpush3.bf16.msra.mxu0 %v5510_v5  ;;  %5181 = vmatpush3.bf16.msra.mxu1 %v5511_v61 }
 0x49b   : > { %5154 = vmatprep.subr.bf16.mxu0 %v5804_v0  ;;  %5182 = vmatprep.subr.bf16.mxu1 %v5804_v0 }
 0x49d   : > { %5115 = vmatmul.mubr.bf16.gmra.mrb[112].mxu0 %v3189_v52  ;;  %5143 = vmatmul.mubr.bf16.gmra.mrb[112].mxu1 %v3324_v15  ;;  %v5539_v52 = vld [vmem:[#allocation11 + $0x38] sm:$0xff]  }
 0x49e   : > { %5155 = vmatpush3.bf16.msra.mxu0 %v5512_v54  ;;  %5183 = vmatpush3.bf16.msra.mxu1 %v5513_v21 }
 0x49f   : > { %5156 = vmatprep.subr.bf16.mxu0 %v5804_v0  ;;  %5184 = vmatprep.subr.bf16.mxu1 %v5804_v0 }
 0x4a0   : > { %5118 = vmatprep.mubr.msk.bf16.mxu0 %vm5805_vm0, %v5804_v0  ;;  %5146 = vmatprep.mubr.msk.bf16.mxu1 %vm5805_vm0, %v5804_v0 }
 0x4a2   : > { %5157 = vmatpush3.bf16.msra.mxu0 %v5514_v22  ;;  %5185 = vmatpush3.bf16.msra.mxu1 %v5515_v23 }
 0x4a3   : > { %5158 = vmatprep.subr.bf16.mxu0 %v5804_v0  ;;  %5186 = vmatprep.subr.bf16.mxu1 %v5804_v0 }
 0x4a5   : > { %5119 = vmatmul.mubr.bf16.gmra.mrb[116].mxu0 %v5806_v25  ;;  %5147 = vmatmul.mubr.bf16.gmra.mrb[116].mxu1 %v6408_v12  ;;  %v5522_v12 = vld [vmem:[#allocation8 + $0x278] sm:$0xff]  }
 0x4a6   : > { %5159 = vmatpush3.bf16.msra.mxu0 %v5516_v24  ;;  %5187 = vmatpush3.bf16.msra.mxu1 %v5517_v26 }
 0x4a7   : > { %5160 = vmatprep.subr.bf16.mxu0 %v5804_v0  ;;  %5188 = vmatprep.subr.bf16.mxu1 %v5804_v0 }
 0x4a8   : > { %5166 = vmatprep.mubr.msk.bf16.mxu0 %vm5805_vm0, %v5804_v0  ;;  %5194 = vmatprep.mubr.msk.bf16.mxu1 %vm5805_vm0, %v5804_v0 }
 0x4aa   : > { %5161 = vmatpush3.bf16.msra.mxu0 %v5518_v27  ;;  %5189 = vmatpush3.bf16.msra.mxu1 %v5519_v29 }
 0x4ab   : > { %5162 = vmatprep.subr.bf16.mxu0 %v5804_v0  ;;  %5190 = vmatprep.subr.bf16.mxu1 %v5804_v0 }
 0x4ae   : > { %5163 = vmatpush3.bf16.msra.mxu0 %v5520_v30  ;;  %5191 = vmatpush3.bf16.msra.mxu1 %v5521_v31 }
 0x4af   : > { %5164 = vmatprep.subr.bf16.mxu0 %v5804_v0  ;;  %5192 = vmatprep.subr.bf16.mxu1 %v5804_v0 }
 0x4b2   : > { %5165 = vmatpush3.bf16.msra.mxu0 %v5522_v12  ;;  %5193 = vmatpush3.bf16.msra.mxu1 %v5523_v34 }
 0x4b3   : > { %5206 = vmatprep.subr.bf16.mxu0 %v5804_v0  ;;  %5226 = vmatprep.subr.bf16.mxu1 %v5804_v0 }
 0x4b5   : > { %5167 = vmatmul.mubr.bf16.vlgmr.msra.gmra.mrb[120].mxu0 %v3458_v36  ;;  %5195 = vmatmul.mubr.bf16.vlgmr.msra.gmra.mrb[120].mxu1 %v5806_v25 }
 0x4b6   : > { %5170 = vmatprep.mubr.msk.bf16.mxu0 %vm5805_vm0, %v5804_v0  ;;  %5198 = vmatprep.mubr.msk.bf16.mxu1 %vm5805_vm0, %v5804_v0 }
 0x4b7   : > { %5207 = vmatpush3.bf16.msra.mxu0 %v5524_v41  ;;  %5227 = vmatpush3.bf16.msra.mxu1 %v5525_v42 }
 0x4b8   : > { %5208 = vmatprep.subr.bf16.mxu0 %v5804_v0  ;;  %5228 = vmatprep.subr.bf16.mxu1 %v5804_v0 }
 0x4bd   : > { %5171 = vmatmul.mubr.bf16.gmra.mrb[124].mxu0 %v3459_v6  ;;  %5199 = vmatmul.mubr.bf16.gmra.mrb[124].mxu1 %v6501_v50  ;;  %v3169_v50 = vpop.f32.mrb[96].mxu1 }
 0x4be   : > { %5174 = vmatprep.mubr.msk.bf16.mxu0 %vm5805_vm0, %v5804_v0  ;;  %5202 = vmatprep.mubr.msk.bf16.mxu1 %vm5805_vm0, %v5804_v0  ;;  %v5084_v39 = vpop.f32.mrb[97].mxu1 }
 0x4bf   : > { %v3171_v40 = vpop.f32.mrb[98].mxu1 }
 0x4c0   : > { %v5085_v28 = vpop.f32.mrb[99].mxu1 }
 0x4c5   : > { %5175 = vmatmul.mubr.bf16.gmra.mrb[128].mxu0 %v6456_v11  ;;  %5203 = vmatmul.mubr.bf16.gmra.mrb[128].mxu1 %v5806_v25  ;;  %v5526_v25 = vld [vmem:[#allocation11 + $0x48] sm:$0xff]  }
 0x4c6   : > { %5222 = vmatprep.mubr.msk.bf16.mxu0 %vm5805_vm0, %v5804_v0  ;;  %5242 = vmatprep.mubr.msk.bf16.mxu1 %vm5805_vm0, %v5804_v0  ;;  %v5527_v11 = vld [vmem:[#allocation11 + $0x8] sm:$0xff]  }
 0x4c7   : > { %5209 = vmatpush3.bf16.msra.mxu0 %v5526_v25  ;;  %5229 = vmatpush3.bf16.msra.mxu1 %v5527_v11 }
 0x4c8   : > { %5210 = vmatprep.subr.bf16.mxu0 %v5804_v0  ;;  %5230 = vmatprep.subr.bf16.mxu1 %v5804_v0 }
 0x4cb   : > { %5211 = vmatpush3.bf16.msra.mxu0 %v5528_v13  ;;  %5231 = vmatpush3.bf16.msra.mxu1 %v5529_v43 }
 0x4cc   : > { %5212 = vmatprep.subr.bf16.mxu0 %v5804_v0  ;;  %5232 = vmatprep.subr.bf16.mxu1 %v5804_v0 }
 0x4cf   : > { %5213 = vmatpush3.bf16.msra.mxu0 %v5530_v16  ;;  %5233 = vmatpush3.bf16.msra.mxu1 %v5531_v44  ;;  %v4296_v16 = vld [vmem:[%s6815_s4 + $0x1] ss:$0 sm:$0xff] }
 0x4d0   : > { %5214 = vmatprep.subr.bf16.mxu0 %v5804_v0  ;;  %5234 = vmatprep.subr.bf16.mxu1 %v5804_v0 }
 0x4d3   : > { %5215 = vmatpush3.bf16.msra.mxu0 %v5532_v46  ;;  %5235 = vmatpush3.bf16.msra.mxu1 %v5533_v47 }
 0x4d4   : > { %5216 = vmatprep.subr.bf16.mxu0 %v5804_v0  ;;  %5236 = vmatprep.subr.bf16.mxu1 %v5804_v0 }
 0x4d7   : > { %5217 = vmatpush3.bf16.msra.mxu0 %v5534_v48  ;;  %5237 = vmatpush3.bf16.msra.mxu1 %v5535_v49 }
 0x4d8   : > { %5218 = vmatprep.subr.bf16.mxu0 %v5804_v0  ;;  %5238 = vmatprep.subr.bf16.mxu1 %v5804_v0 }
 0x4db   : > { %5219 = vmatpush3.bf16.msra.mxu0 %v5536_v32  ;;  %5239 = vmatpush3.bf16.msra.mxu1 %v5537_v33 }
 0x4dc   : > { %5220 = vmatprep.subr.bf16.mxu0 %v5804_v0  ;;  %5240 = vmatprep.subr.bf16.mxu1 %v5804_v0 }
 0x4df   : > { %5221 = vmatpush3.bf16.msra.mxu0 %v5538_v51  ;;  %5241 = vmatpush3.bf16.msra.mxu1 %v5539_v52 }
 0x558   : > { %v3074_v53 = vpop.f32.mrb[100].mxu0  ;;  %v3175_v55 = vpop.f32.mrb[100].mxu1 }
 0x559   : > { %v3176_v56 = vadd.f32 %v3175_v55, %v3074_v53  ;;  %v5060_v57 = vpop.f32.mrb[101].mxu0  ;;  %v5088_v59 = vpop.f32.mrb[101].mxu1 }
 0x55a   : > { %v3077_v62 = vpop.f32.mrb[102].mxu0  ;;  %v3178_v63 = vpop.f32.mrb[102].mxu1 }
 0x55b   : > { %v3179_v1 = vadd.f32 %v3178_v63, %v3077_v62  ;;  %v5061_v2 = vpop.f32.mrb[103].mxu0  ;;  %v5089_v15 = vpop.f32.mrb[103].mxu1 }
 0x560   : > { %v3082_v60 = vpop.f32.mrb[104].mxu0  ;;  %v3183_v7 = vpop.f32.mrb[104].mxu1 }
 0x561   : > { %v5064_v58 = vpop.f32.mrb[105].mxu0  ;;  %v5092_v3 = vpop.f32.mrb[105].mxu1 }
 0x562   : > { %v3084_v4 = vpop.f32.mrb[106].mxu0  ;;  %v3185_v45 = vpop.f32.mrb[106].mxu1 }
 0x563   : > { %v5065_v6 = vpop.f32.mrb[107].mxu0  ;;  %v5093_v0 = vpop.f32.mrb[107].mxu1 }
 0x568   : > { %v3290_v8 = vpop.f32.mrb[108].mxu0  ;;  %v3425_v9 = vpop.f32.mrb[108].mxu1 }
 0x569   : > { %v5112_v10 = vpop.f32.mrb[109].mxu0  ;;  %v5140_v17 = vpop.f32.mrb[109].mxu1 }
 0x56a   : > { %v3292_v19 = vpop.f32.mrb[110].mxu0  ;;  %v3427_v20 = vpop.f32.mrb[110].mxu1 }
 0x56b   : > { %v5113_v5 = vpop.f32.mrb[111].mxu0  ;;  %v5141_v61 = vpop.f32.mrb[111].mxu1 }
 0x56c   : > { %v4298_v5 = vld [vmem:[%s6817_s6 + $0x1] ss:$0 sm:$0xff] }
 0x570   : > { %v3296_v54 = vpop.f32.mrb[112].mxu0  ;;  %v3431_v21 = vpop.f32.mrb[112].mxu1 }
 0x571   : > { %v3309_v22 = vadd.f32 %v3296_v54, %v3176_v56  ;;  %v5116_v23 = vpop.f32.mrb[113].mxu0  ;;  %v5144_v24 = vpop.f32.mrb[113].mxu1 }
 0x572   : > { %v3299_v26 = vpop.f32.mrb[114].mxu0  ;;  %v3434_v27 = vpop.f32.mrb[114].mxu1 }
 0x573   : > { %v3444_v29 = vadd.f32 %v3431_v21, %v3309_v22  ;;  %v3310_v30 = vadd.f32 %v3299_v26, %v3179_v1  ;;  %v5117_v31 = vpop.f32.mrb[115].mxu0  ;;  %v5145_v12 = vpop.f32.mrb[115].mxu1 }
 0x575   : > { %v3445_v34 = vadd.f32 %v3434_v27, %v3310_v30 }
 0x578   : > { %v3304_v35 = vpop.f32.mrb[116].mxu0  ;;  %v3439_v36 = vpop.f32.mrb[116].mxu1 }
 0x579   : > { %v5120_v14 = vpop.f32.mrb[117].mxu0  ;;  %v5148_v18 = vpop.f32.mrb[117].mxu1 }
 0x57a   : > { %v3306_v37 = vpop.f32.mrb[118].mxu0  ;;  %v3441_v50 = vpop.f32.mrb[118].mxu1 }
 0x57b   : > { %v5121_v38 = vpop.f32.mrb[119].mxu0  ;;  %v5149_v39 = vpop.f32.mrb[119].mxu1 }
 0x588   : > { %v3560_v40 = vpop.f32.mrb[120].mxu0  ;;  %v3714_v28 = vpop.f32.mrb[120].mxu1 }
 0x589   : > { %v5168_v41 = vpop.f32.mrb[121].mxu0  ;;  %v5196_v42 = vpop.f32.mrb[121].mxu1 }
 0x58a   : > { %v3562_v25 = vpop.f32.mrb[122].mxu0  ;;  %v3716_v11 = vpop.f32.mrb[122].mxu1 }
 0x58b   : > { %v5169_v13 = vpop.f32.mrb[123].mxu0  ;;  %v5197_v43 = vpop.f32.mrb[123].mxu1 }
 0x590   : > { %v3566_v44 = vpop.f32.mrb[124].mxu0  ;;  %v3720_v46 = vpop.f32.mrb[124].mxu1 }
 0x591   : > { %v3579_v47 = vadd.f32 %v3566_v44, %v3444_v29  ;;  %v5172_v48 = vpop.f32.mrb[125].mxu0  ;;  %v5200_v49 = vpop.f32.mrb[125].mxu1  ;;  %v3721_v22 = vadd.f32 %v4298_v5, %v3720_v46 }
 0x592   : > { %v3569_v32 = vpop.f32.mrb[126].mxu0  ;;  %v3723_v33 = vpop.f32.mrb[126].mxu1  ;;  %v4323_v48 = vld [vmem:[%s6819_s8] ss:$0 sm:$0xff] }
 0x593   : > { %v3587_v51 = vadd.f32 %v4296_v16, %v3579_v47  ;;  %v3580_v52 = vadd.f32 %v3569_v32, %v3445_v34  ;;  %v5173_v53 = vpop.f32.mrb[127].mxu0  ;;  %v5201_v55 = vpop.f32.mrb[127].mxu1  ;;  %v3724_v27 = vadd.f32 %v4298_v5, %v3723_v33 }
 0x595   : > { %v3589_v56 = vmul.f32 %v3587_v51, %v3587_v51  ;;  %v3588_v57 = vadd.f32 %v4296_v16, %v3580_v52 }
 0x597   : > { %v3591_v59 = vmul.f32 %v3589_v56, %v3587_v51  ;;  %v3590_v62 = vmul.f32 %v3588_v57, %v3588_v57 }
 0x598   : > { %v3574_v63 = vpop.f32.mrb[128].mxu0  ;;  %v3728_v1 = vpop.f32.mrb[128].mxu1 }
 0x599   : > { %v3593_v2 = vmul.f32 0.044715, %v3591_v59  ;;  %v3592_v15 = vmul.f32 %v3590_v62, %v3588_v57  ;;  %v5176_v60 = vpop.f32.mrb[129].mxu0  ;;  %v5204_v7 = vpop.f32.mrb[129].mxu1 }
 0x59a   : > { %v3576_v58 = vpop.f32.mrb[130].mxu0  ;;  %v3730_v3 = vpop.f32.mrb[130].mxu1 }
 0x59b   : > { %v3595_v4 = vadd.f32 %v3593_v2, %v3587_v51  ;;  %v3594_v45 = vmul.f32 0.044715, %v3592_v15  ;;  %v5177_v6 = vpop.f32.mrb[131].mxu0  ;;  %v5205_v0 = vpop.f32.mrb[131].mxu1 }
 0x59d   : > { %v3597_v8 = vmul.f32 0.7978846, %v3595_v4  ;;  %v3596_v9 = vadd.f32 %v3594_v45, %v3588_v57 }
 0x59f   : > { %5556 = vtanh.f32 %v3597_v8  ;;  %v3598_v10 = vmul.f32 0.7978846, %v3596_v9 }
 0x5a1   : > { %5558 = vtanh.f32 %v3598_v10 }
 0x5a9   : > { %v5557_v17 = vpop.eup %5556 }
 0x5aa   : > { %v3601_v19 = vadd.f32 1.0, %v5557_v17 }
 0x5ab   : > { %v5559_v20 = vpop.eup %5558 }
 0x5ac   : > { %v3603_v61 = vmul.f32 0.5, %v3601_v19  ;;  %v3602_v54 = vadd.f32 1.0, %v5559_v20 }
 0x5ae   : > { %v3605_v21 = vmul.f32 %v3603_v61, %v3587_v51  ;;  %v3604_v23 = vmul.f32 0.5, %v3602_v54 }
 0x5b0   : > { %v3733_v24 = vadd.f32 %v3721_v22, %v3605_v21  ;;  %v3606_v26 = vmul.f32 %v3604_v23, %v3588_v57 }
 0x5b2   : > { %v3735_v29 = vmul.f32 %v3733_v24, %v3733_v24  ;;  %v3734_v30 = vadd.f32 %v3724_v27, %v3606_v26 }
 0x5b4   : > { %v3737_v31 = vmul.f32 %v3735_v29, %v3733_v24  ;;  %v3736_v12 = vmul.f32 %v3734_v30, %v3734_v30 }
 0x5b6   : > { %v3739_v34 = vmul.f32 0.044715, %v3737_v31  ;;  %v3738_v35 = vmul.f32 %v3736_v12, %v3734_v30 }
 0x5b8   : > { %v3741_v36 = vadd.f32 %v3739_v34, %v3733_v24  ;;  %v3740_v14 = vmul.f32 0.044715, %v3738_v35 }
 0x5ba   : > { %v3743_v18 = vmul.f32 0.7978846, %v3741_v36  ;;  %v3742_v37 = vadd.f32 %v3740_v14, %v3734_v30 }
 0x5bc   : > { %5560 = vtanh.f32 %v3743_v18  ;;  %v3744_v50 = vmul.f32 0.7978846, %v3742_v37 }
 0x5be   : > { %5562 = vtanh.f32 %v3744_v50 }
 0x5c6   : > { %v5561_v38 = vpop.eup %5560 }
 0x5c7   : > { %v3747_v39 = vadd.f32 1.0, %v5561_v38 }
 0x5c8   : > { %v5563_v40 = vpop.eup %5562 }
 0x5c9   : > { %v3749_v28 = vmul.f32 0.5, %v3747_v39  ;;  %v3748_v41 = vadd.f32 1.0, %v5563_v40 }
 0x5cb   : > { %v3751_v42 = vmul.f32 %v3749_v28, %v3733_v24  ;;  %v3750_v25 = vmul.f32 0.5, %v3748_v41 }
 0x5cd   : > { %3755 = vst [vmem:[#allocation3] sm:$0xff] %v3751_v42  ;;  %v3752_v11 = vmul.f32 %v3750_v25, %v3734_v30 }
 0x5cf   : > { %3756 = vst [vmem:[#allocation3 + $0x8] sm:$0xff] %v3752_v11 }
 0x5d6   : > { %v3759_v13 = vld [vmem:[#allocation3 + $0x1] ss:$2 sm:$0xff]  ;;  %v3757_v43 = vld [vmem:[#allocation3] ss:$2 sm:$0xff] }
 0x5d7   : > { %v3777_v16 = vpack.c.bf16 %v3759_v13, %v3759_v13  ;;  %v3760_v44 = vpack.c.bf16 %v3757_v43, %v3757_v43 }
 0x5d9   : > { %5223 = vmatmul.mubr.bf16.vlgmr.msra.gmra.mrb[132].mxu0 %v3777_v16  ;;  %5243 = vmatmul.mubr.bf16.vlgmr.msra.gmra.mrb[132].mxu1 %v3760_v44 }
 0x6ac   : > { %v3877_v46 = vpop.f32.mrb[132].mxu0  ;;  %v3965_v47 = vpop.f32.mrb[132].mxu1 }
 0x6ad   : > { %v3966_v49 = vadd.f32 %v3965_v47, %v3877_v46  ;;  %v5224_v32 = vpop.f32.mrb[133].mxu0  ;;  %v5244_v33 = vpop.f32.mrb[133].mxu1 }
 0x6ae   : > { %v3880_v51 = vpop.f32.mrb[134].mxu0  ;;  %v3968_v52 = vpop.f32.mrb[134].mxu1 }
 0x6af   : > { %v3978_v53 = vadd.f32 %v4323_v48, %v3966_v49  ;;  %v5225_v55 = vpop.f32.mrb[135].mxu0  ;;  %v5245_v56 = vpop.f32.mrb[135].mxu1 }
 0x6b1   : > { %3979 = vst [vmem:[%s357_s13] sm:$0xff] %v3978_v53 }
 0x6b2   : > { %5716 = shalt.err (!%p5713_p2)
}
 0x6b3   : > { %s5717_s23 = scalar_lea.hbm %s6760_s29, 128  ;;  %s5721_s3 = scalar_lea.hbm %s6820_s9, 256 }
 0x6b4   : > { %p5718_p3 = scmp.ne.s32.totalorder %s6760_s29, %s5717_s23  ;;  %p5722_p7 = scmp.lt.u32.totalorder %s6760_s29, %s6820_s9 }
 0x6b5   : > { %p5723_p9 = scmp.lt.u32.totalorder %s5721_s3, %s5717_s23  ;;  %p5725_p4 = scmp.lt.u32.totalorder %s5717_s23, %s6760_s29 }
 0x6b6   : > { %p5719_p5 = pnand %p5718_p3, %p6849_p1 }
 0x6b7   : > { %p5724_p12 = por %p5723_p9, %p5722_p7 }
 0x6b8   : > { %p5720_p6 = pneg %p5719_p5 }
 0x6b9   : > { %p5726_p13 = por %p5725_p4, %p5724_p12 }
 0x6bb   : > { %p5727_p8 = pnand %p5726_p13, %p5720_p6 }
 0x6bd   : > { %5730 = shalt.err (!%p5727_p8)
}
 0x6be   : > { %5262 = dma.vmem_to_hbm [thread:$0]  (%p6849_p1), %s6762_s28, 128, %s6760_s29, %s3981_s12  }
 0x6bf PF: > { %s6850_s21 = sld [smem:[#allocation26_spill]]  ;;  %s6851_s24 = sld [smem:[#allocation23_spill]] }
 0x6c0   : > { %s6852_s22 = sld [smem:[#allocation28_spill]] }
 0x6c5   : > { %p5289_p10 = scmp.ge.s32.totalorder %s6850_s21, 2  ;;  %s4007_s15 = sand.u32 1, %s6851_s24  }
 0x6c6   : > { %p6853_p11 = scmp.ne.s32.totalorder %s6852_s22, 0  ;;  %s4008_s20 = scalar_lea.sflag [#allocation7], %s4007_s15 }
 0x6c8   : > { %p5278_p0 = pnand %p5289_p10, %p6853_p11 }
 0x6ca   : > { %5770 = dma.done.wait (!%p5278_p0), %s4008_s20, 128  }
 0x6cb   : > { %5772 = vsyncadd (!%p5278_p0), %s4008_s20, 4294967168  ;;  %s25_s14 = sadd.s32 1, %s6850_s21   ;;  %s6854_s26 = sld [smem:[#allocation24_spill]] }
 0x6cc   : > { %p22_p2 = scmp.ge.s32.totalorder %s25_s14, 4   ;;  %s6855_s11 = sld [smem:[#allocation29_spill]] }
 0x6cd   : > { %s6856_s12 = sld [smem:[#allocation25_spill]]  ;;  %s6857_s13 = sld [smem:[#allocation27_spill]] }
 0x6ce   : > { %s6858_s30 = smov %s5779_s10  ;;  %24 = sbr.rel (!%p22_p2) target bundleno = 9 (0x9), region = 130 }
 0x6d1   : > { %s6859_s10 = smov %s6854_s26 }
 0x6d5   :  { %4013 = vsyncpa [#allocation6], 1 }
 0x6d6   :  { %4015 = vsyncpa [#allocation6 + $0x1], 1 }
 0x6d7   :  { %4016 = vsyncpa [#allocation9], 1 }
 0x6d8   :  { %4017 = vsyncpa [#allocation12], 1 }
 0x6d9   :  { %4018 = vsyncpa [#allocation7], 1 }
 0x6da   :  { %4020 = vsyncpa [#allocation7 + $0x1], 1 }
 0x6db   :  { %4021 = vsyncmov [#allocation4] }
 0x6de   :  { %s4022_s19 = vpop.sfrf %4021 }
 0x6df   :  { %p4328_p1 = scmp.ne.s32.totalorder %s4022_s19, 0 }
 0x6e1   :  { %4026 = shalt.err (%p4328_p1)  }

// kernel: tpu_custom_call.1
= control target key start
LH: loop header
LB: loop body
LE: loop exit
PB: predicated region body
PF: predicated region fallthrough
CT: control target
= control target key end

     0   :  { %s6811_s0 = inlined_call_operand.hbm [shape: bf16[2,48,128], index: 0, kind: input, shape index: {}]   ;;  %s6812_s1 = inlined_call_operand.hbm [shape: bf16[10,128,128], index: 1, kind: input, shape index: {}]   ;;  %s6813_s2 = inlined_call_operand.vmem [shape: f32[2,1,128], index: 2, kind: input, shape index: {}]   ;;  %s6814_s3 = inlined_call_operand.hbm [shape: bf16[10,128,128], index: 3, kind: input, shape index: {}]   ;;  %s6815_s4 = inlined_call_operand.vmem [shape: f32[2,1,128], index: 4, kind: input, shape index: {}]   ;;  %s6816_s5 = inlined_call_operand.hbm [shape: bf16[2,128,128], index: 5, kind: input, shape index: {}]   ;;  %s6817_s6 = inlined_call_operand.vmem [shape: f32[2,1,128], index: 6, kind: input, shape index: {}]   ;;  %s6818_s7 = inlined_call_operand.hbm [shape: bf16[2,128,128], index: 7, kind: input, shape index: {}]   ;;  %s6819_s8 = inlined_call_operand.vmem [shape: f32[1,128], index: 8, kind: input, shape index: {}]   ;;  %s6820_s9 = inlined_call_operand.hbm [shape: f32[2,8,128], index: 9, kind: output, shape index: {}]  }
   0x1   :  { %6832 = sst [smem:[#allocation30_spill]] %s6814_s3 }
   0x2   :  { %14 = vsyncpa [#allocation6], 0 }
   0x3   :  { %15 = vsyncpa [#allocation9], 0 }
   0x4   :  { %16 = vsyncpa [#allocation12], 0 }
   0x5   :  { %17 = vsyncpa [#allocation7], 0 }
   0x6   :  { %19 = vsyncpa [#allocation7 + $0x1], 0  ;;  %s5858_s30 = smov 0   ;;  %s5860_s10 = smov 0  }
   0x7   :  { %s5862_s11 = smov 0   ;;  %s5864_s12 = smov 0  }
   0x8   :  { %s5866_s13 = smov 0   ;;  %s5868_s14 = smov 0  }
   0x9 LB: > { %6833 = sst [smem:[#allocation23_spill]] %s5775_s30  ;;  %s4102_s15 = sadd.s32 4294967295, %s5795_s14   ;;  %s5795_s14 = sphi %s5868_s14, %s25_s14   ;;  %s5791_s13 = sphi %s5866_s13, %s6857_s13   ;;  %s5787_s12 = sphi %s5864_s12, %s6856_s12   ;;  %s5783_s11 = sphi %s5862_s11, %s6855_s11   ;;  %s5779_s10 = sphi %s5860_s10, %s6859_s10   ;;  %s5775_s30 = sphi %s5858_s30, %s6858_s30  }
   0xa   : > { %6834 = sst [smem:[#allocation24_spill]] %s5783_s11  ;;  %s4103_s16 = sadd.s32 4294967294, %s5795_s14  }
   0xb   : > { %6835 = sst [smem:[#allocation25_spill]] %s5791_s13  ;;  %s37_s17 = sadd.s32 1, %s5791_s13 }
   0xc   : > { %6836 = sst [smem:[#allocation26_spill]] %s5795_s14  ;;  %s214_s18 = sadd.s32 1, %s5783_s11 }
   0xd   : > { %p39_p0 = scmp.ge.s32.totalorder %s37_s17, 2  ;;  %p224_p1 = scmp.ne.s32.totalorder %s5783_s11, %s5779_s10 }
   0xe   : > { %p225_p2 = scmp.eq.s32.totalorder %s4102_s15, 1  ;;  %p230_p3 = scmp.ne.s32.totalorder %s5779_s10, %s5775_s30 }
   0xf   : > { %s6861_s17 = smov (%p39_p0, %s37_s17), 0  ;;  %p231_p5 = scmp.eq.s32.totalorder %s4103_s16, 1 }
  0x10   : > { %6837 = sst [smem:[#allocation27_spill]] %s6861_s17  ;;  %p5898_p4 = por %p225_p2, %p224_p1 }
  0x11   : > { %s209_s20 = ssub.s32 %s5791_s13, %s6861_s17  ;;  %p4104_p6 = scmp.ge.s32.totalorder %s5795_s14, 1 }
  0x12   : > { %s6838_s19 = scalar_select %p5898_p4, 1, 0 }
  0x13   : > { %p212_p7 = scmp.eq.s32.totalorder %s209_s20, 0  ;;  %p5905_p8 = por %p231_p5, %p230_p3 }
  0x14   : > { %p238_p9 = scmp.lt.s32.totalorder %s5795_s14, 3  ;;  %p5917_p11 = scmp.eq.s32.totalorder %s4102_s15, 0 }
  0x15   : > { %s6839_s21 = scalar_select %p5905_p8, 1, 0 }
  0x16   : > { %s5911_s22 = scalar_select %p212_p7, %s5783_s11, %s214_s18  }
  0x17   : > { %6840 = sst [smem:[#allocation28_spill]] %s6839_s21  ;;  %p5913_p10 = pnand %p4104_p6, %p238_p9 }
  0x18   : > { %6841 = sst [smem:[#allocation29_spill]] %s5911_s22  ;;  %s5797_s25 = smov [#allocation8]  }
  0x19   : > { %s6842_s23 = scalar_select %p5913_p10, 1, 0 }
  0x1a   : > { %s6843_s24 = scalar_select %p5917_p11, 1, 0 }
  0x1b   : > { %p5264_p12 = pneg %p5913_p10  ;;  %s266_s26 = sshll.u32 %s5797_s25, 4  ;;  %s267_s26 = int_to_ptr.vmem [resolvable:$true] %s266_s26 }
  0x1c   : > { %s5798_s28 = smov [#allocation5]   ;;  %s6845_s3 = sld [smem:[#allocation30_spill]] }
  0x1d   : > { %p5925_p13 = pnand %p5917_p11, %p5264_p12  ;;  %s250_s29 = sshll.u32 %s5798_s28, 4  ;;  %s251_s29 = int_to_ptr.vmem [resolvable:$true] %s250_s29 }
  0x1f   : > { %p5937_p1 = pneg %p5925_p13 }
  0x22   : > { %s5567_s15 = scalar_lea.hbm %s6845_s3, 10240 }
  0x23   : > { %p5568_p0 = scmp.ne.s32.totalorder %s6845_s3, %s5567_s15  ;;  %p5574_p5 = scmp.lt.u32.totalorder %s5567_s15, %s6845_s3 }
  0x25   : > { %p5570_p2 = pnand %p5937_p1, %p5568_p0 }
  0x27   : > { %p5571_p3 = pneg %p5570_p2 }
  0x29   : > { %p5576_p6 = pnand %p5574_p5, %p5571_p3 }
  0x2b   : > { %5579 = shalt.err (!%p5576_p6)
}
  0x2c   : > { %s5580_s28 = scalar_lea.vmem %s267_s26, 10240  ;;  %p5588_p8 = scmp.lt.s32.totalorder %s267_s26, %s267_s26 }
  0x2d   : > { %p5581_p7 = scmp.ne.s32.totalorder %s267_s26, %s5580_s28  ;;  %p5589_p4 = scmp.lt.s32.totalorder %s5580_s28, %s5580_s28 }
  0x2f   : > { %p5583_p9 = pnand %p5581_p7, %p5937_p1  ;;  %p5590_p11 = por %p5589_p4, %p5588_p8 }
  0x31   : > { %p5584_p12 = pneg %p5583_p9 }
  0x33   : > { %p5591_p10 = pnand %p5590_p11, %p5584_p12 }
  0x35   : > { %5594 = shalt.err (!%p5591_p10)
}
  0x36   : > { %s5799_s17 = smov 64   ;;  %s5800_s16 = smov 4  }
  0x37   : > { %5270 = dma.hbm_to_vmem [thread:$0]  (!%p5925_p13), %s6845_s3, 10240, %s267_s26, [#allocation9], %s5799_s17, %s5799_s17, %s5800_s16  }
  0x38   : > { %s5595_s20 = scalar_lea.hbm %s6812_s1, 10240 }
  0x39   : > { %p5596_p4 = scmp.ne.s32.totalorder %s6812_s1, %s5595_s20  ;;  %p5602_p11 = scmp.lt.u32.totalorder %s5595_s20, %s6812_s1 }
  0x3b   : > { %p5598_p8 = pnand %p5596_p4, %p5937_p1 }
  0x3d   : > { %p5599_p10 = pneg %p5598_p8 }
  0x3f   : > { %p5604_p0 = pnand %p5602_p11, %p5599_p10 }
  0x41   : > { %5607 = shalt.err (!%p5604_p0)
}
  0x42   : > { %s5608_s13 = scalar_lea.vmem %s251_s29, 10240  ;;  %p5616_p6 = scmp.lt.s32.totalorder %s251_s29, %s251_s29 }
  0x43   : > { %p5609_p2 = scmp.ne.s32.totalorder %s251_s29, %s5608_s13  ;;  %p5617_p7 = scmp.lt.s32.totalorder %s5608_s13, %s5608_s13 }
  0x45   : > { %p5611_p3 = pnand %p5609_p2, %p5937_p1  ;;  %p5618_p9 = por %p5617_p7, %p5616_p6 }
  0x47   : > { %p5612_p5 = pneg %p5611_p3 }
  0x49   : > { %p5619_p12 = pnand %p5618_p9, %p5612_p5 }
  0x4b   : > { %5622 = shalt.err (!%p5619_p12)
}
  0x4c   : > { %5267 = dma.hbm_to_vmem [thread:$0]  (!%p5925_p13), %s6812_s1, 10240, %s251_s29, [#allocation6], %s5799_s17, %s5799_s17, %s5800_s16  }
  0x4d   : > { %s5801_s21 = smov [#allocation10]   ;;  %s5802_s22 = smov [#allocation11]  }
  0x4e   : > { %s282_s26 = sshll.u32 %s5801_s21, 4  ;;  %s298_s18 = sshll.u32 %s5802_s22, 4  ;;  %s283_s26 = int_to_ptr.vmem [resolvable:$true] %s282_s26  ;;  %s299_s18 = int_to_ptr.vmem [resolvable:$true] %s298_s18 }
  0x4f   : > { %s5623_s28 = scalar_lea.hbm %s6816_s5, 2048 }
  0x50   : > { %p5624_p4 = scmp.ne.s32.totalorder %s6816_s5, %s5623_s28  ;;  %p5630_p11 = scmp.lt.u32.totalorder %s5623_s28, %s6816_s5 }
  0x52   : > { %p5626_p8 = pnand %p5624_p4, %p5937_p1 }
  0x54   : > { %p5627_p10 = pneg %p5626_p8 }
  0x56   : > { %p5632_p0 = pnand %p5630_p11, %p5627_p10 }
  0x58   : > { %5635 = shalt.err (!%p5632_p0)
}
  0x59   : > { %s5636_s29 = scalar_lea.vmem %s283_s26, 2048  ;;  %p5644_p6 = scmp.lt.s32.totalorder %s283_s26, %s283_s26 }
  0x5a   : > { %p5637_p2 = scmp.ne.s32.totalorder %s283_s26, %s5636_s29  ;;  %p5645_p7 = scmp.lt.s32.totalorder %s5636_s29, %s5636_s29 }
  0x5c   : > { %p5639_p3 = pnand %p5637_p2, %p5937_p1  ;;  %p5646_p9 = por %p5645_p7, %p5644_p6 }
  0x5e   : > { %p5640_p5 = pneg %p5639_p3 }
  0x60   : > { %p5647_p12 = pnand %p5646_p9, %p5640_p5 }
  0x62   : > { %5650 = shalt.err (!%p5647_p12)
}
  0x63   : > { %5273 = dma.hbm_to_vmem [thread:$0]  (!%p5925_p13), %s6816_s5, 2048, %s283_s26, [#allocation9], %s5799_s17, %s5799_s17, %s5800_s16  }
  0x64   : > { %s5651_s22 = scalar_lea.hbm %s6818_s7, 2048 }
  0x65   : > { %p5652_p4 = scmp.ne.s32.totalorder %s6818_s7, %s5651_s22  ;;  %p5658_p11 = scmp.lt.u32.totalorder %s5651_s22, %s6818_s7 }
  0x67   : > { %p5654_p8 = pnand %p5652_p4, %p5937_p1 }
  0x69   : > { %p5655_p10 = pneg %p5654_p8 }
  0x6b   : > { %p5660_p0 = pnand %p5658_p11, %p5655_p10 }
  0x6d   : > { %5663 = shalt.err (!%p5660_p0)
}
  0x6e   : > { %s5664_s30 = scalar_lea.vmem %s299_s18, 2048  ;;  %p5672_p6 = scmp.lt.s32.totalorder %s299_s18, %s299_s18 }
  0x6f   : > { %p5665_p2 = scmp.ne.s32.totalorder %s299_s18, %s5664_s30  ;;  %p5673_p7 = scmp.lt.s32.totalorder %s5664_s30, %s5664_s30 }
  0x71   : > { %p5667_p3 = pnand %p5665_p2, %p5937_p1  ;;  %p5674_p9 = por %p5673_p7, %p5672_p6 }
  0x73   : > { %p5668_p5 = pneg %p5667_p3 }
  0x75   : > { %p5675_p12 = pnand %p5674_p9, %p5668_p5 }
  0x77   : > { %5678 = shalt.err (!%p5675_p12)
}
  0x78   : > { %5276 = dma.hbm_to_vmem [thread:$0]  (!%p5925_p13), %s6818_s7, 2048, %s299_s18, [#allocation12], %s5799_s17, %s5799_s17, %s5800_s16  }
  0x79   : > { %p6847_p4 = scmp.ne.s32.totalorder %s6842_s23, 0 }
  0x7a   : > { %p6848_p1 = scmp.ne.s32.totalorder (!%p6847_p4), %s6843_s24, 0 }
  0x7b   : > { %317 = sbr.rel (%p6847_p4) target bundleno = 1727 (0x6bf), region = 52 }
  0x82   : > { %5756 = dma.done.wait (%p6848_p1), [#allocation6], 10240  }
  0x83   : > { %5758 = vsyncadd (%p6848_p1), [#allocation6], 4294957056 }
  0x84   : > { %5760 = dma.done.wait (%p6848_p1), [#allocation9], 12288  }
  0x85   : > { %5762 = vsyncadd (%p6848_p1), [#allocation9], 4294955008 }
  0x86   : > { %5764 = dma.done.wait (%p6848_p1), [#allocation12], 2048  }
  0x87   : > { %5766 = vsyncadd (%p6848_p1), [#allocation12], 4294965248  ;;  %s355_s23 = sand.u32 1, %s5779_s10   ;;  %s4329_s27 = smul.u32 384, %s5787_s12 }
  0x88   : > { %s6037_s25 = sshll.u32 %s355_s23, 3  ;;  %s5803_s3 = smov [#allocation2]  }
  0x89   : > { %s365_s18 = scalar_lea.hbm %s6811_s0, %s4329_s27  ;;  %s373_s14 = sshll.u32 %s5803_s3, 4  ;;  %s374_s14 = int_to_ptr.vmem [resolvable:$true] %s373_s14 }
  0x8a   : > { %s5679_s11 = scalar_lea.hbm %s365_s18, 384  ;;  %s5681_s22 = scalar_lea.hbm %s6811_s0, 768 }
  0x8b   : > { %p5680_p13 = scmp.ne.s32.totalorder %s365_s18, %s5679_s11  ;;  %p5682_p8 = scmp.lt.u32.totalorder %s365_s18, %s6811_s0 }
  0x8c   : > { %p5683_p10 = scmp.lt.u32.totalorder %s5681_s22, %s5679_s11  ;;  %p5685_p0 = scmp.lt.u32.totalorder %s5679_s11, %s365_s18 }
  0x8e   : > { %p5684_p11 = por %p5683_p10, %p5682_p8 }
  0x90   : > { %p5686_p2 = por %p5685_p0, %p5684_p11 }
  0x92   : > { %p5687_p3 = pnand %p5686_p2, %p5680_p13 }
  0x94   : > { %5690 = shalt.err (!%p5687_p3)  }
  0x95   : > { %s5691_s28 = scalar_lea.vmem %s374_s14, 384  ;;  %p5696_p6 = scmp.lt.s32.totalorder %s374_s14, %s374_s14 }
  0x96   : > { %p5692_p5 = scmp.ne.s32.totalorder %s374_s14, %s5691_s28  ;;  %p5697_p7 = scmp.lt.s32.totalorder %s5691_s28, %s5691_s28 }
  0x98   : > { %p5698_p9 = por %p5697_p7, %p5696_p6 }
  0x9a   : > { %p5699_p12 = pnand %p5698_p9, %p5692_p5 }
  0x9c   : > { %5702 = shalt.err (!%p5699_p12)  }
  0x9d   : > { %376 = dma.hbm_to_vmem [thread:$0]  %s365_s18, 384, %s374_s14, [#allocation4] }
  0x9e   : > { %s357_s13 = scalar_lea.vmem [#allocation13], %s6037_s25 }
  0x9f   : > { %5767 = dma.done.wait [#allocation4], 384 }
  0xa0   : > { %5768 = vsyncadd [#allocation4], 4294966912  ;;  %v5804_v0 = vmov 0.0   ;;  %vm5805_vm0 = vmmov 0   ;;  %v5348_v1 = vld [vmem:[#allocation5 + $0x40] sm:$0xff]   ;;  %v5350_v3 = vld [vmem:[#allocation5 + $0x48] sm:$0xff]   ;;  %v390_v9 = vlaneseq }
  0xa1   : > { %4590 = vmatprep.subr.bf16.mxu0 %v5804_v0  ;;  %4618 = vmatprep.subr.bf16.mxu1 %v5804_v0  ;;  %v5349_v2 = vld [vmem:[#allocation5] sm:$0xff]   ;;  %v5351_v4 = vld [vmem:[#allocation5 + $0x8] sm:$0xff]   ;;  %v5352_v5 = vld [vmem:[#allocation5 + $0x50] sm:$0xff]   ;;  %s4325_s20 = sshll.u32 %s5787_s12, 7  ;;  %s3995_s28 = sshll.u32 %s357_s13, 4  ;;  %s6762_s28 = int_to_ptr.vmem [resolvable:$true] %s3995_s28 }
  0xa2   : > { %4606 = vmatprep.mubr.msk.bf16.mxu0 %vm5805_vm0, %v5804_v0  ;;  %4634 = vmatprep.mubr.msk.bf16.mxu1 %vm5805_vm0, %v5804_v0  ;;  %v5353_v6 = vld [vmem:[#allocation5 + $0x10] sm:$0xff]   ;;  %v5354_v7 = vld [vmem:[#allocation5 + $0x58] sm:$0xff]   ;;  %v5356_v10 = vld [vmem:[#allocation5 + $0x60] sm:$0xff]   ;;  %v6067_v14 = vshrl.u32 %v390_v9, 7  ;;  %s6760_s29 = scalar_lea.hbm %s6820_s9, %s4325_s20  ;;  %s3981_s12 = scalar_lea.sflag [#allocation7], %s355_s23 }
  0xa3   : > { %4591 = vmatpush3.bf16.msra.mxu0 %v5348_v1  ;;  %4619 = vmatpush3.bf16.msra.mxu1 %v5349_v2  ;;  %v5355_v8 = vld [vmem:[#allocation5 + $0x18] sm:$0xff]   ;;  %v5357_v11 = vld [vmem:[#allocation5 + $0x20] sm:$0xff]   ;;  %v6065_v13 = vld [vmem:[#allocation2 + $0x10] sm:$0xff]  ;;  %s5703_s27 = scalar_lea.vmem %s6762_s28, 128  ;;  %p6849_p1 = scmp.ne.s32.totalorder %s6838_s19, 0 }
  0xa4   : > { %4592 = vmatprep.subr.bf16.mxu0 %v5804_v0  ;;  %4620 = vmatprep.subr.bf16.mxu1 %v5804_v0  ;;  %v6063_v12 = vld [vmem:[#allocation2] sm:$0xff]  ;;  %v5358_v17 = vld [vmem:[#allocation5 + $0x68] sm:$0xff]   ;;  %v6076_v18 = vunpack.c.h.bf16 %v6065_v13  ;;  %v5360_v20 = vld [vmem:[#allocation5 + $0x70] sm:$0xff]   ;;  %vm467_vm1 = vcmp.lt.s32.totalorder %v6067_v14, 1  ;;  %vm435_vm2 = vcmp.lt.s32.totalorder %v6067_v14, 2  ;;  %v6119_v45 = vunpack.c.l.bf16 %v6065_v13  ;;  %p5704_p4 = scmp.ne.s32.totalorder %s6762_s28, %s5703_s27  ;;  %s5807_s17 = smov [#allocation13]  }
  0xa5   : > { %v6070_v15 = vunpack.c.l.bf16 %v6063_v12  ;;  %v6073_v16 = vunpack.c.h.bf16 %v6063_v12  ;;  %v5359_v19 = vld [vmem:[#allocation5 + $0x28] sm:$0xff]   ;;  %v5361_v23 = vld [vmem:[#allocation5 + $0x30] sm:$0xff]   ;;  %v6090_v28 = vld [vmem:[#allocation2 + $0x8] sm:$0xff]  ;;  %vm838_vm3 = vcmp.lt.s32.totalorder %v6067_v14, 7  ;;  %vm982_vm4 = vcmp.lt.s32.totalorder %v6067_v14, 6  ;;  %s5707_s16 = sshll.u32 %s5807_s17, 4  ;;  %s5708_s16 = int_to_ptr.vmem [resolvable:$false] %s5707_s16 }
  0xa6   : > { %v466_v24 = vrot.slane %v6076_v18, 7  ;;  %v434_v27 = vrot.slane %v6076_v18, 6  ;;  %v5362_v29 = vld [vmem:[#allocation5 + $0x78] sm:$0xff]   ;;  %v6099_v32 = vunpack.c.l.bf16 %v6090_v28  ;;  %v6102_v33 = vunpack.c.h.bf16 %v6090_v28  ;;  %v5364_v37 = vld [vmem:[#allocation5 + $0x80] sm:$0xff]   ;;  %v5366_v46 = vld [vmem:[#allocation5 + $0x88] sm:$0xff]   ;;  %p5705_p13 = pnand %p5704_p4, %p6849_p1  ;;  %s5709_s18 = scalar_lea.vmem %s5708_s16, 256 }
  0xa7   : > { %4593 = vmatpush3.bf16.msra.mxu0 %v5350_v3  ;;  %4621 = vmatpush3.bf16.msra.mxu1 %v5351_v4  ;;  %v461_v21 = vrot.slane %v6070_v15, 7  ;;  %v462_v22 = vrot.slane %v6073_v16, 7  ;;  %v429_v25 = vrot.slane %v6070_v15, 6  ;;  %v430_v26 = vrot.slane %v6073_v16, 6  ;;  %v5363_v34 = vld [vmem:[#allocation5 + $0x38] sm:$0xff]   ;;  %v5365_v39 = vld [vmem:[#allocation5 + $0xc0] sm:$0xff]   ;;  %p5710_p10 = scmp.lt.s32.totalorder %s6762_s28, %s5708_s16  ;;  %p5711_p11 = scmp.lt.s32.totalorder %s5709_s18, %s5703_s27 }
  0xa8   : > { %4594 = vmatprep.subr.bf16.mxu0 %v5804_v0  ;;  %4622 = vmatprep.subr.bf16.mxu1 %v5804_v0  ;;  %v463_v41 = vrot.slane %v6099_v32, 7  ;;  %v464_v42 = vrot.slane %v6102_v33, 7  ;;  %v431_v43 = vrot.slane %v6099_v32, 6  ;;  %v432_v44 = vrot.slane %v6102_v33, 6  ;;  %v5367_v49 = vld [vmem:[#allocation5 + $0xc8] sm:$0xff]   ;;  %v5368_v52 = vld [vmem:[#allocation5 + $0x90] sm:$0xff]   ;;  %p5706_p8 = pneg %p5705_p13 }
  0xa9   : > { %v472_v30 = vsel %vm467_vm1, %v461_v21, %v462_v22  ;;  %v473_v31 = vsel %vm467_vm1, %v466_v24, %v461_v21  ;;  %v440_v35 = vsel %vm435_vm2, %v429_v25, %v430_v26  ;;  %v441_v36 = vsel %vm435_vm2, %v434_v27, %v429_v25  ;;  %v5369_v54 = vld [vmem:[#allocation5 + $0xd0] sm:$0xff]   ;;  %v5370_v62 = vld [vmem:[#allocation5 + $0x98] sm:$0xff]   ;;  %v5374_v21 = vld [vmem:[#allocation5 + $0xa8] sm:$0xff]   ;;  %p5712_p0 = por %p5711_p11, %p5710_p10 }
  0xaa   : > { %v474_v38 = vpack.c.bf16 %v472_v30, %v473_v31  ;;  %v442_v40 = vpack.c.bf16 %v440_v35, %v441_v36  ;;  %v470_v47 = vsel %vm467_vm1, %v463_v41, %v464_v42  ;;  %v471_v48 = vsel %vm467_vm1, %v462_v22, %v463_v41  ;;  %v5371_v2 = vld [vmem:[#allocation5 + $0xd8] sm:$0xff]   ;;  %v5375_v22 = vld [vmem:[#allocation5 + $0xe8] sm:$0xff]   ;;  %v5380_v30 = vld [vmem:[#allocation5 + $0x100] sm:$0xff]  }
  0xab   : > { %4595 = vmatpush3.bf16.msra.mxu0 %v5352_v5  ;;  %4623 = vmatpush3.bf16.msra.mxu1 %v5353_v6  ;;  %v438_v50 = vsel %vm435_vm2, %v431_v43, %v432_v44  ;;  %v439_v51 = vsel %vm435_vm2, %v430_v26, %v431_v43  ;;  %v465_v53 = vrot.slane %v6119_v45, 7  ;;  %v475_v55 = vpack.c.bf16 %v470_v47, %v471_v48  ;;  %v5378_v25 = vld [vmem:[#allocation5 + $0xb8] sm:$0xff]   ;;  %v5382_v36 = vld [vmem:[#allocation5 + $0x110] sm:$0xff]   ;;  %v5388_v47 = vld [vmem:[#allocation8 + $0x40] sm:$0xff]   ;;  %p5713_p2 = pnand %p5712_p0, %p5706_p8 }
  0xac   : > { %4596 = vmatprep.subr.bf16.mxu0 %v5804_v0  ;;  %4624 = vmatprep.subr.bf16.mxu1 %v5804_v0  ;;  %v433_v56 = vrot.slane %v6119_v45, 6  ;;  %v443_v57 = vpack.c.bf16 %v438_v50, %v439_v51  ;;  %v832_v58 = vrot.slane %v6070_v15, 1  ;;  %v833_v59 = vrot.slane %v6073_v16, 1  ;;  %v5379_v26 = vld [vmem:[#allocation5 + $0xf8] sm:$0xff]   ;;  %v5389_v48 = vld [vmem:[#allocation8] sm:$0xff]   ;;  %v5393_v50 = vld [vmem:[#allocation8 + $0x10] sm:$0xff]  }
  0xad   : > { %v836_v60 = vrot.slane %v6119_v45, 1  ;;  %v976_v61 = vrot.slane %v6070_v15, 2  ;;  %v834_v63 = vrot.slane %v6099_v32, 1  ;;  %v835_v1 = vrot.slane %v6102_v33, 1  ;;  %v5387_v41 = vld [vmem:[#allocation5 + $0x138] sm:$0xff]  }
  0xae   : > { %v977_v3 = vrot.slane %v6073_v16, 2  ;;  %v978_v4 = vrot.slane %v6099_v32, 2  ;;  %v468_v5 = vsel %vm467_vm1, %v465_v53, %v466_v24  ;;  %v469_v6 = vsel %vm467_vm1, %v464_v42, %v465_v53  ;;  %v5377_v24 = vld [vmem:[#allocation5 + $0xf0] sm:$0xff]   ;;  %v5391_v32 = vld [vmem:[#allocation8 + $0x8] sm:$0xff]   ;;  %v5394_v51 = vld [vmem:[#allocation8 + $0x58] sm:$0xff]  }
  0xaf   : > { %4597 = vmatpush3.bf16.msra.mxu0 %v5354_v7  ;;  %4625 = vmatpush3.bf16.msra.mxu1 %v5355_v8  ;;  %v979_v7 = vrot.slane %v6102_v33, 2  ;;  %v980_v8 = vrot.slane %v6119_v45, 2  ;;  %v436_v9 = vsel %vm435_vm2, %v433_v56, %v434_v27  ;;  %v842_v27 = vsel %vm838_vm3, %v833_v59, %v834_v63  ;;  %v5392_v33 = vld [vmem:[#allocation8 + $0x50] sm:$0xff]   ;;  %v5396_v53 = vld [vmem:[#allocation8 + $0x60] sm:$0xff]   ;;  %v5403_v45 = vld [vmem:[#allocation8 + $0x38] sm:$0xff]  }
  0xb0   : > { %4598 = vmatprep.subr.bf16.mxu0 %v5804_v0  ;;  %4626 = vmatprep.subr.bf16.mxu1 %v5804_v0  ;;  %v840_v35 = vsel %vm838_vm3, %v835_v1, %v836_v60  ;;  %v986_v42 = vsel %vm982_vm4, %v977_v3, %v978_v4 }
  0xb1   : > { %v984_v16 = vsel %vm982_vm4, %v979_v7, %v980_v8 }
  0xb3   : > { %4599 = vmatpush3.bf16.msra.mxu0 %v5356_v10  ;;  %4627 = vmatpush3.bf16.msra.mxu1 %v5357_v11  ;;  %v437_v10 = vsel %vm435_vm2, %v432_v44, %v433_v56  ;;  %v5372_v11 = vld [vmem:[#allocation5 + $0xa0] sm:$0xff]   ;;  %v985_v44 = vsel %vm982_vm4, %v978_v4, %v979_v7  ;;  %v837_v56 = vrot.slane %v6076_v18, 1  ;;  %v5401_v4 = vld [vmem:[#allocation8 + $0x30] sm:$0xff]  }
  0xb4   : > { %4600 = vmatprep.subr.bf16.mxu0 %v5804_v0  ;;  %4628 = vmatprep.subr.bf16.mxu1 %v5804_v0 }
  0xb7   : > { %4601 = vmatpush3.bf16.msra.mxu0 %v5358_v17  ;;  %4629 = vmatpush3.bf16.msra.mxu1 %v5359_v19  ;;  %v5373_v17 = vld [vmem:[#allocation5 + $0xe0] sm:$0xff]   ;;  %v476_v19 = vpack.c.bf16 %v468_v5, %v469_v6  ;;  %v6286_v5 = vrot.slane %v5804_v0, 7 }
  0xb8   : > { %4602 = vmatprep.subr.bf16.mxu0 %v5804_v0  ;;  %4630 = vmatprep.subr.bf16.mxu1 %v5804_v0  ;;  %v5404_v6 = vld [vmem:[#allocation8 + $0x80] sm:$0xff]  }
  0xb9   : > { %v6291_v15 = vpack.c.bf16 %v6286_v5, %v6286_v5 }
  0xbb   : > { %4603 = vmatpush3.bf16.msra.mxu0 %v5360_v20  ;;  %4631 = vmatpush3.bf16.msra.mxu1 %v5361_v23  ;;  %v444_v20 = vpack.c.bf16 %v436_v9, %v437_v10  ;;  %v5376_v23 = vld [vmem:[#allocation5 + $0xb0] sm:$0xff]   ;;  %v5406_v9 = vld [vmem:[#allocation8 + $0x88] sm:$0xff]  }
  0xbc   : > { %4604 = vmatprep.subr.bf16.mxu0 %v5804_v0  ;;  %4632 = vmatprep.subr.bf16.mxu1 %v5804_v0  ;;  %v5407_v10 = vld [vmem:[#allocation8 + $0xc8] sm:$0xff]  }
  0xbf   : > { %4605 = vmatpush3.bf16.msra.mxu0 %v5362_v29  ;;  %4633 = vmatpush3.bf16.msra.mxu1 %v5363_v34  ;;  %v843_v29 = vsel %vm838_vm3, %v832_v58, %v833_v59  ;;  %v5381_v34 = vld [vmem:[#allocation5 + $0x108] sm:$0xff]   ;;  %v844_v59 = vsel %vm838_vm3, %v837_v56, %v832_v58 }
  0xc0   : > { %4646 = vmatprep.subr.bf16.mxu0 %v5804_v0  ;;  %4674 = vmatprep.subr.bf16.mxu1 %v5804_v0  ;;  %v845_v31 = vpack.c.bf16 %v842_v27, %v843_v29  ;;  %v5418_v27 = vld [vmem:[#allocation8 + $0xb8] sm:$0xff]  }
  0xc1   : > { %v5419_v29 = vld [vmem:[#allocation8 + $0xf8] sm:$0xff]  }
  0xc2   : > { %4607 = vmatmul.mubr.bf16.vlgmr.msra.gmra.mrb[0].mxu0 %v474_v38  ;;  %4635 = vmatmul.mubr.bf16.vlgmr.msra.gmra.mrb[0].mxu1 %v442_v40  ;;  %v5383_v38 = vld [vmem:[#allocation5 + $0x118] sm:$0xff]   ;;  %v5385_v40 = vld [vmem:[#allocation5 + $0x128] sm:$0xff]  }
  0xc3   : > { %4647 = vmatpush3.bf16.msra.mxu0 %v5364_v37  ;;  %4675 = vmatpush3.bf16.msra.mxu1 %v5365_v39  ;;  %v5384_v39 = vld [vmem:[#allocation5 + $0x120] sm:$0xff]  }
  0xc4   : > { %4648 = vmatprep.subr.bf16.mxu0 %v5804_v0  ;;  %4676 = vmatprep.subr.bf16.mxu1 %v5804_v0 }
  0xc5   : > { %4610 = vmatprep.mubr.msk.bf16.mxu0 %vm5805_vm0, %v5804_v0  ;;  %4638 = vmatprep.mubr.msk.bf16.mxu1 %vm5805_vm0, %v5804_v0 }
  0xc7   : > { %4649 = vmatpush3.bf16.msra.mxu0 %v5366_v46  ;;  %4677 = vmatpush3.bf16.msra.mxu1 %v5367_v49  ;;  %v990_v46 = vpack.c.bf16 %v984_v16, %v985_v44  ;;  %v5390_v49 = vld [vmem:[#allocation8 + $0x48] sm:$0xff]  }
  0xc8   : > { %4650 = vmatprep.subr.bf16.mxu0 %v5804_v0  ;;  %4678 = vmatprep.subr.bf16.mxu1 %v5804_v0 }
  0xca   : > { %4611 = vmatmul.mubr.bf16.gmra.mrb[4].mxu0 %v475_v55  ;;  %4639 = vmatmul.mubr.bf16.gmra.mrb[4].mxu1 %v443_v57  ;;  %v5398_v55 = vld [vmem:[#allocation8 + $0x68] sm:$0xff]   ;;  %v839_v57 = vsel %vm838_vm3, %v836_v60, %v837_v56 }
  0xcb   : > { %4651 = vmatpush3.bf16.msra.mxu0 %v5368_v52  ;;  %4679 = vmatpush3.bf16.msra.mxu1 %v5369_v54  ;;  %v5395_v52 = vld [vmem:[#allocation8 + $0x18] sm:$0xff]   ;;  %v5397_v54 = vld [vmem:[#allocation8 + $0x20] sm:$0xff]  }
  0xcc   : > { %4652 = vmatprep.subr.bf16.mxu0 %v5804_v0  ;;  %4680 = vmatprep.subr.bf16.mxu1 %v5804_v0 }
  0xcd   : > { %4614 = vmatprep.mubr.msk.bf16.mxu0 %vm5805_vm0, %v5804_v0  ;;  %4642 = vmatprep.mubr.msk.bf16.mxu1 %vm5805_vm0, %v5804_v0 }
  0xcf   : > { %4653 = vmatpush3.bf16.msra.mxu0 %v5370_v62  ;;  %4681 = vmatpush3.bf16.msra.mxu1 %v5371_v2  ;;  %v847_v62 = vpack.c.bf16 %v844_v59, %v839_v57  ;;  %v981_v2 = vrot.slane %v6076_v18, 2  ;;  %v5402_v18 = vld [vmem:[#allocation8 + $0x78] sm:$0xff]  }
  0xd0   : > { %4654 = vmatprep.subr.bf16.mxu0 %v5804_v0  ;;  %4682 = vmatprep.subr.bf16.mxu1 %v5804_v0 }
  0xd1   : > { %v983_v60 = vsel %vm982_vm4, %v980_v8, %v981_v2  ;;  %v988_v58 = vsel %vm982_vm4, %v981_v2, %v976_v61  ;;  %v5405_v8 = vld [vmem:[#allocation8 + $0xc0] sm:$0xff]  }
  0xd2   : > { %4615 = vmatmul.mubr.bf16.gmra.mrb[8].mxu0 %v476_v19  ;;  %4643 = vmatmul.mubr.bf16.gmra.mrb[8].mxu1 %v444_v20  ;;  %v5410_v19 = vld [vmem:[#allocation8 + $0x98] sm:$0xff]  }
  0xd3   : > { %4655 = vmatpush3.bf16.msra.mxu0 %v5372_v11  ;;  %4683 = vmatpush3.bf16.msra.mxu1 %v5373_v17  ;;  %v5408_v11 = vld [vmem:[#allocation8 + $0x90] sm:$0xff]   ;;  %v5411_v20 = vld [vmem:[#allocation8 + $0xd8] sm:$0xff]  }
  0xd4   : > { %4656 = vmatprep.subr.bf16.mxu0 %v5804_v0  ;;  %4684 = vmatprep.subr.bf16.mxu1 %v5804_v0  ;;  %v5409_v17 = vld [vmem:[#allocation8 + $0xd0] sm:$0xff]  }
  0xd5   : > { %4662 = vmatprep.mubr.msk.bf16.mxu0 %vm5805_vm0, %v5804_v0  ;;  %4690 = vmatprep.mubr.msk.bf16.mxu1 %vm5805_vm0, %v5804_v0 }
  0xd7   : > { %4657 = vmatpush3.bf16.msra.mxu0 %v5374_v21  ;;  %4685 = vmatpush3.bf16.msra.mxu1 %v5375_v22  ;;  %v5412_v21 = vld [vmem:[#allocation8 + $0xa0] sm:$0xff]  }
  0xd8   : > { %4658 = vmatprep.subr.bf16.mxu0 %v5804_v0  ;;  %4686 = vmatprep.subr.bf16.mxu1 %v5804_v0  ;;  %v5413_v22 = vld [vmem:[#allocation8 + $0xe0] sm:$0xff]  }
  0xdb   : > { %4659 = vmatpush3.bf16.msra.mxu0 %v5376_v23  ;;  %4687 = vmatpush3.bf16.msra.mxu1 %v5377_v24  ;;  %v5414_v23 = vld [vmem:[#allocation8 + $0xa8] sm:$0xff]  }
  0xdc   : > { %4660 = vmatprep.subr.bf16.mxu0 %v5804_v0  ;;  %4688 = vmatprep.subr.bf16.mxu1 %v5804_v0  ;;  %v5415_v24 = vld [vmem:[#allocation8 + $0xe8] sm:$0xff]  }
  0xdf   : > { %4661 = vmatpush3.bf16.msra.mxu0 %v5378_v25  ;;  %4689 = vmatpush3.bf16.msra.mxu1 %v5379_v26  ;;  %v5416_v25 = vld [vmem:[#allocation8 + $0xb0] sm:$0xff]  }
  0xe0   : > { %4702 = vmatprep.subr.bf16.mxu0 %v5804_v0  ;;  %4730 = vmatprep.subr.bf16.mxu1 %v5804_v0  ;;  %v5417_v26 = vld [vmem:[#allocation8 + $0xf0] sm:$0xff]  }
  0xe2   : > { %4663 = vmatmul.mubr.bf16.vlgmr.msra.gmra.mrb[12].mxu0 %v6063_v12  ;;  %4691 = vmatmul.mubr.bf16.vlgmr.msra.gmra.mrb[12].mxu1 %v845_v31  ;;  %v841_v12 = vsel %vm838_vm3, %v834_v63, %v835_v1  ;;  %v5399_v63 = vld [vmem:[#allocation8 + $0x28] sm:$0xff]   ;;  %v5400_v1 = vld [vmem:[#allocation8 + $0x70] sm:$0xff]  }
  0xe3   : > { %4703 = vmatpush3.bf16.msra.mxu0 %v5380_v30  ;;  %4666 = vmatprep.mubr.msk.bf16.mxu0 %vm5805_vm0, %v5804_v0  ;;  %v846_v37 = vpack.c.bf16 %v840_v35, %v841_v12 }
  0xe4   : > { %4704 = vmatprep.subr.bf16.mxu0 %v5804_v0  ;;  %4694 = vmatprep.mubr.msk.bf16.mxu1 %vm5805_vm0, %v5804_v0 }
  0xe5   : > { %4731 = vmatpush3.bf16.msra.mxu1 %v5388_v47 }
  0xe6   : > { %4732 = vmatprep.subr.bf16.mxu1 %v5804_v0 }
  0xe7   : > { %4705 = vmatpush3.bf16.msra.mxu0 %v5381_v34 }
  0xe8   : > { %4706 = vmatprep.subr.bf16.mxu0 %v5804_v0 }
  0xe9   : > { %4733 = vmatpush3.bf16.msra.mxu1 %v5390_v49 }
  0xea   : > { %4667 = vmatmul.mubr.bf16.gmra.mrb[16].mxu0 %v6090_v28  ;;  %4695 = vmatmul.mubr.bf16.gmra.mrb[16].mxu1 %v846_v37  ;;  %v5386_v28 = vld [vmem:[#allocation5 + $0x130] sm:$0xff]  }
  0xeb   : > { %4707 = vmatpush3.bf16.msra.mxu0 %v5382_v36  ;;  %4670 = vmatprep.mubr.msk.bf16.mxu0 %vm5805_vm0, %v5804_v0 }
  0xec   : > { %4708 = vmatprep.subr.bf16.mxu0 %v5804_v0  ;;  %4698 = vmatprep.mubr.msk.bf16.mxu1 %vm5805_vm0, %v5804_v0 }
  0xed   : > { %4734 = vmatprep.subr.bf16.mxu1 %v5804_v0 }
  0xee   : > { %4735 = vmatpush3.bf16.msra.mxu1 %v5392_v33 }
  0xef   : > { %4709 = vmatpush3.bf16.msra.mxu0 %v5383_v38  ;;  %4736 = vmatprep.subr.bf16.mxu1 %v5804_v0 }
  0xf0   : > { %4710 = vmatprep.subr.bf16.mxu0 %v5804_v0 }
  0xf2   : > { %4671 = vmatmul.mubr.bf16.gmra.mrb[20].mxu0 %v6065_v13  ;;  %v987_v13 = vsel %vm982_vm4, %v976_v61, %v977_v3  ;;  %4737 = vmatpush3.bf16.msra.mxu1 %v5394_v51  ;;  %v991_v3 = vpack.c.bf16 %v988_v58, %v983_v60  ;;  %v6298_v61 = vrot.slane %v5804_v0, 6 }
  0xf3   : > { %4711 = vmatpush3.bf16.msra.mxu0 %v5384_v39  ;;  %4718 = vmatprep.mubr.msk.bf16.mxu0 %vm5805_vm0, %v5804_v0  ;;  %v989_v43 = vpack.c.bf16 %v986_v42, %v987_v13 }
  0xf4   : > { %4712 = vmatprep.subr.bf16.mxu0 %v5804_v0  ;;  %4738 = vmatprep.subr.bf16.mxu1 %v5804_v0  ;;  %v6305_v7 = vpack.c.bf16 %v6298_v61, %v6298_v61 }
  0xf5   : > { %4699 = vmatmul.mubr.bf16.gmra.mrb[20].mxu1 %v847_v62 }
  0xf6   : > { %4739 = vmatpush3.bf16.msra.mxu1 %v5396_v53  ;;  %4746 = vmatprep.mubr.msk.bf16.mxu1 %vm5805_vm0, %v5804_v0 }
  0xf7   : > { %4713 = vmatpush3.bf16.msra.mxu0 %v5385_v40  ;;  %4740 = vmatprep.subr.bf16.mxu1 %v5804_v0 }
  0xf8   : > { %4714 = vmatprep.subr.bf16.mxu0 %v5804_v0 }
  0xfa   : > { %4741 = vmatpush3.bf16.msra.mxu1 %v5398_v55 }
  0xfb   : > { %4715 = vmatpush3.bf16.msra.mxu0 %v5386_v28  ;;  %4742 = vmatprep.subr.bf16.mxu1 %v5804_v0 }
  0xfc   : > { %4716 = vmatprep.subr.bf16.mxu0 %v5804_v0 }
  0xfe   : > { %4743 = vmatpush3.bf16.msra.mxu1 %v5400_v1 }
  0xff   : > { %4717 = vmatpush3.bf16.msra.mxu0 %v5387_v41  ;;  %4744 = vmatprep.subr.bf16.mxu1 %v5804_v0 }
 0x100   : > { %4758 = vmatprep.subr.bf16.mxu0 %v5804_v0 }
 0x102   : > { %4719 = vmatmul.mubr.bf16.vlgmr.msra.gmra.mrb[24].mxu0 %v989_v43  ;;  %4745 = vmatpush3.bf16.msra.mxu1 %v5402_v18 }
 0x103   : > { %4722 = vmatprep.mubr.msk.bf16.mxu0 %vm5805_vm0, %v5804_v0  ;;  %4759 = vmatpush3.bf16.msra.mxu0 %v5389_v48 }
 0x104   : > { %4760 = vmatprep.subr.bf16.mxu0 %v5804_v0  ;;  %4786 = vmatprep.subr.bf16.mxu1 %v5804_v0 }
 0x105   : > { %4747 = vmatmul.mubr.bf16.vlgmr.msra.gmra.mrb[24].mxu1 %v6291_v15 }
 0x106   : > { %4750 = vmatprep.mubr.msk.bf16.mxu1 %vm5805_vm0, %v5804_v0  ;;  %4787 = vmatpush3.bf16.msra.mxu1 %v5404_v6 }
 0x107   : > { %4761 = vmatpush3.bf16.msra.mxu0 %v5391_v32  ;;  %4788 = vmatprep.subr.bf16.mxu1 %v5804_v0 }
 0x108   : > { %4762 = vmatprep.subr.bf16.mxu0 %v5804_v0 }
 0x10a   : > { %4723 = vmatmul.mubr.bf16.gmra.mrb[28].mxu0 %v990_v46  ;;  %4789 = vmatpush3.bf16.msra.mxu1 %v5406_v9 }
 0x10b   : > { %4726 = vmatprep.mubr.msk.bf16.mxu0 %vm5805_vm0, %v5804_v0  ;;  %4763 = vmatpush3.bf16.msra.mxu0 %v5393_v50 }
 0x10c   : > { %4764 = vmatprep.subr.bf16.mxu0 %v5804_v0  ;;  %4790 = vmatprep.subr.bf16.mxu1 %v5804_v0 }
 0x10e   : > { %4791 = vmatpush3.bf16.msra.mxu1 %v5408_v11 }
 0x10f   : > { %4765 = vmatpush3.bf16.msra.mxu0 %v5395_v52  ;;  %4792 = vmatprep.subr.bf16.mxu1 %v5804_v0 }
 0x110   : > { %4766 = vmatprep.subr.bf16.mxu0 %v5804_v0 }
 0x112   : > { %4727 = vmatmul.mubr.bf16.gmra.mrb[32].mxu0 %v991_v3  ;;  %4793 = vmatpush3.bf16.msra.mxu1 %v5410_v19 }
 0x113   : > { %4767 = vmatpush3.bf16.msra.mxu0 %v5397_v54  ;;  %4774 = vmatprep.mubr.msk.bf16.mxu0 %vm5805_vm0, %v5804_v0 }
 0x114   : > { %4768 = vmatprep.subr.bf16.mxu0 %v5804_v0  ;;  %4794 = vmatprep.subr.bf16.mxu1 %v5804_v0 }
 0x116   : > { %4795 = vmatpush3.bf16.msra.mxu1 %v5412_v21 }
 0x117   : > { %4769 = vmatpush3.bf16.msra.mxu0 %v5399_v63  ;;  %4796 = vmatprep.subr.bf16.mxu1 %v5804_v0 }
 0x118   : > { %4770 = vmatprep.subr.bf16.mxu0 %v5804_v0 }
 0x11a   : > { %4797 = vmatpush3.bf16.msra.mxu1 %v5414_v23 }
 0x11b   : > { %4771 = vmatpush3.bf16.msra.mxu0 %v5401_v4  ;;  %4798 = vmatprep.subr.bf16.mxu1 %v5804_v0 }
 0x11c   : > { %4772 = vmatprep.subr.bf16.mxu0 %v5804_v0 }
 0x11e   : > { %4799 = vmatpush3.bf16.msra.mxu1 %v5416_v25  ;;  %v4162_v25 = vld [vmem:[%s6813_s2] ss:$0 sm:$0xff] }
 0x11f   : > { %4773 = vmatpush3.bf16.msra.mxu0 %v5403_v45  ;;  %4800 = vmatprep.subr.bf16.mxu1 %v5804_v0 }
 0x120   : > { %4814 = vmatprep.subr.bf16.mxu0 %v5804_v0 }
 0x122   : > { %4775 = vmatmul.mubr.bf16.vlgmr.msra.gmra.mrb[36].mxu0 %v6305_v7  ;;  %4801 = vmatpush3.bf16.msra.mxu1 %v5418_v27 }
 0x123   : > { %4815 = vmatpush3.bf16.msra.mxu0 %v5405_v8  ;;  %4778 = vmatprep.mubr.msk.bf16.mxu0 %vm5805_vm0, %v5804_v0 }
 0x124   : > { %4816 = vmatprep.subr.bf16.mxu0 %v5804_v0  ;;  %4842 = vmatprep.subr.bf16.mxu1 %v5804_v0 }
 0x127   : > { %4817 = vmatpush3.bf16.msra.mxu0 %v5407_v10 }
 0x128   : > { %4818 = vmatprep.subr.bf16.mxu0 %v5804_v0 }
 0x12b   : > { %4819 = vmatpush3.bf16.msra.mxu0 %v5409_v17 }
 0x12c   : > { %4820 = vmatprep.subr.bf16.mxu0 %v5804_v0 }
 0x12f   : > { %4821 = vmatpush3.bf16.msra.mxu0 %v5411_v20 }
 0x130   : > { %4822 = vmatprep.subr.bf16.mxu0 %v5804_v0 }
 0x133   : > { %4823 = vmatpush3.bf16.msra.mxu0 %v5413_v22 }
 0x134   : > { %4824 = vmatprep.subr.bf16.mxu0 %v5804_v0 }
 0x137   : > { %4825 = vmatpush3.bf16.msra.mxu0 %v5415_v24 }
 0x138   : > { %4826 = vmatprep.subr.bf16.mxu0 %v5804_v0 }
 0x13b   : > { %4827 = vmatpush3.bf16.msra.mxu0 %v5417_v26 }
 0x13c   : > { %4828 = vmatprep.subr.bf16.mxu0 %v5804_v0 }
 0x13f   : > { %4829 = vmatpush3.bf16.msra.mxu0 %v5419_v29 }
 0x140   : > { %4870 = vmatprep.subr.bf16.mxu0 %v5804_v0 }
 0x195   : > { %v576_v30 = vpop.f32.mrb[0].mxu0  ;;  %v681_v34 = vpop.f32.mrb[0].mxu1 }
 0x196   : > { %v4608_v31 = vpop.f32.mrb[1].mxu0  ;;  %v4636_v12 = vpop.f32.mrb[1].mxu1 }
 0x197   : > { %v579_v35 = vpop.f32.mrb[2].mxu0  ;;  %v684_v37 = vpop.f32.mrb[2].mxu1 }
 0x198   : > { %v4609_v36 = vpop.f32.mrb[3].mxu0  ;;  %v4637_v38 = vpop.f32.mrb[3].mxu1 }
 0x19d   : > { %v584_v39 = vpop.f32.mrb[4].mxu0  ;;  %v689_v28 = vpop.f32.mrb[4].mxu1 }
 0x19e   : > { %v4612_v40 = vpop.f32.mrb[5].mxu0  ;;  %v690_v41 = vadd.f32 %v689_v28, %v584_v39  ;;  %v4640_v13 = vpop.f32.mrb[5].mxu1 }
 0x19f   : > { %v587_v42 = vpop.f32.mrb[6].mxu0  ;;  %v692_v16 = vpop.f32.mrb[6].mxu1 }
 0x1a0   : > { %v4613_v43 = vpop.f32.mrb[7].mxu0  ;;  %v693_v44 = vadd.f32 %v692_v16, %v587_v42  ;;  %v4641_v46 = vpop.f32.mrb[7].mxu1 }
 0x1a5   : > { %v592_v47 = vpop.f32.mrb[8].mxu0  ;;  %v697_v49 = vpop.f32.mrb[8].mxu1 }
 0x1a6   : > { %v4616_v48 = vpop.f32.mrb[9].mxu0  ;;  %v4644_v33 = vpop.f32.mrb[9].mxu1 }
 0x1a7   : > { %v595_v32 = vpop.f32.mrb[10].mxu0  ;;  %v700_v51 = vpop.f32.mrb[10].mxu1 }
 0x1a8   : > { %v4617_v50 = vpop.f32.mrb[11].mxu0  ;;  %v4645_v52 = vpop.f32.mrb[11].mxu1 }
 0x1b5   : > { %v803_v53 = vpop.f32.mrb[12].mxu0  ;;  %v947_v55 = vpop.f32.mrb[12].mxu1 }
 0x1b6   : > { %v4664_v54 = vpop.f32.mrb[13].mxu0  ;;  %v4692_v57 = vpop.f32.mrb[13].mxu1 }
 0x1b7   : > { %v806_v56 = vpop.f32.mrb[14].mxu0  ;;  %v950_v62 = vpop.f32.mrb[14].mxu1  ;;  %v6334_v54 = vrot.slane %v5804_v0, 1 }
 0x1b8   : > { %v4665_v59 = vpop.f32.mrb[15].mxu0  ;;  %v4693_v63 = vpop.f32.mrb[15].mxu1 }
 0x1bd   : > { %v811_v1 = vpop.f32.mrb[16].mxu0  ;;  %v955_v58 = vpop.f32.mrb[16].mxu1 }
 0x1be   : > { %v828_v2 = vadd.f32 %v811_v1, %v690_v41  ;;  %v4668_v60 = vpop.f32.mrb[17].mxu0  ;;  %v4696_v4 = vpop.f32.mrb[17].mxu1 }
 0x1bf   : > { %v814_v3 = vpop.f32.mrb[18].mxu0  ;;  %v958_v6 = vpop.f32.mrb[18].mxu1 }
 0x1c0   : > { %v829_v18 = vadd.f32 %v814_v3, %v693_v44  ;;  %v972_v45 = vadd.f32 %v955_v58, %v828_v2  ;;  %v4669_v8 = vpop.f32.mrb[19].mxu0  ;;  %v4697_v9 = vpop.f32.mrb[19].mxu1 }
 0x1c2   : > { %v973_v10 = vadd.f32 %v958_v6, %v829_v18  ;;  %v6354_v18 = vrot.slane %v5804_v0, 2 }
 0x1c5   : > { %v819_v11 = vpop.f32.mrb[20].mxu0 }
 0x1c6   : > { %v4672_v17 = vpop.f32.mrb[21].mxu0 }
 0x1c7   : > { %v822_v19 = vpop.f32.mrb[22].mxu0 }
 0x1c8   : > { %v4673_v20 = vpop.f32.mrb[23].mxu0 }
 0x1d5   : > { %v1091_v21 = vpop.f32.mrb[24].mxu0 }
 0x1d6   : > { %v4720_v22 = vpop.f32.mrb[25].mxu0 }
 0x1d7   : > { %v1094_v23 = vpop.f32.mrb[26].mxu0  ;;  %v5420_v22 = vld [vmem:[#allocation8 + $0x100] sm:$0xff]  }
 0x1d8   : > { %v4721_v24 = vpop.f32.mrb[27].mxu0 }
 0x1d9   : > { %v5427_v24 = vld [vmem:[#allocation10] sm:$0xff]  }
 0x1dd   : > { %v1099_v26 = vpop.f32.mrb[28].mxu0 }
 0x1de   : > { %v1116_v27 = vadd.f32 %v1099_v26, %v972_v45  ;;  %v4724_v29 = vpop.f32.mrb[29].mxu0  ;;  %v5421_v26 = vld [vmem:[#allocation8 + $0x108] sm:$0xff]  }
 0x1df   : > { %v1102_v30 = vpop.f32.mrb[30].mxu0  ;;  %v5422_v29 = vld [vmem:[#allocation8 + $0x110] sm:$0xff]  }
 0x1e0   : > { %v1128_v31 = vadd.f32 %v4162_v25, %v1116_v27  ;;  %v1117_v34 = vadd.f32 %v1102_v30, %v973_v10  ;;  %v4725_v35 = vpop.f32.mrb[31].mxu0  ;;  %v5429_v27 = vld [vmem:[#allocation10 + $0x8] sm:$0xff]   ;;  %v5430_v30 = vld [vmem:[#allocation10 + $0x10] sm:$0xff]  }
 0x1e1   : > { %v5424_v35 = vld [vmem:[#allocation8 + $0x120] sm:$0xff]  }
 0x1e2   : > { %v1134_v12 = vmul.f32 %v1128_v31, %v1128_v31  ;;  %v1129_v36 = vadd.f32 %v4162_v25, %v1117_v34  ;;  %v5806_v25 = vmov 0.0|0.0   ;;  %v5431_v34 = vld [vmem:[#allocation10 + $0x18] sm:$0xff]  }
 0x1e4   : > { %v1140_v37 = vmul.f32 %v1134_v12, %v1128_v31  ;;  %v1135_v38 = vmul.f32 %v1129_v36, %v1129_v36  ;;  %v6408_v12 = vpack.c.bf16 %v6334_v54, %v6334_v54 }
 0x1e6   : > { %v1146_v39 = vmul.f32 0.044715, %v1140_v37  ;;  %v1141_v40 = vmul.f32 %v1135_v38, %v1129_v36  ;;  %v5425_v37 = vld [vmem:[#allocation8 + $0x128] sm:$0xff]  }
 0x1e7   : > { %v5433_v38 = vld [vmem:[#allocation10 + $0x28] sm:$0xff]  }
 0x1e8   : > { %v1152_v28 = vadd.f32 %v1146_v39, %v1128_v31  ;;  %v1147_v41 = vmul.f32 0.044715, %v1141_v40  ;;  %v5426_v39 = vld [vmem:[#allocation8 + $0x130] sm:$0xff]  }
 0x1e9   : > { %v5434_v40 = vld [vmem:[#allocation10 + $0x30] sm:$0xff]  }
 0x1ea   : > { %v1158_v42 = vmul.f32 0.7978846, %v1152_v28  ;;  %v1153_v13 = vadd.f32 %v1147_v41, %v1129_v36  ;;  %v5428_v28 = vld [vmem:[#allocation8 + $0x138] sm:$0xff]  }
 0x1ec   : > { %5540 = vtanh.f32 %v1158_v42  ;;  %v1159_v43 = vmul.f32 0.7978846, %v1153_v13  ;;  %v5435_v42 = vld [vmem:[#allocation10 + $0x38] sm:$0xff]  }
 0x1ee   : > { %5542 = vtanh.f32 %v1159_v43  ;;  %v5564_v43 = vld [vmem:[#allocation2] sm:$0xff] }
 0x1f6   : > { %v5541_v16 = vpop.eup %5540 }
 0x1f7   : > { %v1170_v44 = vadd.f32 1.0, %v5541_v16  ;;  %v963_v16 = vpop.f32.mrb[20].mxu1 }
 0x1f8   : > { %v5543_v46 = vpop.eup %5542 }
 0x1f9   : > { %v1176_v47 = vmul.f32 0.5, %v1170_v44  ;;  %v1171_v48 = vadd.f32 1.0, %v5543_v46  ;;  %v4700_v44 = vpop.f32.mrb[21].mxu1  ;;  %v5565_v46 = vld [vmem:[#allocation2 + $0x8] sm:$0xff] }
 0x1fb   : > { %v6329_v49 = vmul.f32 %v1176_v47, %v1128_v31  ;;  %v1177_v32 = vmul.f32 0.5, %v1171_v48  ;;  %v5423_v31 = vld [vmem:[#allocation8 + $0x118] sm:$0xff]   ;;  %v966_v47 = vpop.f32.mrb[22].mxu1 }
 0x1fc   : > { %v4701_v48 = vpop.f32.mrb[23].mxu1  ;;  %v5464_v47 = vld [vmem:[#allocation5 + $0x1f0] sm:$0xff]  }
 0x1fd   : > { %v1183_v33 = vmul.f32 %v1177_v32, %v1129_v36  ;;  %v1238_v50 = vrot.slane %v6329_v49, 7  ;;  %v1207_v51 = vrot.slane %v6329_v49, 6  ;;  %v1611_v55 = vrot.slane %v6329_v49, 1  ;;  %v5432_v36 = vld [vmem:[#allocation10 + $0x20] sm:$0xff]   ;;  %v5465_v48 = vld [vmem:[#allocation5 + $0x230] sm:$0xff]  }
 0x1fe   : > { %v1754_v45 = vrot.slane %v6329_v49, 2 }
 0x1ff   : > { %v1239_v52 = vrot.slane %v1183_v33, 7  ;;  %v1208_v53 = vrot.slane %v1183_v33, 6  ;;  %v1479_v56 = vpack.c.bf16 %v1183_v33, %v6329_v49  ;;  %v1612_v57 = vrot.slane %v1183_v33, 1  ;;  %v1107_v49 = vpop.f32.mrb[32].mxu0 }
 0x200   : > { %v1245_v62 = vsel %vm467_vm1, %v6286_v5, %v1238_v50  ;;  %v1214_v1 = vsel %vm435_vm2, %v6298_v61, %v1207_v51  ;;  %v1755_v6 = vrot.slane %v1183_v33, 2  ;;  %v1618_v21 = vsel %vm838_vm3, %v6334_v54, %v1611_v55  ;;  %v4728_v32 = vpop.f32.mrb[33].mxu0 }
 0x201   : > { %v1244_v59 = vsel %vm467_vm1, %v1238_v50, %v1239_v52  ;;  %v1213_v63 = vsel %vm435_vm2, %v1207_v51, %v1208_v53  ;;  %v1616_v58 = vsel %vm838_vm3, %v1612_v57, %v6334_v54  ;;  %v1617_v3 = vsel %vm838_vm3, %v1611_v55, %v1612_v57  ;;  %v1110_v33 = vpop.f32.mrb[34].mxu0  ;;  %v1350_v51 = vpop.f32.mrb[24].mxu1  ;;  %v5566_v55 = vld [vmem:[#allocation2 + $0x10] sm:$0xff] }
 0x202   : > { %v1249_v2 = vpack.c.bf16 %v1244_v59, %v1245_v62  ;;  %v1218_v60 = vpack.c.bf16 %v1213_v63, %v1214_v1  ;;  %v1622_v4 = vpack.c.bf16 %v1616_v58, %v1617_v3  ;;  %v6364_v8 = vsel %vm982_vm4, %v1755_v6, %v6354_v18  ;;  %v4729_v50 = vpop.f32.mrb[35].mxu0  ;;  %v5436_v1 = vld [vmem:[#allocation5 + $0x180] sm:$0xff]   ;;  %v5439_v58 = vld [vmem:[#allocation5 + $0x148] sm:$0xff]   ;;  %v5440_v3 = vld [vmem:[#allocation5 + $0x190] sm:$0xff]  }
 0x203   : > { %v6370_v9 = vsel %vm982_vm4, %v1754_v45, %v1755_v6  ;;  %v1243_v10 = vsel %vm467_vm1, %v1239_v52, %v6286_v5  ;;  %v1212_v11 = vsel %vm435_vm2, %v1208_v53, %v6298_v61  ;;  %v1621_v23 = vpack.c.bf16 %v1618_v21, %v6334_v54  ;;  %v4748_v52 = vpop.f32.mrb[25].mxu1  ;;  %v1455_v57 = vpop.f32.mrb[36].mxu0  ;;  %v5443_v6 = vld [vmem:[#allocation5 + $0x158] sm:$0xff]  }
 0x204   : > { %4751 = vmatmul.mubr.bf16.gmra.mrb[28].mxu1 %v1249_v2  ;;  %4779 = vmatmul.mubr.bf16.gmra.mrb[40].mxu0 %v1218_v60  ;;  %v1765_v17 = vpack.c.bf16 %v6364_v8, %v6370_v9  ;;  %v1250_v19 = vpack.c.bf16 %v6286_v5, %v1243_v10  ;;  %v1219_v20 = vpack.c.bf16 %v6298_v61, %v1212_v11  ;;  %v1353_v53 = vpop.f32.mrb[26].mxu1  ;;  %v4776_v59 = vpop.f32.mrb[37].mxu0  ;;  %v5437_v2 = vld [vmem:[#allocation5 + $0x140] sm:$0xff]   ;;  %v5438_v60 = vld [vmem:[#allocation5 + $0x188] sm:$0xff]   ;;  %v5450_v21 = vld [vmem:[#allocation5 + $0x1b8] sm:$0xff]  }
 0x205   : > { %4754 = vmatprep.mubr.msk.bf16.mxu1 %vm5805_vm0, %v5804_v0  ;;  %4782 = vmatprep.mubr.msk.bf16.mxu0 %vm5805_vm0, %v5804_v0  ;;  %v1761_v41 = vsel %vm982_vm4, %v6354_v18, %v1754_v45  ;;  %v1458_v62 = vpop.f32.mrb[38].mxu0  ;;  %v5442_v45 = vld [vmem:[#allocation5 + $0x198] sm:$0xff]   ;;  %v5444_v8 = vld [vmem:[#allocation5 + $0x1a0] sm:$0xff]   ;;  %v5446_v10 = vld [vmem:[#allocation5 + $0x1a8] sm:$0xff]   ;;  %v6456_v11 = vpack.c.bf16 %v6354_v18, %v6354_v18 }
 0x206   : > { %v1764_v13 = vpack.c.bf16 %v1761_v41, %v6354_v18  ;;  %v4777_v63 = vpop.f32.mrb[39].mxu0  ;;  %v5445_v9 = vld [vmem:[#allocation5 + $0x160] sm:$0xff]   ;;  %v5466_v33 = vld [vmem:[#allocation5 + $0x1f8] sm:$0xff]  }
 0x207   : > { %v5467_v52 = vld [vmem:[#allocation5 + $0x238] sm:$0xff]  }
 0x20c   : > { %4755 = vmatmul.mubr.bf16.gmra.mrb[32].mxu1 %v1250_v19  ;;  %4783 = vmatmul.mubr.bf16.gmra.mrb[44].mxu0 %v1219_v20  ;;  %v5448_v19 = vld [vmem:[#allocation5 + $0x1b0] sm:$0xff]  }
 0x20d   : > { %4802 = vmatprep.mubr.msk.bf16.mxu1 %vm5805_vm0, %v5804_v0  ;;  %4830 = vmatprep.mubr.msk.bf16.mxu0 %vm5805_vm0, %v5804_v0  ;;  %v5449_v20 = vld [vmem:[#allocation5 + $0x170] sm:$0xff]  }
 0x214   : > { %4803 = vmatmul.mubr.bf16.vlgmr.msra.gmra.mrb[36].mxu1 %v5806_v25  ;;  %4831 = vmatmul.mubr.bf16.vlgmr.msra.gmra.mrb[48].mxu0 %v1621_v23  ;;  %v5452_v23 = vld [vmem:[#allocation5 + $0x1c0] sm:$0xff]  }
 0x215   : > { %4843 = vmatpush3.bf16.msra.mxu1 %v5420_v22  ;;  %4806 = vmatprep.mubr.msk.bf16.mxu1 %vm5805_vm0, %v5804_v0  ;;  %v5451_v22 = vld [vmem:[#allocation5 + $0x178] sm:$0xff]  }
 0x216   : > { %4844 = vmatprep.subr.bf16.mxu1 %v5804_v0  ;;  %4834 = vmatprep.mubr.msk.bf16.mxu0 %vm5805_vm0, %v5804_v0 }
 0x217   : > { %4871 = vmatpush3.bf16.msra.mxu0 %v5427_v24  ;;  %v5453_v24 = vld [vmem:[#allocation5 + $0x200] sm:$0xff]  }
 0x218   : > { %4872 = vmatprep.subr.bf16.mxu0 %v5804_v0 }
 0x219   : > { %4845 = vmatpush3.bf16.msra.mxu1 %v5421_v26  ;;  %v5454_v26 = vld [vmem:[#allocation5 + $0x1c8] sm:$0xff]  }
 0x21a   : > { %4846 = vmatprep.subr.bf16.mxu1 %v5804_v0 }
 0x21b   : > { %4873 = vmatpush3.bf16.msra.mxu0 %v5429_v27  ;;  %v5455_v27 = vld [vmem:[#allocation5 + $0x208] sm:$0xff]  }
 0x21c   : > { %4807 = vmatmul.mubr.bf16.gmra.mrb[40].mxu1 %v1479_v56  ;;  %4835 = vmatmul.mubr.bf16.gmra.mrb[52].mxu0 %v1622_v4  ;;  %v4749_v56 = vpop.f32.mrb[27].mxu1  ;;  %v5441_v4 = vld [vmem:[#allocation5 + $0x150] sm:$0xff]  }
 0x21d   : > { %4847 = vmatpush3.bf16.msra.mxu1 %v5422_v29  ;;  %4810 = vmatprep.mubr.msk.bf16.mxu1 %vm5805_vm0, %v5804_v0  ;;  %v5456_v29 = vld [vmem:[#allocation5 + $0x1d0] sm:$0xff]  }
 0x21e   : > { %4848 = vmatprep.subr.bf16.mxu1 %v5804_v0  ;;  %4874 = vmatprep.subr.bf16.mxu0 %v5804_v0 }
 0x21f   : > { %4875 = vmatpush3.bf16.msra.mxu0 %v5430_v30  ;;  %4838 = vmatprep.mubr.msk.bf16.mxu0 %vm5805_vm0, %v5804_v0  ;;  %v5457_v30 = vld [vmem:[#allocation5 + $0x210] sm:$0xff]  }
 0x220   : > { %4876 = vmatprep.subr.bf16.mxu0 %v5804_v0 }
 0x221   : > { %4849 = vmatpush3.bf16.msra.mxu1 %v5423_v31  ;;  %v5458_v31 = vld [vmem:[#allocation5 + $0x1d8] sm:$0xff]  }
 0x222   : > { %4850 = vmatprep.subr.bf16.mxu1 %v5804_v0 }
 0x223   : > { %4877 = vmatpush3.bf16.msra.mxu0 %v5431_v34  ;;  %v5459_v34 = vld [vmem:[#allocation5 + $0x218] sm:$0xff]  }
 0x224   : > { %4811 = vmatmul.mubr.bf16.gmra.mrb[44].mxu1 %v5806_v25  ;;  %4878 = vmatprep.subr.bf16.mxu0 %v5804_v0 }
 0x225   : > { %4851 = vmatpush3.bf16.msra.mxu1 %v5424_v35  ;;  %4858 = vmatprep.mubr.msk.bf16.mxu1 %vm5805_vm0, %v5804_v0  ;;  %v5460_v35 = vld [vmem:[#allocation5 + $0x1e0] sm:$0xff]  }
 0x226   : > { %4852 = vmatprep.subr.bf16.mxu1 %v5804_v0  ;;  %4839 = vmatmul.mubr.bf16.gmra.mrb[56].mxu0 %v6408_v12 }
 0x227   : > { %4879 = vmatpush3.bf16.msra.mxu0 %v5432_v36  ;;  %4886 = vmatprep.mubr.msk.bf16.mxu0 %vm5805_vm0, %v5804_v0  ;;  %v5461_v36 = vld [vmem:[#allocation5 + $0x220] sm:$0xff]  }
 0x228   : > { %4880 = vmatprep.subr.bf16.mxu0 %v5804_v0 }
 0x229   : > { %4853 = vmatpush3.bf16.msra.mxu1 %v5425_v37 }
 0x22a   : > { %4854 = vmatprep.subr.bf16.mxu1 %v5804_v0 }
 0x22b   : > { %4881 = vmatpush3.bf16.msra.mxu0 %v5433_v38 }
 0x22c   : > { %4882 = vmatprep.subr.bf16.mxu0 %v5804_v0 }
 0x22d   : > { %4855 = vmatpush3.bf16.msra.mxu1 %v5426_v39  ;;  %v5462_v39 = vld [vmem:[#allocation5 + $0x1e8] sm:$0xff]  }
 0x22e   : > { %4856 = vmatprep.subr.bf16.mxu1 %v5804_v0 }
 0x22f   : > { %4883 = vmatpush3.bf16.msra.mxu0 %v5434_v40 }
 0x230   : > { %4884 = vmatprep.subr.bf16.mxu0 %v5804_v0 }
 0x231   : > { %4857 = vmatpush3.bf16.msra.mxu1 %v5428_v28 }
 0x232   : > { %4898 = vmatprep.subr.bf16.mxu1 %v5804_v0 }
 0x233   : > { %4885 = vmatpush3.bf16.msra.mxu0 %v5435_v42  ;;  %v5463_v42 = vld [vmem:[#allocation5 + $0x228] sm:$0xff]  }
 0x234   : > { %4859 = vmatmul.mubr.bf16.vlgmr.msra.gmra.mrb[48].mxu1 %v1764_v13  ;;  %4926 = vmatprep.subr.bf16.mxu0 %v5804_v0 }
 0x235   : > { %4862 = vmatprep.mubr.msk.bf16.mxu1 %vm5805_vm0, %v5804_v0  ;;  %4899 = vmatpush3.bf16.msra.mxu1 %v5436_v1 }
 0x236   : > { %4887 = vmatmul.mubr.bf16.vlgmr.msra.gmra.mrb[60].mxu0 %v5564_v43  ;;  %4900 = vmatprep.subr.bf16.mxu1 %v5804_v0 }
 0x237   : > { %4890 = vmatprep.mubr.msk.bf16.mxu0 %vm5805_vm0, %v5804_v0  ;;  %4927 = vmatpush3.bf16.msra.mxu0 %v5437_v2 }
 0x238   : > { %4928 = vmatprep.subr.bf16.mxu0 %v5804_v0 }
 0x239   : > { %4901 = vmatpush3.bf16.msra.mxu1 %v5438_v60 }
 0x23a   : > { %4902 = vmatprep.subr.bf16.mxu1 %v5804_v0 }
 0x23b   : > { %4929 = vmatpush3.bf16.msra.mxu0 %v5439_v58 }
 0x23c   : > { %4863 = vmatmul.mubr.bf16.gmra.mrb[52].mxu1 %v1765_v17  ;;  %4930 = vmatprep.subr.bf16.mxu0 %v5804_v0  ;;  %v5447_v17 = vld [vmem:[#allocation5 + $0x168] sm:$0xff]  }
 0x23d   : > { %4866 = vmatprep.mubr.msk.bf16.mxu1 %vm5805_vm0, %v5804_v0  ;;  %4903 = vmatpush3.bf16.msra.mxu1 %v5440_v3 }
 0x23e   : > { %4891 = vmatmul.mubr.bf16.gmra.mrb[64].mxu0 %v5565_v46  ;;  %4904 = vmatprep.subr.bf16.mxu1 %v5804_v0 }
 0x23f   : > { %4894 = vmatprep.mubr.msk.bf16.mxu0 %vm5805_vm0, %v5804_v0  ;;  %4931 = vmatpush3.bf16.msra.mxu0 %v5441_v4 }
 0x240   : > { %4932 = vmatprep.subr.bf16.mxu0 %v5804_v0 }
 0x241   : > { %4905 = vmatpush3.bf16.msra.mxu1 %v5442_v45 }
 0x242   : > { %4906 = vmatprep.subr.bf16.mxu1 %v5804_v0 }
 0x243   : > { %4933 = vmatpush3.bf16.msra.mxu0 %v5443_v6 }
 0x244   : > { %4934 = vmatprep.subr.bf16.mxu0 %v5804_v0  ;;  %4867 = vmatmul.mubr.bf16.gmra.mrb[56].mxu1 %v6456_v11 }
 0x245   : > { %4907 = vmatpush3.bf16.msra.mxu1 %v5444_v8  ;;  %4914 = vmatprep.mubr.msk.bf16.mxu1 %vm5805_vm0, %v5804_v0 }
 0x246   : > { %4895 = vmatmul.mubr.bf16.gmra.mrb[68].mxu0 %v5566_v55  ;;  %4908 = vmatprep.subr.bf16.mxu1 %v5804_v0 }
 0x247   : > { %4942 = vmatprep.mubr.msk.bf16.mxu0 %vm5805_vm0, %v5804_v0  ;;  %4935 = vmatpush3.bf16.msra.mxu0 %v5445_v9 }
 0x248   : > { %4936 = vmatprep.subr.bf16.mxu0 %v5804_v0 }
 0x249   : > { %4909 = vmatpush3.bf16.msra.mxu1 %v5446_v10 }
 0x24a   : > { %4910 = vmatprep.subr.bf16.mxu1 %v5804_v0 }
 0x24b   : > { %4937 = vmatpush3.bf16.msra.mxu0 %v5447_v17 }
 0x24c   : > { %4938 = vmatprep.subr.bf16.mxu0 %v5804_v0 }
 0x24d   : > { %4911 = vmatpush3.bf16.msra.mxu1 %v5448_v19 }
 0x24e   : > { %4912 = vmatprep.subr.bf16.mxu1 %v5804_v0 }
 0x24f   : > { %4939 = vmatpush3.bf16.msra.mxu0 %v5449_v20 }
 0x250   : > { %4940 = vmatprep.subr.bf16.mxu0 %v5804_v0 }
 0x251   : > { %4913 = vmatpush3.bf16.msra.mxu1 %v5450_v21 }
 0x252   : > { %4954 = vmatprep.subr.bf16.mxu1 %v5804_v0 }
 0x253   : > { %4941 = vmatpush3.bf16.msra.mxu0 %v5451_v22 }
 0x254   : > { %4915 = vmatmul.mubr.bf16.vlgmr.msra.gmra.mrb[60].mxu1 %v6291_v15  ;;  %4982 = vmatprep.subr.bf16.mxu0 %v5804_v0 }
 0x255   : > { %4918 = vmatprep.mubr.msk.bf16.mxu1 %vm5805_vm0, %v5804_v0  ;;  %4955 = vmatpush3.bf16.msra.mxu1 %v5452_v23 }
 0x256   : > { %4943 = vmatmul.mubr.bf16.vlgmr.msra.gmra.mrb[72].mxu0 %v6305_v7  ;;  %4956 = vmatprep.subr.bf16.mxu1 %v5804_v0 }
 0x257   : > { %4983 = vmatpush3.bf16.msra.mxu0 %v5453_v24  ;;  %4946 = vmatprep.mubr.msk.bf16.mxu0 %vm5805_vm0, %v5804_v0 }
 0x258   : > { %4984 = vmatprep.subr.bf16.mxu0 %v5804_v0 }
 0x259   : > { %4957 = vmatpush3.bf16.msra.mxu1 %v5454_v26 }
 0x25a   : > { %4958 = vmatprep.subr.bf16.mxu1 %v5804_v0 }
 0x25b   : > { %4985 = vmatpush3.bf16.msra.mxu0 %v5455_v27 }
 0x25c   : > { %4986 = vmatprep.subr.bf16.mxu0 %v5804_v0 }
 0x25d   : > { %4959 = vmatpush3.bf16.msra.mxu1 %v5456_v29 }
 0x25e   : > { %4960 = vmatprep.subr.bf16.mxu1 %v5804_v0 }
 0x25f   : > { %4987 = vmatpush3.bf16.msra.mxu0 %v5457_v30 }
 0x260   : > { %4988 = vmatprep.subr.bf16.mxu0 %v5804_v0 }
 0x261   : > { %4961 = vmatpush3.bf16.msra.mxu1 %v5458_v31 }
 0x262   : > { %4962 = vmatprep.subr.bf16.mxu1 %v5804_v0 }
 0x263   : > { %4989 = vmatpush3.bf16.msra.mxu0 %v5459_v34 }
 0x264   : > { %4990 = vmatprep.subr.bf16.mxu0 %v5804_v0 }
 0x265   : > { %4963 = vmatpush3.bf16.msra.mxu1 %v5460_v35 }
 0x266   : > { %4964 = vmatprep.subr.bf16.mxu1 %v5804_v0 }
 0x267   : > { %4991 = vmatpush3.bf16.msra.mxu0 %v5461_v36 }
 0x268   : > { %4992 = vmatprep.subr.bf16.mxu0 %v5804_v0 }
 0x269   : > { %4965 = vmatpush3.bf16.msra.mxu1 %v5462_v39 }
 0x26a   : > { %4966 = vmatprep.subr.bf16.mxu1 %v5804_v0 }
 0x26b   : > { %4993 = vmatpush3.bf16.msra.mxu0 %v5463_v42 }
 0x26c   : > { %4994 = vmatprep.subr.bf16.mxu0 %v5804_v0 }
 0x26d   : > { %4967 = vmatpush3.bf16.msra.mxu1 %v5464_v47 }
 0x26e   : > { %4968 = vmatprep.subr.bf16.mxu1 %v5804_v0 }
 0x26f   : > { %4995 = vmatpush3.bf16.msra.mxu0 %v5465_v48 }
 0x270   : > { %4996 = vmatprep.subr.bf16.mxu0 %v5804_v0 }
 0x271   : > { %4969 = vmatpush3.bf16.msra.mxu1 %v5466_v33 }
 0x272   : > { %5010 = vmatprep.subr.bf16.mxu1 %v5804_v0 }
 0x273   : > { %4997 = vmatpush3.bf16.msra.mxu0 %v5467_v52 }
 0x274   : > { %5038 = vmatprep.subr.bf16.mxu0 %v5804_v0 }
 0x2d7   : > { %v1358_v37 = vpop.f32.mrb[28].mxu1  ;;  %v1463_v38 = vpop.f32.mrb[40].mxu0 }
 0x2d8   : > { %v1464_v40 = vadd.f32 %v1463_v38, %v1358_v37  ;;  %v4752_v28 = vpop.f32.mrb[29].mxu1  ;;  %v4780_v41 = vpop.f32.mrb[41].mxu0 }
 0x2d9   : > { %v1361_v13 = vpop.f32.mrb[30].mxu1  ;;  %v1466_v43 = vpop.f32.mrb[42].mxu0 }
 0x2da   : > { %v1467_v16 = vadd.f32 %v1466_v43, %v1361_v13  ;;  %v4753_v44 = vpop.f32.mrb[31].mxu1  ;;  %v4781_v46 = vpop.f32.mrb[43].mxu0  ;;  %v4203_v13 = vld [vmem:[%s6815_s4] ss:$0 sm:$0xff] }
 0x2df   : > { %v1366_v49 = vpop.f32.mrb[32].mxu1  ;;  %v1471_v32 = vpop.f32.mrb[44].mxu0 }
 0x2e0   : > { %v4756_v50 = vpop.f32.mrb[33].mxu1  ;;  %v4784_v51 = vpop.f32.mrb[45].mxu0 }
 0x2e1   : > { %v1369_v53 = vpop.f32.mrb[34].mxu1  ;;  %v1474_v55 = vpop.f32.mrb[46].mxu0 }
 0x2e2   : > { %v4757_v56 = vpop.f32.mrb[35].mxu1  ;;  %v4785_v57 = vpop.f32.mrb[47].mxu0 }
 0x2e7   : > { %v1580_v59 = vpop.f32.mrb[36].mxu1  ;;  %v1723_v62 = vpop.f32.mrb[48].mxu0 }
 0x2e8   : > { %v4804_v63 = vpop.f32.mrb[37].mxu1  ;;  %v4832_v1 = vpop.f32.mrb[49].mxu0 }
 0x2e9   : > { %v1583_v2 = vpop.f32.mrb[38].mxu1  ;;  %v1726_v60 = vpop.f32.mrb[50].mxu0 }
 0x2ea   : > { %v4805_v58 = vpop.f32.mrb[39].mxu1  ;;  %v4833_v3 = vpop.f32.mrb[51].mxu0 }
 0x2ef   : > { %v1588_v4 = vpop.f32.mrb[40].mxu1  ;;  %v1731_v45 = vpop.f32.mrb[52].mxu0 }
 0x2f0   : > { %v1605_v6 = vadd.f32 %v1588_v4, %v1464_v40  ;;  %v4808_v8 = vpop.f32.mrb[41].mxu1  ;;  %v4836_v9 = vpop.f32.mrb[53].mxu0 }
 0x2f1   : > { %v1591_v10 = vpop.f32.mrb[42].mxu1  ;;  %v1734_v17 = vpop.f32.mrb[54].mxu0  ;;  %v4204_v8 = vld [vmem:[%s6817_s6] ss:$0 sm:$0xff] }
 0x2f2   : > { %v1748_v19 = vadd.f32 %v1731_v45, %v1605_v6  ;;  %v1606_v20 = vadd.f32 %v1591_v10, %v1467_v16  ;;  %v4809_v21 = vpop.f32.mrb[43].mxu1  ;;  %v4837_v22 = vpop.f32.mrb[55].mxu0 }
 0x2f4   : > { %v1749_v23 = vadd.f32 %v1734_v17, %v1606_v20 }
 0x2f7   : > { %v1596_v24 = vpop.f32.mrb[44].mxu1 }
 0x2f8   : > { %v4812_v26 = vpop.f32.mrb[45].mxu1 }
 0x2f9   : > { %v1599_v27 = vpop.f32.mrb[46].mxu1  ;;  %v1739_v29 = vpop.f32.mrb[56].mxu0 }
 0x2fa   : > { %v4813_v30 = vpop.f32.mrb[47].mxu1  ;;  %v4840_v31 = vpop.f32.mrb[57].mxu0 }
 0x2fb   : > { %v1742_v34 = vpop.f32.mrb[58].mxu0 }
 0x2fc   : > { %v4841_v35 = vpop.f32.mrb[59].mxu0 }
 0x307   : > { %v1866_v36 = vpop.f32.mrb[48].mxu1 }
 0x308   : > { %v4860_v37 = vpop.f32.mrb[49].mxu1 }
 0x309   : > { %v1869_v38 = vpop.f32.mrb[50].mxu1  ;;  %v2066_v39 = vpop.f32.mrb[60].mxu0 }
 0x30a   : > { %v4861_v40 = vpop.f32.mrb[51].mxu1  ;;  %v4888_v28 = vpop.f32.mrb[61].mxu0 }
 0x30b   : > { %v2069_v41 = vpop.f32.mrb[62].mxu0 }
 0x30c   : > { %v4889_v42 = vpop.f32.mrb[63].mxu0 }
 0x30f   : > { %v1874_v43 = vpop.f32.mrb[52].mxu1 }
 0x310   : > { %v1891_v16 = vadd.f32 %v1874_v43, %v1748_v19  ;;  %v4864_v44 = vpop.f32.mrb[53].mxu1 }
 0x311   : > { %v1877_v46 = vpop.f32.mrb[54].mxu1  ;;  %v2074_v47 = vpop.f32.mrb[64].mxu0 }
 0x312   : > { %v1903_v48 = vadd.f32 %v4203_v13, %v1891_v16  ;;  %v1892_v49 = vadd.f32 %v1877_v46, %v1749_v23  ;;  %v4865_v32 = vpop.f32.mrb[55].mxu1  ;;  %v4892_v33 = vpop.f32.mrb[65].mxu0  ;;  %v2075_v19 = vadd.f32 %v4204_v8, %v2074_v47 }
 0x313   : > { %v2077_v50 = vpop.f32.mrb[66].mxu0 }
 0x314   : > { %v1909_v51 = vmul.f32 %v1903_v48, %v1903_v48  ;;  %v1904_v52 = vadd.f32 %v4203_v13, %v1892_v49  ;;  %v4893_v53 = vpop.f32.mrb[67].mxu0  ;;  %v2078_v26 = vadd.f32 %v4204_v8, %v2077_v50 }
 0x316   : > { %v1915_v55 = vmul.f32 %v1909_v51, %v1903_v48  ;;  %v1910_v56 = vmul.f32 %v1904_v52, %v1904_v52 }
 0x318   : > { %v1921_v57 = vmul.f32 0.044715, %v1915_v55  ;;  %v1916_v59 = vmul.f32 %v1910_v56, %v1904_v52 }
 0x319   : > { %v2082_v62 = vpop.f32.mrb[68].mxu0 }
 0x31a   : > { %v1927_v63 = vadd.f32 %v1921_v57, %v1903_v48  ;;  %v1922_v1 = vmul.f32 0.044715, %v1916_v59  ;;  %v4896_v2 = vpop.f32.mrb[69].mxu0 }
 0x31b   : > { %v2085_v60 = vpop.f32.mrb[70].mxu0 }
 0x31c   : > { %v1928_v58 = vadd.f32 %v1922_v1, %v1904_v52  ;;  %v1933_v3 = vmul.f32 0.7978846, %v1927_v63  ;;  %v4897_v4 = vpop.f32.mrb[71].mxu0 }
 0x31e   : > { %5544 = vtanh.f32 %v1933_v3  ;;  %v1934_v45 = vmul.f32 0.7978846, %v1928_v58 }
 0x320   : > { %5546 = vtanh.f32 %v1934_v45 }
 0x328   : > { %v5545_v6 = vpop.eup %5544 }
 0x329   : > { %v1945_v9 = vadd.f32 1.0, %v5545_v6 }
 0x32a   : > { %v5547_v10 = vpop.eup %5546 }
 0x32b   : > { %v1951_v17 = vmul.f32 0.5, %v1945_v9  ;;  %v1946_v20 = vadd.f32 1.0, %v5547_v10 }
 0x32d   : > { %v1957_v21 = vmul.f32 %v1951_v17, %v1903_v48  ;;  %v1952_v22 = vmul.f32 0.5, %v1946_v20  ;;  %v5468_v17 = vld [vmem:[#allocation5 + $0x240] sm:$0xff]   ;;  %v5469_v20 = vld [vmem:[#allocation5 + $0x248] sm:$0xff]  }
 0x32f   : > { %v2091_v23 = vadd.f32 %v2075_v19, %v1957_v21  ;;  %v1958_v24 = vmul.f32 %v1952_v22, %v1904_v52  ;;  %v5470_v21 = vld [vmem:[#allocation5 + $0x250] sm:$0xff]   ;;  %v5471_v22 = vld [vmem:[#allocation5 + $0x258] sm:$0xff]  }
 0x331   : > { %v2097_v27 = vmul.f32 %v2091_v23, %v2091_v23  ;;  %v2092_v29 = vadd.f32 %v2078_v26, %v1958_v24  ;;  %v5473_v24 = vld [vmem:[#allocation5 + $0x268] sm:$0xff]   ;;  %v5474_v26 = vld [vmem:[#allocation5 + $0x270] sm:$0xff]  }
 0x333   : > { %v2103_v30 = vmul.f32 %v2097_v27, %v2091_v23  ;;  %v2098_v31 = vmul.f32 %v2092_v29, %v2092_v29  ;;  %v5475_v27 = vld [vmem:[#allocation5 + $0x278] sm:$0xff]  }
 0x335   : > { %v2109_v34 = vmul.f32 0.044715, %v2103_v30  ;;  %v2104_v35 = vmul.f32 %v2098_v31, %v2092_v29  ;;  %v1882_v31 = vpop.f32.mrb[56].mxu1 }
 0x337   : > { %v2115_v36 = vadd.f32 %v2109_v34, %v2091_v23  ;;  %v2110_v37 = vmul.f32 0.044715, %v2104_v35  ;;  %v4868_v34 = vpop.f32.mrb[57].mxu1 }
 0x338   : > { %v1885_v35 = vpop.f32.mrb[58].mxu1 }
 0x339   : > { %v2121_v38 = vmul.f32 0.7978846, %v2115_v36  ;;  %v2116_v39 = vadd.f32 %v2110_v37, %v2092_v29  ;;  %v4869_v36 = vpop.f32.mrb[59].mxu1 }
 0x33a   : > { %v2303_v37 = vpop.f32.mrb[60].mxu1 }
 0x33b   : > { %5548 = vtanh.f32 %v2121_v38  ;;  %v2122_v40 = vmul.f32 0.7978846, %v2116_v39  ;;  %v4916_v38 = vpop.f32.mrb[61].mxu1 }
 0x33c   : > { %v2306_v39 = vpop.f32.mrb[62].mxu1 }
 0x33d   : > { %5550 = vtanh.f32 %v2122_v40  ;;  %v4917_v40 = vpop.f32.mrb[63].mxu1 }
 0x345   : > { %v5549_v28 = vpop.eup %5548 }
 0x346   : > { %v2133_v41 = vadd.f32 1.0, %v5549_v28  ;;  %v2408_v28 = vpop.f32.mrb[72].mxu0 }
 0x347   : > { %v5551_v42 = vpop.eup %5550 }
 0x348   : > { %v2139_v13 = vmul.f32 0.5, %v2133_v41  ;;  %v2134_v43 = vadd.f32 1.0, %v5551_v42  ;;  %v4944_v41 = vpop.f32.mrb[73].mxu0 }
 0x349   : > { %v2411_v42 = vpop.f32.mrb[74].mxu0 }
 0x34a   : > { %v6495_v16 = vmul.f32 %v2139_v13, %v2091_v23  ;;  %v2140_v44 = vmul.f32 0.5, %v2134_v43  ;;  %v5472_v23 = vld [vmem:[#allocation5 + $0x260] sm:$0xff]   ;;  %v4945_v13 = vpop.f32.mrb[75].mxu0 }
 0x34b   : > { %v5476_v43 = vld [vmem:[#allocation8 + $0x180] sm:$0xff]  }
 0x34c   : > { %v2146_v46 = vmul.f32 %v2140_v44, %v2092_v29  ;;  %v2191_v47 = vrot.slane %v6495_v16, 7  ;;  %v2159_v48 = vrot.slane %v6495_v16, 6  ;;  %v2564_v33 = vrot.slane %v6495_v16, 1  ;;  %v5478_v44 = vld [vmem:[#allocation8 + $0x188] sm:$0xff]  }
 0x34d   : > { %v2707_v2 = vrot.slane %v6495_v16, 2 }
 0x34e   : > { %v2192_v49 = vrot.slane %v2146_v46, 7  ;;  %v2160_v32 = vrot.slane %v2146_v46, 6  ;;  %v6501_v50 = vpack.c.bf16 %v2146_v46, %v6495_v16  ;;  %v2565_v51 = vrot.slane %v2146_v46, 1  ;;  %v5477_v16 = vld [vmem:[#allocation8 + $0x140] sm:$0xff]  }
 0x34f   : > { %v2198_v53 = vsel %vm467_vm1, %v6286_v5, %v2191_v47  ;;  %v2166_v56 = vsel %vm435_vm2, %v6298_v61, %v2159_v48  ;;  %v2708_v60 = vrot.slane %v2146_v46, 2  ;;  %v2571_v10 = vsel %vm838_vm3, %v6334_v54, %v2564_v33  ;;  %v5479_v46 = vld [vmem:[#allocation8 + $0x148] sm:$0xff]  }
 0x350   : > { %v2197_v52 = vsel %vm467_vm1, %v2191_v47, %v2192_v49  ;;  %v2165_v55 = vsel %vm435_vm2, %v2159_v48, %v2160_v32  ;;  %v2569_v62 = vsel %vm838_vm3, %v2565_v51, %v6334_v54  ;;  %v2570_v63 = vsel %vm838_vm3, %v2564_v33, %v2565_v51  ;;  %v5480_v47 = vld [vmem:[#allocation8 + $0x190] sm:$0xff]   ;;  %v5484_v33 = vld [vmem:[#allocation8 + $0x1a0] sm:$0xff]  }
 0x351   : > { %v2202_v57 = vpack.c.bf16 %v2197_v52, %v2198_v53  ;;  %v2170_v59 = vpack.c.bf16 %v2165_v55, %v2166_v56  ;;  %v2575_v1 = vpack.c.bf16 %v2569_v62, %v2570_v63  ;;  %v2712_v58 = vsel %vm982_vm4, %v2708_v60, %v6354_v18  ;;  %v5481_v48 = vld [vmem:[#allocation8 + $0x150] sm:$0xff]   ;;  %v5485_v51 = vld [vmem:[#allocation8 + $0x160] sm:$0xff]   ;;  %v5486_v52 = vld [vmem:[#allocation8 + $0x1a8] sm:$0xff]  }
 0x352   : > { %v2713_v3 = vsel %vm982_vm4, %v2707_v2, %v2708_v60  ;;  %v2196_v4 = vsel %vm467_vm1, %v2192_v49, %v6286_v5  ;;  %v2164_v45 = vsel %vm435_vm2, %v2160_v32, %v6298_v61  ;;  %v2574_v19 = vpack.c.bf16 %v2571_v10, %v6334_v54  ;;  %v5482_v49 = vld [vmem:[#allocation8 + $0x198] sm:$0xff]   ;;  %v5487_v53 = vld [vmem:[#allocation8 + $0x168] sm:$0xff]   ;;  %v5488_v55 = vld [vmem:[#allocation8 + $0x1b0] sm:$0xff]  }
 0x353   : > { %4919 = vmatmul.mubr.bf16.gmra.mrb[64].mxu1 %v2202_v57  ;;  %4947 = vmatmul.mubr.bf16.gmra.mrb[76].mxu0 %v2170_v59  ;;  %v2718_v6 = vpack.c.bf16 %v2712_v58, %v2713_v3  ;;  %v2203_v8 = vpack.c.bf16 %v6286_v5, %v2196_v4  ;;  %v2171_v9 = vpack.c.bf16 %v6298_v61, %v2164_v45  ;;  %v5483_v32 = vld [vmem:[#allocation8 + $0x158] sm:$0xff]   ;;  %v5489_v56 = vld [vmem:[#allocation8 + $0x170] sm:$0xff]   ;;  %v5492_v62 = vld [vmem:[#allocation8 + $0x1c0] sm:$0xff]  }
 0x354   : > { %4922 = vmatprep.mubr.msk.bf16.mxu1 %vm5805_vm0, %v5804_v0  ;;  %4950 = vmatprep.mubr.msk.bf16.mxu0 %vm5805_vm0, %v5804_v0  ;;  %v2714_v29 = vsel %vm982_vm4, %v6354_v18, %v2707_v2  ;;  %v5490_v57 = vld [vmem:[#allocation8 + $0x1b8] sm:$0xff]   ;;  %v5493_v63 = vld [vmem:[#allocation8 + $0x200] sm:$0xff]   ;;  %v5495_v2 = vld [vmem:[#allocation8 + $0x208] sm:$0xff]  }
 0x355   : > { %v2717_v30 = vpack.c.bf16 %v2714_v29, %v6354_v18  ;;  %v5491_v59 = vld [vmem:[#allocation8 + $0x178] sm:$0xff]   ;;  %v5497_v60 = vld [vmem:[#allocation8 + $0x210] sm:$0xff]   ;;  %v5500_v3 = vld [vmem:[#allocation8 + $0x1e0] sm:$0xff]  }
 0x356   : > { %v5499_v58 = vld [vmem:[#allocation8 + $0x218] sm:$0xff]   ;;  %v5501_v4 = vld [vmem:[#allocation8 + $0x220] sm:$0xff]   ;;  %v5502_v45 = vld [vmem:[#allocation8 + $0x1e8] sm:$0xff]  }
 0x357   : > { %v5506_v10 = vld [vmem:[#allocation8 + $0x1f8] sm:$0xff]  }
 0x35b   : > { %4923 = vmatmul.mubr.bf16.gmra.mrb[68].mxu1 %v2203_v8  ;;  %4951 = vmatmul.mubr.bf16.gmra.mrb[80].mxu0 %v2171_v9  ;;  %v5504_v8 = vld [vmem:[#allocation8 + $0x1f0] sm:$0xff]  }
 0x35c   : > { %4970 = vmatprep.mubr.msk.bf16.mxu1 %vm5805_vm0, %v5804_v0  ;;  %4998 = vmatprep.mubr.msk.bf16.mxu0 %vm5805_vm0, %v5804_v0  ;;  %v5505_v9 = vld [vmem:[#allocation8 + $0x230] sm:$0xff]  }
 0x363   : > { %4971 = vmatmul.mubr.bf16.vlgmr.msra.gmra.mrb[72].mxu1 %v5806_v25  ;;  %4999 = vmatmul.mubr.bf16.vlgmr.msra.gmra.mrb[84].mxu0 %v2574_v19 }
 0x364   : > { %5011 = vmatpush3.bf16.msra.mxu1 %v5468_v17  ;;  %4974 = vmatprep.mubr.msk.bf16.mxu1 %vm5805_vm0, %v5804_v0  ;;  %v5507_v17 = vld [vmem:[#allocation8 + $0x238] sm:$0xff]  }
 0x365   : > { %5012 = vmatprep.subr.bf16.mxu1 %v5804_v0  ;;  %5002 = vmatprep.mubr.msk.bf16.mxu0 %vm5805_vm0, %v5804_v0 }
 0x366   : > { %5039 = vmatpush3.bf16.msra.mxu0 %v5476_v43 }
 0x367   : > { %5040 = vmatprep.subr.bf16.mxu0 %v5804_v0 }
 0x368   : > { %5013 = vmatpush3.bf16.msra.mxu1 %v5469_v20 }
 0x369   : > { %5014 = vmatprep.subr.bf16.mxu1 %v5804_v0 }
 0x36a   : > { %5041 = vmatpush3.bf16.msra.mxu0 %v5478_v44 }
 0x36b   : > { %4975 = vmatmul.mubr.bf16.gmra.mrb[76].mxu1 %v6501_v50  ;;  %5003 = vmatmul.mubr.bf16.gmra.mrb[88].mxu0 %v2575_v1  ;;  %v5494_v1 = vld [vmem:[#allocation8 + $0x1c8] sm:$0xff]  }
 0x36c   : > { %5015 = vmatpush3.bf16.msra.mxu1 %v5470_v21  ;;  %4978 = vmatprep.mubr.msk.bf16.mxu1 %vm5805_vm0, %v5804_v0 }
 0x36d   : > { %5016 = vmatprep.subr.bf16.mxu1 %v5804_v0  ;;  %5006 = vmatprep.mubr.msk.bf16.mxu0 %vm5805_vm0, %v5804_v0 }
 0x36e   : > { %5042 = vmatprep.subr.bf16.mxu0 %v5804_v0 }
 0x36f   : > { %5043 = vmatpush3.bf16.msra.mxu0 %v5480_v47 }
 0x370   : > { %5017 = vmatpush3.bf16.msra.mxu1 %v5471_v22  ;;  %5044 = vmatprep.subr.bf16.mxu0 %v5804_v0 }
 0x371   : > { %5018 = vmatprep.subr.bf16.mxu1 %v5804_v0 }
 0x373   : > { %4979 = vmatmul.mubr.bf16.gmra.mrb[80].mxu1 %v5806_v25  ;;  %5007 = vmatmul.mubr.bf16.gmra.mrb[92].mxu0 %v6408_v12 }
 0x374   : > { %5019 = vmatpush3.bf16.msra.mxu1 %v5472_v23  ;;  %5026 = vmatprep.mubr.msk.bf16.mxu1 %vm5805_vm0, %v5804_v0 }
 0x375   : > { %5020 = vmatprep.subr.bf16.mxu1 %v5804_v0  ;;  %5054 = vmatprep.mubr.msk.bf16.mxu0 %vm5805_vm0, %v5804_v0 }
 0x376   : > { %5045 = vmatpush3.bf16.msra.mxu0 %v5482_v49 }
 0x377   : > { %5046 = vmatprep.subr.bf16.mxu0 %v5804_v0 }
 0x378   : > { %5021 = vmatpush3.bf16.msra.mxu1 %v5473_v24 }
 0x379   : > { %5022 = vmatprep.subr.bf16.mxu1 %v5804_v0 }
 0x37a   : > { %5047 = vmatpush3.bf16.msra.mxu0 %v5484_v33 }
 0x37b   : > { %5048 = vmatprep.subr.bf16.mxu0 %v5804_v0 }
 0x37c   : > { %5023 = vmatpush3.bf16.msra.mxu1 %v5474_v26 }
 0x37d   : > { %5024 = vmatprep.subr.bf16.mxu1 %v5804_v0 }
 0x37e   : > { %5049 = vmatpush3.bf16.msra.mxu0 %v5486_v52 }
 0x37f   : > { %5050 = vmatprep.subr.bf16.mxu0 %v5804_v0 }
 0x380   : > { %5025 = vmatpush3.bf16.msra.mxu1 %v5475_v27 }
 0x381   : > { %5066 = vmatprep.subr.bf16.mxu1 %v5804_v0 }
 0x382   : > { %5051 = vmatpush3.bf16.msra.mxu0 %v5488_v55 }
 0x383   : > { %5027 = vmatmul.mubr.bf16.vlgmr.msra.gmra.mrb[84].mxu1 %v2717_v30  ;;  %5052 = vmatprep.subr.bf16.mxu0 %v5804_v0 }
 0x384   : > { %5030 = vmatprep.mubr.msk.bf16.mxu1 %vm5805_vm0, %v5804_v0  ;;  %5067 = vmatpush3.bf16.msra.mxu1 %v5477_v16 }
 0x385   : > { %5068 = vmatprep.subr.bf16.mxu1 %v5804_v0 }
 0x386   : > { %5053 = vmatpush3.bf16.msra.mxu0 %v5490_v57 }
 0x387   : > { %5094 = vmatprep.subr.bf16.mxu0 %v5804_v0 }
 0x388   : > { %5069 = vmatpush3.bf16.msra.mxu1 %v5479_v46 }
 0x389   : > { %5070 = vmatprep.subr.bf16.mxu1 %v5804_v0  ;;  %5055 = vmatmul.mubr.bf16.vlgmr.msra.gmra.mrb[96].mxu0 %v6291_v15  ;;  %v5496_v15 = vld [vmem:[#allocation8 + $0x1d0] sm:$0xff]  }
 0x38a   : > { %5058 = vmatprep.mubr.msk.bf16.mxu0 %vm5805_vm0, %v5804_v0  ;;  %5095 = vmatpush3.bf16.msra.mxu0 %v5492_v62 }
 0x38b   : > { %5031 = vmatmul.mubr.bf16.gmra.mrb[88].mxu1 %v2718_v6  ;;  %5096 = vmatprep.subr.bf16.mxu0 %v5804_v0  ;;  %v5503_v6 = vld [vmem:[#allocation8 + $0x228] sm:$0xff]  }
 0x38c   : > { %5034 = vmatprep.mubr.msk.bf16.mxu1 %vm5805_vm0, %v5804_v0  ;;  %5071 = vmatpush3.bf16.msra.mxu1 %v5481_v48 }
 0x38d   : > { %5072 = vmatprep.subr.bf16.mxu1 %v5804_v0 }
 0x38e   : > { %5097 = vmatpush3.bf16.msra.mxu0 %v5494_v1 }
 0x38f   : > { %5098 = vmatprep.subr.bf16.mxu0 %v5804_v0 }
 0x390   : > { %5073 = vmatpush3.bf16.msra.mxu1 %v5483_v32 }
 0x391   : > { %5074 = vmatprep.subr.bf16.mxu1 %v5804_v0 }
 0x392   : > { %5099 = vmatpush3.bf16.msra.mxu0 %v5496_v15 }
 0x393   : > { %5035 = vmatmul.mubr.bf16.gmra.mrb[92].mxu1 %v6456_v11  ;;  %5100 = vmatprep.subr.bf16.mxu0 %v5804_v0 }
 0x394   : > { %5082 = vmatprep.mubr.msk.bf16.mxu1 %vm5805_vm0, %v5804_v0  ;;  %5075 = vmatpush3.bf16.msra.mxu1 %v5485_v51 }
 0x395   : > { %5076 = vmatprep.subr.bf16.mxu1 %v5804_v0 }
 0x398   : > { %5077 = vmatpush3.bf16.msra.mxu1 %v5487_v53 }
 0x399   : > { %5078 = vmatprep.subr.bf16.mxu1 %v5804_v0 }
 0x39c   : > { %5079 = vmatpush3.bf16.msra.mxu1 %v5489_v56 }
 0x39d   : > { %5080 = vmatprep.subr.bf16.mxu1 %v5804_v0 }
 0x3a0   : > { %5081 = vmatpush3.bf16.msra.mxu1 %v5491_v59 }
 0x3a1   : > { %5122 = vmatprep.subr.bf16.mxu1 %v5804_v0 }
 0x3a3   : > { %5083 = vmatmul.mubr.bf16.vlgmr.msra.gmra.mrb[96].mxu1 %v6305_v7  ;;  %v5498_v7 = vld [vmem:[#allocation8 + $0x1d8] sm:$0xff]  }
 0x3a4   : > { %5123 = vmatpush3.bf16.msra.mxu1 %v5493_v63  ;;  %5086 = vmatprep.mubr.msk.bf16.mxu1 %vm5805_vm0, %v5804_v0 }
 0x3a5   : > { %5124 = vmatprep.subr.bf16.mxu1 %v5804_v0  ;;  %5101 = vmatpush3.bf16.msra.mxu0 %v5498_v7 }
 0x3a6   : > { %5102 = vmatprep.subr.bf16.mxu0 %v5804_v0 }
 0x3a8   : > { %5125 = vmatpush3.bf16.msra.mxu1 %v5495_v2 }
 0x3a9   : > { %5126 = vmatprep.subr.bf16.mxu1 %v5804_v0  ;;  %5103 = vmatpush3.bf16.msra.mxu0 %v5500_v3 }
 0x3aa   : > { %5104 = vmatprep.subr.bf16.mxu0 %v5804_v0 }
 0x3ac   : > { %5127 = vmatpush3.bf16.msra.mxu1 %v5497_v60 }
 0x3ad   : > { %5128 = vmatprep.subr.bf16.mxu1 %v5804_v0  ;;  %5105 = vmatpush3.bf16.msra.mxu0 %v5502_v45 }
 0x3ae   : > { %5106 = vmatprep.subr.bf16.mxu0 %v5804_v0 }
 0x3b0   : > { %5129 = vmatpush3.bf16.msra.mxu1 %v5499_v58 }
 0x3b1   : > { %5130 = vmatprep.subr.bf16.mxu1 %v5804_v0  ;;  %5107 = vmatpush3.bf16.msra.mxu0 %v5504_v8  ;;  %v4254_v8 = vld [vmem:[%s6813_s2 + $0x1] ss:$0 sm:$0xff] }
 0x3b2   : > { %5108 = vmatprep.subr.bf16.mxu0 %v5804_v0 }
 0x3b4   : > { %5131 = vmatpush3.bf16.msra.mxu1 %v5501_v4 }
 0x3b5   : > { %5132 = vmatprep.subr.bf16.mxu1 %v5804_v0  ;;  %5109 = vmatpush3.bf16.msra.mxu0 %v5506_v10 }
 0x3b6   : > { %5150 = vmatprep.subr.bf16.mxu0 %v5804_v0 }
 0x3b8   : > { %5133 = vmatpush3.bf16.msra.mxu1 %v5503_v6 }
 0x3b9   : > { %5134 = vmatprep.subr.bf16.mxu1 %v5804_v0 }
 0x3bc   : > { %5135 = vmatpush3.bf16.msra.mxu1 %v5505_v9 }
 0x3bd   : > { %5136 = vmatprep.subr.bf16.mxu1 %v5804_v0 }
 0x3c0   : > { %5137 = vmatpush3.bf16.msra.mxu1 %v5507_v17 }
 0x3c1   : > { %5178 = vmatprep.subr.bf16.mxu1 %v5804_v0 }
 0x426   : > { %v2311_v19 = vpop.f32.mrb[64].mxu1  ;;  %v2416_v20 = vpop.f32.mrb[76].mxu0 }
 0x427   : > { %v2417_v21 = vadd.f32 %v2416_v20, %v2311_v19  ;;  %v4920_v22 = vpop.f32.mrb[65].mxu1  ;;  %v4948_v23 = vpop.f32.mrb[77].mxu0 }
 0x428   : > { %v2314_v24 = vpop.f32.mrb[66].mxu1  ;;  %v2419_v26 = vpop.f32.mrb[78].mxu0 }
 0x429   : > { %v2420_v27 = vadd.f32 %v2419_v26, %v2314_v24  ;;  %v4921_v29 = vpop.f32.mrb[67].mxu1  ;;  %v4949_v30 = vpop.f32.mrb[79].mxu0 }
 0x42e   : > { %v2319_v31 = vpop.f32.mrb[68].mxu1  ;;  %v2424_v34 = vpop.f32.mrb[80].mxu0 }
 0x42f   : > { %v4924_v35 = vpop.f32.mrb[69].mxu1  ;;  %v4952_v36 = vpop.f32.mrb[81].mxu0 }
 0x430   : > { %v2322_v37 = vpop.f32.mrb[70].mxu1  ;;  %v2427_v38 = vpop.f32.mrb[82].mxu0 }
 0x431   : > { %v4925_v39 = vpop.f32.mrb[71].mxu1  ;;  %v4953_v40 = vpop.f32.mrb[83].mxu0 }
 0x436   : > { %v2533_v28 = vpop.f32.mrb[72].mxu1  ;;  %v2676_v41 = vpop.f32.mrb[84].mxu0 }
 0x437   : > { %v4972_v42 = vpop.f32.mrb[73].mxu1  ;;  %v5000_v13 = vpop.f32.mrb[85].mxu0 }
 0x438   : > { %v2536_v43 = vpop.f32.mrb[74].mxu1  ;;  %v2679_v16 = vpop.f32.mrb[86].mxu0 }
 0x439   : > { %v4973_v44 = vpop.f32.mrb[75].mxu1  ;;  %v5001_v46 = vpop.f32.mrb[87].mxu0 }
 0x43e   : > { %v2541_v47 = vpop.f32.mrb[76].mxu1  ;;  %v2684_v48 = vpop.f32.mrb[88].mxu0 }
 0x43f   : > { %v2558_v49 = vadd.f32 %v2541_v47, %v2417_v21  ;;  %v4976_v32 = vpop.f32.mrb[77].mxu1  ;;  %v5004_v33 = vpop.f32.mrb[89].mxu0 }
 0x440   : > { %v2544_v51 = vpop.f32.mrb[78].mxu1  ;;  %v2687_v52 = vpop.f32.mrb[90].mxu0 }
 0x441   : > { %v2701_v53 = vadd.f32 %v2684_v48, %v2558_v49  ;;  %v2559_v55 = vadd.f32 %v2544_v51, %v2420_v27  ;;  %v4977_v56 = vpop.f32.mrb[79].mxu1  ;;  %v5005_v57 = vpop.f32.mrb[91].mxu0 }
 0x443   : > { %v2702_v59 = vadd.f32 %v2687_v52, %v2559_v55 }
 0x446   : > { %v2549_v62 = vpop.f32.mrb[80].mxu1  ;;  %v2692_v63 = vpop.f32.mrb[92].mxu0 }
 0x447   : > { %v4980_v1 = vpop.f32.mrb[81].mxu1  ;;  %v5008_v2 = vpop.f32.mrb[93].mxu0 }
 0x448   : > { %v2552_v15 = vpop.f32.mrb[82].mxu1  ;;  %v2695_v60 = vpop.f32.mrb[94].mxu0 }
 0x449   : > { %v4981_v7 = vpop.f32.mrb[83].mxu1  ;;  %v5009_v58 = vpop.f32.mrb[95].mxu0 }
 0x456   : > { %v2819_v3 = vpop.f32.mrb[84].mxu1 }
 0x457   : > { %v5028_v4 = vpop.f32.mrb[85].mxu1 }
 0x458   : > { %v2822_v45 = vpop.f32.mrb[86].mxu1 }
 0x459   : > { %v5029_v6 = vpop.f32.mrb[87].mxu1 }
 0x45c   : > { %v3068_v14 = vpop.f32.mrb[96].mxu0 }
 0x45e   : > { %v2827_v9 = vpop.f32.mrb[88].mxu1 }
 0x45f   : > { %v2844_v10 = vadd.f32 %v2827_v9, %v2701_v53  ;;  %v5032_v17 = vpop.f32.mrb[89].mxu1 }
 0x460   : > { %v2830_v19 = vpop.f32.mrb[90].mxu1  ;;  %v5508_v17 = vld [vmem:[#allocation8 + $0x240] sm:$0xff]  }
 0x461   : > { %v2856_v20 = vadd.f32 %v4254_v8, %v2844_v10  ;;  %v2845_v21 = vadd.f32 %v2830_v19, %v2702_v59  ;;  %v5033_v22 = vpop.f32.mrb[91].mxu1  ;;  %v5509_v19 = vld [vmem:[#allocation10 + $0x40] sm:$0xff]  }
 0x462   : > { %v5514_v22 = vld [vmem:[#allocation8 + $0x258] sm:$0xff]  }
 0x463   : > { %v2862_v23 = vmul.f32 %v2856_v20, %v2856_v20  ;;  %v2857_v24 = vadd.f32 %v4254_v8, %v2845_v21  ;;  %v5513_v21 = vld [vmem:[#allocation10 + $0x50] sm:$0xff]  }
 0x465   : > { %v2868_v26 = vmul.f32 %v2862_v23, %v2856_v20  ;;  %v2863_v27 = vmul.f32 %v2857_v24, %v2857_v24  ;;  %v5515_v23 = vld [vmem:[#allocation10 + $0x58] sm:$0xff]  }
 0x466   : > { %v2835_v29 = vpop.f32.mrb[92].mxu1 }
 0x467   : > { %v2874_v30 = vmul.f32 0.044715, %v2868_v26  ;;  %v2869_v31 = vmul.f32 %v2863_v27, %v2857_v24  ;;  %v5036_v34 = vpop.f32.mrb[93].mxu1  ;;  %v5517_v26 = vld [vmem:[#allocation10 + $0x60] sm:$0xff]   ;;  %v5518_v27 = vld [vmem:[#allocation8 + $0x268] sm:$0xff]  }
 0x468   : > { %v2838_v35 = vpop.f32.mrb[94].mxu1  ;;  %v5519_v29 = vld [vmem:[#allocation10 + $0x68] sm:$0xff]   ;;  %v5523_v34 = vld [vmem:[#allocation10 + $0x78] sm:$0xff]  }
 0x469   : > { %v2880_v36 = vadd.f32 %v2874_v30, %v2856_v20  ;;  %v2875_v37 = vmul.f32 0.044715, %v2869_v31  ;;  %v5037_v38 = vpop.f32.mrb[95].mxu1  ;;  %v5520_v30 = vld [vmem:[#allocation8 + $0x270] sm:$0xff]  }
 0x46a   : > { %v5521_v31 = vld [vmem:[#allocation10 + $0x70] sm:$0xff]  }
 0x46b   : > { %v2886_v39 = vmul.f32 0.7978846, %v2880_v36  ;;  %v2881_v40 = vadd.f32 %v2875_v37, %v2857_v24 }
 0x46d   : > { %5552 = vtanh.f32 %v2886_v39  ;;  %v2887_v28 = vmul.f32 0.7978846, %v2881_v40 }
 0x46f   : > { %5554 = vtanh.f32 %v2887_v28 }
 0x477   : > { %v5553_v41 = vpop.eup %5552 }
 0x478   : > { %v2898_v42 = vadd.f32 1.0, %v5553_v41  ;;  %v5524_v41 = vld [vmem:[#allocation11 + $0x40] sm:$0xff]  }
 0x479   : > { %v5555_v13 = vpop.eup %5554 }
 0x47a   : > { %v2904_v43 = vmul.f32 0.5, %v2898_v42  ;;  %v2899_v16 = vadd.f32 1.0, %v5555_v13  ;;  %v5525_v42 = vld [vmem:[#allocation11] sm:$0xff]   ;;  %v5528_v13 = vld [vmem:[#allocation11 + $0x50] sm:$0xff]  }
 0x47c   : > { %v6620_v44 = vmul.f32 %v2904_v43, %v2856_v20  ;;  %v2905_v46 = vmul.f32 0.5, %v2899_v16  ;;  %v5529_v43 = vld [vmem:[#allocation11 + $0x10] sm:$0xff]   ;;  %v5530_v16 = vld [vmem:[#allocation11 + $0x58] sm:$0xff]  }
 0x47e   : > { %v2911_v47 = vmul.f32 %v2905_v46, %v2857_v24  ;;  %v2956_v48 = vrot.slane %v6620_v44, 7  ;;  %v2924_v49 = vrot.slane %v6620_v44, 6  ;;  %v3313_v51 = vrot.slane %v6620_v44, 1  ;;  %v5516_v24 = vld [vmem:[#allocation8 + $0x260] sm:$0xff]  }
 0x47f   : > { %v3448_v60 = vrot.slane %v6620_v44, 2  ;;  %v5532_v46 = vld [vmem:[#allocation11 + $0x60] sm:$0xff]  }
 0x480   : > { %v2957_v32 = vrot.slane %v2911_v47, 7  ;;  %v2925_v33 = vrot.slane %v2911_v47, 6  ;;  %v3189_v52 = vpack.c.bf16 %v2911_v47, %v6620_v44  ;;  %v3314_v53 = vrot.slane %v2911_v47, 1  ;;  %v5531_v44 = vld [vmem:[#allocation11 + $0x18] sm:$0xff]  }
 0x481   : > { %v2963_v56 = vsel %vm467_vm1, %v6286_v5, %v2956_v48  ;;  %v2931_v59 = vsel %vm435_vm2, %v6298_v61, %v2924_v49  ;;  %v3449_v7 = vrot.slane %v2911_v47, 2  ;;  %v3320_v10 = vsel %vm838_vm3, %v6334_v54, %v3313_v51  ;;  %v5533_v47 = vld [vmem:[#allocation11 + $0x20] sm:$0xff]  }
 0x482   : > { %v2962_v55 = vsel %vm467_vm1, %v2956_v48, %v2957_v32  ;;  %v2930_v57 = vsel %vm435_vm2, %v2924_v49, %v2925_v33  ;;  %v3318_v1 = vsel %vm838_vm3, %v3314_v53, %v6334_v54  ;;  %v3319_v2 = vsel %vm838_vm3, %v3313_v51, %v3314_v53  ;;  %v5534_v48 = vld [vmem:[#allocation11 + $0x68] sm:$0xff]   ;;  %v5538_v51 = vld [vmem:[#allocation11 + $0x78] sm:$0xff]  }
 0x483   : > { %v2967_v62 = vpack.c.bf16 %v2962_v55, %v2963_v56  ;;  %v2935_v63 = vpack.c.bf16 %v2930_v57, %v2931_v59  ;;  %v3324_v15 = vpack.c.bf16 %v3318_v1, %v3319_v2  ;;  %v6649_v58 = vsel %vm982_vm4, %v3449_v7, %v6354_v18  ;;  %v5535_v49 = vld [vmem:[#allocation11 + $0x28] sm:$0xff]  }
 0x484   : > { %v6655_v3 = vsel %vm982_vm4, %v3448_v60, %v3449_v7  ;;  %v2961_v4 = vsel %vm467_vm1, %v2957_v32, %v6286_v5  ;;  %v2929_v45 = vsel %vm435_vm2, %v2925_v33, %v6298_v61  ;;  %v3323_v20 = vpack.c.bf16 %v3320_v10, %v6334_v54  ;;  %v5512_v54 = vld [vmem:[#allocation8 + $0x250] sm:$0xff]  }
 0x485   : > { %5059 = vmatmul.mubr.bf16.gmra.mrb[100].mxu0 %v2967_v62  ;;  %5087 = vmatmul.mubr.bf16.gmra.mrb[100].mxu1 %v2935_v63  ;;  %v3459_v6 = vpack.c.bf16 %v6649_v58, %v6655_v3  ;;  %v2968_v8 = vpack.c.bf16 %v6286_v5, %v2961_v4  ;;  %v2936_v9 = vpack.c.bf16 %v6298_v61, %v2929_v45  ;;  %v5510_v5 = vld [vmem:[#allocation8 + $0x248] sm:$0xff]   ;;  %v5536_v32 = vld [vmem:[#allocation11 + $0x70] sm:$0xff]  }
 0x486   : > { %5062 = vmatprep.mubr.msk.bf16.mxu0 %vm5805_vm0, %v5804_v0  ;;  %5090 = vmatprep.mubr.msk.bf16.mxu1 %vm5805_vm0, %v5804_v0  ;;  %v5511_v61 = vld [vmem:[#allocation10 + $0x48] sm:$0xff]   ;;  %v3455_v35 = vsel %vm982_vm4, %v6354_v18, %v3448_v60  ;;  %v5537_v33 = vld [vmem:[#allocation11 + $0x30] sm:$0xff]  }
 0x487   : > { %v3458_v36 = vpack.c.bf16 %v3455_v35, %v6354_v18  ;;  %v5056_v18 = vpop.f32.mrb[97].mxu0 }
 0x488   : > { %v3070_v37 = vpop.f32.mrb[98].mxu0 }
 0x489   : > { %v5057_v38 = vpop.f32.mrb[99].mxu0 }
 0x48d   : > { %5063 = vmatmul.mubr.bf16.gmra.mrb[104].mxu0 %v2968_v8  ;;  %5091 = vmatmul.mubr.bf16.gmra.mrb[104].mxu1 %v2936_v9 }
 0x48e   : > { %5110 = vmatprep.mubr.msk.bf16.mxu0 %vm5805_vm0, %v5804_v0  ;;  %5138 = vmatprep.mubr.msk.bf16.mxu1 %vm5805_vm0, %v5804_v0 }
 0x495   : > { %5111 = vmatmul.mubr.bf16.vlgmr.msra.gmra.mrb[108].mxu0 %v5806_v25  ;;  %5139 = vmatmul.mubr.bf16.vlgmr.msra.gmra.mrb[108].mxu1 %v3323_v20 }
 0x496   : > { %5151 = vmatpush3.bf16.msra.mxu0 %v5508_v17  ;;  %5179 = vmatpush3.bf16.msra.mxu1 %v5509_v19 }
 0x497   : > { %5152 = vmatprep.subr.bf16.mxu0 %v5804_v0  ;;  %5180 = vmatprep.subr.bf16.mxu1 %v5804_v0 }
 0x498   : > { %5114 = vmatprep.mubr.msk.bf16.mxu0 %vm5805_vm0, %v5804_v0  ;;  %5142 = vmatprep.mubr.msk.bf16.mxu1 %vm5805_vm0, %v5804_v0 }
 0x49a   : > { %5153 = vmatpush3.bf16.msra.mxu0 %v5510_v5  ;;  %5181 = vmatpush3.bf16.msra.mxu1 %v5511_v61 }
 0x49b   : > { %5154 = vmatprep.subr.bf16.mxu0 %v5804_v0  ;;  %5182 = vmatprep.subr.bf16.mxu1 %v5804_v0 }
 0x49d   : > { %5115 = vmatmul.mubr.bf16.gmra.mrb[112].mxu0 %v3189_v52  ;;  %5143 = vmatmul.mubr.bf16.gmra.mrb[112].mxu1 %v3324_v15  ;;  %v5539_v52 = vld [vmem:[#allocation11 + $0x38] sm:$0xff]  }
 0x49e   : > { %5155 = vmatpush3.bf16.msra.mxu0 %v5512_v54  ;;  %5183 = vmatpush3.bf16.msra.mxu1 %v5513_v21 }
 0x49f   : > { %5156 = vmatprep.subr.bf16.mxu0 %v5804_v0  ;;  %5184 = vmatprep.subr.bf16.mxu1 %v5804_v0 }
 0x4a0   : > { %5118 = vmatprep.mubr.msk.bf16.mxu0 %vm5805_vm0, %v5804_v0  ;;  %5146 = vmatprep.mubr.msk.bf16.mxu1 %vm5805_vm0, %v5804_v0 }
 0x4a2   : > { %5157 = vmatpush3.bf16.msra.mxu0 %v5514_v22  ;;  %5185 = vmatpush3.bf16.msra.mxu1 %v5515_v23 }
 0x4a3   : > { %5158 = vmatprep.subr.bf16.mxu0 %v5804_v0  ;;  %5186 = vmatprep.subr.bf16.mxu1 %v5804_v0 }
 0x4a5   : > { %5119 = vmatmul.mubr.bf16.gmra.mrb[116].mxu0 %v5806_v25  ;;  %5147 = vmatmul.mubr.bf16.gmra.mrb[116].mxu1 %v6408_v12  ;;  %v5522_v12 = vld [vmem:[#allocation8 + $0x278] sm:$0xff]  }
 0x4a6   : > { %5159 = vmatpush3.bf16.msra.mxu0 %v5516_v24  ;;  %5187 = vmatpush3.bf16.msra.mxu1 %v5517_v26 }
 0x4a7   : > { %5160 = vmatprep.subr.bf16.mxu0 %v5804_v0  ;;  %5188 = vmatprep.subr.bf16.mxu1 %v5804_v0 }
 0x4a8   : > { %5166 = vmatprep.mubr.msk.bf16.mxu0 %vm5805_vm0, %v5804_v0  ;;  %5194 = vmatprep.mubr.msk.bf16.mxu1 %vm5805_vm0, %v5804_v0 }
 0x4aa   : > { %5161 = vmatpush3.bf16.msra.mxu0 %v5518_v27  ;;  %5189 = vmatpush3.bf16.msra.mxu1 %v5519_v29 }
 0x4ab   : > { %5162 = vmatprep.subr.bf16.mxu0 %v5804_v0  ;;  %5190 = vmatprep.subr.bf16.mxu1 %v5804_v0 }
 0x4ae   : > { %5163 = vmatpush3.bf16.msra.mxu0 %v5520_v30  ;;  %5191 = vmatpush3.bf16.msra.mxu1 %v5521_v31 }
 0x4af   : > { %5164 = vmatprep.subr.bf16.mxu0 %v5804_v0  ;;  %5192 = vmatprep.subr.bf16.mxu1 %v5804_v0 }
 0x4b2   : > { %5165 = vmatpush3.bf16.msra.mxu0 %v5522_v12  ;;  %5193 = vmatpush3.bf16.msra.mxu1 %v5523_v34 }
 0x4b3   : > { %5206 = vmatprep.subr.bf16.mxu0 %v5804_v0  ;;  %5226 = vmatprep.subr.bf16.mxu1 %v5804_v0 }
 0x4b5   : > { %5167 = vmatmul.mubr.bf16.vlgmr.msra.gmra.mrb[120].mxu0 %v3458_v36  ;;  %5195 = vmatmul.mubr.bf16.vlgmr.msra.gmra.mrb[120].mxu1 %v5806_v25 }
 0x4b6   : > { %5170 = vmatprep.mubr.msk.bf16.mxu0 %vm5805_vm0, %v5804_v0  ;;  %5198 = vmatprep.mubr.msk.bf16.mxu1 %vm5805_vm0, %v5804_v0 }
 0x4b7   : > { %5207 = vmatpush3.bf16.msra.mxu0 %v5524_v41  ;;  %5227 = vmatpush3.bf16.msra.mxu1 %v5525_v42 }
 0x4b8   : > { %5208 = vmatprep.subr.bf16.mxu0 %v5804_v0  ;;  %5228 = vmatprep.subr.bf16.mxu1 %v5804_v0 }
 0x4bd   : > { %5171 = vmatmul.mubr.bf16.gmra.mrb[124].mxu0 %v3459_v6  ;;  %5199 = vmatmul.mubr.bf16.gmra.mrb[124].mxu1 %v6501_v50  ;;  %v3169_v50 = vpop.f32.mrb[96].mxu1 }
 0x4be   : > { %5174 = vmatprep.mubr.msk.bf16.mxu0 %vm5805_vm0, %v5804_v0  ;;  %5202 = vmatprep.mubr.msk.bf16.mxu1 %vm5805_vm0, %v5804_v0  ;;  %v5084_v39 = vpop.f32.mrb[97].mxu1 }
 0x4bf   : > { %v3171_v40 = vpop.f32.mrb[98].mxu1 }
 0x4c0   : > { %v5085_v28 = vpop.f32.mrb[99].mxu1 }
 0x4c5   : > { %5175 = vmatmul.mubr.bf16.gmra.mrb[128].mxu0 %v6456_v11  ;;  %5203 = vmatmul.mubr.bf16.gmra.mrb[128].mxu1 %v5806_v25  ;;  %v5526_v25 = vld [vmem:[#allocation11 + $0x48] sm:$0xff]  }
 0x4c6   : > { %5222 = vmatprep.mubr.msk.bf16.mxu0 %vm5805_vm0, %v5804_v0  ;;  %5242 = vmatprep.mubr.msk.bf16.mxu1 %vm5805_vm0, %v5804_v0  ;;  %v5527_v11 = vld [vmem:[#allocation11 + $0x8] sm:$0xff]  }
 0x4c7   : > { %5209 = vmatpush3.bf16.msra.mxu0 %v5526_v25  ;;  %5229 = vmatpush3.bf16.msra.mxu1 %v5527_v11 }
 0x4c8   : > { %5210 = vmatprep.subr.bf16.mxu0 %v5804_v0  ;;  %5230 = vmatprep.subr.bf16.mxu1 %v5804_v0 }
 0x4cb   : > { %5211 = vmatpush3.bf16.msra.mxu0 %v5528_v13  ;;  %5231 = vmatpush3.bf16.msra.mxu1 %v5529_v43 }
 0x4cc   : > { %5212 = vmatprep.subr.bf16.mxu0 %v5804_v0  ;;  %5232 = vmatprep.subr.bf16.mxu1 %v5804_v0 }
 0x4cf   : > { %5213 = vmatpush3.bf16.msra.mxu0 %v5530_v16  ;;  %5233 = vmatpush3.bf16.msra.mxu1 %v5531_v44  ;;  %v4296_v16 = vld [vmem:[%s6815_s4 + $0x1] ss:$0 sm:$0xff] }
 0x4d0   : > { %5214 = vmatprep.subr.bf16.mxu0 %v5804_v0  ;;  %5234 = vmatprep.subr.bf16.mxu1 %v5804_v0 }
 0x4d3   : > { %5215 = vmatpush3.bf16.msra.mxu0 %v5532_v46  ;;  %5235 = vmatpush3.bf16.msra.mxu1 %v5533_v47 }
 0x4d4   : > { %5216 = vmatprep.subr.bf16.mxu0 %v5804_v0  ;;  %5236 = vmatprep.subr.bf16.mxu1 %v5804_v0 }
 0x4d7   : > { %5217 = vmatpush3.bf16.msra.mxu0 %v5534_v48  ;;  %5237 = vmatpush3.bf16.msra.mxu1 %v5535_v49 }
 0x4d8   : > { %5218 = vmatprep.subr.bf16.mxu0 %v5804_v0  ;;  %5238 = vmatprep.subr.bf16.mxu1 %v5804_v0 }
 0x4db   : > { %5219 = vmatpush3.bf16.msra.mxu0 %v5536_v32  ;;  %5239 = vmatpush3.bf16.msra.mxu1 %v5537_v33 }
 0x4dc   : > { %5220 = vmatprep.subr.bf16.mxu0 %v5804_v0  ;;  %5240 = vmatprep.subr.bf16.mxu1 %v5804_v0 }
 0x4df   : > { %5221 = vmatpush3.bf16.msra.mxu0 %v5538_v51  ;;  %5241 = vmatpush3.bf16.msra.mxu1 %v5539_v52 }
 0x558   : > { %v3074_v53 = vpop.f32.mrb[100].mxu0  ;;  %v3175_v55 = vpop.f32.mrb[100].mxu1 }
 0x559   : > { %v3176_v56 = vadd.f32 %v3175_v55, %v3074_v53  ;;  %v5060_v57 = vpop.f32.mrb[101].mxu0  ;;  %v5088_v59 = vpop.f32.mrb[101].mxu1 }
 0x55a   : > { %v3077_v62 = vpop.f32.mrb[102].mxu0  ;;  %v3178_v63 = vpop.f32.mrb[102].mxu1 }
 0x55b   : > { %v3179_v1 = vadd.f32 %v3178_v63, %v3077_v62  ;;  %v5061_v2 = vpop.f32.mrb[103].mxu0  ;;  %v5089_v15 = vpop.f32.mrb[103].mxu1 }
 0x560   : > { %v3082_v60 = vpop.f32.mrb[104].mxu0  ;;  %v3183_v7 = vpop.f32.mrb[104].mxu1 }
 0x561   : > { %v5064_v58 = vpop.f32.mrb[105].mxu0  ;;  %v5092_v3 = vpop.f32.mrb[105].mxu1 }
 0x562   : > { %v3084_v4 = vpop.f32.mrb[106].mxu0  ;;  %v3185_v45 = vpop.f32.mrb[106].mxu1 }
 0x563   : > { %v5065_v6 = vpop.f32.mrb[107].mxu0  ;;  %v5093_v0 = vpop.f32.mrb[107].mxu1 }
 0x568   : > { %v3290_v8 = vpop.f32.mrb[108].mxu0  ;;  %v3425_v9 = vpop.f32.mrb[108].mxu1 }
 0x569   : > { %v5112_v10 = vpop.f32.mrb[109].mxu0  ;;  %v5140_v17 = vpop.f32.mrb[109].mxu1 }
 0x56a   : > { %v3292_v19 = vpop.f32.mrb[110].mxu0  ;;  %v3427_v20 = vpop.f32.mrb[110].mxu1 }
 0x56b   : > { %v5113_v5 = vpop.f32.mrb[111].mxu0  ;;  %v5141_v61 = vpop.f32.mrb[111].mxu1 }
 0x56c   : > { %v4298_v5 = vld [vmem:[%s6817_s6 + $0x1] ss:$0 sm:$0xff] }
 0x570   : > { %v3296_v54 = vpop.f32.mrb[112].mxu0  ;;  %v3431_v21 = vpop.f32.mrb[112].mxu1 }
 0x571   : > { %v3309_v22 = vadd.f32 %v3296_v54, %v3176_v56  ;;  %v5116_v23 = vpop.f32.mrb[113].mxu0  ;;  %v5144_v24 = vpop.f32.mrb[113].mxu1 }
 0x572   : > { %v3299_v26 = vpop.f32.mrb[114].mxu0  ;;  %v3434_v27 = vpop.f32.mrb[114].mxu1 }
 0x573   : > { %v3444_v29 = vadd.f32 %v3431_v21, %v3309_v22  ;;  %v3310_v30 = vadd.f32 %v3299_v26, %v3179_v1  ;;  %v5117_v31 = vpop.f32.mrb[115].mxu0  ;;  %v5145_v12 = vpop.f32.mrb[115].mxu1 }
 0x575   : > { %v3445_v34 = vadd.f32 %v3434_v27, %v3310_v30 }
 0x578   : > { %v3304_v35 = vpop.f32.mrb[116].mxu0  ;;  %v3439_v36 = vpop.f32.mrb[116].mxu1 }
 0x579   : > { %v5120_v14 = vpop.f32.mrb[117].mxu0  ;;  %v5148_v18 = vpop.f32.mrb[117].mxu1 }
 0x57a   : > { %v3306_v37 = vpop.f32.mrb[118].mxu0  ;;  %v3441_v50 = vpop.f32.mrb[118].mxu1 }
 0x57b   : > { %v5121_v38 = vpop.f32.mrb[119].mxu0  ;;  %v5149_v39 = vpop.f32.mrb[119].mxu1 }
 0x588   : > { %v3560_v40 = vpop.f32.mrb[120].mxu0  ;;  %v3714_v28 = vpop.f32.mrb[120].mxu1 }
 0x589   : > { %v5168_v41 = vpop.f32.mrb[121].mxu0  ;;  %v5196_v42 = vpop.f32.mrb[121].mxu1 }
 0x58a   : > { %v3562_v25 = vpop.f32.mrb[122].mxu0  ;;  %v3716_v11 = vpop.f32.mrb[122].mxu1 }
 0x58b   : > { %v5169_v13 = vpop.f32.mrb[123].mxu0  ;;  %v5197_v43 = vpop.f32.mrb[123].mxu1 }
 0x590   : > { %v3566_v44 = vpop.f32.mrb[124].mxu0  ;;  %v3720_v46 = vpop.f32.mrb[124].mxu1 }
 0x591   : > { %v3579_v47 = vadd.f32 %v3566_v44, %v3444_v29  ;;  %v5172_v48 = vpop.f32.mrb[125].mxu0  ;;  %v5200_v49 = vpop.f32.mrb[125].mxu1  ;;  %v3721_v22 = vadd.f32 %v4298_v5, %v3720_v46 }
 0x592   : > { %v3569_v32 = vpop.f32.mrb[126].mxu0  ;;  %v3723_v33 = vpop.f32.mrb[126].mxu1  ;;  %v4323_v48 = vld [vmem:[%s6819_s8] ss:$0 sm:$0xff] }
 0x593   : > { %v3587_v51 = vadd.f32 %v4296_v16, %v3579_v47  ;;  %v3580_v52 = vadd.f32 %v3569_v32, %v3445_v34  ;;  %v5173_v53 = vpop.f32.mrb[127].mxu0  ;;  %v5201_v55 = vpop.f32.mrb[127].mxu1  ;;  %v3724_v27 = vadd.f32 %v4298_v5, %v3723_v33 }
 0x595   : > { %v3589_v56 = vmul.f32 %v3587_v51, %v3587_v51  ;;  %v3588_v57 = vadd.f32 %v4296_v16, %v3580_v52 }
 0x597   : > { %v3591_v59 = vmul.f32 %v3589_v56, %v3587_v51  ;;  %v3590_v62 = vmul.f32 %v3588_v57, %v3588_v57 }
 0x598   : > { %v3574_v63 = vpop.f32.mrb[128].mxu0  ;;  %v3728_v1 = vpop.f32.mrb[128].mxu1 }
 0x599   : > { %v3593_v2 = vmul.f32 0.044715, %v3591_v59  ;;  %v3592_v15 = vmul.f32 %v3590_v62, %v3588_v57  ;;  %v5176_v60 = vpop.f32.mrb[129].mxu0  ;;  %v5204_v7 = vpop.f32.mrb[129].mxu1 }
 0x59a   : > { %v3576_v58 = vpop.f32.mrb[130].mxu0  ;;  %v3730_v3 = vpop.f32.mrb[130].mxu1 }
 0x59b   : > { %v3595_v4 = vadd.f32 %v3593_v2, %v3587_v51  ;;  %v3594_v45 = vmul.f32 0.044715, %v3592_v15  ;;  %v5177_v6 = vpop.f32.mrb[131].mxu0  ;;  %v5205_v0 = vpop.f32.mrb[131].mxu1 }
 0x59d   : > { %v3597_v8 = vmul.f32 0.7978846, %v3595_v4  ;;  %v3596_v9 = vadd.f32 %v3594_v45, %v3588_v57 }
 0x59f   : > { %5556 = vtanh.f32 %v3597_v8  ;;  %v3598_v10 = vmul.f32 0.7978846, %v3596_v9 }
 0x5a1   : > { %5558 = vtanh.f32 %v3598_v10 }
 0x5a9   : > { %v5557_v17 = vpop.eup %5556 }
 0x5aa   : > { %v3601_v19 = vadd.f32 1.0, %v5557_v17 }
 0x5ab   : > { %v5559_v20 = vpop.eup %5558 }
 0x5ac   : > { %v3603_v61 = vmul.f32 0.5, %v3601_v19  ;;  %v3602_v54 = vadd.f32 1.0, %v5559_v20 }
 0x5ae   : > { %v3605_v21 = vmul.f32 %v3603_v61, %v3587_v51  ;;  %v3604_v23 = vmul.f32 0.5, %v3602_v54 }
 0x5b0   : > { %v3733_v24 = vadd.f32 %v3721_v22, %v3605_v21  ;;  %v3606_v26 = vmul.f32 %v3604_v23, %v3588_v57 }
 0x5b2   : > { %v3735_v29 = vmul.f32 %v3733_v24, %v3733_v24  ;;  %v3734_v30 = vadd.f32 %v3724_v27, %v3606_v26 }
 0x5b4   : > { %v3737_v31 = vmul.f32 %v3735_v29, %v3733_v24  ;;  %v3736_v12 = vmul.f32 %v3734_v30, %v3734_v30 }
 0x5b6   : > { %v3739_v34 = vmul.f32 0.044715, %v3737_v31  ;;  %v3738_v35 = vmul.f32 %v3736_v12, %v3734_v30 }
 0x5b8   : > { %v3741_v36 = vadd.f32 %v3739_v34, %v3733_v24  ;;  %v3740_v14 = vmul.f32 0.044715, %v3738_v35 }
 0x5ba   : > { %v3743_v18 = vmul.f32 0.7978846, %v3741_v36  ;;  %v3742_v37 = vadd.f32 %v3740_v14, %v3734_v30 }
 0x5bc   : > { %5560 = vtanh.f32 %v3743_v18  ;;  %v3744_v50 = vmul.f32 0.7978846, %v3742_v37 }
 0x5be   : > { %5562 = vtanh.f32 %v3744_v50 }
 0x5c6   : > { %v5561_v38 = vpop.eup %5560 }
 0x5c7   : > { %v3747_v39 = vadd.f32 1.0, %v5561_v38 }
 0x5c8   : > { %v5563_v40 = vpop.eup %5562 }
 0x5c9   : > { %v3749_v28 = vmul.f32 0.5, %v3747_v39  ;;  %v3748_v41 = vadd.f32 1.0, %v5563_v40 }
 0x5cb   : > { %v3751_v42 = vmul.f32 %v3749_v28, %v3733_v24  ;;  %v3750_v25 = vmul.f32 0.5, %v3748_v41 }
 0x5cd   : > { %3755 = vst [vmem:[#allocation3] sm:$0xff] %v3751_v42  ;;  %v3752_v11 = vmul.f32 %v3750_v25, %v3734_v30 }
 0x5cf   : > { %3756 = vst [vmem:[#allocation3 + $0x8] sm:$0xff] %v3752_v11 }
 0x5d6   : > { %v3759_v13 = vld [vmem:[#allocation3 + $0x1] ss:$2 sm:$0xff]  ;;  %v3757_v43 = vld [vmem:[#allocation3] ss:$2 sm:$0xff] }
 0x5d7   : > { %v3777_v16 = vpack.c.bf16 %v3759_v13, %v3759_v13  ;;  %v3760_v44 = vpack.c.bf16 %v3757_v43, %v3757_v43 }
 0x5d9   : > { %5223 = vmatmul.mubr.bf16.vlgmr.msra.gmra.mrb[132].mxu0 %v3777_v16  ;;  %5243 = vmatmul.mubr.bf16.vlgmr.msra.gmra.mrb[132].mxu1 %v3760_v44 }
 0x6ac   : > { %v3877_v46 = vpop.f32.mrb[132].mxu0  ;;  %v3965_v47 = vpop.f32.mrb[132].mxu1 }
 0x6ad   : > { %v3966_v49 = vadd.f32 %v3965_v47, %v3877_v46  ;;  %v5224_v32 = vpop.f32.mrb[133].mxu0  ;;  %v5244_v33 = vpop.f32.mrb[133].mxu1 }
 0x6ae   : > { %v3880_v51 = vpop.f32.mrb[134].mxu0  ;;  %v3968_v52 = vpop.f32.mrb[134].mxu1 }
 0x6af   : > { %v3978_v53 = vadd.f32 %v4323_v48, %v3966_v49  ;;  %v5225_v55 = vpop.f32.mrb[135].mxu0  ;;  %v5245_v56 = vpop.f32.mrb[135].mxu1 }
 0x6b1   : > { %3979 = vst [vmem:[%s357_s13] sm:$0xff] %v3978_v53 }
 0x6b2   : > { %5716 = shalt.err (!%p5713_p2)
}
 0x6b3   : > { %s5717_s23 = scalar_lea.hbm %s6760_s29, 128  ;;  %s5721_s3 = scalar_lea.hbm %s6820_s9, 256 }
 0x6b4   : > { %p5718_p3 = scmp.ne.s32.totalorder %s6760_s29, %s5717_s23  ;;  %p5722_p7 = scmp.lt.u32.totalorder %s6760_s29, %s6820_s9 }
 0x6b5   : > { %p5723_p9 = scmp.lt.u32.totalorder %s5721_s3, %s5717_s23  ;;  %p5725_p4 = scmp.lt.u32.totalorder %s5717_s23, %s6760_s29 }
 0x6b6   : > { %p5719_p5 = pnand %p5718_p3, %p6849_p1 }
 0x6b7   : > { %p5724_p12 = por %p5723_p9, %p5722_p7 }
 0x6b8   : > { %p5720_p6 = pneg %p5719_p5 }
 0x6b9   : > { %p5726_p13 = por %p5725_p4, %p5724_p12 }
 0x6bb   : > { %p5727_p8 = pnand %p5726_p13, %p5720_p6 }
 0x6bd   : > { %5730 = shalt.err (!%p5727_p8)
}
 0x6be   : > { %5262 = dma.vmem_to_hbm [thread:$0]  (%p6849_p1), %s6762_s28, 128, %s6760_s29, %s3981_s12  }
 0x6bf PF: > { %s6850_s21 = sld [smem:[#allocation26_spill]]  ;;  %s6851_s24 = sld [smem:[#allocation23_spill]] }
 0x6c0   : > { %s6852_s22 = sld [smem:[#allocation28_spill]] }
 0x6c5   : > { %p5289_p10 = scmp.ge.s32.totalorder %s6850_s21, 2  ;;  %s4007_s15 = sand.u32 1, %s6851_s24  }
 0x6c6   : > { %p6853_p11 = scmp.ne.s32.totalorder %s6852_s22, 0  ;;  %s4008_s20 = scalar_lea.sflag [#allocation7], %s4007_s15 }
 0x6c8   : > { %p5278_p0 = pnand %p5289_p10, %p6853_p11 }
 0x6ca   : > { %5770 = dma.done.wait (!%p5278_p0), %s4008_s20, 128  }
 0x6cb   : > { %5772 = vsyncadd (!%p5278_p0), %s4008_s20, 4294967168  ;;  %s25_s14 = sadd.s32 1, %s6850_s21   ;;  %s6854_s26 = sld [smem:[#allocation24_spill]] }
 0x6cc   : > { %p22_p2 = scmp.ge.s32.totalorder %s25_s14, 4   ;;  %s6855_s11 = sld [smem:[#allocation29_spill]] }
 0x6cd   : > { %s6856_s12 = sld [smem:[#allocation25_spill]]  ;;  %s6857_s13 = sld [smem:[#allocation27_spill]] }
 0x6ce   : > { %s6858_s30 = smov %s5779_s10  ;;  %24 = sbr.rel (!%p22_p2) target bundleno = 9 (0x9), region = 130 }
 0x6d1   : > { %s6859_s10 = smov %s6854_s26 }
 0x6d5   :  { %4013 = vsyncpa [#allocation6], 1 }
 0x6d6   :  { %4015 = vsyncpa [#allocation6 + $0x1], 1 }
 0x6d7   :  { %4016 = vsyncpa [#allocation9], 1 }
 0x6d8   :  { %4017 = vsyncpa [#allocation12], 1 }
 0x6d9   :  { %4018 = vsyncpa [#allocation7], 1 }
 0x6da   :  { %4020 = vsyncpa [#allocation7 + $0x1], 1 }
 0x6db   :  { %4021 = vsyncmov [#allocation4] }
 0x6de   :  { %s4022_s19 = vpop.sfrf %4021 }
 0x6df   :  { %p4328_p1 = scmp.ne.s32.totalorder %s4022_s19, 0 }
 0x6e1   :  { %4026 = shalt.err (%p4328_p1)  }

</bundles_post_ra>
